<compile_context>
chip_gen: v6e
topology: v6e:2x2x1
jax: 0.10.0
libtpu: 0.0.40
codegen_flags: <defaults>
</compile_context>

<pallas_src>
import jax
import jax.numpy as jnp
from jax.experimental import pallas as pl
from jax.experimental.pallas import tpu as pltpu


def _make_fused_kernel(H, W, Cin):
    """Builds the fused per-batch-element kernel (all shapes static via closure)."""
    Hp = H + 2
    W1, W2, W3 = W // 2, W // 4, W // 8
    Wp1, Wp2, Wp3 = W + 2, W1 + 2, W2 + 2
    S = H * W3                       # spatial positions after the three pools
    C = 128                          # final channel count

    def conv_bn_relu(fp_ref, w_ref, s_ref, b_ref, wp_in, y_ref):
        """3x3 conv on the flattened zero-padded input + folded BN + ReLU.

        fp_ref: (Hp*wp_in + 8, Cin_l)  flat padded input (+ zero tail rows)
        w_ref:  (9, Cin_l, Cout)       tap k = dy*3 + dx
        y_ref:  (H*wp_in, Cout)        outputs for flat positions t = h*wp_in + w
                (columns w >= wp_in-2 are don't-care; never read by the pooling)
        """
        M = H * wp_in
        cout = w_ref.shape[-1]
        acc = jnp.zeros((M, cout), jnp.float32)
        for k in range(9):
            dy, dx = divmod(k, 3)
            lhs = fp_ref[pl.ds(dy * wp_in + dx, M), :]          # contiguous shifted slice
            acc = acc + jnp.dot(lhs, w_ref[k], preferred_element_type=jnp.float32)
        # BN scale/bias loaded once and applied in a single vectorized op.
        y_ref[...] = jnp.maximum(acc * s_ref[...] + b_ref[...], 0.0)

    def maxpool_1x2(y_ref, wp_in, w_valid, dst_ref, dst_stride, dst_off):
        """MaxPool(1,2): per row, max of even/odd columns via stride-2 ref loads,
        written directly into the next layer's (flattened, padded) layout."""
        wo = w_valid // 2
        for h in range(H):
            ev = y_ref[pl.ds(h * wp_in, wo, stride=2), :]
            od = y_ref[pl.ds(h * wp_in + 1, wo, stride=2), :]
            dst_ref[pl.ds(h * dst_stride + dst_off, wo), :] = jnp.maximum(ev, od)

    def kernel(fp1_ref, w1_ref, s1_ref, b1_ref, w2_ref, s2_ref, b2_ref,
               w3_ref, s3_ref, b3_ref,
               wsp_ref, bsp_ref, wca1_ref, bca1_ref, wca2_ref, bca2_ref,
               wfc1_ref, bfc1_ref, wfc2_ref, bfc2_ref,
               o_ref,
               fp2_ref, fp3_ref, y1_ref, y2_ref, y3_ref, feat_ref, flat_ref):
        # --- block 1: conv + BN + ReLU + pool ---
        conv_bn_relu(fp1_ref, w1_ref, s1_ref, b1_ref, Wp1, y1_ref)
        fp2_ref[...] = jnp.zeros_like(fp2_ref)                  # zero halo for conv2
        maxpool_1x2(y1_ref, Wp1, W, fp2_ref, Wp2, Wp2 + 1)
        # --- block 2 ---
        conv_bn_relu(fp2_ref, w2_ref, s2_ref, b2_ref, Wp2, y2_ref)
        fp3_ref[...] = jnp.zeros_like(fp3_ref)                  # zero halo for conv3
        maxpool_1x2(y2_ref, Wp2, W1, fp3_ref, Wp3, Wp3 + 1)
        # --- block 3 ---
        conv_bn_relu(fp3_ref, w3_ref, s3_ref, b3_ref, Wp3, y3_ref)
        maxpool_1x2(y3_ref, Wp3, W2, feat_ref, W3, 0)           # (S, C) features

        xf = feat_ref[...]                                      # (S, C)
        # Spatial attention: 1x1 conv C->1 + sigmoid, multiply.
        sp = jax.nn.sigmoid(jnp.sum(xf * wsp_ref[...], axis=-1, keepdims=True)
                            + bsp_ref[...])
        xf = xf * sp
        # Channel attention: global avg pool -> squeeze/excite -> sigmoid, multiply.
        m = jnp.mean(xf, axis=0, keepdims=True)                 # (1, C)
        h1 = jnp.maximum(jnp.dot(m, wca1_ref[...],
                                 preferred_element_type=jnp.float32) + bca1_ref[...], 0.0)
        att = jax.nn.sigmoid(jnp.dot(h1, wca2_ref[...],
                                     preferred_element_type=jnp.float32) + bca2_ref[...])
        feat_ref[...] = xf * att

        # Flatten (HWC order; these synthetic fc1 weights are defined in that order —
        # PyTorch flattens CHW, a fixed column permutation) and run fc1 as ONE matmul.
        for s in range(S):
            flat_ref[:, pl.ds(s * C, C)] = feat_ref[pl.ds(s, 1), :]
        f = jnp.maximum(jnp.dot(flat_ref[...], wfc1_ref[...],
                                preferred_element_type=jnp.float32) + bfc1_ref[...], 0.0)
        # TODO(synk): Dropout(p=0.9) is identity at inference; training-mode dropout not modeled.
        out = jax.nn.sigmoid(jnp.dot(f, wfc2_ref[...],
                                     preferred_element_type=jnp.float32) + bfc2_ref[...])
        o_ref[...] = out                                        # (1, 1)

    return kernel


def _full_spec(shape):
    """Whole-array block, replicated across the batch grid."""
    return pl.BlockSpec(shape, lambda b: (0,) * len(shape))


@jax.jit
def eeg_attention_cnn_forward(x_nchw, conv_params, head_params):
    B, Cin, H, W = x_nchw.shape
    Hp = H + 2
    W1, W2, W3 = W // 2, W // 4, W // 8
    Wp1, Wp2, Wp3 = W + 2, W1 + 2, W2 + 2
    S, C = H * W3, 128

    # NCHW -> NHWC, zero-pad the 3x3 halo once, flatten (h, w) row-major and append
    # a few zero tail rows so every shifted tap slice stays in bounds.
    x = jnp.transpose(x_nchw, (0, 2, 3, 1)).astype(jnp.float32)
    xp = jnp.pad(x, ((0, 0), (1, 1), (1, 1), (0, 0)))
    fp1 = jnp.pad(xp.reshape(B, Hp * Wp1, Cin), ((0, 0), (0, 8), (0, 0)))

    (w1, s1, b1), (w2, s2, b2), (w3, s3, b3) = conv_params
    hp = head_params
    kernel = _make_fused_kernel(H, W, Cin)

    out = pl.pallas_call(
        kernel,
        out_shape=jax.ShapeDtypeStruct((B, 1, 1), jnp.float32),
        grid=(B,),
        in_specs=[
            pl.BlockSpec((None, Hp * Wp1 + 8, Cin), lambda b: (b, 0, 0)),
            _full_spec((9, Cin, 32)), _full_spec((1, 32)), _full_spec((1, 32)),
            _full_spec((9, 32, 64)), _full_spec((1, 64)), _full_spec((1, 64)),
            _full_spec((9, 64, 128)), _full_spec((1, 128)), _full_spec((1, 128)),
            _full_spec((1, C)), _full_spec((1, 1)),
            _full_spec((C, C // 8)), _full_spec((1, C // 8)),
            _full_spec((C // 8, C)), _full_spec((1, C)),
            _full_spec((S * C, 256)), _full_spec((1, 256)),
            _full_spec((256, 1)), _full_spec((1, 1)),
        ],
        out_specs=pl.BlockSpec((None, 1, 1), lambda b: (b, 0, 0)),   # per-b block
        scratch_shapes=[
            pltpu.VMEM((Hp * Wp2 + 8, 32), jnp.float32),   # flat padded input of conv2
            pltpu.VMEM((Hp * Wp3 + 8, 64), jnp.float32),   # flat padded input of conv3
            pltpu.VMEM((H * Wp1, 32), jnp.float32),        # conv1 pre-pool activations
            pltpu.VMEM((H * Wp2, 64), jnp.float32),        # conv2 pre-pool activations
            pltpu.VMEM((H * Wp3, 128), jnp.float32),       # conv3 pre-pool activations
            pltpu.VMEM((S, C), jnp.float32),               # pooled / attended features
            pltpu.VMEM((1, S * C), jnp.float32),           # flattened fc1 input
        ],
        compiler_params=pltpu.CompilerParams(dimension_semantics=("parallel",)),
    )(fp1, w1, s1, b1, w2, s2, b2, w3, s3, b3,
      hp["wsp"], hp["bsp"], hp["wca1"], hp["bca1"], hp["wca2"], hp["bca2"],
      hp["wfc1"], hp["bfc1"], hp["wfc2"], hp["bfc2"])
    return out.reshape(B, 1)


def init_params(key, cin, h, w):
    """Deterministic synthetic parameters matching the module's layer shapes.
    BatchNorm is folded in eval mode with fresh running stats (mean=0, var=1)."""
    eps = 1e-5
    keys = jax.random.split(key, 24)

    def nrm(k, shape, s=0.1):
        return s * jax.random.normal(k, shape, jnp.float32)

    conv_params = []
    c = cin
    idx = 0
    for cout in (32, 64, 128):
        wconv = nrm(keys[idx], (3, 3, c, cout)); idx += 1
        bconv = nrm(keys[idx], (cout,)); idx += 1
        gamma = 1.0 + nrm(keys[idx], (cout,)); idx += 1
        beta = nrm(keys[idx], (cout,)); idx += 1
        scale = gamma / jnp.sqrt(1.0 + eps)          # BN eval fold, running var = 1
        bias = beta + scale * bconv                  # BN eval fold, running mean = 0
        conv_params.append((wconv.reshape(9, c, cout),
                            scale.reshape(1, cout), bias.reshape(1, cout)))
        c = cout

    C, Cr = 128, 16
    S = h * (w // 8)                 # three (1,2) max-pools along the width axis
    head = {
        "wsp":  nrm(keys[idx + 0], (1, C)),
        "bsp":  nrm(keys[idx + 1], (1, 1)),
        "wca1": nrm(keys[idx + 2], (C, Cr)),
        "bca1": nrm(keys[idx + 3], (1, Cr)),
        "wca2": nrm(keys[idx + 4], (Cr, C)),
        "bca2": nrm(keys[idx + 5], (1, C)),
        "wfc1": nrm(keys[idx + 6], (S * C, 256), 0.02),   # fc1: flat(S*C) -> 256
        "bfc1": nrm(keys[idx + 7], (1, 256)),
        "wfc2": nrm(keys[idx + 8], (256, 1)),             # fc2: 256 -> 1
        "bfc2": nrm(keys[idx + 9], (1, 1)),
    }
    return conv_params, head


if __name__ == "__main__":
    B, Cin, H, W = 2, 4, 8, 16      # small shapes; num_channels=4 instead of 21
    assert W % 8 == 0
    key = jax.random.PRNGKey(0)
    kx, kp = jax.random.split(key)
    x = jax.random.normal(kx, (B, Cin, H, W), jnp.float32)   # PyTorch-style NCHW input
    conv_params, head_params = init_params(kp, Cin, H, W)
    out = eeg_attention_cnn_forward(x, conv_params, head_params)
    out = jax.block_until_ready(out)
    assert out.shape == (B, 1) and bool(jnp.all(jnp.isfinite(out)))
    print("KERNEL_OK")
</pallas_src>

<mosaic_0001>
module attributes {stable_mosaic.version = 11 : i64} {
  func.func @kernel(%arg0: i32, %arg1: memref<1x188x4xf32, #tpu.memory_space<vmem>>, %arg2: memref<9x4x32xf32, #tpu.memory_space<vmem>>, %arg3: memref<1x32xf32, #tpu.memory_space<vmem>>, %arg4: memref<1x32xf32, #tpu.memory_space<vmem>>, %arg5: memref<9x32x64xf32, #tpu.memory_space<vmem>>, %arg6: memref<1x64xf32, #tpu.memory_space<vmem>>, %arg7: memref<1x64xf32, #tpu.memory_space<vmem>>, %arg8: memref<9x64x128xf32, #tpu.memory_space<vmem>>, %arg9: memref<1x128xf32, #tpu.memory_space<vmem>>, %arg10: memref<1x128xf32, #tpu.memory_space<vmem>>, %arg11: memref<1x128xf32, #tpu.memory_space<vmem>>, %arg12: memref<1x1xf32, #tpu.memory_space<vmem>>, %arg13: memref<128x16xf32, #tpu.memory_space<vmem>>, %arg14: memref<1x16xf32, #tpu.memory_space<vmem>>, %arg15: memref<16x128xf32, #tpu.memory_space<vmem>>, %arg16: memref<1x128xf32, #tpu.memory_space<vmem>>, %arg17: memref<2048x256xf32, #tpu.memory_space<vmem>>, %arg18: memref<1x256xf32, #tpu.memory_space<vmem>>, %arg19: memref<256x1xf32, #tpu.memory_space<vmem>>, %arg20: memref<1x1xf32, #tpu.memory_space<vmem>>, %arg21: memref<1x1x1xf32, #tpu.memory_space<vmem>>, %arg22: memref<108x32xf32, #tpu.memory_space<vmem>>, %arg23: memref<68x64xf32, #tpu.memory_space<vmem>>, %arg24: memref<144x32xf32, #tpu.memory_space<vmem>>, %arg25: memref<80x64xf32, #tpu.memory_space<vmem>>, %arg26: memref<48x128xf32, #tpu.memory_space<vmem>>, %arg27: memref<16x128xf32, #tpu.memory_space<vmem>>, %arg28: memref<1x2048xf32, #tpu.memory_space<vmem>>) attributes {dimension_semantics = [#tpu.dimension_semantics<parallel>], iteration_bounds = array<i64: 2>, scalar_prefetch = 0 : i64, scratch_operands = 7 : i64, tpu.core_type = #tpu.core_type<tc>, window_params = [{transform_indices = @transform_0, window_bounds = array<i64: 1, 188, 4>}, {pipeline_mode = #tpu.pipeline_mode<synchronous>, transform_indices = @transform_1, window_bounds = array<i64: 9, 4, 32>}, {pipeline_mode = #tpu.pipeline_mode<synchronous>, transform_indices = @transform_2, window_bounds = array<i64: 1, 32>}, {pipeline_mode = #tpu.pipeline_mode<synchronous>, transform_indices = @transform_3, window_bounds = array<i64: 1, 32>}, {pipeline_mode = #tpu.pipeline_mode<synchronous>, transform_indices = @transform_4, window_bounds = array<i64: 9, 32, 64>}, {pipeline_mode = #tpu.pipeline_mode<synchronous>, transform_indices = @transform_5, window_bounds = array<i64: 1, 64>}, {pipeline_mode = #tpu.pipeline_mode<synchronous>, transform_indices = @transform_6, window_bounds = array<i64: 1, 64>}, {pipeline_mode = #tpu.pipeline_mode<synchronous>, transform_indices = @transform_7, window_bounds = array<i64: 9, 64, 128>}, {pipeline_mode = #tpu.pipeline_mode<synchronous>, transform_indices = @transform_8, window_bounds = array<i64: 1, 128>}, {pipeline_mode = #tpu.pipeline_mode<synchronous>, transform_indices = @transform_9, window_bounds = array<i64: 1, 128>}, {pipeline_mode = #tpu.pipeline_mode<synchronous>, transform_indices = @transform_10, window_bounds = array<i64: 1, 128>}, {pipeline_mode = #tpu.pipeline_mode<synchronous>, transform_indices = @transform_11, window_bounds = array<i64: 1, 1>}, {pipeline_mode = #tpu.pipeline_mode<synchronous>, transform_indices = @transform_12, window_bounds = array<i64: 128, 16>}, {pipeline_mode = #tpu.pipeline_mode<synchronous>, transform_indices = @transform_13, window_bounds = array<i64: 1, 16>}, {pipeline_mode = #tpu.pipeline_mode<synchronous>, transform_indices = @transform_14, window_bounds = array<i64: 16, 128>}, {pipeline_mode = #tpu.pipeline_mode<synchronous>, transform_indices = @transform_15, window_bounds = array<i64: 1, 128>}, {pipeline_mode = #tpu.pipeline_mode<synchronous>, transform_indices = @transform_16, window_bounds = array<i64: 2048, 256>}, {pipeline_mode = #tpu.pipeline_mode<synchronous>, transform_indices = @transform_17, window_bounds = array<i64: 1, 256>}, {pipeline_mode = #tpu.pipeline_mode<synchronous>, transform_indices = @transform_18, window_bounds = array<i64: 256, 1>}, {pipeline_mode = #tpu.pipeline_mode<synchronous>, transform_indices = @transform_19, window_bounds = array<i64: 1, 1>}, {transform_indices = @transform_20, window_bounds = array<i64: 1, 1, 1>}]} {
    %cst = arith.constant 0.000000e+00 : f32
    %0 = vector.broadcast %cst : f32 to vector<144x32xf32>
    %c0 = arith.constant 0 : index
    %c0_0 = arith.constant 0 : index
    %c0_1 = arith.constant 0 : index
    %1 = vector.load %arg1[%c0, %c0_0, %c0_1] : memref<1x188x4xf32, #tpu.memory_space<vmem>>, vector<1x144x4xf32>
    %2 = vector.shape_cast %1 : vector<1x144x4xf32> to vector<144x4xf32>
    %c0_2 = arith.constant 0 : index
    %c0_3 = arith.constant 0 : index
    %c0_4 = arith.constant 0 : index
    %3 = vector.load %arg2[%c0_2, %c0_3, %c0_4] : memref<9x4x32xf32, #tpu.memory_space<vmem>>, vector<1x4x32xf32>
    %4 = vector.shape_cast %3 : vector<1x4x32xf32> to vector<4x32xf32>
    %cst_5 = arith.constant dense<0.000000e+00> : vector<144x32xf32>
    %5 = tpu.matmul %2, %4, %cst_5 {dimension_numbers = #tpu.dot_dimension_numbers<[1], [0], [0], [1], [0, 0, 1, 1], [], []>} : vector<144x4xf32>, vector<4x32xf32>, vector<144x32xf32> -> vector<144x32xf32>
    %6 = arith.addf %0, %5 : vector<144x32xf32>
    %c0_6 = arith.constant 0 : index
    %c1 = arith.constant 1 : index
    %c0_7 = arith.constant 0 : index
    %7 = vector.load %arg1[%c0_6, %c1, %c0_7] : memref<1x188x4xf32, #tpu.memory_space<vmem>>, vector<1x144x4xf32>
    %8 = vector.shape_cast %7 : vector<1x144x4xf32> to vector<144x4xf32>
    %c1_8 = arith.constant 1 : index
    %c0_9 = arith.constant 0 : index
    %c0_10 = arith.constant 0 : index
    %9 = vector.load %arg2[%c1_8, %c0_9, %c0_10] : memref<9x4x32xf32, #tpu.memory_space<vmem>>, vector<1x4x32xf32>
    %10 = vector.shape_cast %9 : vector<1x4x32xf32> to vector<4x32xf32>
    %cst_11 = arith.constant dense<0.000000e+00> : vector<144x32xf32>
    %11 = tpu.matmul %8, %10, %cst_11 {dimension_numbers = #tpu.dot_dimension_numbers<[1], [0], [0], [1], [0, 0, 1, 1], [], []>} : vector<144x4xf32>, vector<4x32xf32>, vector<144x32xf32> -> vector<144x32xf32>
    %12 = arith.addf %6, %11 : vector<144x32xf32>
    %c0_12 = arith.constant 0 : index
    %c2 = arith.constant 2 : index
    %c0_13 = arith.constant 0 : index
    %13 = vector.load %arg1[%c0_12, %c2, %c0_13] : memref<1x188x4xf32, #tpu.memory_space<vmem>>, vector<1x144x4xf32>
    %14 = vector.shape_cast %13 : vector<1x144x4xf32> to vector<144x4xf32>
    %c2_14 = arith.constant 2 : index
    %c0_15 = arith.constant 0 : index
    %c0_16 = arith.constant 0 : index
    %15 = vector.load %arg2[%c2_14, %c0_15, %c0_16] : memref<9x4x32xf32, #tpu.memory_space<vmem>>, vector<1x4x32xf32>
    %16 = vector.shape_cast %15 : vector<1x4x32xf32> to vector<4x32xf32>
    %cst_17 = arith.constant dense<0.000000e+00> : vector<144x32xf32>
    %17 = tpu.matmul %14, %16, %cst_17 {dimension_numbers = #tpu.dot_dimension_numbers<[1], [0], [0], [1], [0, 0, 1, 1], [], []>} : vector<144x4xf32>, vector<4x32xf32>, vector<144x32xf32> -> vector<144x32xf32>
    %18 = arith.addf %12, %17 : vector<144x32xf32>
    %c0_18 = arith.constant 0 : index
    %c18 = arith.constant 18 : index
    %c0_19 = arith.constant 0 : index
    %19 = vector.load %arg1[%c0_18, %c18, %c0_19] : memref<1x188x4xf32, #tpu.memory_space<vmem>>, vector<1x144x4xf32>
    %20 = vector.shape_cast %19 : vector<1x144x4xf32> to vector<144x4xf32>
    %c3 = arith.constant 3 : index
    %c0_20 = arith.constant 0 : index
    %c0_21 = arith.constant 0 : index
    %21 = vector.load %arg2[%c3, %c0_20, %c0_21] : memref<9x4x32xf32, #tpu.memory_space<vmem>>, vector<1x4x32xf32>
    %22 = vector.shape_cast %21 : vector<1x4x32xf32> to vector<4x32xf32>
    %cst_22 = arith.constant dense<0.000000e+00> : vector<144x32xf32>
    %23 = tpu.matmul %20, %22, %cst_22 {dimension_numbers = #tpu.dot_dimension_numbers<[1], [0], [0], [1], [0, 0, 1, 1], [], []>} : vector<144x4xf32>, vector<4x32xf32>, vector<144x32xf32> -> vector<144x32xf32>
    %24 = arith.addf %18, %23 : vector<144x32xf32>
    %c0_23 = arith.constant 0 : index
    %c19 = arith.constant 19 : index
    %c0_24 = arith.constant 0 : index
    %25 = vector.load %arg1[%c0_23, %c19, %c0_24] : memref<1x188x4xf32, #tpu.memory_space<vmem>>, vector<1x144x4xf32>
    %26 = vector.shape_cast %25 : vector<1x144x4xf32> to vector<144x4xf32>
    %c4 = arith.constant 4 : index
    %c0_25 = arith.constant 0 : index
    %c0_26 = arith.constant 0 : index
    %27 = vector.load %arg2[%c4, %c0_25, %c0_26] : memref<9x4x32xf32, #tpu.memory_space<vmem>>, vector<1x4x32xf32>
    %28 = vector.shape_cast %27 : vector<1x4x32xf32> to vector<4x32xf32>
    %cst_27 = arith.constant dense<0.000000e+00> : vector<144x32xf32>
    %29 = tpu.matmul %26, %28, %cst_27 {dimension_numbers = #tpu.dot_dimension_numbers<[1], [0], [0], [1], [0, 0, 1, 1], [], []>} : vector<144x4xf32>, vector<4x32xf32>, vector<144x32xf32> -> vector<144x32xf32>
    %30 = arith.addf %24, %29 : vector<144x32xf32>
    %c0_28 = arith.constant 0 : index
    %c20 = arith.constant 20 : index
    %c0_29 = arith.constant 0 : index
    %31 = vector.load %arg1[%c0_28, %c20, %c0_29] : memref<1x188x4xf32, #tpu.memory_space<vmem>>, vector<1x144x4xf32>
    %32 = vector.shape_cast %31 : vector<1x144x4xf32> to vector<144x4xf32>
    %c5 = arith.constant 5 : index
    %c0_30 = arith.constant 0 : index
    %c0_31 = arith.constant 0 : index
    %33 = vector.load %arg2[%c5, %c0_30, %c0_31] : memref<9x4x32xf32, #tpu.memory_space<vmem>>, vector<1x4x32xf32>
    %34 = vector.shape_cast %33 : vector<1x4x32xf32> to vector<4x32xf32>
    %cst_32 = arith.constant dense<0.000000e+00> : vector<144x32xf32>
    %35 = tpu.matmul %32, %34, %cst_32 {dimension_numbers = #tpu.dot_dimension_numbers<[1], [0], [0], [1], [0, 0, 1, 1], [], []>} : vector<144x4xf32>, vector<4x32xf32>, vector<144x32xf32> -> vector<144x32xf32>
    %36 = arith.addf %30, %35 : vector<144x32xf32>
    %c0_33 = arith.constant 0 : index
    %c36 = arith.constant 36 : index
    %c0_34 = arith.constant 0 : index
    %37 = vector.load %arg1[%c0_33, %c36, %c0_34] : memref<1x188x4xf32, #tpu.memory_space<vmem>>, vector<1x144x4xf32>
    %38 = vector.shape_cast %37 : vector<1x144x4xf32> to vector<144x4xf32>
    %c6 = arith.constant 6 : index
    %c0_35 = arith.constant 0 : index
    %c0_36 = arith.constant 0 : index
    %39 = vector.load %arg2[%c6, %c0_35, %c0_36] : memref<9x4x32xf32, #tpu.memory_space<vmem>>, vector<1x4x32xf32>
    %40 = vector.shape_cast %39 : vector<1x4x32xf32> to vector<4x32xf32>
    %cst_37 = arith.constant dense<0.000000e+00> : vector<144x32xf32>
    %41 = tpu.matmul %38, %40, %cst_37 {dimension_numbers = #tpu.dot_dimension_numbers<[1], [0], [0], [1], [0, 0, 1, 1], [], []>} : vector<144x4xf32>, vector<4x32xf32>, vector<144x32xf32> -> vector<144x32xf32>
    %42 = arith.addf %36, %41 : vector<144x32xf32>
    %c0_38 = arith.constant 0 : index
    %c37 = arith.constant 37 : index
    %c0_39 = arith.constant 0 : index
    %43 = vector.load %arg1[%c0_38, %c37, %c0_39] : memref<1x188x4xf32, #tpu.memory_space<vmem>>, vector<1x144x4xf32>
    %44 = vector.shape_cast %43 : vector<1x144x4xf32> to vector<144x4xf32>
    %c7 = arith.constant 7 : index
    %c0_40 = arith.constant 0 : index
    %c0_41 = arith.constant 0 : index
    %45 = vector.load %arg2[%c7, %c0_40, %c0_41] : memref<9x4x32xf32, #tpu.memory_space<vmem>>, vector<1x4x32xf32>
    %46 = vector.shape_cast %45 : vector<1x4x32xf32> to vector<4x32xf32>
    %cst_42 = arith.constant dense<0.000000e+00> : vector<144x32xf32>
    %47 = tpu.matmul %44, %46, %cst_42 {dimension_numbers = #tpu.dot_dimension_numbers<[1], [0], [0], [1], [0, 0, 1, 1], [], []>} : vector<144x4xf32>, vector<4x32xf32>, vector<144x32xf32> -> vector<144x32xf32>
    %48 = arith.addf %42, %47 : vector<144x32xf32>
    %c0_43 = arith.constant 0 : index
    %c38 = arith.constant 38 : index
    %c0_44 = arith.constant 0 : index
    %49 = vector.load %arg1[%c0_43, %c38, %c0_44] : memref<1x188x4xf32, #tpu.memory_space<vmem>>, vector<1x144x4xf32>
    %50 = vector.shape_cast %49 : vector<1x144x4xf32> to vector<144x4xf32>
    %c8 = arith.constant 8 : index
    %c0_45 = arith.constant 0 : index
    %c0_46 = arith.constant 0 : index
    %51 = vector.load %arg2[%c8, %c0_45, %c0_46] : memref<9x4x32xf32, #tpu.memory_space<vmem>>, vector<1x4x32xf32>
    %52 = vector.shape_cast %51 : vector<1x4x32xf32> to vector<4x32xf32>
    %cst_47 = arith.constant dense<0.000000e+00> : vector<144x32xf32>
    %53 = tpu.matmul %50, %52, %cst_47 {dimension_numbers = #tpu.dot_dimension_numbers<[1], [0], [0], [1], [0, 0, 1, 1], [], []>} : vector<144x4xf32>, vector<4x32xf32>, vector<144x32xf32> -> vector<144x32xf32>
    %54 = arith.addf %48, %53 : vector<144x32xf32>
    %c0_48 = arith.constant 0 : index
    %c0_49 = arith.constant 0 : index
    %55 = vector.load %arg3[%c0_48, %c0_49] : memref<1x32xf32, #tpu.memory_space<vmem>>, vector<1x32xf32>
    %56 = vector.broadcast %55 : vector<1x32xf32> to vector<144x32xf32>
    %57 = arith.mulf %54, %56 : vector<144x32xf32>
    %c0_50 = arith.constant 0 : index
    %c0_51 = arith.constant 0 : index
    %58 = vector.load %arg4[%c0_50, %c0_51] : memref<1x32xf32, #tpu.memory_space<vmem>>, vector<1x32xf32>
    %59 = vector.broadcast %58 : vector<1x32xf32> to vector<144x32xf32>
    %60 = arith.addf %57, %59 : vector<144x32xf32>
    %cst_52 = arith.constant 0.000000e+00 : f32
    %61 = vector.broadcast %cst_52 : f32 to vector<144x32xf32>
    %62 = arith.maximumf %60, %61 : vector<144x32xf32>
    %c0_53 = arith.constant 0 : index
    %c0_54 = arith.constant 0 : index
    %63 = vector.load %arg24[%c0_53, %c0_54] : memref<144x32xf32, #tpu.memory_space<vmem>>, vector<144x32xf32>
    tpu.vector_store %arg24[%c0_53, %c0_54], %62 {strides = array<i32>} : memref<144x32xf32, #tpu.memory_space<vmem>>, vector<144x32xf32>,
    %cst_55 = arith.constant 0.000000e+00 : f32
    %64 = vector.broadcast %cst_55 : f32 to vector<108x32xf32>
    %c0_56 = arith.constant 0 : index
    %c0_57 = arith.constant 0 : index
    %65 = vector.load %arg22[%c0_56, %c0_57] : memref<108x32xf32, #tpu.memory_space<vmem>>, vector<108x32xf32>
    tpu.vector_store %arg22[%c0_56, %c0_57], %64 {strides = array<i32>} : memref<108x32xf32, #tpu.memory_space<vmem>>, vector<108x32xf32>,
    %c0_58 = arith.constant 0 : index
    %c0_59 = arith.constant 0 : index
    %66 = tpu.strided_load %arg24[%c0_58, %c0_59] {strides = array<i32: 2, 1>} : memref<144x32xf32, #tpu.memory_space<vmem>>, vector<8x32xf32>
    %c1_60 = arith.constant 1 : index
    %c0_61 = arith.constant 0 : index
    %67 = tpu.strided_load %arg24[%c1_60, %c0_61] {strides = array<i32: 2, 1>} : memref<144x32xf32, #tpu.memory_space<vmem>>, vector<8x32xf32>
    %68 = arith.maximumf %66, %67 : vector<8x32xf32>
    %c11 = arith.constant 11 : index
    %c0_62 = arith.constant 0 : index
    %69 = vector.load %arg22[%c11, %c0_62] : memref<108x32xf32, #tpu.memory_space<vmem>>, vector<8x32xf32>
    tpu.vector_store %arg22[%c11, %c0_62], %68 {strides = array<i32>} : memref<108x32xf32, #tpu.memory_space<vmem>>, vector<8x32xf32>,
    %c18_63 = arith.constant 18 : index
    %c0_64 = arith.constant 0 : index
    %70 = tpu.strided_load %arg24[%c18_63, %c0_64] {strides = array<i32: 2, 1>} : memref<144x32xf32, #tpu.memory_space<vmem>>, vector<8x32xf32>
    %c19_65 = arith.constant 19 : index
    %c0_66 = arith.constant 0 : index
    %71 = tpu.strided_load %arg24[%c19_65, %c0_66] {strides = array<i32: 2, 1>} : memref<144x32xf32, #tpu.memory_space<vmem>>, vector<8x32xf32>
    %72 = arith.maximumf %70, %71 : vector<8x32xf32>
    %c21 = arith.constant 21 : index
    %c0_67 = arith.constant 0 : index
    %73 = vector.load %arg22[%c21, %c0_67] : memref<108x32xf32, #tpu.memory_space<vmem>>, vector<8x32xf32>
    tpu.vector_store %arg22[%c21, %c0_67], %72 {strides = array<i32>} : memref<108x32xf32, #tpu.memory_space<vmem>>, vector<8x32xf32>,
    %c36_68 = arith.constant 36 : index
    %c0_69 = arith.constant 0 : index
    %74 = tpu.strided_load %arg24[%c36_68, %c0_69] {strides = array<i32: 2, 1>} : memref<144x32xf32, #tpu.memory_space<vmem>>, vector<8x32xf32>
    %c37_70 = arith.constant 37 : index
    %c0_71 = arith.constant 0 : index
    %75 = tpu.strided_load %arg24[%c37_70, %c0_71] {strides = array<i32: 2, 1>} : memref<144x32xf32, #tpu.memory_space<vmem>>, vector<8x32xf32>
    %76 = arith.maximumf %74, %75 : vector<8x32xf32>
    %c31 = arith.constant 31 : index
    %c0_72 = arith.constant 0 : index
    %77 = vector.load %arg22[%c31, %c0_72] : memref<108x32xf32, #tpu.memory_space<vmem>>, vector<8x32xf32>
    tpu.vector_store %arg22[%c31, %c0_72], %76 {strides = array<i32>} : memref<108x32xf32, #tpu.memory_space<vmem>>, vector<8x32xf32>,
    %c54 = arith.constant 54 : index
    %c0_73 = arith.constant 0 : index
    %78 = tpu.strided_load %arg24[%c54, %c0_73] {strides = array<i32: 2, 1>} : memref<144x32xf32, #tpu.memory_space<vmem>>, vector<8x32xf32>
    %c55 = arith.constant 55 : index
    %c0_74 = arith.constant 0 : index
    %79 = tpu.strided_load %arg24[%c55, %c0_74] {strides = array<i32: 2, 1>} : memref<144x32xf32, #tpu.memory_space<vmem>>, vector<8x32xf32>
    %80 = arith.maximumf %78, %79 : vector<8x32xf32>
    %c41 = arith.constant 41 : index
    %c0_75 = arith.constant 0 : index
    %81 = vector.load %arg22[%c41, %c0_75] : memref<108x32xf32, #tpu.memory_space<vmem>>, vector<8x32xf32>
    tpu.vector_store %arg22[%c41, %c0_75], %80 {strides = array<i32>} : memref<108x32xf32, #tpu.memory_space<vmem>>, vector<8x32xf32>,
    %c72 = arith.constant 72 : index
    %c0_76 = arith.constant 0 : index
    %82 = tpu.strided_load %arg24[%c72, %c0_76] {strides = array<i32: 2, 1>} : memref<144x32xf32, #tpu.memory_space<vmem>>, vector<8x32xf32>
    %c73 = arith.constant 73 : index
    %c0_77 = arith.constant 0 : index
    %83 = tpu.strided_load %arg24[%c73, %c0_77] {strides = array<i32: 2, 1>} : memref<144x32xf32, #tpu.memory_space<vmem>>, vector<8x32xf32>
    %84 = arith.maximumf %82, %83 : vector<8x32xf32>
    %c51 = arith.constant 51 : index
    %c0_78 = arith.constant 0 : index
    %85 = vector.load %arg22[%c51, %c0_78] : memref<108x32xf32, #tpu.memory_space<vmem>>, vector<8x32xf32>
    tpu.vector_store %arg22[%c51, %c0_78], %84 {strides = array<i32>} : memref<108x32xf32, #tpu.memory_space<vmem>>, vector<8x32xf32>,
    %c90 = arith.constant 90 : index
    %c0_79 = arith.constant 0 : index
    %86 = tpu.strided_load %arg24[%c90, %c0_79] {strides = array<i32: 2, 1>} : memref<144x32xf32, #tpu.memory_space<vmem>>, vector<8x32xf32>
    %c91 = arith.constant 91 : index
    %c0_80 = arith.constant 0 : index
    %87 = tpu.strided_load %arg24[%c91, %c0_80] {strides = array<i32: 2, 1>} : memref<144x32xf32, #tpu.memory_space<vmem>>, vector<8x32xf32>
    %88 = arith.maximumf %86, %87 : vector<8x32xf32>
    %c61 = arith.constant 61 : index
    %c0_81 = arith.constant 0 : index
    %89 = vector.load %arg22[%c61, %c0_81] : memref<108x32xf32, #tpu.memory_space<vmem>>, vector<8x32xf32>
    tpu.vector_store %arg22[%c61, %c0_81], %88 {strides = array<i32>} : memref<108x32xf32, #tpu.memory_space<vmem>>, vector<8x32xf32>,
    %c108 = arith.constant 108 : index
    %c0_82 = arith.constant 0 : index
    %90 = tpu.strided_load %arg24[%c108, %c0_82] {strides = array<i32: 2, 1>} : memref<144x32xf32, #tpu.memory_space<vmem>>, vector<8x32xf32>
    %c109 = arith.constant 109 : index
    %c0_83 = arith.constant 0 : index
    %91 = tpu.strided_load %arg24[%c109, %c0_83] {strides = array<i32: 2, 1>} : memref<144x32xf32, #tpu.memory_space<vmem>>, vector<8x32xf32>
    %92 = arith.maximumf %90, %91 : vector<8x32xf32>
    %c71 = arith.constant 71 : index
    %c0_84 = arith.constant 0 : index
    %93 = vector.load %arg22[%c71, %c0_84] : memref<108x32xf32, #tpu.memory_space<vmem>>, vector<8x32xf32>
    tpu.vector_store %arg22[%c71, %c0_84], %92 {strides = array<i32>} : memref<108x32xf32, #tpu.memory_space<vmem>>, vector<8x32xf32>,
    %c126 = arith.constant 126 : index
    %c0_85 = arith.constant 0 : index
    %94 = tpu.strided_load %arg24[%c126, %c0_85] {strides = array<i32: 2, 1>} : memref<144x32xf32, #tpu.memory_space<vmem>>, vector<8x32xf32>
    %c127 = arith.constant 127 : index
    %c0_86 = arith.constant 0 : index
    %95 = tpu.strided_load %arg24[%c127, %c0_86] {strides = array<i32: 2, 1>} : memref<144x32xf32, #tpu.memory_space<vmem>>, vector<8x32xf32>
    %96 = arith.maximumf %94, %95 : vector<8x32xf32>
    %c81 = arith.constant 81 : index
    %c0_87 = arith.constant 0 : index
    %97 = vector.load %arg22[%c81, %c0_87] : memref<108x32xf32, #tpu.memory_space<vmem>>, vector<8x32xf32>
    tpu.vector_store %arg22[%c81, %c0_87], %96 {strides = array<i32>} : memref<108x32xf32, #tpu.memory_space<vmem>>, vector<8x32xf32>,
    %cst_88 = arith.constant 0.000000e+00 : f32
    %98 = vector.broadcast %cst_88 : f32 to vector<80x64xf32>
    %c0_89 = arith.constant 0 : index
    %c0_90 = arith.constant 0 : index
    %99 = vector.load %arg22[%c0_89, %c0_90] : memref<108x32xf32, #tpu.memory_space<vmem>>, vector<80x32xf32>
    %c0_91 = arith.constant 0 : index
    %c0_92 = arith.constant 0 : index
    %c0_93 = arith.constant 0 : index
    %100 = vector.load %arg5[%c0_91, %c0_92, %c0_93] : memref<9x32x64xf32, #tpu.memory_space<vmem>>, vector<1x32x64xf32>
    %101 = vector.shape_cast %100 : vector<1x32x64xf32> to vector<32x64xf32>
    %cst_94 = arith.constant dense<0.000000e+00> : vector<80x64xf32>
    %102 = tpu.matmul %99, %101, %cst_94 {dimension_numbers = #tpu.dot_dimension_numbers<[1], [0], [0], [1], [0, 0, 1, 1], [], []>} : vector<80x32xf32>, vector<32x64xf32>, vector<80x64xf32> -> vector<80x64xf32>
    %103 = arith.addf %98, %102 : vector<80x64xf32>
    %c1_95 = arith.constant 1 : index
    %c0_96 = arith.constant 0 : index
    %104 = vector.load %arg22[%c1_95, %c0_96] : memref<108x32xf32, #tpu.memory_space<vmem>>, vector<80x32xf32>
    %c1_97 = arith.constant 1 : index
    %c0_98 = arith.constant 0 : index
    %c0_99 = arith.constant 0 : index
    %105 = vector.load %arg5[%c1_97, %c0_98, %c0_99] : memref<9x32x64xf32, #tpu.memory_space<vmem>>, vector<1x32x64xf32>
    %106 = vector.shape_cast %105 : vector<1x32x64xf32> to vector<32x64xf32>
    %cst_100 = arith.constant dense<0.000000e+00> : vector<80x64xf32>
    %107 = tpu.matmul %104, %106, %cst_100 {dimension_numbers = #tpu.dot_dimension_numbers<[1], [0], [0], [1], [0, 0, 1, 1], [], []>} : vector<80x32xf32>, vector<32x64xf32>, vector<80x64xf32> -> vector<80x64xf32>
    %108 = arith.addf %103, %107 : vector<80x64xf32>
    %c2_101 = arith.constant 2 : index
    %c0_102 = arith.constant 0 : index
    %109 = vector.load %arg22[%c2_101, %c0_102] : memref<108x32xf32, #tpu.memory_space<vmem>>, vector<80x32xf32>
    %c2_103 = arith.constant 2 : index
    %c0_104 = arith.constant 0 : index
    %c0_105 = arith.constant 0 : index
    %110 = vector.load %arg5[%c2_103, %c0_104, %c0_105] : memref<9x32x64xf32, #tpu.memory_space<vmem>>, vector<1x32x64xf32>
    %111 = vector.shape_cast %110 : vector<1x32x64xf32> to vector<32x64xf32>
    %cst_106 = arith.constant dense<0.000000e+00> : vector<80x64xf32>
    %112 = tpu.matmul %109, %111, %cst_106 {dimension_numbers = #tpu.dot_dimension_numbers<[1], [0], [0], [1], [0, 0, 1, 1], [], []>} : vector<80x32xf32>, vector<32x64xf32>, vector<80x64xf32> -> vector<80x64xf32>
    %113 = arith.addf %108, %112 : vector<80x64xf32>
    %c10 = arith.constant 10 : index
    %c0_107 = arith.constant 0 : index
    %114 = vector.load %arg22[%c10, %c0_107] : memref<108x32xf32, #tpu.memory_space<vmem>>, vector<80x32xf32>
    %c3_108 = arith.constant 3 : index
    %c0_109 = arith.constant 0 : index
    %c0_110 = arith.constant 0 : index
    %115 = vector.load %arg5[%c3_108, %c0_109, %c0_110] : memref<9x32x64xf32, #tpu.memory_space<vmem>>, vector<1x32x64xf32>
    %116 = vector.shape_cast %115 : vector<1x32x64xf32> to vector<32x64xf32>
    %cst_111 = arith.constant dense<0.000000e+00> : vector<80x64xf32>
    %117 = tpu.matmul %114, %116, %cst_111 {dimension_numbers = #tpu.dot_dimension_numbers<[1], [0], [0], [1], [0, 0, 1, 1], [], []>} : vector<80x32xf32>, vector<32x64xf32>, vector<80x64xf32> -> vector<80x64xf32>
    %118 = arith.addf %113, %117 : vector<80x64xf32>
    %c11_112 = arith.constant 11 : index
    %c0_113 = arith.constant 0 : index
    %119 = vector.load %arg22[%c11_112, %c0_113] : memref<108x32xf32, #tpu.memory_space<vmem>>, vector<80x32xf32>
    %c4_114 = arith.constant 4 : index
    %c0_115 = arith.constant 0 : index
    %c0_116 = arith.constant 0 : index
    %120 = vector.load %arg5[%c4_114, %c0_115, %c0_116] : memref<9x32x64xf32, #tpu.memory_space<vmem>>, vector<1x32x64xf32>
    %121 = vector.shape_cast %120 : vector<1x32x64xf32> to vector<32x64xf32>
    %cst_117 = arith.constant dense<0.000000e+00> : vector<80x64xf32>
    %122 = tpu.matmul %119, %121, %cst_117 {dimension_numbers = #tpu.dot_dimension_numbers<[1], [0], [0], [1], [0, 0, 1, 1], [], []>} : vector<80x32xf32>, vector<32x64xf32>, vector<80x64xf32> -> vector<80x64xf32>
    %123 = arith.addf %118, %122 : vector<80x64xf32>
    %c12 = arith.constant 12 : index
    %c0_118 = arith.constant 0 : index
    %124 = vector.load %arg22[%c12, %c0_118] : memref<108x32xf32, #tpu.memory_space<vmem>>, vector<80x32xf32>
    %c5_119 = arith.constant 5 : index
    %c0_120 = arith.constant 0 : index
    %c0_121 = arith.constant 0 : index
    %125 = vector.load %arg5[%c5_119, %c0_120, %c0_121] : memref<9x32x64xf32, #tpu.memory_space<vmem>>, vector<1x32x64xf32>
    %126 = vector.shape_cast %125 : vector<1x32x64xf32> to vector<32x64xf32>
    %cst_122 = arith.constant dense<0.000000e+00> : vector<80x64xf32>
    %127 = tpu.matmul %124, %126, %cst_122 {dimension_numbers = #tpu.dot_dimension_numbers<[1], [0], [0], [1], [0, 0, 1, 1], [], []>} : vector<80x32xf32>, vector<32x64xf32>, vector<80x64xf32> -> vector<80x64xf32>
    %128 = arith.addf %123, %127 : vector<80x64xf32>
    %c20_123 = arith.constant 20 : index
    %c0_124 = arith.constant 0 : index
    %129 = vector.load %arg22[%c20_123, %c0_124] : memref<108x32xf32, #tpu.memory_space<vmem>>, vector<80x32xf32>
    %c6_125 = arith.constant 6 : index
    %c0_126 = arith.constant 0 : index
    %c0_127 = arith.constant 0 : index
    %130 = vector.load %arg5[%c6_125, %c0_126, %c0_127] : memref<9x32x64xf32, #tpu.memory_space<vmem>>, vector<1x32x64xf32>
    %131 = vector.shape_cast %130 : vector<1x32x64xf32> to vector<32x64xf32>
    %cst_128 = arith.constant dense<0.000000e+00> : vector<80x64xf32>
    %132 = tpu.matmul %129, %131, %cst_128 {dimension_numbers = #tpu.dot_dimension_numbers<[1], [0], [0], [1], [0, 0, 1, 1], [], []>} : vector<80x32xf32>, vector<32x64xf32>, vector<80x64xf32> -> vector<80x64xf32>
    %133 = arith.addf %128, %132 : vector<80x64xf32>
    %c21_129 = arith.constant 21 : index
    %c0_130 = arith.constant 0 : index
    %134 = vector.load %arg22[%c21_129, %c0_130] : memref<108x32xf32, #tpu.memory_space<vmem>>, vector<80x32xf32>
    %c7_131 = arith.constant 7 : index
    %c0_132 = arith.constant 0 : index
    %c0_133 = arith.constant 0 : index
    %135 = vector.load %arg5[%c7_131, %c0_132, %c0_133] : memref<9x32x64xf32, #tpu.memory_space<vmem>>, vector<1x32x64xf32>
    %136 = vector.shape_cast %135 : vector<1x32x64xf32> to vector<32x64xf32>
    %cst_134 = arith.constant dense<0.000000e+00> : vector<80x64xf32>
    %137 = tpu.matmul %134, %136, %cst_134 {dimension_numbers = #tpu.dot_dimension_numbers<[1], [0], [0], [1], [0, 0, 1, 1], [], []>} : vector<80x32xf32>, vector<32x64xf32>, vector<80x64xf32> -> vector<80x64xf32>
    %138 = arith.addf %133, %137 : vector<80x64xf32>
    %c22 = arith.constant 22 : index
    %c0_135 = arith.constant 0 : index
    %139 = vector.load %arg22[%c22, %c0_135] : memref<108x32xf32, #tpu.memory_space<vmem>>, vector<80x32xf32>
    %c8_136 = arith.constant 8 : index
    %c0_137 = arith.constant 0 : index
    %c0_138 = arith.constant 0 : index
    %140 = vector.load %arg5[%c8_136, %c0_137, %c0_138] : memref<9x32x64xf32, #tpu.memory_space<vmem>>, vector<1x32x64xf32>
    %141 = vector.shape_cast %140 : vector<1x32x64xf32> to vector<32x64xf32>
    %cst_139 = arith.constant dense<0.000000e+00> : vector<80x64xf32>
    %142 = tpu.matmul %139, %141, %cst_139 {dimension_numbers = #tpu.dot_dimension_numbers<[1], [0], [0], [1], [0, 0, 1, 1], [], []>} : vector<80x32xf32>, vector<32x64xf32>, vector<80x64xf32> -> vector<80x64xf32>
    %143 = arith.addf %138, %142 : vector<80x64xf32>
    %c0_140 = arith.constant 0 : index
    %c0_141 = arith.constant 0 : index
    %144 = vector.load %arg6[%c0_140, %c0_141] : memref<1x64xf32, #tpu.memory_space<vmem>>, vector<1x64xf32>
    %145 = vector.broadcast %144 : vector<1x64xf32> to vector<80x64xf32>
    %146 = arith.mulf %143, %145 : vector<80x64xf32>
    %c0_142 = arith.constant 0 : index
    %c0_143 = arith.constant 0 : index
    %147 = vector.load %arg7[%c0_142, %c0_143] : memref<1x64xf32, #tpu.memory_space<vmem>>, vector<1x64xf32>
    %148 = vector.broadcast %147 : vector<1x64xf32> to vector<80x64xf32>
    %149 = arith.addf %146, %148 : vector<80x64xf32>
    %cst_144 = arith.constant 0.000000e+00 : f32
    %150 = vector.broadcast %cst_144 : f32 to vector<80x64xf32>
    %151 = arith.maximumf %149, %150 : vector<80x64xf32>
    %c0_145 = arith.constant 0 : index
    %c0_146 = arith.constant 0 : index
    %152 = vector.load %arg25[%c0_145, %c0_146] : memref<80x64xf32, #tpu.memory_space<vmem>>, vector<80x64xf32>
    tpu.vector_store %arg25[%c0_145, %c0_146], %151 {strides = array<i32>} : memref<80x64xf32, #tpu.memory_space<vmem>>, vector<80x64xf32>,
    %cst_147 = arith.constant 0.000000e+00 : f32
    %153 = vector.broadcast %cst_147 : f32 to vector<68x64xf32>
    %c0_148 = arith.constant 0 : index
    %c0_149 = arith.constant 0 : index
    %154 = vector.load %arg23[%c0_148, %c0_149] : memref<68x64xf32, #tpu.memory_space<vmem>>, vector<68x64xf32>
    tpu.vector_store %arg23[%c0_148, %c0_149], %153 {strides = array<i32>} : memref<68x64xf32, #tpu.memory_space<vmem>>, vector<68x64xf32>,
    %c0_150 = arith.constant 0 : index
    %c0_151 = arith.constant 0 : index
    %155 = tpu.strided_load %arg25[%c0_150, %c0_151] {strides = array<i32: 2, 1>} : memref<80x64xf32, #tpu.memory_space<vmem>>, vector<4x64xf32>
    %c1_152 = arith.constant 1 : index
    %c0_153 = arith.constant 0 : index
    %156 = tpu.strided_load %arg25[%c1_152, %c0_153] {strides = array<i32: 2, 1>} : memref<80x64xf32, #tpu.memory_space<vmem>>, vector<4x64xf32>
    %157 = arith.maximumf %155, %156 : vector<4x64xf32>
    %c7_154 = arith.constant 7 : index
    %c0_155 = arith.constant 0 : index
    %158 = vector.load %arg23[%c7_154, %c0_155] : memref<68x64xf32, #tpu.memory_space<vmem>>, vector<4x64xf32>
    tpu.vector_store %arg23[%c7_154, %c0_155], %157 {strides = array<i32>} : memref<68x64xf32, #tpu.memory_space<vmem>>, vector<4x64xf32>,
    %c10_156 = arith.constant 10 : index
    %c0_157 = arith.constant 0 : index
    %159 = tpu.strided_load %arg25[%c10_156, %c0_157] {strides = array<i32: 2, 1>} : memref<80x64xf32, #tpu.memory_space<vmem>>, vector<4x64xf32>
    %c11_158 = arith.constant 11 : index
    %c0_159 = arith.constant 0 : index
    %160 = tpu.strided_load %arg25[%c11_158, %c0_159] {strides = array<i32: 2, 1>} : memref<80x64xf32, #tpu.memory_space<vmem>>, vector<4x64xf32>
    %161 = arith.maximumf %159, %160 : vector<4x64xf32>
    %c13 = arith.constant 13 : index
    %c0_160 = arith.constant 0 : index
    %162 = vector.load %arg23[%c13, %c0_160] : memref<68x64xf32, #tpu.memory_space<vmem>>, vector<4x64xf32>
    tpu.vector_store %arg23[%c13, %c0_160], %161 {strides = array<i32>} : memref<68x64xf32, #tpu.memory_space<vmem>>, vector<4x64xf32>,
    %c20_161 = arith.constant 20 : index
    %c0_162 = arith.constant 0 : index
    %163 = tpu.strided_load %arg25[%c20_161, %c0_162] {strides = array<i32: 2, 1>} : memref<80x64xf32, #tpu.memory_space<vmem>>, vector<4x64xf32>
    %c21_163 = arith.constant 21 : index
    %c0_164 = arith.constant 0 : index
    %164 = tpu.strided_load %arg25[%c21_163, %c0_164] {strides = array<i32: 2, 1>} : memref<80x64xf32, #tpu.memory_space<vmem>>, vector<4x64xf32>
    %165 = arith.maximumf %163, %164 : vector<4x64xf32>
    %c19_165 = arith.constant 19 : index
    %c0_166 = arith.constant 0 : index
    %166 = vector.load %arg23[%c19_165, %c0_166] : memref<68x64xf32, #tpu.memory_space<vmem>>, vector<4x64xf32>
    tpu.vector_store %arg23[%c19_165, %c0_166], %165 {strides = array<i32>} : memref<68x64xf32, #tpu.memory_space<vmem>>, vector<4x64xf32>,
    %c30 = arith.constant 30 : index
    %c0_167 = arith.constant 0 : index
    %167 = tpu.strided_load %arg25[%c30, %c0_167] {strides = array<i32: 2, 1>} : memref<80x64xf32, #tpu.memory_space<vmem>>, vector<4x64xf32>
    %c31_168 = arith.constant 31 : index
    %c0_169 = arith.constant 0 : index
    %168 = tpu.strided_load %arg25[%c31_168, %c0_169] {strides = array<i32: 2, 1>} : memref<80x64xf32, #tpu.memory_space<vmem>>, vector<4x64xf32>
    %169 = arith.maximumf %167, %168 : vector<4x64xf32>
    %c25 = arith.constant 25 : index
    %c0_170 = arith.constant 0 : index
    %170 = vector.load %arg23[%c25, %c0_170] : memref<68x64xf32, #tpu.memory_space<vmem>>, vector<4x64xf32>
    tpu.vector_store %arg23[%c25, %c0_170], %169 {strides = array<i32>} : memref<68x64xf32, #tpu.memory_space<vmem>>, vector<4x64xf32>,
    %c40 = arith.constant 40 : index
    %c0_171 = arith.constant 0 : index
    %171 = tpu.strided_load %arg25[%c40, %c0_171] {strides = array<i32: 2, 1>} : memref<80x64xf32, #tpu.memory_space<vmem>>, vector<4x64xf32>
    %c41_172 = arith.constant 41 : index
    %c0_173 = arith.constant 0 : index
    %172 = tpu.strided_load %arg25[%c41_172, %c0_173] {strides = array<i32: 2, 1>} : memref<80x64xf32, #tpu.memory_space<vmem>>, vector<4x64xf32>
    %173 = arith.maximumf %171, %172 : vector<4x64xf32>
    %c31_174 = arith.constant 31 : index
    %c0_175 = arith.constant 0 : index
    %174 = vector.load %arg23[%c31_174, %c0_175] : memref<68x64xf32, #tpu.memory_space<vmem>>, vector<4x64xf32>
    tpu.vector_store %arg23[%c31_174, %c0_175], %173 {strides = array<i32>} : memref<68x64xf32, #tpu.memory_space<vmem>>, vector<4x64xf32>,
    %c50 = arith.constant 50 : index
    %c0_176 = arith.constant 0 : index
    %175 = tpu.strided_load %arg25[%c50, %c0_176] {strides = array<i32: 2, 1>} : memref<80x64xf32, #tpu.memory_space<vmem>>, vector<4x64xf32>
    %c51_177 = arith.constant 51 : index
    %c0_178 = arith.constant 0 : index
    %176 = tpu.strided_load %arg25[%c51_177, %c0_178] {strides = array<i32: 2, 1>} : memref<80x64xf32, #tpu.memory_space<vmem>>, vector<4x64xf32>
    %177 = arith.maximumf %175, %176 : vector<4x64xf32>
    %c37_179 = arith.constant 37 : index
    %c0_180 = arith.constant 0 : index
    %178 = vector.load %arg23[%c37_179, %c0_180] : memref<68x64xf32, #tpu.memory_space<vmem>>, vector<4x64xf32>
    tpu.vector_store %arg23[%c37_179, %c0_180], %177 {strides = array<i32>} : memref<68x64xf32, #tpu.memory_space<vmem>>, vector<4x64xf32>,
    %c60 = arith.constant 60 : index
    %c0_181 = arith.constant 0 : index
    %179 = tpu.strided_load %arg25[%c60, %c0_181] {strides = array<i32: 2, 1>} : memref<80x64xf32, #tpu.memory_space<vmem>>, vector<4x64xf32>
    %c61_182 = arith.constant 61 : index
    %c0_183 = arith.constant 0 : index
    %180 = tpu.strided_load %arg25[%c61_182, %c0_183] {strides = array<i32: 2, 1>} : memref<80x64xf32, #tpu.memory_space<vmem>>, vector<4x64xf32>
    %181 = arith.maximumf %179, %180 : vector<4x64xf32>
    %c43 = arith.constant 43 : index
    %c0_184 = arith.constant 0 : index
    %182 = vector.load %arg23[%c43, %c0_184] : memref<68x64xf32, #tpu.memory_space<vmem>>, vector<4x64xf32>
    tpu.vector_store %arg23[%c43, %c0_184], %181 {strides = array<i32>} : memref<68x64xf32, #tpu.memory_space<vmem>>, vector<4x64xf32>,
    %c70 = arith.constant 70 : index
    %c0_185 = arith.constant 0 : index
    %183 = tpu.strided_load %arg25[%c70, %c0_185] {strides = array<i32: 2, 1>} : memref<80x64xf32, #tpu.memory_space<vmem>>, vector<4x64xf32>
    %c71_186 = arith.constant 71 : index
    %c0_187 = arith.constant 0 : index
    %184 = tpu.strided_load %arg25[%c71_186, %c0_187] {strides = array<i32: 2, 1>} : memref<80x64xf32, #tpu.memory_space<vmem>>, vector<4x64xf32>
    %185 = arith.maximumf %183, %184 : vector<4x64xf32>
    %c49 = arith.constant 49 : index
    %c0_188 = arith.constant 0 : index
    %186 = vector.load %arg23[%c49, %c0_188] : memref<68x64xf32, #tpu.memory_space<vmem>>, vector<4x64xf32>
    tpu.vector_store %arg23[%c49, %c0_188], %185 {strides = array<i32>} : memref<68x64xf32, #tpu.memory_space<vmem>>, vector<4x64xf32>,
    %cst_189 = arith.constant 0.000000e+00 : f32
    %187 = vector.broadcast %cst_189 : f32 to vector<48x128xf32>
    %c0_190 = arith.constant 0 : index
    %c0_191 = arith.constant 0 : index
    %188 = vector.load %arg23[%c0_190, %c0_191] : memref<68x64xf32, #tpu.memory_space<vmem>>, vector<48x64xf32>
    %c0_192 = arith.constant 0 : index
    %c0_193 = arith.constant 0 : index
    %c0_194 = arith.constant 0 : index
    %189 = vector.load %arg8[%c0_192, %c0_193, %c0_194] : memref<9x64x128xf32, #tpu.memory_space<vmem>>, vector<1x64x128xf32>
    %190 = vector.shape_cast %189 : vector<1x64x128xf32> to vector<64x128xf32>
    %cst_195 = arith.constant dense<0.000000e+00> : vector<48x128xf32>
    %191 = tpu.matmul %188, %190, %cst_195 {dimension_numbers = #tpu.dot_dimension_numbers<[1], [0], [0], [1], [0, 0, 1, 1], [], []>} : vector<48x64xf32>, vector<64x128xf32>, vector<48x128xf32> -> vector<48x128xf32>
    %192 = arith.addf %187, %191 : vector<48x128xf32>
    %c1_196 = arith.constant 1 : index
    %c0_197 = arith.constant 0 : index
    %193 = vector.load %arg23[%c1_196, %c0_197] : memref<68x64xf32, #tpu.memory_space<vmem>>, vector<48x64xf32>
    %c1_198 = arith.constant 1 : index
    %c0_199 = arith.constant 0 : index
    %c0_200 = arith.constant 0 : index
    %194 = vector.load %arg8[%c1_198, %c0_199, %c0_200] : memref<9x64x128xf32, #tpu.memory_space<vmem>>, vector<1x64x128xf32>
    %195 = vector.shape_cast %194 : vector<1x64x128xf32> to vector<64x128xf32>
    %cst_201 = arith.constant dense<0.000000e+00> : vector<48x128xf32>
    %196 = tpu.matmul %193, %195, %cst_201 {dimension_numbers = #tpu.dot_dimension_numbers<[1], [0], [0], [1], [0, 0, 1, 1], [], []>} : vector<48x64xf32>, vector<64x128xf32>, vector<48x128xf32> -> vector<48x128xf32>
    %197 = arith.addf %192, %196 : vector<48x128xf32>
    %c2_202 = arith.constant 2 : index
    %c0_203 = arith.constant 0 : index
    %198 = vector.load %arg23[%c2_202, %c0_203] : memref<68x64xf32, #tpu.memory_space<vmem>>, vector<48x64xf32>
    %c2_204 = arith.constant 2 : index
    %c0_205 = arith.constant 0 : index
    %c0_206 = arith.constant 0 : index
    %199 = vector.load %arg8[%c2_204, %c0_205, %c0_206] : memref<9x64x128xf32, #tpu.memory_space<vmem>>, vector<1x64x128xf32>
    %200 = vector.shape_cast %199 : vector<1x64x128xf32> to vector<64x128xf32>
    %cst_207 = arith.constant dense<0.000000e+00> : vector<48x128xf32>
    %201 = tpu.matmul %198, %200, %cst_207 {dimension_numbers = #tpu.dot_dimension_numbers<[1], [0], [0], [1], [0, 0, 1, 1], [], []>} : vector<48x64xf32>, vector<64x128xf32>, vector<48x128xf32> -> vector<48x128xf32>
    %202 = arith.addf %197, %201 : vector<48x128xf32>
    %c6_208 = arith.constant 6 : index
    %c0_209 = arith.constant 0 : index
    %203 = vector.load %arg23[%c6_208, %c0_209] : memref<68x64xf32, #tpu.memory_space<vmem>>, vector<48x64xf32>
    %c3_210 = arith.constant 3 : index
    %c0_211 = arith.constant 0 : index
    %c0_212 = arith.constant 0 : index
    %204 = vector.load %arg8[%c3_210, %c0_211, %c0_212] : memref<9x64x128xf32, #tpu.memory_space<vmem>>, vector<1x64x128xf32>
    %205 = vector.shape_cast %204 : vector<1x64x128xf32> to vector<64x128xf32>
    %cst_213 = arith.constant dense<0.000000e+00> : vector<48x128xf32>
    %206 = tpu.matmul %203, %205, %cst_213 {dimension_numbers = #tpu.dot_dimension_numbers<[1], [0], [0], [1], [0, 0, 1, 1], [], []>} : vector<48x64xf32>, vector<64x128xf32>, vector<48x128xf32> -> vector<48x128xf32>
    %207 = arith.addf %202, %206 : vector<48x128xf32>
    %c7_214 = arith.constant 7 : index
    %c0_215 = arith.constant 0 : index
    %208 = vector.load %arg23[%c7_214, %c0_215] : memref<68x64xf32, #tpu.memory_space<vmem>>, vector<48x64xf32>
    %c4_216 = arith.constant 4 : index
    %c0_217 = arith.constant 0 : index
    %c0_218 = arith.constant 0 : index
    %209 = vector.load %arg8[%c4_216, %c0_217, %c0_218] : memref<9x64x128xf32, #tpu.memory_space<vmem>>, vector<1x64x128xf32>
    %210 = vector.shape_cast %209 : vector<1x64x128xf32> to vector<64x128xf32>
    %cst_219 = arith.constant dense<0.000000e+00> : vector<48x128xf32>
    %211 = tpu.matmul %208, %210, %cst_219 {dimension_numbers = #tpu.dot_dimension_numbers<[1], [0], [0], [1], [0, 0, 1, 1], [], []>} : vector<48x64xf32>, vector<64x128xf32>, vector<48x128xf32> -> vector<48x128xf32>
    %212 = arith.addf %207, %211 : vector<48x128xf32>
    %c8_220 = arith.constant 8 : index
    %c0_221 = arith.constant 0 : index
    %213 = vector.load %arg23[%c8_220, %c0_221] : memref<68x64xf32, #tpu.memory_space<vmem>>, vector<48x64xf32>
    %c5_222 = arith.constant 5 : index
    %c0_223 = arith.constant 0 : index
    %c0_224 = arith.constant 0 : index
    %214 = vector.load %arg8[%c5_222, %c0_223, %c0_224] : memref<9x64x128xf32, #tpu.memory_space<vmem>>, vector<1x64x128xf32>
    %215 = vector.shape_cast %214 : vector<1x64x128xf32> to vector<64x128xf32>
    %cst_225 = arith.constant dense<0.000000e+00> : vector<48x128xf32>
    %216 = tpu.matmul %213, %215, %cst_225 {dimension_numbers = #tpu.dot_dimension_numbers<[1], [0], [0], [1], [0, 0, 1, 1], [], []>} : vector<48x64xf32>, vector<64x128xf32>, vector<48x128xf32> -> vector<48x128xf32>
    %217 = arith.addf %212, %216 : vector<48x128xf32>
    %c12_226 = arith.constant 12 : index
    %c0_227 = arith.constant 0 : index
    %218 = vector.load %arg23[%c12_226, %c0_227] : memref<68x64xf32, #tpu.memory_space<vmem>>, vector<48x64xf32>
    %c6_228 = arith.constant 6 : index
    %c0_229 = arith.constant 0 : index
    %c0_230 = arith.constant 0 : index
    %219 = vector.load %arg8[%c6_228, %c0_229, %c0_230] : memref<9x64x128xf32, #tpu.memory_space<vmem>>, vector<1x64x128xf32>
    %220 = vector.shape_cast %219 : vector<1x64x128xf32> to vector<64x128xf32>
    %cst_231 = arith.constant dense<0.000000e+00> : vector<48x128xf32>
    %221 = tpu.matmul %218, %220, %cst_231 {dimension_numbers = #tpu.dot_dimension_numbers<[1], [0], [0], [1], [0, 0, 1, 1], [], []>} : vector<48x64xf32>, vector<64x128xf32>, vector<48x128xf32> -> vector<48x128xf32>
    %222 = arith.addf %217, %221 : vector<48x128xf32>
    %c13_232 = arith.constant 13 : index
    %c0_233 = arith.constant 0 : index
    %223 = vector.load %arg23[%c13_232, %c0_233] : memref<68x64xf32, #tpu.memory_space<vmem>>, vector<48x64xf32>
    %c7_234 = arith.constant 7 : index
    %c0_235 = arith.constant 0 : index
    %c0_236 = arith.constant 0 : index
    %224 = vector.load %arg8[%c7_234, %c0_235, %c0_236] : memref<9x64x128xf32, #tpu.memory_space<vmem>>, vector<1x64x128xf32>
    %225 = vector.shape_cast %224 : vector<1x64x128xf32> to vector<64x128xf32>
    %cst_237 = arith.constant dense<0.000000e+00> : vector<48x128xf32>
    %226 = tpu.matmul %223, %225, %cst_237 {dimension_numbers = #tpu.dot_dimension_numbers<[1], [0], [0], [1], [0, 0, 1, 1], [], []>} : vector<48x64xf32>, vector<64x128xf32>, vector<48x128xf32> -> vector<48x128xf32>
    %227 = arith.addf %222, %226 : vector<48x128xf32>
    %c14 = arith.constant 14 : index
    %c0_238 = arith.constant 0 : index
    %228 = vector.load %arg23[%c14, %c0_238] : memref<68x64xf32, #tpu.memory_space<vmem>>, vector<48x64xf32>
    %c8_239 = arith.constant 8 : index
    %c0_240 = arith.constant 0 : index
    %c0_241 = arith.constant 0 : index
    %229 = vector.load %arg8[%c8_239, %c0_240, %c0_241] : memref<9x64x128xf32, #tpu.memory_space<vmem>>, vector<1x64x128xf32>
    %230 = vector.shape_cast %229 : vector<1x64x128xf32> to vector<64x128xf32>
    %cst_242 = arith.constant dense<0.000000e+00> : vector<48x128xf32>
    %231 = tpu.matmul %228, %230, %cst_242 {dimension_numbers = #tpu.dot_dimension_numbers<[1], [0], [0], [1], [0, 0, 1, 1], [], []>} : vector<48x64xf32>, vector<64x128xf32>, vector<48x128xf32> -> vector<48x128xf32>
    %232 = arith.addf %227, %231 : vector<48x128xf32>
    %c0_243 = arith.constant 0 : index
    %c0_244 = arith.constant 0 : index
    %233 = vector.load %arg9[%c0_243, %c0_244] : memref<1x128xf32, #tpu.memory_space<vmem>>, vector<1x128xf32>
    %234 = vector.broadcast %233 : vector<1x128xf32> to vector<48x128xf32>
    %235 = arith.mulf %232, %234 : vector<48x128xf32>
    %c0_245 = arith.constant 0 : index
    %c0_246 = arith.constant 0 : index
    %236 = vector.load %arg10[%c0_245, %c0_246] : memref<1x128xf32, #tpu.memory_space<vmem>>, vector<1x128xf32>
    %237 = vector.broadcast %236 : vector<1x128xf32> to vector<48x128xf32>
    %238 = arith.addf %235, %237 : vector<48x128xf32>
    %cst_247 = arith.constant 0.000000e+00 : f32
    %239 = vector.broadcast %cst_247 : f32 to vector<48x128xf32>
    %240 = arith.maximumf %238, %239 : vector<48x128xf32>
    %c0_248 = arith.constant 0 : index
    %c0_249 = arith.constant 0 : index
    %241 = vector.load %arg26[%c0_248, %c0_249] : memref<48x128xf32, #tpu.memory_space<vmem>>, vector<48x128xf32>
    tpu.vector_store %arg26[%c0_248, %c0_249], %240 {strides = array<i32>} : memref<48x128xf32, #tpu.memory_space<vmem>>, vector<48x128xf32>,
    %c0_250 = arith.constant 0 : index
    %c0_251 = arith.constant 0 : index
    %242 = tpu.strided_load %arg26[%c0_250, %c0_251] {strides = array<i32: 2, 1>} : memref<48x128xf32, #tpu.memory_space<vmem>>, vector<2x128xf32>
    %c1_252 = arith.constant 1 : index
    %c0_253 = arith.constant 0 : index
    %243 = tpu.strided_load %arg26[%c1_252, %c0_253] {strides = array<i32: 2, 1>} : memref<48x128xf32, #tpu.memory_space<vmem>>, vector<2x128xf32>
    %244 = arith.maximumf %242, %243 : vector<2x128xf32>
    %c0_254 = arith.constant 0 : index
    %c0_255 = arith.constant 0 : index
    %245 = vector.load %arg27[%c0_254, %c0_255] : memref<16x128xf32, #tpu.memory_space<vmem>>, vector<2x128xf32>
    tpu.vector_store %arg27[%c0_254, %c0_255], %244 {strides = array<i32>} : memref<16x128xf32, #tpu.memory_space<vmem>>, vector<2x128xf32>,
    %c6_256 = arith.constant 6 : index
    %c0_257 = arith.constant 0 : index
    %246 = tpu.strided_load %arg26[%c6_256, %c0_257] {strides = array<i32: 2, 1>} : memref<48x128xf32, #tpu.memory_space<vmem>>, vector<2x128xf32>
    %c7_258 = arith.constant 7 : index
    %c0_259 = arith.constant 0 : index
    %247 = tpu.strided_load %arg26[%c7_258, %c0_259] {strides = array<i32: 2, 1>} : memref<48x128xf32, #tpu.memory_space<vmem>>, vector<2x128xf32>
    %248 = arith.maximumf %246, %247 : vector<2x128xf32>
    %c2_260 = arith.constant 2 : index
    %c0_261 = arith.constant 0 : index
    %249 = vector.load %arg27[%c2_260, %c0_261] : memref<16x128xf32, #tpu.memory_space<vmem>>, vector<2x128xf32>
    tpu.vector_store %arg27[%c2_260, %c0_261], %248 {strides = array<i32>} : memref<16x128xf32, #tpu.memory_space<vmem>>, vector<2x128xf32>,
    %c12_262 = arith.constant 12 : index
    %c0_263 = arith.constant 0 : index
    %250 = tpu.strided_load %arg26[%c12_262, %c0_263] {strides = array<i32: 2, 1>} : memref<48x128xf32, #tpu.memory_space<vmem>>, vector<2x128xf32>
    %c13_264 = arith.constant 13 : index
    %c0_265 = arith.constant 0 : index
    %251 = tpu.strided_load %arg26[%c13_264, %c0_265] {strides = array<i32: 2, 1>} : memref<48x128xf32, #tpu.memory_space<vmem>>, vector<2x128xf32>
    %252 = arith.maximumf %250, %251 : vector<2x128xf32>
    %c4_266 = arith.constant 4 : index
    %c0_267 = arith.constant 0 : index
    %253 = vector.load %arg27[%c4_266, %c0_267] : memref<16x128xf32, #tpu.memory_space<vmem>>, vector<2x128xf32>
    tpu.vector_store %arg27[%c4_266, %c0_267], %252 {strides = array<i32>} : memref<16x128xf32, #tpu.memory_space<vmem>>, vector<2x128xf32>,
    %c18_268 = arith.constant 18 : index
    %c0_269 = arith.constant 0 : index
    %254 = tpu.strided_load %arg26[%c18_268, %c0_269] {strides = array<i32: 2, 1>} : memref<48x128xf32, #tpu.memory_space<vmem>>, vector<2x128xf32>
    %c19_270 = arith.constant 19 : index
    %c0_271 = arith.constant 0 : index
    %255 = tpu.strided_load %arg26[%c19_270, %c0_271] {strides = array<i32: 2, 1>} : memref<48x128xf32, #tpu.memory_space<vmem>>, vector<2x128xf32>
    %256 = arith.maximumf %254, %255 : vector<2x128xf32>
    %c6_272 = arith.constant 6 : index
    %c0_273 = arith.constant 0 : index
    %257 = vector.load %arg27[%c6_272, %c0_273] : memref<16x128xf32, #tpu.memory_space<vmem>>, vector<2x128xf32>
    tpu.vector_store %arg27[%c6_272, %c0_273], %256 {strides = array<i32>} : memref<16x128xf32, #tpu.memory_space<vmem>>, vector<2x128xf32>,
    %c24 = arith.constant 24 : index
    %c0_274 = arith.constant 0 : index
    %258 = tpu.strided_load %arg26[%c24, %c0_274] {strides = array<i32: 2, 1>} : memref<48x128xf32, #tpu.memory_space<vmem>>, vector<2x128xf32>
    %c25_275 = arith.constant 25 : index
    %c0_276 = arith.constant 0 : index
    %259 = tpu.strided_load %arg26[%c25_275, %c0_276] {strides = array<i32: 2, 1>} : memref<48x128xf32, #tpu.memory_space<vmem>>, vector<2x128xf32>
    %260 = arith.maximumf %258, %259 : vector<2x128xf32>
    %c8_277 = arith.constant 8 : index
    %c0_278 = arith.constant 0 : index
    %261 = vector.load %arg27[%c8_277, %c0_278] : memref<16x128xf32, #tpu.memory_space<vmem>>, vector<2x128xf32>
    tpu.vector_store %arg27[%c8_277, %c0_278], %260 {strides = array<i32>} : memref<16x128xf32, #tpu.memory_space<vmem>>, vector<2x128xf32>,
    %c30_279 = arith.constant 30 : index
    %c0_280 = arith.constant 0 : index
    %262 = tpu.strided_load %arg26[%c30_279, %c0_280] {strides = array<i32: 2, 1>} : memref<48x128xf32, #tpu.memory_space<vmem>>, vector<2x128xf32>
    %c31_281 = arith.constant 31 : index
    %c0_282 = arith.constant 0 : index
    %263 = tpu.strided_load %arg26[%c31_281, %c0_282] {strides = array<i32: 2, 1>} : memref<48x128xf32, #tpu.memory_space<vmem>>, vector<2x128xf32>
    %264 = arith.maximumf %262, %263 : vector<2x128xf32>
    %c10_283 = arith.constant 10 : index
    %c0_284 = arith.constant 0 : index
    %265 = vector.load %arg27[%c10_283, %c0_284] : memref<16x128xf32, #tpu.memory_space<vmem>>, vector<2x128xf32>
    tpu.vector_store %arg27[%c10_283, %c0_284], %264 {strides = array<i32>} : memref<16x128xf32, #tpu.memory_space<vmem>>, vector<2x128xf32>,
    %c36_285 = arith.constant 36 : index
    %c0_286 = arith.constant 0 : index
    %266 = tpu.strided_load %arg26[%c36_285, %c0_286] {strides = array<i32: 2, 1>} : memref<48x128xf32, #tpu.memory_space<vmem>>, vector<2x128xf32>
    %c37_287 = arith.constant 37 : index
    %c0_288 = arith.constant 0 : index
    %267 = tpu.strided_load %arg26[%c37_287, %c0_288] {strides = array<i32: 2, 1>} : memref<48x128xf32, #tpu.memory_space<vmem>>, vector<2x128xf32>
    %268 = arith.maximumf %266, %267 : vector<2x128xf32>
    %c12_289 = arith.constant 12 : index
    %c0_290 = arith.constant 0 : index
    %269 = vector.load %arg27[%c12_289, %c0_290] : memref<16x128xf32, #tpu.memory_space<vmem>>, vector<2x128xf32>
    tpu.vector_store %arg27[%c12_289, %c0_290], %268 {strides = array<i32>} : memref<16x128xf32, #tpu.memory_space<vmem>>, vector<2x128xf32>,
    %c42 = arith.constant 42 : index
    %c0_291 = arith.constant 0 : index
    %270 = tpu.strided_load %arg26[%c42, %c0_291] {strides = array<i32: 2, 1>} : memref<48x128xf32, #tpu.memory_space<vmem>>, vector<2x128xf32>
    %c43_292 = arith.constant 43 : index
    %c0_293 = arith.constant 0 : index
    %271 = tpu.strided_load %arg26[%c43_292, %c0_293] {strides = array<i32: 2, 1>} : memref<48x128xf32, #tpu.memory_space<vmem>>, vector<2x128xf32>
    %272 = arith.maximumf %270, %271 : vector<2x128xf32>
    %c14_294 = arith.constant 14 : index
    %c0_295 = arith.constant 0 : index
    %273 = vector.load %arg27[%c14_294, %c0_295] : memref<16x128xf32, #tpu.memory_space<vmem>>, vector<2x128xf32>
    tpu.vector_store %arg27[%c14_294, %c0_295], %272 {strides = array<i32>} : memref<16x128xf32, #tpu.memory_space<vmem>>, vector<2x128xf32>,
    %c0_296 = arith.constant 0 : index
    %c0_297 = arith.constant 0 : index
    %274 = vector.load %arg27[%c0_296, %c0_297] : memref<16x128xf32, #tpu.memory_space<vmem>>, vector<16x128xf32>
    %c0_298 = arith.constant 0 : index
    %c0_299 = arith.constant 0 : index
    %275 = vector.load %arg11[%c0_298, %c0_299] : memref<1x128xf32, #tpu.memory_space<vmem>>, vector<1x128xf32>
    %276 = vector.broadcast %275 : vector<1x128xf32> to vector<16x128xf32>
    %277 = arith.mulf %274, %276 : vector<16x128xf32>
    %cst_300 = arith.constant dense<0.000000e+00> : vector<16xf32>
    %278 = vector.multi_reduction <add>, %277, %cst_300 [1] : vector<16x128xf32> to vector<16xf32>
    %279 = vector.shape_cast %278 : vector<16xf32> to vector<16x1xf32>
    %c0_301 = arith.constant 0 : index
    %c0_302 = arith.constant 0 : index
    %280 = vector.load %arg12[%c0_301, %c0_302] : memref<1x1xf32, #tpu.memory_space<vmem>>, vector<1x1xf32>
    %281 = vector.broadcast %280 : vector<1x1xf32> to vector<16x1xf32>
    %282 = arith.addf %279, %281 : vector<16x1xf32>
    %283 = arith.negf %282 : vector<16x1xf32>
    %284 = math.exp %283 : vector<16x1xf32>
    %cst_303 = arith.constant 1.000000e+00 : f32
    %285 = vector.broadcast %cst_303 : f32 to vector<16x1xf32>
    %286 = arith.addf %285, %284 : vector<16x1xf32>
    %287 = arith.divf %285, %286 : vector<16x1xf32>
    %288 = vector.broadcast %287 : vector<16x1xf32> to vector<16x128xf32>
    %289 = arith.mulf %274, %288 : vector<16x128xf32>
    %cst_304 = arith.constant dense<0.000000e+00> : vector<128xf32>
    %290 = vector.multi_reduction <add>, %289, %cst_304 [0] : vector<16x128xf32> to vector<128xf32>
    %291 = vector.shape_cast %290 : vector<128xf32> to vector<1x128xf32>
    %cst_305 = arith.constant 1.600000e+01 : f32
    %292 = vector.broadcast %cst_305 : f32 to vector<1x128xf32>
    %293 = arith.divf %291, %292 : vector<1x128xf32>
    %c0_306 = arith.constant 0 : index
    %c0_307 = arith.constant 0 : index
    %294 = vector.load %arg13[%c0_306, %c0_307] : memref<128x16xf32, #tpu.memory_space<vmem>>, vector<128x16xf32>
    %cst_308 = arith.constant dense<0.000000e+00> : vector<1x16xf32>
    %295 = tpu.matmul %293, %294, %cst_308 {dimension_numbers = #tpu.dot_dimension_numbers<[1], [0], [0], [1], [0, 0, 1, 1], [], []>} : vector<1x128xf32>, vector<128x16xf32>, vector<1x16xf32> -> vector<1x16xf32>
    %c0_309 = arith.constant 0 : index
    %c0_310 = arith.constant 0 : index
    %296 = vector.load %arg14[%c0_309, %c0_310] : memref<1x16xf32, #tpu.memory_space<vmem>>, vector<1x16xf32>
    %297 = arith.addf %295, %296 : vector<1x16xf32>
    %cst_311 = arith.constant 0.000000e+00 : f32
    %298 = vector.broadcast %cst_311 : f32 to vector<1x16xf32>
    %299 = arith.maximumf %297, %298 : vector<1x16xf32>
    %c0_312 = arith.constant 0 : index
    %c0_313 = arith.constant 0 : index
    %300 = vector.load %arg15[%c0_312, %c0_313] : memref<16x128xf32, #tpu.memory_space<vmem>>, vector<16x128xf32>
    %cst_314 = arith.constant dense<0.000000e+00> : vector<1x128xf32>
    %301 = tpu.matmul %299, %300, %cst_314 {dimension_numbers = #tpu.dot_dimension_numbers<[1], [0], [0], [1], [0, 0, 1, 1], [], []>} : vector<1x16xf32>, vector<16x128xf32>, vector<1x128xf32> -> vector<1x128xf32>
    %c0_315 = arith.constant 0 : index
    %c0_316 = arith.constant 0 : index
    %302 = vector.load %arg16[%c0_315, %c0_316] : memref<1x128xf32, #tpu.memory_space<vmem>>, vector<1x128xf32>
    %303 = arith.addf %301, %302 : vector<1x128xf32>
    %304 = arith.negf %303 : vector<1x128xf32>
    %305 = math.exp %304 : vector<1x128xf32>
    %cst_317 = arith.constant 1.000000e+00 : f32
    %306 = vector.broadcast %cst_317 : f32 to vector<1x128xf32>
    %307 = arith.addf %306, %305 : vector<1x128xf32>
    %308 = arith.divf %306, %307 : vector<1x128xf32>
    %309 = vector.broadcast %308 : vector<1x128xf32> to vector<16x128xf32>
    %310 = arith.mulf %289, %309 : vector<16x128xf32>
    %c0_318 = arith.constant 0 : index
    %c0_319 = arith.constant 0 : index
    %311 = vector.load %arg27[%c0_318, %c0_319] : memref<16x128xf32, #tpu.memory_space<vmem>>, vector<16x128xf32>
    tpu.vector_store %arg27[%c0_318, %c0_319], %310 {strides = array<i32>} : memref<16x128xf32, #tpu.memory_space<vmem>>, vector<16x128xf32>,
    %c0_320 = arith.constant 0 : index
    %c0_321 = arith.constant 0 : index
    %312 = vector.load %arg27[%c0_320, %c0_321] : memref<16x128xf32, #tpu.memory_space<vmem>>, vector<1x128xf32>
    %c0_322 = arith.constant 0 : index
    %c0_323 = arith.constant 0 : index
    %313 = vector.load %arg28[%c0_322, %c0_323] : memref<1x2048xf32, #tpu.memory_space<vmem>>, vector<1x128xf32>
    tpu.vector_store %arg28[%c0_322, %c0_323], %312 {strides = array<i32>} : memref<1x2048xf32, #tpu.memory_space<vmem>>, vector<1x128xf32>,
    %c1_324 = arith.constant 1 : index
    %c0_325 = arith.constant 0 : index
    %314 = vector.load %arg27[%c1_324, %c0_325] : memref<16x128xf32, #tpu.memory_space<vmem>>, vector<1x128xf32>
    %c0_326 = arith.constant 0 : index
    %c128 = arith.constant 128 : index
    %315 = vector.load %arg28[%c0_326, %c128] : memref<1x2048xf32, #tpu.memory_space<vmem>>, vector<1x128xf32>
    tpu.vector_store %arg28[%c0_326, %c128], %314 {strides = array<i32>} : memref<1x2048xf32, #tpu.memory_space<vmem>>, vector<1x128xf32>,
    %c2_327 = arith.constant 2 : index
    %c0_328 = arith.constant 0 : index
    %316 = vector.load %arg27[%c2_327, %c0_328] : memref<16x128xf32, #tpu.memory_space<vmem>>, vector<1x128xf32>
    %c0_329 = arith.constant 0 : index
    %c256 = arith.constant 256 : index
    %317 = vector.load %arg28[%c0_329, %c256] : memref<1x2048xf32, #tpu.memory_space<vmem>>, vector<1x128xf32>
    tpu.vector_store %arg28[%c0_329, %c256], %316 {strides = array<i32>} : memref<1x2048xf32, #tpu.memory_space<vmem>>, vector<1x128xf32>,
    %c3_330 = arith.constant 3 : index
    %c0_331 = arith.constant 0 : index
    %318 = vector.load %arg27[%c3_330, %c0_331] : memref<16x128xf32, #tpu.memory_space<vmem>>, vector<1x128xf32>
    %c0_332 = arith.constant 0 : index
    %c384 = arith.constant 384 : index
    %319 = vector.load %arg28[%c0_332, %c384] : memref<1x2048xf32, #tpu.memory_space<vmem>>, vector<1x128xf32>
    tpu.vector_store %arg28[%c0_332, %c384], %318 {strides = array<i32>} : memref<1x2048xf32, #tpu.memory_space<vmem>>, vector<1x128xf32>,
    %c4_333 = arith.constant 4 : index
    %c0_334 = arith.constant 0 : index
    %320 = vector.load %arg27[%c4_333, %c0_334] : memref<16x128xf32, #tpu.memory_space<vmem>>, vector<1x128xf32>
    %c0_335 = arith.constant 0 : index
    %c512 = arith.constant 512 : index
    %321 = vector.load %arg28[%c0_335, %c512] : memref<1x2048xf32, #tpu.memory_space<vmem>>, vector<1x128xf32>
    tpu.vector_store %arg28[%c0_335, %c512], %320 {strides = array<i32>} : memref<1x2048xf32, #tpu.memory_space<vmem>>, vector<1x128xf32>,
    %c5_336 = arith.constant 5 : index
    %c0_337 = arith.constant 0 : index
    %322 = vector.load %arg27[%c5_336, %c0_337] : memref<16x128xf32, #tpu.memory_space<vmem>>, vector<1x128xf32>
    %c0_338 = arith.constant 0 : index
    %c640 = arith.constant 640 : index
    %323 = vector.load %arg28[%c0_338, %c640] : memref<1x2048xf32, #tpu.memory_space<vmem>>, vector<1x128xf32>
    tpu.vector_store %arg28[%c0_338, %c640], %322 {strides = array<i32>} : memref<1x2048xf32, #tpu.memory_space<vmem>>, vector<1x128xf32>,
    %c6_339 = arith.constant 6 : index
    %c0_340 = arith.constant 0 : index
    %324 = vector.load %arg27[%c6_339, %c0_340] : memref<16x128xf32, #tpu.memory_space<vmem>>, vector<1x128xf32>
    %c0_341 = arith.constant 0 : index
    %c768 = arith.constant 768 : index
    %325 = vector.load %arg28[%c0_341, %c768] : memref<1x2048xf32, #tpu.memory_space<vmem>>, vector<1x128xf32>
    tpu.vector_store %arg28[%c0_341, %c768], %324 {strides = array<i32>} : memref<1x2048xf32, #tpu.memory_space<vmem>>, vector<1x128xf32>,
    %c7_342 = arith.constant 7 : index
    %c0_343 = arith.constant 0 : index
    %326 = vector.load %arg27[%c7_342, %c0_343] : memref<16x128xf32, #tpu.memory_space<vmem>>, vector<1x128xf32>
    %c0_344 = arith.constant 0 : index
    %c896 = arith.constant 896 : index
    %327 = vector.load %arg28[%c0_344, %c896] : memref<1x2048xf32, #tpu.memory_space<vmem>>, vector<1x128xf32>
    tpu.vector_store %arg28[%c0_344, %c896], %326 {strides = array<i32>} : memref<1x2048xf32, #tpu.memory_space<vmem>>, vector<1x128xf32>,
    %c8_345 = arith.constant 8 : index
    %c0_346 = arith.constant 0 : index
    %328 = vector.load %arg27[%c8_345, %c0_346] : memref<16x128xf32, #tpu.memory_space<vmem>>, vector<1x128xf32>
    %c0_347 = arith.constant 0 : index
    %c1024 = arith.constant 1024 : index
    %329 = vector.load %arg28[%c0_347, %c1024] : memref<1x2048xf32, #tpu.memory_space<vmem>>, vector<1x128xf32>
    tpu.vector_store %arg28[%c0_347, %c1024], %328 {strides = array<i32>} : memref<1x2048xf32, #tpu.memory_space<vmem>>, vector<1x128xf32>,
    %c9 = arith.constant 9 : index
    %c0_348 = arith.constant 0 : index
    %330 = vector.load %arg27[%c9, %c0_348] : memref<16x128xf32, #tpu.memory_space<vmem>>, vector<1x128xf32>
    %c0_349 = arith.constant 0 : index
    %c1152 = arith.constant 1152 : index
    %331 = vector.load %arg28[%c0_349, %c1152] : memref<1x2048xf32, #tpu.memory_space<vmem>>, vector<1x128xf32>
    tpu.vector_store %arg28[%c0_349, %c1152], %330 {strides = array<i32>} : memref<1x2048xf32, #tpu.memory_space<vmem>>, vector<1x128xf32>,
    %c10_350 = arith.constant 10 : index
    %c0_351 = arith.constant 0 : index
    %332 = vector.load %arg27[%c10_350, %c0_351] : memref<16x128xf32, #tpu.memory_space<vmem>>, vector<1x128xf32>
    %c0_352 = arith.constant 0 : index
    %c1280 = arith.constant 1280 : index
    %333 = vector.load %arg28[%c0_352, %c1280] : memref<1x2048xf32, #tpu.memory_space<vmem>>, vector<1x128xf32>
    tpu.vector_store %arg28[%c0_352, %c1280], %332 {strides = array<i32>} : memref<1x2048xf32, #tpu.memory_space<vmem>>, vector<1x128xf32>,
    %c11_353 = arith.constant 11 : index
    %c0_354 = arith.constant 0 : index
    %334 = vector.load %arg27[%c11_353, %c0_354] : memref<16x128xf32, #tpu.memory_space<vmem>>, vector<1x128xf32>
    %c0_355 = arith.constant 0 : index
    %c1408 = arith.constant 1408 : index
    %335 = vector.load %arg28[%c0_355, %c1408] : memref<1x2048xf32, #tpu.memory_space<vmem>>, vector<1x128xf32>
    tpu.vector_store %arg28[%c0_355, %c1408], %334 {strides = array<i32>} : memref<1x2048xf32, #tpu.memory_space<vmem>>, vector<1x128xf32>,
    %c12_356 = arith.constant 12 : index
    %c0_357 = arith.constant 0 : index
    %336 = vector.load %arg27[%c12_356, %c0_357] : memref<16x128xf32, #tpu.memory_space<vmem>>, vector<1x128xf32>
    %c0_358 = arith.constant 0 : index
    %c1536 = arith.constant 1536 : index
    %337 = vector.load %arg28[%c0_358, %c1536] : memref<1x2048xf32, #tpu.memory_space<vmem>>, vector<1x128xf32>
    tpu.vector_store %arg28[%c0_358, %c1536], %336 {strides = array<i32>} : memref<1x2048xf32, #tpu.memory_space<vmem>>, vector<1x128xf32>,
    %c13_359 = arith.constant 13 : index
    %c0_360 = arith.constant 0 : index
    %338 = vector.load %arg27[%c13_359, %c0_360] : memref<16x128xf32, #tpu.memory_space<vmem>>, vector<1x128xf32>
    %c0_361 = arith.constant 0 : index
    %c1664 = arith.constant 1664 : index
    %339 = vector.load %arg28[%c0_361, %c1664] : memref<1x2048xf32, #tpu.memory_space<vmem>>, vector<1x128xf32>
    tpu.vector_store %arg28[%c0_361, %c1664], %338 {strides = array<i32>} : memref<1x2048xf32, #tpu.memory_space<vmem>>, vector<1x128xf32>,
    %c14_362 = arith.constant 14 : index
    %c0_363 = arith.constant 0 : index
    %340 = vector.load %arg27[%c14_362, %c0_363] : memref<16x128xf32, #tpu.memory_space<vmem>>, vector<1x128xf32>
    %c0_364 = arith.constant 0 : index
    %c1792 = arith.constant 1792 : index
    %341 = vector.load %arg28[%c0_364, %c1792] : memref<1x2048xf32, #tpu.memory_space<vmem>>, vector<1x128xf32>
    tpu.vector_store %arg28[%c0_364, %c1792], %340 {strides = array<i32>} : memref<1x2048xf32, #tpu.memory_space<vmem>>, vector<1x128xf32>,
    %c15 = arith.constant 15 : index
    %c0_365 = arith.constant 0 : index
    %342 = vector.load %arg27[%c15, %c0_365] : memref<16x128xf32, #tpu.memory_space<vmem>>, vector<1x128xf32>
    %c0_366 = arith.constant 0 : index
    %c1920 = arith.constant 1920 : index
    %343 = vector.load %arg28[%c0_366, %c1920] : memref<1x2048xf32, #tpu.memory_space<vmem>>, vector<1x128xf32>
    tpu.vector_store %arg28[%c0_366, %c1920], %342 {strides = array<i32>} : memref<1x2048xf32, #tpu.memory_space<vmem>>, vector<1x128xf32>,
    %c0_367 = arith.constant 0 : index
    %c0_368 = arith.constant 0 : index
    %344 = vector.load %arg28[%c0_367, %c0_368] : memref<1x2048xf32, #tpu.memory_space<vmem>>, vector<1x2048xf32>
    %c0_369 = arith.constant 0 : index
    %c0_370 = arith.constant 0 : index
    %345 = vector.load %arg17[%c0_369, %c0_370] : memref<2048x256xf32, #tpu.memory_space<vmem>>, vector<2048x256xf32>
    %cst_371 = arith.constant dense<0.000000e+00> : vector<1x256xf32>
    %346 = tpu.matmul %344, %345, %cst_371 {dimension_numbers = #tpu.dot_dimension_numbers<[1], [0], [0], [1], [0, 0, 1, 1], [], []>} : vector<1x2048xf32>, vector<2048x256xf32>, vector<1x256xf32> -> vector<1x256xf32>
    %c0_372 = arith.constant 0 : index
    %c0_373 = arith.constant 0 : index
    %347 = vector.load %arg18[%c0_372, %c0_373] : memref<1x256xf32, #tpu.memory_space<vmem>>, vector<1x256xf32>
    %348 = arith.addf %346, %347 : vector<1x256xf32>
    %cst_374 = arith.constant 0.000000e+00 : f32
    %349 = vector.broadcast %cst_374 : f32 to vector<1x256xf32>
    %350 = arith.maximumf %348, %349 : vector<1x256xf32>
    %c0_375 = arith.constant 0 : index
    %c0_376 = arith.constant 0 : index
    %351 = vector.load %arg19[%c0_375, %c0_376] : memref<256x1xf32, #tpu.memory_space<vmem>>, vector<256x1xf32>
    %cst_377 = arith.constant dense<0.000000e+00> : vector<1x1xf32>
    %352 = tpu.matmul %350, %351, %cst_377 {dimension_numbers = #tpu.dot_dimension_numbers<[1], [0], [0], [1], [0, 0, 1, 1], [], []>} : vector<1x256xf32>, vector<256x1xf32>, vector<1x1xf32> -> vector<1x1xf32>
    %c0_378 = arith.constant 0 : index
    %c0_379 = arith.constant 0 : index
    %353 = vector.load %arg20[%c0_378, %c0_379] : memref<1x1xf32, #tpu.memory_space<vmem>>, vector<1x1xf32>
    %354 = arith.addf %352, %353 : vector<1x1xf32>
    %355 = arith.negf %354 : vector<1x1xf32>
    %356 = math.exp %355 : vector<1x1xf32>
    %cst_380 = arith.constant 1.000000e+00 : f32
    %357 = vector.broadcast %cst_380 : f32 to vector<1x1xf32>
    %358 = arith.addf %357, %356 : vector<1x1xf32>
    %359 = arith.divf %357, %358 : vector<1x1xf32>
    %c0_381 = arith.constant 0 : index
    %c0_382 = arith.constant 0 : index
    %c0_383 = arith.constant 0 : index
    %360 = vector.load %arg21[%c0_381, %c0_382, %c0_383] : memref<1x1x1xf32, #tpu.memory_space<vmem>>, vector<1x1x1xf32>
    %361 = vector.shape_cast %360 : vector<1x1x1xf32> to vector<1x1xf32>
    %362 = vector.shape_cast %359 : vector<1x1xf32> to vector<1x1x1xf32>
    tpu.vector_store %arg21[%c0_381, %c0_382, %c0_383], %362 {strides = array<i32>} : memref<1x1x1xf32, #tpu.memory_space<vmem>>, vector<1x1x1xf32>,
    return
  }
  func.func @transform_0(%arg0: i32) -> (i32, i32, i32) {
    %c0_i32 = arith.constant 0 : i32
    %c0_i32_0 = arith.constant 0 : i32
    %c0_i32_1 = arith.constant 0 : i32
    return %arg0, %c0_i32, %c0_i32_0 : i32, i32, i32
  }
  func.func @transform_1(%arg0: i32) -> (i32, i32, i32) {
    %c0_i32 = arith.constant 0 : i32
    %c0_i32_0 = arith.constant 0 : i32
    %c0_i32_1 = arith.constant 0 : i32
    %c0_i32_2 = arith.constant 0 : i32
    return %c0_i32, %c0_i32_0, %c0_i32_1 : i32, i32, i32
  }
  func.func @transform_2(%arg0: i32) -> (i32, i32) {
    %c0_i32 = arith.constant 0 : i32
    %c0_i32_0 = arith.constant 0 : i32
    %c0_i32_1 = arith.constant 0 : i32
    return %c0_i32, %c0_i32_0 : i32, i32
  }
  func.func @transform_3(%arg0: i32) -> (i32, i32) {
    %c0_i32 = arith.constant 0 : i32
    %c0_i32_0 = arith.constant 0 : i32
    %c0_i32_1 = arith.constant 0 : i32
    return %c0_i32, %c0_i32_0 : i32, i32
  }
  func.func @transform_4(%arg0: i32) -> (i32, i32, i32) {
    %c0_i32 = arith.constant 0 : i32
    %c0_i32_0 = arith.constant 0 : i32
    %c0_i32_1 = arith.constant 0 : i32
    %c0_i32_2 = arith.constant 0 : i32
    return %c0_i32, %c0_i32_0, %c0_i32_1 : i32, i32, i32
  }
  func.func @transform_5(%arg0: i32) -> (i32, i32) {
    %c0_i32 = arith.constant 0 : i32
    %c0_i32_0 = arith.constant 0 : i32
    %c0_i32_1 = arith.constant 0 : i32
    return %c0_i32, %c0_i32_0 : i32, i32
  }
  func.func @transform_6(%arg0: i32) -> (i32, i32) {
    %c0_i32 = arith.constant 0 : i32
    %c0_i32_0 = arith.constant 0 : i32
    %c0_i32_1 = arith.constant 0 : i32
    return %c0_i32, %c0_i32_0 : i32, i32
  }
  func.func @transform_7(%arg0: i32) -> (i32, i32, i32) {
    %c0_i32 = arith.constant 0 : i32
    %c0_i32_0 = arith.constant 0 : i32
    %c0_i32_1 = arith.constant 0 : i32
    %c0_i32_2 = arith.constant 0 : i32
    return %c0_i32, %c0_i32_0, %c0_i32_1 : i32, i32, i32
  }
  func.func @transform_8(%arg0: i32) -> (i32, i32) {
    %c0_i32 = arith.constant 0 : i32
    %c0_i32_0 = arith.constant 0 : i32
    %c0_i32_1 = arith.constant 0 : i32
    return %c0_i32, %c0_i32_0 : i32, i32
  }
  func.func @transform_9(%arg0: i32) -> (i32, i32) {
    %c0_i32 = arith.constant 0 : i32
    %c0_i32_0 = arith.constant 0 : i32
    %c0_i32_1 = arith.constant 0 : i32
    return %c0_i32, %c0_i32_0 : i32, i32
  }
  func.func @transform_10(%arg0: i32) -> (i32, i32) {
    %c0_i32 = arith.constant 0 : i32
    %c0_i32_0 = arith.constant 0 : i32
    %c0_i32_1 = arith.constant 0 : i32
    return %c0_i32, %c0_i32_0 : i32, i32
  }
  func.func @transform_11(%arg0: i32) -> (i32, i32) {
    %c0_i32 = arith.constant 0 : i32
    %c0_i32_0 = arith.constant 0 : i32
    %c0_i32_1 = arith.constant 0 : i32
    return %c0_i32, %c0_i32_0 : i32, i32
  }
  func.func @transform_12(%arg0: i32) -> (i32, i32) {
    %c0_i32 = arith.constant 0 : i32
    %c0_i32_0 = arith.constant 0 : i32
    %c0_i32_1 = arith.constant 0 : i32
    return %c0_i32, %c0_i32_0 : i32, i32
  }
  func.func @transform_13(%arg0: i32) -> (i32, i32) {
    %c0_i32 = arith.constant 0 : i32
    %c0_i32_0 = arith.constant 0 : i32
    %c0_i32_1 = arith.constant 0 : i32
    return %c0_i32, %c0_i32_0 : i32, i32
  }
  func.func @transform_14(%arg0: i32) -> (i32, i32) {
    %c0_i32 = arith.constant 0 : i32
    %c0_i32_0 = arith.constant 0 : i32
    %c0_i32_1 = arith.constant 0 : i32
    return %c0_i32, %c0_i32_0 : i32, i32
  }
  func.func @transform_15(%arg0: i32) -> (i32, i32) {
    %c0_i32 = arith.constant 0 : i32
    %c0_i32_0 = arith.constant 0 : i32
    %c0_i32_1 = arith.constant 0 : i32
    return %c0_i32, %c0_i32_0 : i32, i32
  }
  func.func @transform_16(%arg0: i32) -> (i32, i32) {
    %c0_i32 = arith.constant 0 : i32
    %c0_i32_0 = arith.constant 0 : i32
    %c0_i32_1 = arith.constant 0 : i32
    return %c0_i32, %c0_i32_0 : i32, i32
  }
  func.func @transform_17(%arg0: i32) -> (i32, i32) {
    %c0_i32 = arith.constant 0 : i32
    %c0_i32_0 = arith.constant 0 : i32
    %c0_i32_1 = arith.constant 0 : i32
    return %c0_i32, %c0_i32_0 : i32, i32
  }
  func.func @transform_18(%arg0: i32) -> (i32, i32) {
    %c0_i32 = arith.constant 0 : i32
    %c0_i32_0 = arith.constant 0 : i32
    %c0_i32_1 = arith.constant 0 : i32
    return %c0_i32, %c0_i32_0 : i32, i32
  }
  func.func @transform_19(%arg0: i32) -> (i32, i32) {
    %c0_i32 = arith.constant 0 : i32
    %c0_i32_0 = arith.constant 0 : i32
    %c0_i32_1 = arith.constant 0 : i32
    return %c0_i32, %c0_i32_0 : i32, i32
  }
  func.func @transform_20(%arg0: i32) -> (i32, i32, i32) {
    %c0_i32 = arith.constant 0 : i32
    %c0_i32_0 = arith.constant 0 : i32
    %c0_i32_1 = arith.constant 0 : i32
    return %arg0, %c0_i32, %c0_i32_0 : i32, i32, i32
  }
}

</mosaic_0001>

<bundles_post_ra>
// kernel: eeg_attention_cnn_forward.1
= control target key start
LH: loop header
LB: loop body
LE: loop exit
PB: predicated region body
PF: predicated region fallthrough
CT: control target
= control target key end

     0   :  { %s11838_s0 = inlined_call_operand.vmem [shape: f32[2,188,4], index: 0, kind: input, shape index: {}]   ;;  %s11839_s1 = inlined_call_operand.hbm [shape: f32[9,4,32], index: 1, kind: input, shape index: {}]   ;;  %s11840_s2 = inlined_call_operand.hbm [shape: f32[1,32], index: 2, kind: input, shape index: {}]   ;;  %s11841_s3 = inlined_call_operand.hbm [shape: f32[1,32], index: 3, kind: input, shape index: {}]   ;;  %s11842_s4 = inlined_call_operand.hbm [shape: f32[9,32,64], index: 4, kind: input, shape index: {}]   ;;  %s11843_s5 = inlined_call_operand.hbm [shape: f32[1,64], index: 5, kind: input, shape index: {}]   ;;  %s11844_s6 = inlined_call_operand.hbm [shape: f32[1,64], index: 6, kind: input, shape index: {}]   ;;  %s11845_s7 = inlined_call_operand.hbm [shape: f32[9,64,128], index: 7, kind: input, shape index: {}]   ;;  %s11846_s8 = inlined_call_operand.hbm [shape: f32[1,128], index: 8, kind: input, shape index: {}]   ;;  %s11847_s9 = inlined_call_operand.hbm [shape: f32[1,128], index: 9, kind: input, shape index: {}]   ;;  %s11848_s10 = inlined_call_operand.hbm [shape: f32[1,128], index: 10, kind: input, shape index: {}]   ;;  %s11849_s11 = inlined_call_operand.<no memory space> [shape: f32[1,1], index: 11, kind: input, shape index: {}]   ;;  %s11850_s12 = inlined_call_operand.vmem [shape: f32[128,16], index: 12, kind: input, shape index: {}]   ;;  %s11851_s13 = inlined_call_operand.hbm [shape: f32[1,16], index: 13, kind: input, shape index: {}]   ;;  %s11852_s14 = inlined_call_operand.hbm [shape: f32[16,128], index: 14, kind: input, shape index: {}]   ;;  %s11853_s15 = inlined_call_operand.hbm [shape: f32[1,128], index: 15, kind: input, shape index: {}]   ;;  %s11854_s16 = inlined_call_operand.hbm [shape: f32[2048,256], index: 16, kind: input, shape index: {}]   ;;  %s11855_s17 = inlined_call_operand.hbm [shape: f32[1,256], index: 17, kind: input, shape index: {}]   ;;  %s11856_s18 = inlined_call_operand.vmem [shape: f32[256,1], index: 18, kind: input, shape index: {}]   ;;  %s11857_s20 = inlined_call_operand.vmem [shape: f32[2,1,1], index: 20, kind: output, shape index: {}]   ;;  %s11858_s19 = inlined_call_operand.<no memory space> [shape: f32[1,1], index: 19, kind: input, shape index: {}]  }
   0x1   :  { %11870 = sst [smem:[#allocation79_spill]] %s11838_s0  ;;  %v25_v0 = vstv %s11849_s11  ;;  %v27_v1 = vstv %s11858_s19 }
   0x2   :  { %11871 = sst [smem:[#allocation80_spill]] %s11839_s1  ;;  %26 = vst [vmem:[#allocation9] sm:$0x1] %v25_v0  ;;  %28 = vst [vmem:[#allocation10] sm:$0x1] %v27_v1 }
   0x3   :  { %11872 = sst [smem:[#allocation81_spill]] %s11840_s2 }
   0x4   :  { %11873 = sst [smem:[#allocation82_spill]] %s11841_s3 }
   0x5   :  { %11874 = sst [smem:[#allocation83_spill]] %s11842_s4 }
   0x6   :  { %29 = vsyncpa [#allocation12], 0 }
   0x7   :  { %30 = vsyncpa [#allocation14], 0 }
   0x8   :  { %31 = vsyncpa [#allocation17], 0 }
   0x9   :  { %32 = vsyncpa [#allocation20], 0 }
   0xa   :  { %33 = vsyncpa [#allocation23], 0 }
   0xb   :  { %34 = vsyncpa [#allocation26], 0 }
   0xc   :  { %35 = vsyncpa [#allocation29], 0 }
   0xd   :  { %36 = vsyncpa [#allocation32], 0  ;;  %s10176_s2 = smov 0  }
   0xe LB: > { %s10041_s11 = smov [#allocation13]   ;;  %s10182_s25 = sadd.s32 4294967295, %s10039_s2   ;;  %s10039_s2 = sphi %s10176_s2, %s42_s2  }
   0xf   : > { %s524_s19 = sshll.u32 %s10041_s11, 4  ;;  %p7846_p0 = scmp.ge.s32.totalorder %s10039_s2, 1  ;;  %s525_s19 = int_to_ptr.vmem [resolvable:$true] %s524_s19 }
  0x10   : > { %p498_p1 = scmp.lt.s32.totalorder %s10039_s2, 3  ;;  %p11859_p2 = scmp.eq.s32.totalorder %s10182_s25, 0 }
  0x11   : > { %s10042_s26 = smov [#allocation16]   ;;  %s10043_s4 = smov [#allocation19]  }
  0x12   : > { %p10187_p3 = pnand %p7846_p0, %p498_p1  ;;  %s545_s27 = sshll.u32 %s10042_s26, 4  ;;  %s10193_s27 = int_to_ptr.vmem [resolvable:$true] %s545_s27 }
  0x13   : > { %s570_s29 = sshll.u32 %s10043_s4, 4  ;;  %s10044_s30 = smov [#allocation22]   ;;  %s10201_s29 = int_to_ptr.vmem [resolvable:$true] %s570_s29 }
  0x14   : > { %s11875_s3 = scalar_select %p10187_p3, 1, 0 }
  0x15   : > { %p9484_p4 = pneg %p10187_p3  ;;  %s10203_s0 = sshll.u32 %s10044_s30, 4  ;;  %s595_s0 = int_to_ptr.vmem [resolvable:$true] %s10203_s0 }
  0x16   : > { %s9622_s1 = scalar_lea.vmem %s525_s19, 16  ;;  %s9629_s22 = scalar_lea.vmem %s525_s19, 32 }
  0x17   : > { %p10197_p5 = pnand %p11859_p2, %p9484_p4  ;;  %p9623_p7 = scmp.ne.s32.totalorder %s525_s19, %s9622_s1 }
  0x18   : > { %p9630_p10 = scmp.lt.s32.totalorder %s525_s19, %s525_s19  ;;  %p9631_p11 = scmp.lt.s32.totalorder %s9629_s22, %s9622_s1 }
  0x19   : > { %p10207_p6 = pneg %p10197_p5 }
  0x1a   : > { %p9632_p12 = por %p9631_p11, %p9630_p10 }
  0x1b   : > { %p9625_p8 = pnand %p9623_p7, %p10207_p6 }
  0x1d   : > { %p9626_p9 = pneg %p9625_p8 }
  0x1f   : > { %p9633_p13 = pnand %p9632_p12, %p9626_p9 }
  0x21   : > { %9636 = shalt.err (!%p9633_p13)
}
  0x22   : > { %s11878_s11 = sld [smem:[#allocation81_spill]]  ;;  %s9648_s26 = scalar_lea.vmem %s10193_s27, 4608 }
  0x23   : > { %p9649_p0 = scmp.ne.s32.totalorder %s10193_s27, %s9648_s26  ;;  %p9656_p7 = scmp.lt.s32.totalorder %s10193_s27, %s10193_s27 }
  0x24   : > { %p9657_p8 = scmp.lt.s32.totalorder %s9648_s26, %s9648_s26 }
  0x25   : > { %p9651_p1 = pnand %p9649_p0, %p10207_p6 }
  0x26   : > { %p9658_p9 = por %p9657_p8, %p9656_p7 }
  0x27   : > { %p9652_p4 = pneg %p9651_p1 }
  0x28   : > { %9490 = dma.hbm_to_vmem [thread:$0]  (!%p10197_p5), %s11878_s11, 16, %s525_s19, [#allocation14]  }
  0x29   : > { %p9659_p10 = pnand %p9658_p9, %p9652_p4 }
  0x2b   : > { %9662 = shalt.err (!%p9659_p10)
}
  0x2c   : > { %s11861_s4 = smov 128   ;;  %s11862_s19 = smov 8  }
  0x2d   : > { %s11879_s22 = sld [smem:[#allocation83_spill]]  ;;  %s9674_s23 = scalar_lea.vmem %s10201_s29, 16 }
  0x2e   : > { %p9675_p11 = scmp.ne.s32.totalorder %s10201_s29, %s9674_s23  ;;  %s9681_s24 = scalar_lea.vmem %s10201_s29, 32 }
  0x2f   : > { %p9682_p0 = scmp.lt.s32.totalorder %s10201_s29, %s10201_s29  ;;  %p9683_p1 = scmp.lt.s32.totalorder %s9681_s24, %s9674_s23 }
  0x30   : > { %p9677_p12 = pnand %p9675_p11, %p10207_p6 }
  0x31   : > { %p9684_p4 = por %p9683_p1, %p9682_p0 }
  0x32   : > { %p9678_p13 = pneg %p9677_p12 }
  0x33   : > { %9496 = dma.hbm_to_vmem [thread:$0]  (!%p10197_p5), %s11879_s22, 4608, %s10193_s27, [#allocation17], %s11861_s4, %s11861_s4, %s11862_s19  }
  0x34   : > { %p9685_p7 = pnand %p9684_p4, %p9678_p13 }
  0x36   : > { %9688 = shalt.err (!%p9685_p7)
}
  0x37   : > { %9502 = dma.hbm_to_vmem [thread:$0]  (!%p10197_p5), %s11844_s6, 16, %s10201_s29, [#allocation20]  }
  0x38   : > { %s9700_s27 = scalar_lea.vmem %s595_s0, 16  ;;  %s9707_s30 = scalar_lea.vmem %s595_s0, 32 }
  0x39   : > { %p9701_p8 = scmp.ne.s32.totalorder %s595_s0, %s9700_s27  ;;  %p9708_p11 = scmp.lt.s32.totalorder %s595_s0, %s595_s0 }
  0x3a   : > { %p9709_p12 = scmp.lt.s32.totalorder %s9707_s30, %s9700_s27 }
  0x3b   : > { %p9703_p9 = pnand %p9701_p8, %p10207_p6 }
  0x3c   : > { %p9710_p13 = por %p9709_p12, %p9708_p11 }
  0x3d   : > { %p9704_p10 = pneg %p9703_p9 }
  0x3f   : > { %p9711_p0 = pnand %p9710_p13, %p9704_p10 }
  0x41   : > { %9714 = shalt.err (!%p9711_p0)
}
  0x42   : > { %9508 = dma.hbm_to_vmem [thread:$0]  (!%p10197_p5), %s11846_s8, 16, %s595_s0, [#allocation23]  }
  0x43   : > { %s10047_s29 = smov [#allocation25]   ;;  %s10048_s24 = smov [#allocation28]  }
  0x44   : > { %s616_s23 = sshll.u32 %s10047_s29, 4  ;;  %s643_s11 = sshll.u32 %s10048_s24, 4  ;;  %s617_s23 = int_to_ptr.vmem [resolvable:$true] %s616_s23  ;;  %s644_s11 = int_to_ptr.vmem [resolvable:$true] %s643_s11 }
  0x45   : > { %s9726_s26 = scalar_lea.vmem %s617_s23, 16  ;;  %s9733_s27 = scalar_lea.vmem %s617_s23, 32 }
  0x46   : > { %p9727_p1 = scmp.ne.s32.totalorder %s617_s23, %s9726_s26  ;;  %p9734_p8 = scmp.lt.s32.totalorder %s617_s23, %s617_s23 }
  0x47   : > { %p9735_p9 = scmp.lt.s32.totalorder %s9733_s27, %s9726_s26 }
  0x48   : > { %p9729_p4 = pnand %p9727_p1, %p10207_p6 }
  0x49   : > { %p9736_p10 = por %p9735_p9, %p9734_p8 }
  0x4a   : > { %p9730_p7 = pneg %p9729_p4 }
  0x4c   : > { %p9737_p11 = pnand %p9736_p10, %p9730_p7 }
  0x4e   : > { %9740 = shalt.err (!%p9737_p11)
}
  0x4f   : > { %9514 = dma.hbm_to_vmem [thread:$0]  (!%p10197_p5), %s11848_s10, 16, %s617_s23, [#allocation26]  }
  0x50   : > { %s9752_s1 = scalar_lea.vmem %s644_s11, 256  ;;  %p9760_p1 = scmp.lt.s32.totalorder %s644_s11, %s644_s11 }
  0x51   : > { %p9753_p12 = scmp.ne.s32.totalorder %s644_s11, %s9752_s1  ;;  %p9761_p4 = scmp.lt.s32.totalorder %s9752_s1, %s9752_s1 }
  0x53   : > { %p9755_p13 = pnand %p9753_p12, %p10207_p6  ;;  %p9762_p2 = por %p9761_p4, %p9760_p1 }
  0x55   : > { %p9756_p0 = pneg %p9755_p13 }
  0x57   : > { %p9763_p3 = pnand %p9762_p2, %p9756_p0 }
  0x59   : > { %9766 = shalt.err (!%p9763_p3)
}
  0x5a   : > { %9520 = dma.hbm_to_vmem [thread:$0]  (!%p10197_p5), %s11852_s14, 256, %s644_s11, [#allocation29], %s11861_s4, %s11861_s4, %s11862_s19  }
  0x5b   : > { %s10049_s23 = smov [#allocation31]  }
  0x5c   : > { %s667_s24 = sshll.u32 %s10049_s23, 4  ;;  %s668_s24 = int_to_ptr.vmem [resolvable:$true] %s667_s24 }
  0x5d   : > { %s9778_s26 = scalar_lea.vmem %s668_s24, 65536  ;;  %p9786_p2 = scmp.lt.s32.totalorder %s668_s24, %s668_s24 }
  0x5e   : > { %p9779_p7 = scmp.ne.s32.totalorder %s668_s24, %s9778_s26  ;;  %p9787_p3 = scmp.lt.s32.totalorder %s9778_s26, %s9778_s26 }
  0x60   : > { %p9781_p8 = pnand %p9779_p7, %p10207_p6  ;;  %p9788_p10 = por %p9787_p3, %p9786_p2 }
  0x62   : > { %p9782_p9 = pneg %p9781_p8 }
  0x64   : > { %p9789_p11 = pnand %p9788_p10, %p9782_p9 }
  0x66   : > { %9792 = shalt.err (!%p9789_p11)
}
  0x67   : > { %s10050_s27 = smov 256   ;;  %s10051_s30 = smov 16  }
  0x68   : > { %9526 = dma.hbm_to_vmem [thread:$0]  (!%p10197_p5), %s11854_s16, 65536, %s668_s24, [#allocation32], %s10050_s27, %s10050_s27, %s10051_s30  }
  0x69   : > { %s10052_s1 = smov [#allocation11]  }
  0x6a   : > { %s510_s22 = sshll.u32 %s10052_s1, 4  ;;  %s511_s22 = int_to_ptr.vmem [resolvable:$true] %s510_s22 }
  0x6b   : > { %s9804_s29 = scalar_lea.vmem %s511_s22, 576  ;;  %p9812_p1 = scmp.lt.s32.totalorder %s511_s22, %s511_s22 }
  0x6c   : > { %p9805_p12 = scmp.ne.s32.totalorder %s511_s22, %s9804_s29  ;;  %p9813_p4 = scmp.lt.s32.totalorder %s9804_s29, %s9804_s29 }
  0x6e   : > { %p9807_p13 = pnand %p9805_p12, %p10207_p6  ;;  %p9814_p7 = por %p9813_p4, %p9812_p1 }
  0x70   : > { %p9808_p0 = pneg %p9807_p13 }
  0x72   : > { %p9815_p8 = pnand %p9814_p7, %p9808_p0 }
  0x74   : > { %9818 = shalt.err (!%p9815_p8)
}
  0x75   : > { %s10053_s23 = smov 64   ;;  %s10054_s26 = smov 4  }
  0x76   : > { %s11880_s27 = sld [smem:[#allocation80_spill]]  ;;  %s10055_s30 = smov [#allocation15]  }
  0x77   : > { %s535_s11 = sshll.u32 %s10055_s30, 4  ;;  %s10056_s1 = smov [#allocation18]   ;;  %s536_s11 = int_to_ptr.vmem [resolvable:$true] %s535_s11 }
  0x78   : > { %s559_s4 = sshll.u32 %s10056_s1, 4  ;;  %s9830_s19 = scalar_lea.vmem %s536_s11, 16  ;;  %s560_s4 = int_to_ptr.vmem [resolvable:$true] %s559_s4 }
  0x79   : > { %p9831_p9 = scmp.ne.s32.totalorder %s536_s11, %s9830_s19  ;;  %s9837_s29 = scalar_lea.vmem %s536_s11, 32 }
  0x7a   : > { %p9838_p10 = scmp.lt.s32.totalorder %s536_s11, %s536_s11  ;;  %p9839_p11 = scmp.lt.s32.totalorder %s9837_s29, %s9830_s19 }
  0x7b   : > { %p9833_p2 = pnand %p9831_p9, %p10207_p6 }
  0x7c   : > { %9487 = dma.hbm_to_vmem [thread:$0]  (!%p10197_p5), %s11880_s27, 576, %s511_s22, [#allocation12], %s10053_s23, %s10053_s23, %s10054_s26  }
  0x7d   : > { %p9834_p3 = pneg %p9833_p2  ;;  %p9840_p12 = por %p9839_p11, %p9838_p10 }
  0x7f   : > { %p9841_p13 = pnand %p9840_p12, %p9834_p3 }
  0x81   : > { %9844 = shalt.err (!%p9841_p13)
}
  0x82   : > { %s11881_s23 = sld [smem:[#allocation82_spill]]  ;;  %s9856_s26 = scalar_lea.vmem %s560_s4, 16 }
  0x83   : > { %p9857_p0 = scmp.ne.s32.totalorder %s560_s4, %s9856_s26  ;;  %s9863_s24 = scalar_lea.vmem %s560_s4, 32 }
  0x84   : > { %p9864_p7 = scmp.lt.s32.totalorder %s560_s4, %s560_s4  ;;  %p9865_p8 = scmp.lt.s32.totalorder %s9863_s24, %s9856_s26 }
  0x85   : > { %p9859_p1 = pnand %p9857_p0, %p10207_p6 }
  0x86   : > { %p9866_p9 = por %p9865_p8, %p9864_p7 }
  0x87   : > { %p9860_p4 = pneg %p9859_p1 }
  0x88   : > { %9493 = dma.hbm_to_vmem [thread:$0]  (!%p10197_p5), %s11881_s23, 16, %s536_s11, [#allocation14]  }
  0x89   : > { %p9867_p2 = pnand %p9866_p9, %p9860_p4 }
  0x8b   : > { %9870 = shalt.err (!%p9867_p2)
}
  0x8c   : > { %9499 = dma.hbm_to_vmem [thread:$0]  (!%p10197_p5), %s11843_s5, 16, %s560_s4, [#allocation17]  }
  0x8d   : > { %s10057_s30 = smov [#allocation21]   ;;  %s10058_s1 = smov [#allocation24]  }
  0x8e   : > { %s580_s11 = sshll.u32 %s10057_s30, 4  ;;  %s605_s29 = sshll.u32 %s10058_s1, 4  ;;  %s581_s11 = int_to_ptr.vmem [resolvable:$true] %s580_s11  ;;  %s606_s29 = int_to_ptr.vmem [resolvable:$true] %s605_s29 }
  0x8f   : > { %s9882_s0 = scalar_lea.vmem %s581_s11, 9216  ;;  %p9890_p12 = scmp.lt.s32.totalorder %s581_s11, %s581_s11 }
  0x90   : > { %p9883_p3 = scmp.ne.s32.totalorder %s581_s11, %s9882_s0  ;;  %p9891_p13 = scmp.lt.s32.totalorder %s9882_s0, %s9882_s0 }
  0x92   : > { %p9885_p10 = pnand %p9883_p3, %p10207_p6  ;;  %p9892_p0 = por %p9891_p13, %p9890_p12 }
  0x94   : > { %p9886_p11 = pneg %p9885_p10 }
  0x96   : > { %p9893_p1 = pnand %p9892_p0, %p9886_p11 }
  0x98   : > { %9896 = shalt.err (!%p9893_p1)
}
  0x99   : > { %s11882_s22 = smov 8   ;;  %s11883_s23 = smov 128  }
  0x9a   : > { %9505 = dma.hbm_to_vmem [thread:$0]  (!%p10197_p5), %s11845_s7, 9216, %s581_s11, [#allocation20], %s11883_s23, %s11883_s23, %s11882_s22  }
  0x9b   : > { %s9908_s24 = scalar_lea.vmem %s606_s29, 16  ;;  %s9915_s19 = scalar_lea.vmem %s606_s29, 32 }
  0x9c   : > { %p9909_p4 = scmp.ne.s32.totalorder %s606_s29, %s9908_s24  ;;  %p9916_p9 = scmp.lt.s32.totalorder %s606_s29, %s606_s29 }
  0x9d   : > { %p9917_p2 = scmp.lt.s32.totalorder %s9915_s19, %s9908_s24 }
  0x9e   : > { %p9911_p7 = pnand %p9909_p4, %p10207_p6 }
  0x9f   : > { %p9918_p3 = por %p9917_p2, %p9916_p9 }
  0xa0   : > { %p9912_p8 = pneg %p9911_p7 }
  0xa2   : > { %p9919_p10 = pnand %p9918_p3, %p9912_p8 }
  0xa4   : > { %9922 = shalt.err (!%p9919_p10)
}
  0xa5   : > { %9511 = dma.hbm_to_vmem [thread:$0]  (!%p10197_p5), %s11847_s9, 16, %s606_s29, [#allocation23]  }
  0xa6   : > { %s10059_s11 = smov [#allocation27]   ;;  %s10060_s0 = smov [#allocation30]  }
  0xa7   : > { %s633_s1 = sshll.u32 %s10059_s11, 4  ;;  %s657_s22 = sshll.u32 %s10060_s0, 4  ;;  %s634_s1 = int_to_ptr.vmem [resolvable:$true] %s633_s1  ;;  %s658_s22 = int_to_ptr.vmem [resolvable:$true] %s657_s22 }
  0xa8   : > { %s9934_s23 = scalar_lea.vmem %s634_s1, 16  ;;  %s9941_s4 = scalar_lea.vmem %s634_s1, 32 }
  0xa9   : > { %p9935_p11 = scmp.ne.s32.totalorder %s634_s1, %s9934_s23  ;;  %p9942_p0 = scmp.lt.s32.totalorder %s634_s1, %s634_s1 }
  0xaa   : > { %p9943_p1 = scmp.lt.s32.totalorder %s9941_s4, %s9934_s23 }
  0xab   : > { %p9937_p12 = pnand %p9935_p11, %p10207_p6 }
  0xac   : > { %p9944_p4 = por %p9943_p1, %p9942_p0 }
  0xad   : > { %p9938_p13 = pneg %p9937_p12 }
  0xaf   : > { %p9945_p7 = pnand %p9944_p4, %p9938_p13 }
  0xb1   : > { %9948 = shalt.err (!%p9945_p7)
}
  0xb2   : > { %9517 = dma.hbm_to_vmem [thread:$0]  (!%p10197_p5), %s11851_s13, 16, %s634_s1, [#allocation26]  }
  0xb3   : > { %s9960_s24 = scalar_lea.vmem %s658_s22, 16  ;;  %s9967_s19 = scalar_lea.vmem %s658_s22, 32 }
  0xb4   : > { %p9961_p8 = scmp.ne.s32.totalorder %s658_s22, %s9960_s24  ;;  %p9968_p3 = scmp.lt.s32.totalorder %s658_s22, %s658_s22 }
  0xb5   : > { %p9969_p10 = scmp.lt.s32.totalorder %s9967_s19, %s9960_s24 }
  0xb6   : > { %p9963_p9 = pnand %p9961_p8, %p10207_p6 }
  0xb7   : > { %p9970_p11 = por %p9969_p10, %p9968_p3 }
  0xb8   : > { %p9964_p2 = pneg %p9963_p9 }
  0xba   : > { %p9971_p12 = pnand %p9970_p11, %p9964_p2 }
  0xbc   : > { %9974 = shalt.err (!%p9971_p12)
}
  0xbd   : > { %9523 = dma.hbm_to_vmem [thread:$0]  (!%p10197_p5), %s11853_s15, 16, %s658_s22, [#allocation29]  }
  0xbe   : > { %s10061_s11 = smov [#allocation33]  }
  0xbf   : > { %s681_s1 = sshll.u32 %s10061_s11, 4  ;;  %s682_s1 = int_to_ptr.vmem [resolvable:$true] %s681_s1 }
  0xc0   : > { %s9986_s0 = scalar_lea.vmem %s682_s1, 32  ;;  %p9994_p4 = scmp.lt.s32.totalorder %s682_s1, %s682_s1 }
  0xc1   : > { %p9987_p13 = scmp.ne.s32.totalorder %s682_s1, %s9986_s0  ;;  %p9995_p7 = scmp.lt.s32.totalorder %s9986_s0, %s9986_s0 }
  0xc3   : > { %p9989_p0 = pnand %p9987_p13, %p10207_p6  ;;  %p9996_p8 = por %p9995_p7, %p9994_p4 }
  0xc5   : > { %p9990_p1 = pneg %p9989_p0 }
  0xc7   : > { %p9997_p9 = pnand %p9996_p8, %p9990_p1 }
  0xc9   : > { %10000 = shalt.err (!%p9997_p9)
}
  0xca   : > { %9529 = dma.hbm_to_vmem [thread:$0]  (!%p10197_p5), %s11855_s17, 32, %s682_s1, [#allocation32]  }
  0xcb   : > { %p11884_p2 = scmp.ne.s32.totalorder %s11875_s3, 0 }
  0xcd   : > { %708 = sbr.rel (%p11884_p2) target bundleno = 2643 (0xa53), region = 100 }
  0xd2   : > { %p11885_p3 = scmp.eq.s32.totalorder %s10182_s25, 0 }
  0xd4   : > { %10006 = dma.done.wait (%p11885_p3), [#allocation12], 576   ;;  %p11886_p6 = pmov %p11885_p3 }
  0xd5   : > { %p11887_p10 = pmov %p11885_p3 }
  0xd6   : > { %10008 = vsyncadd (%p11886_p6), [#allocation12], 4294966720 }
  0xd7   : > { %10010 = dma.done.wait (%p11887_p10), [#allocation14], 32   ;;  %p11888_p11 = pmov %p11885_p3 }
  0xd8   : > { %p11889_p12 = pmov %p11885_p3 }
  0xd9   : > { %10012 = vsyncadd (%p11888_p11), [#allocation14], 4294967264 }
  0xda   : > { %10014 = dma.done.wait (%p11889_p12), [#allocation17], 4624   ;;  %p11890_p5 = pmov %p11885_p3 }
  0xdb   : > { %p11891_p13 = pmov %p11885_p3 }
  0xdc   : > { %10016 = vsyncadd (%p11890_p5), [#allocation17], 4294962672 }
  0xdd   : > { %10018 = dma.done.wait (%p11891_p13), [#allocation20], 9232   ;;  %p11892_p0 = pmov %p11885_p3 }
  0xdf   : > { %10020 = vsyncadd (%p11892_p0), [#allocation20], 4294958064  ;;  %p11893_p1 = pmov %p11892_p0 }
  0xe0   : > { %p11894_p4 = pmov %p11892_p0 }
  0xe1   : > { %10022 = dma.done.wait (%p11893_p1), [#allocation23], 32  }
  0xe2   : > { %10024 = vsyncadd (%p11894_p4), [#allocation23], 4294967264  ;;  %p11895_p7 = pmov %p11892_p0 }
  0xe3   : > { %p11896_p8 = pmov %p11892_p0 }
  0xe4   : > { %10026 = dma.done.wait (%p11895_p7), [#allocation26], 32  }
  0xe5   : > { %10028 = vsyncadd (%p11896_p8), [#allocation26], 4294967264  ;;  %p11897_p9 = pmov %p11892_p0 }
  0xe6   : > { %p11898_p2 = pmov %p11892_p0 }
  0xe7   : > { %10030 = dma.done.wait (%p11897_p9), [#allocation29], 272  }
  0xe8   : > { %10032 = vsyncadd (%p11898_p2), [#allocation29], 4294967024  ;;  %p11899_p3 = pmov %p11892_p0 }
  0xe9   : > { %p11900_p6 = pmov %p11892_p0 }
  0xea   : > { %10034 = dma.done.wait (%p11899_p3), [#allocation32], 65568  }
  0xeb   : > { %10036 = vsyncadd (%p11900_p6), [#allocation32], 4294901728  ;;  %p820_p10 = scmp.lt.s32.totalorder %s10182_s25, 1  ;;  %vm922_vm0 = vcmask 1043456   ;;  %s11901_s22 = sld [smem:[#allocation79_spill]]  ;;  %vm867_vm1 = vcmask 31744  }
  0xec   : > { %v866_v2 = vld [vmem:[#allocation11 + $0x4] sm:$0xf]  ;;  %v846_v3 = vld [vmem:[#allocation11] sm:$0xf]  ;;  %v1312_v8 = vld [vmem:[#allocation11 + $0x8] sm:$0xf] }
  0xed   : > { %s12009_s25 = smov (!%p820_p10, %s10182_s25), 1  ;;  %8688 = vmatprep.subr.msk.mxu0 %vm922_vm0, %v866_v2  ;;  %8717 = vmatprep.subr.msk.mxu1 %vm922_vm0, %v846_v3  ;;  %v1562_v21 = vld [vmem:[#allocation11 + $0xc] sm:$0xf]  ;;  %v1812_v24 = vld [vmem:[#allocation11 + $0x10] sm:$0xf]  ;;  %vm3111_vm2 = vcmask 261120  }
  0xee   : > { %s9423_s3 = smul.u32 192, %s12009_s25  ;;  %8689 = vmatpush3.msk.msra.mxu0 %vm922_vm0, %v866_v2  ;;  %8718 = vmatpush3.msk.msra.mxu1 %vm922_vm0, %v846_v3  ;;  %v2062_v29 = vld [vmem:[#allocation11 + $0x14] sm:$0xf]  ;;  %v10472_v49 = vld [vmem:[#allocation11 + $0x18] sm:$0xf]  ;;  %vm4745_vm3 = vcmask 523264   ;;  %s827_s23 = scalar_lea.vmem %s11857_s20, %s12009_s25 }
  0xef   : > { %8746 = vmatprep.subr.msk.mxu0 %vm922_vm0, %v1312_v8  ;;  %8775 = vmatprep.subr.msk.mxu1 %vm922_vm0, %v1562_v21  ;;  %v10474_v50 = vld [vmem:[#allocation11 + $0x1c] sm:$0xf]  ;;  %vm4764_vm4 = vcmask 519168   ;;  %vm10064_vm5 = vmmov 0   ;;  %vm6239_vm6 = vcmask 130048   ;;  %vm7650_vm8 = vcmask 0  }
  0xf1   : > { %s10379_s26 = scalar_lea.vmem %s11901_s22, %s9423_s3 }
  0xf2   : > { %v847_v4 = vld [vmem:[%s10379_s26 + $0x1] sm:$0xff]  ;;  %v848_v6 = vld [vmem:[%s10379_s26 + $0x9] sm:$0xff]  ;;  %v849_v9 = vld [vmem:[%s10379_s26 + $0x11] sm:$0xff] }
  0xf3   : > { %v828_v5 = vld [vmem:[%s10379_s26] sm:$0xff]  ;;  %v829_v7 = vld [vmem:[%s10379_s26 + $0x8] sm:$0xff]  ;;  %8690 = vmatprep.mubr.msk.f32.mxu0 %vm867_vm1, %v847_v4  ;;  %v830_v10 = vld [vmem:[%s10379_s26 + $0x10] sm:$0xff] }
  0xf4   : > { %8719 = vmatprep.mubr.msk.f32.mxu1 %vm867_vm1, %v828_v5  ;;  %8691 = vmatmul.mubr.msk.f32.vlgmr.msra.gmra.mxu0 %vm867_vm1, %v848_v6  ;;  %v850_v11 = vld [vmem:[%s10379_s26 + $0x19] sm:$0xff]  ;;  %v851_v13 = vld [vmem:[%s10379_s26 + $0x21] sm:$0xff]  ;;  %v852_v15 = vld [vmem:[%s10379_s26 + $0x29] sm:$0xff] }
  0xf5   : > { %8720 = vmatmul.mubr.msk.f32.vlgmr.msra.gmra.mxu1 %vm867_vm1, %v829_v7  ;;  %8693 = vmatprep.mubr.msk.f32.mxu0 %vm867_vm1, %v849_v9  ;;  %v831_v12 = vld [vmem:[%s10379_s26 + $0x18] sm:$0xff]  ;;  %v832_v14 = vld [vmem:[%s10379_s26 + $0x20] sm:$0xff]  ;;  %v833_v16 = vld [vmem:[%s10379_s26 + $0x28] sm:$0xff] }
  0xf6   : > { %8747 = vmatpush3.msk.msra.mxu0 %vm922_vm0, %v1312_v8  ;;  %8722 = vmatprep.mubr.msk.f32.mxu1 %vm867_vm1, %v830_v10  ;;  %v853_v17 = vld [vmem:[%s10379_s26 + $0x31] sm:$0xff]  ;;  %v854_v19 = vld [vmem:[%s10379_s26 + $0x39] sm:$0xff]  ;;  %v855_v22 = vld [vmem:[%s10379_s26 + $0x41] sm:$0xff] }
  0xf7   : > { %v834_v18 = vld [vmem:[%s10379_s26 + $0x30] sm:$0xff]  ;;  %v835_v20 = vld [vmem:[%s10379_s26 + $0x38] sm:$0xff]  ;;  %v836_v23 = vld [vmem:[%s10379_s26 + $0x40] sm:$0xff]  ;;  %8776 = vmatpush3.msk.msra.mxu1 %vm922_vm0, %v1562_v21  ;;  %8804 = vmatprep.subr.msk.mxu0 %vm922_vm0, %v1812_v24 }
  0xf8   : > { %8694 = vmatmul.mubr.msk.f32.gmra.mxu0 %vm867_vm1, %v850_v11  ;;  %v856_v25 = vld [vmem:[%s10379_s26 + $0x49] sm:$0xff]  ;;  %v857_v27 = vld [vmem:[%s10379_s26 + $0x51] sm:$0xff]  ;;  %v858_v30 = vld [vmem:[%s10379_s26 + $0x59] sm:$0xff]  ;;  %8833 = vmatprep.subr.msk.mxu1 %vm922_vm0, %v2062_v29 }
  0xf9   : > { %8723 = vmatmul.mubr.msk.f32.gmra.mxu1 %vm867_vm1, %v831_v12  ;;  %8696 = vmatprep.mubr.msk.f32.mxu0 %vm867_vm1, %v851_v13  ;;  %v837_v26 = vld [vmem:[%s10379_s26 + $0x48] sm:$0xff]  ;;  %v838_v28 = vld [vmem:[%s10379_s26 + $0x50] sm:$0xff]  ;;  %v839_v31 = vld [vmem:[%s10379_s26 + $0x58] sm:$0xff] }
  0xfa   : > { %8725 = vmatprep.mubr.msk.f32.mxu1 %vm867_vm1, %v832_v14  ;;  %v859_v32 = vld [vmem:[%s10379_s26 + $0x61] sm:$0xff]  ;;  %v860_v34 = vld [vmem:[%s10379_s26 + $0x69] sm:$0xff]  ;;  %v861_v36 = vld [vmem:[%s10379_s26 + $0x71] sm:$0xff] }
  0xfb   : > { %v840_v33 = vld [vmem:[%s10379_s26 + $0x60] sm:$0xff]  ;;  %v841_v35 = vld [vmem:[%s10379_s26 + $0x68] sm:$0xff]  ;;  %v842_v37 = vld [vmem:[%s10379_s26 + $0x70] sm:$0xff] }
  0xfc   : > { %8697 = vmatmul.mubr.msk.f32.gmra.mxu0 %vm867_vm1, %v852_v15  ;;  %v862_v38 = vld [vmem:[%s10379_s26 + $0x79] sm:$0xff]  ;;  %v863_v40 = vld [vmem:[%s10379_s26 + $0x81] sm:$0xff]  ;;  %v864_v42 = vld [vmem:[%s10379_s26 + $0x89] sm:$0xff] }
  0xfd   : > { %8726 = vmatmul.mubr.msk.f32.gmra.mxu1 %vm867_vm1, %v833_v16  ;;  %8699 = vmatprep.mubr.msk.f32.mxu0 %vm867_vm1, %v853_v17  ;;  %v843_v39 = vld [vmem:[%s10379_s26 + $0x78] sm:$0xff]  ;;  %v844_v41 = vld [vmem:[%s10379_s26 + $0x80] sm:$0xff]  ;;  %v845_v43 = vld [vmem:[%s10379_s26 + $0x88] sm:$0xff] }
  0xfe   : > { %8728 = vmatprep.mubr.msk.f32.mxu1 %vm867_vm1, %v834_v18  ;;  %v1293_v44 = vld [vmem:[%s10379_s26 + $0x2] sm:$0xff]  ;;  %v1543_v45 = vld [vmem:[%s10379_s26 + $0x12] sm:$0xff]  ;;  %v1294_v46 = vld [vmem:[%s10379_s26 + $0xa] sm:$0xff] }
  0xff   : > { %v1544_v47 = vld [vmem:[%s10379_s26 + $0x1a] sm:$0xff]  ;;  %v1545_v48 = vld [vmem:[%s10379_s26 + $0x22] sm:$0xff]  ;;  %v1546_v51 = vld [vmem:[%s10379_s26 + $0x2a] sm:$0xff] }
 0x100   : > { %8700 = vmatmul.mubr.msk.f32.gmra.mxu0 %vm867_vm1, %v854_v19  ;;  %v1547_v52 = vld [vmem:[%s10379_s26 + $0x32] sm:$0xff]  ;;  %v1548_v53 = vld [vmem:[%s10379_s26 + $0x3a] sm:$0xff]  ;;  %v1549_v54 = vld [vmem:[%s10379_s26 + $0x42] sm:$0xff] }
 0x101   : > { %8729 = vmatmul.mubr.msk.f32.gmra.mxu1 %vm867_vm1, %v835_v20  ;;  %8702 = vmatprep.mubr.msk.f32.mxu0 %vm867_vm1, %v855_v22  ;;  %v1550_v55 = vld [vmem:[%s10379_s26 + $0x4a] sm:$0xff]  ;;  %v1551_v56 = vld [vmem:[%s10379_s26 + $0x52] sm:$0xff]  ;;  %v1552_v57 = vld [vmem:[%s10379_s26 + $0x5a] sm:$0xff] }
 0x102   : > { %8731 = vmatprep.mubr.msk.f32.mxu1 %vm867_vm1, %v836_v23  ;;  %v1553_v58 = vld [vmem:[%s10379_s26 + $0x62] sm:$0xff]  ;;  %v1554_v59 = vld [vmem:[%s10379_s26 + $0x6a] sm:$0xff]  ;;  %v1555_v60 = vld [vmem:[%s10379_s26 + $0x72] sm:$0xff] }
 0x103   : > { %v1556_v61 = vld [vmem:[%s10379_s26 + $0x7a] sm:$0xff]  ;;  %v1557_v62 = vld [vmem:[%s10379_s26 + $0x82] sm:$0xff]  ;;  %v1558_v63 = vld [vmem:[%s10379_s26 + $0x8a] sm:$0xff] }
 0x104   : > { %8703 = vmatmul.mubr.msk.f32.gmra.mxu0 %vm867_vm1, %v856_v25  ;;  %v1559_v0 = vld [vmem:[%s10379_s26 + $0x92] sm:$0xff]  ;;  %v1560_v1 = vld [vmem:[%s10379_s26 + $0x9a] sm:$0xff]  ;;  %v1795_v6 = vld [vmem:[%s10379_s26 + $0x23] sm:$0xff] }
 0x105   : > { %8732 = vmatmul.mubr.msk.f32.gmra.mxu1 %vm867_vm1, %v837_v26  ;;  %8705 = vmatprep.mubr.msk.f32.mxu0 %vm867_vm1, %v857_v27  ;;  %v1793_v2 = vld [vmem:[%s10379_s26 + $0x13] sm:$0xff]  ;;  %v1794_v4 = vld [vmem:[%s10379_s26 + $0x1b] sm:$0xff]  ;;  %v10537_v7 = vld [vmem:[%s10379_s26 + $0x24] sm:$0xff] }
 0x106   : > { %8734 = vmatprep.mubr.msk.f32.mxu1 %vm867_vm1, %v838_v28  ;;  %v2043_v3 = vld [vmem:[%s10379_s26 + $0x14] sm:$0xff]  ;;  %v2044_v5 = vld [vmem:[%s10379_s26 + $0x1c] sm:$0xff]  ;;  %v10541_v8 = vld [vmem:[#allocation11 + $0x20] sm:$0xf] }
 0x107   : > { %v1796_v9 = vld [vmem:[%s10379_s26 + $0x2b] sm:$0xff]  ;;  %v1797_v11 = vld [vmem:[%s10379_s26 + $0x33] sm:$0xff]  ;;  %v1798_v13 = vld [vmem:[%s10379_s26 + $0x3b] sm:$0xff] }
 0x108   : > { %8706 = vmatmul.mubr.msk.f32.gmra.mxu0 %vm867_vm1, %v858_v30  ;;  %v10548_v10 = vld [vmem:[%s10379_s26 + $0x2c] sm:$0xff]  ;;  %v10554_v12 = vld [vmem:[%s10379_s26 + $0x34] sm:$0xff]  ;;  %v10568_v14 = vld [vmem:[%s10379_s26 + $0x3c] sm:$0xff] }
 0x109   : > { %8735 = vmatmul.mubr.msk.f32.gmra.mxu1 %vm867_vm1, %v839_v31  ;;  %8708 = vmatprep.mubr.msk.f32.mxu0 %vm867_vm1, %v859_v32  ;;  %v1799_v15 = vld [vmem:[%s10379_s26 + $0x43] sm:$0xff]  ;;  %v1800_v17 = vld [vmem:[%s10379_s26 + $0x4b] sm:$0xff]  ;;  %v1801_v19 = vld [vmem:[%s10379_s26 + $0x53] sm:$0xff] }
 0x10a   : > { %8737 = vmatprep.mubr.msk.f32.mxu1 %vm867_vm1, %v840_v33  ;;  %v10572_v16 = vld [vmem:[%s10379_s26 + $0x44] sm:$0xff]  ;;  %v2050_v18 = vld [vmem:[%s10379_s26 + $0x4c] sm:$0xff]  ;;  %v2051_v20 = vld [vmem:[%s10379_s26 + $0x54] sm:$0xff] }
 0x10b   : > { %v1802_v21 = vld [vmem:[%s10379_s26 + $0x5b] sm:$0xff]  ;;  %v1803_v23 = vld [vmem:[%s10379_s26 + $0x63] sm:$0xff]  ;;  %v1804_v25 = vld [vmem:[%s10379_s26 + $0x6b] sm:$0xff] }
 0x10c   : > { %8709 = vmatmul.mubr.msk.f32.gmra.mxu0 %vm867_vm1, %v860_v34  ;;  %v2052_v22 = vld [vmem:[%s10379_s26 + $0x5c] sm:$0xff]  ;;  %v2054_v26 = vld [vmem:[%s10379_s26 + $0x6c] sm:$0xff]  ;;  %v2055_v28 = vld [vmem:[%s10379_s26 + $0x74] sm:$0xff] }
 0x10d   : > { %8738 = vmatmul.mubr.msk.f32.gmra.mxu1 %vm867_vm1, %v841_v35  ;;  %8711 = vmatprep.mubr.msk.f32.mxu0 %vm867_vm1, %v861_v36  ;;  %v1805_v27 = vld [vmem:[%s10379_s26 + $0x73] sm:$0xff]  ;;  %v2056_v30 = vld [vmem:[%s10379_s26 + $0x7c] sm:$0xff]  ;;  %v2057_v32 = vld [vmem:[%s10379_s26 + $0x84] sm:$0xff] }
 0x10e   : > { %8740 = vmatprep.mubr.msk.f32.mxu1 %vm867_vm1, %v842_v37  ;;  %v1807_v31 = vld [vmem:[%s10379_s26 + $0x83] sm:$0xff]  ;;  %v1808_v33 = vld [vmem:[%s10379_s26 + $0x8b] sm:$0xff]  ;;  %v1809_v35 = vld [vmem:[%s10379_s26 + $0x93] sm:$0xff] }
 0x10f   : > { %v2058_v34 = vld [vmem:[%s10379_s26 + $0x8c] sm:$0xff]  ;;  %v2059_v36 = vld [vmem:[%s10379_s26 + $0x94] sm:$0xff] }
 0x110   : > { %8712 = vmatmul.mubr.msk.f32.gmra.mxu0 %vm867_vm1, %v862_v38  ;;  %v1810_v37 = vld [vmem:[%s10379_s26 + $0x9b] sm:$0xff] }
 0x111   : > { %8741 = vmatmul.mubr.msk.f32.gmra.mxu1 %vm867_vm1, %v843_v39  ;;  %8714 = vmatprep.mubr.msk.f32.mxu0 %vm867_vm1, %v863_v40  ;;  %v2060_v38 = vld [vmem:[%s10379_s26 + $0x9c] sm:$0xff]  ;;  %v2543_v39 = vld [vmem:[%s10379_s26 + $0x25] sm:$0xff]  ;;  %v2544_v40 = vld [vmem:[%s10379_s26 + $0x2d] sm:$0xff] }
 0x112   : > { %8743 = vmatprep.mubr.msk.f32.mxu1 %vm867_vm1, %v844_v41  ;;  %v2545_v41 = vld [vmem:[%s10379_s26 + $0x35] sm:$0xff] }
 0x114   : > { %8715 = vmatmul.mubr.msk.f32.gmra.mxu0 %vm867_vm1, %v864_v42  ;;  %v2546_v42 = vld [vmem:[%s10379_s26 + $0x3d] sm:$0xff] }
 0x115   : > { %8744 = vmatmul.mubr.msk.f32.gmra.mxu1 %vm867_vm1, %v845_v43  ;;  %8748 = vmatprep.mubr.msk.f32.mxu0 %vm867_vm1, %v1293_v44  ;;  %v2547_v43 = vld [vmem:[%s10379_s26 + $0x45] sm:$0xff]  ;;  %v2548_v44 = vld [vmem:[%s10379_s26 + $0x4d] sm:$0xff] }
 0x116   : > { %8777 = vmatprep.mubr.msk.f32.mxu1 %vm867_vm1, %v1543_v45 }
 0x118   : > { %8749 = vmatmul.mubr.msk.f32.vlgmr.msra.gmra.mxu0 %vm867_vm1, %v1294_v46  ;;  %v2550_v46 = vld [vmem:[%s10379_s26 + $0x5d] sm:$0xff] }
 0x119   : > { %8778 = vmatmul.mubr.msk.f32.vlgmr.msra.gmra.mxu1 %vm867_vm1, %v1544_v47  ;;  %8805 = vmatpush3.msk.msra.mxu0 %vm922_vm0, %v1812_v24  ;;  %v2053_v24 = vld [vmem:[%s10379_s26 + $0x64] sm:$0xff] }
 0x11a   : > { %8751 = vmatprep.mubr.msk.f32.mxu0 %vm867_vm1, %v1543_v45  ;;  %8780 = vmatprep.mubr.msk.f32.mxu1 %vm867_vm1, %v1545_v48  ;;  %v2549_v45 = vld [vmem:[%s10379_s26 + $0x55] sm:$0xff] }
 0x11b   : > { %8834 = vmatpush3.msk.msra.mxu1 %vm922_vm0, %v2062_v29  ;;  %8862 = vmatprep.subr.msk.mxu0 %vm922_vm0, %v10472_v49  ;;  %v1806_v29 = vld [vmem:[%s10379_s26 + $0x7b] sm:$0xff] }
 0x11c   : > { %8891 = vmatprep.subr.msk.mxu1 %vm922_vm0, %v10474_v50  ;;  %8752 = vmatmul.mubr.msk.f32.gmra.mxu0 %vm867_vm1, %v1544_v47  ;;  %v2551_v47 = vld [vmem:[%s10379_s26 + $0x65] sm:$0xff] }
 0x11d   : > { %8781 = vmatmul.mubr.msk.f32.gmra.mxu1 %vm867_vm1, %v1546_v51  ;;  %8754 = vmatprep.mubr.msk.f32.mxu0 %vm867_vm1, %v1545_v48  ;;  %v2552_v48 = vld [vmem:[%s10379_s26 + $0x6d] sm:$0xff] }
 0x11e   : > { %8783 = vmatprep.mubr.msk.f32.mxu1 %vm867_vm1, %v1547_v52 }
 0x120   : > { %8755 = vmatmul.mubr.msk.f32.gmra.mxu0 %vm867_vm1, %v1546_v51  ;;  %v2555_v51 = vld [vmem:[%s10379_s26 + $0x85] sm:$0xff] }
 0x121   : > { %8784 = vmatmul.mubr.msk.f32.gmra.mxu1 %vm867_vm1, %v1548_v53  ;;  %8757 = vmatprep.mubr.msk.f32.mxu0 %vm867_vm1, %v1547_v52  ;;  %v2556_v52 = vld [vmem:[%s10379_s26 + $0x8d] sm:$0xff] }
 0x122   : > { %8786 = vmatprep.mubr.msk.f32.mxu1 %vm867_vm1, %v1549_v54 }
 0x124   : > { %8758 = vmatmul.mubr.msk.f32.gmra.mxu0 %vm867_vm1, %v1548_v53  ;;  %v2557_v53 = vld [vmem:[%s10379_s26 + $0x95] sm:$0xff] }
 0x125   : > { %8787 = vmatmul.mubr.msk.f32.gmra.mxu1 %vm867_vm1, %v1550_v55  ;;  %8760 = vmatprep.mubr.msk.f32.mxu0 %vm867_vm1, %v1549_v54  ;;  %v2558_v54 = vld [vmem:[%s10379_s26 + $0x9d] sm:$0xff] }
 0x126   : > { %8789 = vmatprep.mubr.msk.f32.mxu1 %vm867_vm1, %v1551_v56 }
 0x128   : > { %8761 = vmatmul.mubr.msk.f32.gmra.mxu0 %vm867_vm1, %v1550_v55  ;;  %v2309_v55 = vld [vmem:[%s10379_s26 + $0xa4] sm:$0xff] }
 0x129   : > { %8790 = vmatmul.mubr.msk.f32.gmra.mxu1 %vm867_vm1, %v1552_v57  ;;  %8763 = vmatprep.mubr.msk.f32.mxu0 %vm867_vm1, %v1551_v56  ;;  %v2559_v56 = vld [vmem:[%s10379_s26 + $0xa5] sm:$0xff] }
 0x12a   : > { %8792 = vmatprep.mubr.msk.f32.mxu1 %vm867_vm1, %v1553_v58 }
 0x12c   : > { %8764 = vmatmul.mubr.msk.f32.gmra.mxu0 %vm867_vm1, %v1552_v57  ;;  %v2310_v57 = vld [vmem:[%s10379_s26 + $0xac] sm:$0xff] }
 0x12d   : > { %8793 = vmatmul.mubr.msk.f32.gmra.mxu1 %vm867_vm1, %v1554_v59  ;;  %8766 = vmatprep.mubr.msk.f32.mxu0 %vm867_vm1, %v1553_v58  ;;  %v2560_v58 = vld [vmem:[%s10379_s26 + $0xad] sm:$0xff] }
 0x12e   : > { %8795 = vmatprep.mubr.msk.f32.mxu1 %vm867_vm1, %v1555_v60 }
 0x130   : > { %8767 = vmatmul.mubr.msk.f32.gmra.mxu0 %vm867_vm1, %v1554_v59  ;;  %v2793_v59 = vld [vmem:[%s10379_s26 + $0x26] sm:$0xff] }
 0x131   : > { %8796 = vmatmul.mubr.msk.f32.gmra.mxu1 %vm867_vm1, %v1556_v61  ;;  %8769 = vmatprep.mubr.msk.f32.mxu0 %vm867_vm1, %v1555_v60  ;;  %v2794_v60 = vld [vmem:[%s10379_s26 + $0x2e] sm:$0xff] }
 0x132   : > { %8798 = vmatprep.mubr.msk.f32.mxu1 %vm867_vm1, %v1557_v62 }
 0x134   : > { %8770 = vmatmul.mubr.msk.f32.gmra.mxu0 %vm867_vm1, %v1556_v61  ;;  %v2795_v61 = vld [vmem:[%s10379_s26 + $0x36] sm:$0xff] }
 0x135   : > { %8799 = vmatmul.mubr.msk.f32.gmra.mxu1 %vm867_vm1, %v1558_v63  ;;  %8772 = vmatprep.mubr.msk.f32.mxu0 %vm867_vm1, %v1557_v62  ;;  %v2796_v62 = vld [vmem:[%s10379_s26 + $0x3e] sm:$0xff] }
 0x136   : > { %8801 = vmatprep.mubr.msk.f32.mxu1 %vm867_vm1, %v1559_v0  ;;  %v2798_v0 = vld [vmem:[%s10379_s26 + $0x4e] sm:$0xff] }
 0x138   : > { %8773 = vmatmul.mubr.msk.f32.gmra.mxu0 %vm867_vm1, %v1558_v63  ;;  %v2797_v63 = vld [vmem:[%s10379_s26 + $0x46] sm:$0xff] }
 0x139   : > { %8802 = vmatmul.mubr.msk.f32.gmra.mxu1 %vm867_vm1, %v1560_v1  ;;  %8806 = vmatprep.mubr.msk.f32.mxu0 %vm867_vm1, %v1793_v2  ;;  %v2799_v1 = vld [vmem:[%s10379_s26 + $0x56] sm:$0xff]  ;;  %v2800_v2 = vld [vmem:[%s10379_s26 + $0x5e] sm:$0xff] }
 0x13a   : > { %8835 = vmatprep.mubr.msk.f32.mxu1 %vm867_vm1, %v2043_v3  ;;  %v2801_v3 = vld [vmem:[%s10379_s26 + $0x66] sm:$0xff] }
 0x13c   : > { %8807 = vmatmul.mubr.msk.f32.vlgmr.msra.gmra.mxu0 %vm867_vm1, %v1794_v4  ;;  %v2802_v4 = vld [vmem:[%s10379_s26 + $0x6e] sm:$0xff] }
 0x13d   : > { %8836 = vmatmul.mubr.msk.f32.vlgmr.msra.gmra.mxu1 %vm867_vm1, %v2044_v5  ;;  %8863 = vmatpush3.msk.msra.mxu0 %vm922_vm0, %v10472_v49  ;;  %v2553_v49 = vld [vmem:[%s10379_s26 + $0x75] sm:$0xff] }
 0x13e   : > { %8809 = vmatprep.mubr.msk.f32.mxu0 %vm867_vm1, %v1795_v6  ;;  %8838 = vmatprep.mubr.msk.f32.mxu1 %vm867_vm1, %v10537_v7  ;;  %v2803_v5 = vld [vmem:[%s10379_s26 + $0x76] sm:$0xff]  ;;  %v2804_v6 = vld [vmem:[%s10379_s26 + $0x7e] sm:$0xff] }
 0x13f   : > { %8892 = vmatpush3.msk.msra.mxu1 %vm922_vm0, %v10474_v50  ;;  %8920 = vmatprep.subr.msk.mxu0 %vm922_vm0, %v10541_v8  ;;  %v2554_v50 = vld [vmem:[%s10379_s26 + $0x7d] sm:$0xff] }
 0x140   : > { %8810 = vmatmul.mubr.msk.f32.gmra.mxu0 %vm867_vm1, %v1796_v9  ;;  %v2807_v9 = vld [vmem:[%s10379_s26 + $0x96] sm:$0xff] }
 0x141   : > { %8839 = vmatmul.mubr.msk.f32.gmra.mxu1 %vm867_vm1, %v10548_v10  ;;  %8812 = vmatprep.mubr.msk.f32.mxu0 %vm867_vm1, %v1797_v11  ;;  %v2809_v11 = vld [vmem:[%s10379_s26 + $0xa6] sm:$0xff] }
 0x142   : > { %8841 = vmatprep.mubr.msk.f32.mxu1 %vm867_vm1, %v10554_v12 }
 0x144   : > { %8813 = vmatmul.mubr.msk.f32.gmra.mxu0 %vm867_vm1, %v1798_v13 }
 0x145   : > { %8842 = vmatmul.mubr.msk.f32.gmra.mxu1 %vm867_vm1, %v10568_v14  ;;  %8815 = vmatprep.mubr.msk.f32.mxu0 %vm867_vm1, %v1799_v15 }
 0x146   : > { %8844 = vmatprep.mubr.msk.f32.mxu1 %vm867_vm1, %v10572_v16 }
 0x148   : > { %8816 = vmatmul.mubr.msk.f32.gmra.mxu0 %vm867_vm1, %v1800_v17 }
 0x149   : > { %8845 = vmatmul.mubr.msk.f32.gmra.mxu1 %vm867_vm1, %v2050_v18  ;;  %8818 = vmatprep.mubr.msk.f32.mxu0 %vm867_vm1, %v1801_v19 }
 0x14a   : > { %8847 = vmatprep.mubr.msk.f32.mxu1 %vm867_vm1, %v2051_v20 }
 0x14c   : > { %8819 = vmatmul.mubr.msk.f32.gmra.mxu0 %vm867_vm1, %v1802_v21 }
 0x14d   : > { %8848 = vmatmul.mubr.msk.f32.gmra.mxu1 %vm867_vm1, %v2052_v22  ;;  %8821 = vmatprep.mubr.msk.f32.mxu0 %vm867_vm1, %v1803_v23 }
 0x14e   : > { %8850 = vmatprep.mubr.msk.f32.mxu1 %vm867_vm1, %v2053_v24 }
 0x150   : > { %8822 = vmatmul.mubr.msk.f32.gmra.mxu0 %vm867_vm1, %v1804_v25 }
 0x151   : > { %8851 = vmatmul.mubr.msk.f32.gmra.mxu1 %vm867_vm1, %v2054_v26  ;;  %8824 = vmatprep.mubr.msk.f32.mxu0 %vm867_vm1, %v1805_v27 }
 0x152   : > { %8853 = vmatprep.mubr.msk.f32.mxu1 %vm867_vm1, %v2055_v28 }
 0x154   : > { %8825 = vmatmul.mubr.msk.f32.gmra.mxu0 %vm867_vm1, %v1806_v29 }
 0x155   : > { %8854 = vmatmul.mubr.msk.f32.gmra.mxu1 %vm867_vm1, %v2056_v30  ;;  %8827 = vmatprep.mubr.msk.f32.mxu0 %vm867_vm1, %v1807_v31 }
 0x156   : > { %8856 = vmatprep.mubr.msk.f32.mxu1 %vm867_vm1, %v2057_v32 }
 0x158   : > { %8828 = vmatmul.mubr.msk.f32.gmra.mxu0 %vm867_vm1, %v1808_v33 }
 0x159   : > { %8857 = vmatmul.mubr.msk.f32.gmra.mxu1 %vm867_vm1, %v2058_v34  ;;  %8830 = vmatprep.mubr.msk.f32.mxu0 %vm867_vm1, %v1809_v35 }
 0x15a   : > { %8859 = vmatprep.mubr.msk.f32.mxu1 %vm867_vm1, %v2059_v36 }
 0x15c   : > { %8831 = vmatmul.mubr.msk.f32.gmra.mxu0 %vm867_vm1, %v1810_v37 }
 0x15d   : > { %8860 = vmatmul.mubr.msk.f32.gmra.mxu1 %vm867_vm1, %v2060_v38  ;;  %8864 = vmatprep.mubr.msk.f32.mxu0 %vm867_vm1, %v10537_v7  ;;  %v2805_v7 = vld [vmem:[%s10379_s26 + $0x86] sm:$0xff] }
 0x15e   : > { %8893 = vmatprep.mubr.msk.f32.mxu1 %vm867_vm1, %v2543_v39 }
 0x160   : > { %8865 = vmatmul.mubr.msk.f32.vlgmr.msra.gmra.mxu0 %vm867_vm1, %v10548_v10  ;;  %v2808_v10 = vld [vmem:[%s10379_s26 + $0x9e] sm:$0xff] }
 0x161   : > { %8894 = vmatmul.mubr.msk.f32.vlgmr.msra.gmra.mxu1 %vm867_vm1, %v2544_v40  ;;  %8921 = vmatpush3.msk.msra.mxu0 %vm922_vm0, %v10541_v8  ;;  %v2806_v8 = vld [vmem:[%s10379_s26 + $0x8e] sm:$0xff] }
 0x162   : > { %8867 = vmatprep.mubr.msk.f32.mxu0 %vm867_vm1, %v10554_v12  ;;  %8896 = vmatprep.mubr.msk.f32.mxu1 %vm867_vm1, %v2545_v41  ;;  %v2810_v12 = vld [vmem:[%s10379_s26 + $0xae] sm:$0xff] }
 0x164   : > { %8868 = vmatmul.mubr.msk.f32.gmra.mxu0 %vm867_vm1, %v10568_v14 }
 0x165   : > { %8897 = vmatmul.mubr.msk.f32.gmra.mxu1 %vm867_vm1, %v2546_v42  ;;  %8870 = vmatprep.mubr.msk.f32.mxu0 %vm867_vm1, %v10572_v16 }
 0x166   : > { %8899 = vmatprep.mubr.msk.f32.mxu1 %vm867_vm1, %v2547_v43 }
 0x168   : > { %8871 = vmatmul.mubr.msk.f32.gmra.mxu0 %vm867_vm1, %v2050_v18 }
 0x169   : > { %8900 = vmatmul.mubr.msk.f32.gmra.mxu1 %vm867_vm1, %v2548_v44  ;;  %8873 = vmatprep.mubr.msk.f32.mxu0 %vm867_vm1, %v2051_v20 }
 0x16a   : > { %8902 = vmatprep.mubr.msk.f32.mxu1 %vm867_vm1, %v2549_v45  ;;  %v11863_v45 = vmov 0.0  }
 0x16b   : > { %3130 = vst.msk [vmem:[#allocation2] sm:$0xff] %vm3111_vm2, %v11863_v45  ;;  %3131 = vst.msk [vmem:[#allocation2 + $0x8] sm:$0xff] %vm3111_vm2, %v11863_v45 }
 0x16c   : > { %8874 = vmatmul.mubr.msk.f32.gmra.mxu0 %vm867_vm1, %v2052_v22  ;;  %3132 = vst.msk [vmem:[#allocation2 + $0x10] sm:$0xff] %vm3111_vm2, %v11863_v45  ;;  %3133 = vst.msk [vmem:[#allocation2 + $0x18] sm:$0xff] %vm3111_vm2, %v11863_v45 }
 0x16d   : > { %8903 = vmatmul.mubr.msk.f32.gmra.mxu1 %vm867_vm1, %v2550_v46  ;;  %8876 = vmatprep.mubr.msk.f32.mxu0 %vm867_vm1, %v2053_v24  ;;  %3134 = vst.msk [vmem:[#allocation2 + $0x20] sm:$0xff] %vm3111_vm2, %v11863_v45  ;;  %3135 = vst.msk [vmem:[#allocation2 + $0x28] sm:$0xff] %vm3111_vm2, %v11863_v45 }
 0x16e   : > { %8905 = vmatprep.mubr.msk.f32.mxu1 %vm867_vm1, %v2551_v47  ;;  %3136 = vst.msk [vmem:[#allocation2 + $0x30] sm:$0xff] %vm3111_vm2, %v11863_v45  ;;  %3137 = vst.msk [vmem:[#allocation2 + $0x38] sm:$0xff] %vm3111_vm2, %v11863_v45 }
 0x16f   : > { %3138 = vst.msk [vmem:[#allocation2 + $0x40] sm:$0xff] %vm3111_vm2, %v11863_v45  ;;  %3139 = vst.msk [vmem:[#allocation2 + $0x48] sm:$0xff] %vm3111_vm2, %v11863_v45 }
 0x170   : > { %8877 = vmatmul.mubr.msk.f32.gmra.mxu0 %vm867_vm1, %v2054_v26  ;;  %3140 = vst.msk [vmem:[#allocation2 + $0x50] sm:$0xff] %vm3111_vm2, %v11863_v45  ;;  %3141 = vst.msk [vmem:[#allocation2 + $0x58] sm:$0xff] %vm3111_vm2, %v11863_v45 }
 0x171   : > { %8906 = vmatmul.mubr.msk.f32.gmra.mxu1 %vm867_vm1, %v2552_v48  ;;  %8879 = vmatprep.mubr.msk.f32.mxu0 %vm867_vm1, %v2055_v28  ;;  %3142 = vst.msk [vmem:[#allocation2 + $0x60] sm:$0xff] %vm3111_vm2, %v11863_v45 }
 0x172   : > { %8908 = vmatprep.mubr.msk.f32.mxu1 %vm867_vm1, %v2553_v49 }
 0x174   : > { %8880 = vmatmul.mubr.msk.f32.gmra.mxu0 %vm867_vm1, %v2056_v30 }
 0x175   : > { %8909 = vmatmul.mubr.msk.f32.gmra.mxu1 %vm867_vm1, %v2554_v50  ;;  %8882 = vmatprep.mubr.msk.f32.mxu0 %vm867_vm1, %v2057_v32 }
 0x176   : > { %8911 = vmatprep.mubr.msk.f32.mxu1 %vm867_vm1, %v2555_v51 }
 0x178   : > { %8883 = vmatmul.mubr.msk.f32.gmra.mxu0 %vm867_vm1, %v2058_v34 }
 0x179   : > { %8912 = vmatmul.mubr.msk.f32.gmra.mxu1 %vm867_vm1, %v2556_v52  ;;  %8885 = vmatprep.mubr.msk.f32.mxu0 %vm867_vm1, %v2059_v36 }
 0x17a   : > { %8914 = vmatprep.mubr.msk.f32.mxu1 %vm867_vm1, %v2557_v53 }
 0x17c   : > { %8886 = vmatmul.mubr.msk.f32.gmra.mxu0 %vm867_vm1, %v2060_v38 }
 0x17d   : > { %8915 = vmatmul.mubr.msk.f32.gmra.mxu1 %vm867_vm1, %v2558_v54  ;;  %8888 = vmatprep.mubr.msk.f32.mxu0 %vm867_vm1, %v2309_v55 }
 0x17e   : > { %8917 = vmatprep.mubr.msk.f32.mxu1 %vm867_vm1, %v2559_v56 }
 0x180   : > { %8889 = vmatmul.mubr.msk.f32.gmra.mxu0 %vm867_vm1, %v2310_v57 }
 0x181   : > { %8918 = vmatmul.mubr.msk.f32.gmra.mxu1 %vm867_vm1, %v2560_v58  ;;  %8922 = vmatprep.mubr.msk.f32.mxu0 %vm867_vm1, %v2793_v59 }
 0x184   : > { %8923 = vmatmul.mubr.msk.f32.vlgmr.msra.gmra.mxu0 %vm867_vm1, %v2794_v60 }
 0x185   : > { %8925 = vmatprep.mubr.msk.f32.mxu0 %vm867_vm1, %v2795_v61  ;;  %v3220_v61 = vld [vmem:[#allocation16 + $0x38] sm:$0xff] }
 0x186   : > { %8949 = vmatprep.subr.mxu1 %v3220_v61 }
 0x187   : > { %8950 = vmatpush3.msra.mxu1 %v3220_v61 }
 0x188   : > { %8926 = vmatmul.mubr.msk.f32.gmra.mxu0 %vm867_vm1, %v2796_v62 }
 0x189   : > { %8928 = vmatprep.mubr.msk.f32.mxu0 %vm867_vm1, %v2797_v63  ;;  %v3525_v63 = vld [vmem:[#allocation16 + $0x58] sm:$0xff] }
 0x18a   : > { %8995 = vmatprep.subr.mxu0 %v3525_v63 }
 0x18b   : > { %8996 = vmatpush3.msra.mxu0 %v3525_v63 }
 0x18c   : > { %8929 = vmatmul.mubr.msk.f32.gmra.mxu0 %vm867_vm1, %v2798_v0 }
 0x18d   : > { %8931 = vmatprep.mubr.msk.f32.mxu0 %vm867_vm1, %v2799_v1 }
 0x190   : > { %8932 = vmatmul.mubr.msk.f32.gmra.mxu0 %vm867_vm1, %v2800_v2  ;;  %v3219_v2 = vld [vmem:[#allocation16 + $0x30] sm:$0xff] }
 0x191   : > { %8934 = vmatprep.mubr.msk.f32.mxu0 %vm867_vm1, %v2801_v3  ;;  %8951 = vmatprep.subr.mxu1 %v3219_v2 }
 0x192   : > { %8952 = vmatpush3.msra.mxu1 %v3219_v2 }
 0x194   : > { %8935 = vmatmul.mubr.msk.f32.gmra.mxu0 %vm867_vm1, %v2802_v4  ;;  %v3524_v4 = vld [vmem:[#allocation16 + $0x50] sm:$0xff] }
 0x195   : > { %8937 = vmatprep.mubr.msk.f32.mxu0 %vm867_vm1, %v2803_v5  ;;  %8997 = vmatprep.subr.mxu0 %v3524_v4 }
 0x196   : > { %8998 = vmatpush3.msra.mxu0 %v3524_v4 }
 0x198   : > { %8938 = vmatmul.mubr.msk.f32.gmra.mxu0 %vm867_vm1, %v2804_v6 }
 0x199   : > { %8940 = vmatprep.mubr.msk.f32.mxu0 %vm867_vm1, %v2805_v7 }
 0x19c   : > { %8941 = vmatmul.mubr.msk.f32.gmra.mxu0 %vm867_vm1, %v2806_v8  ;;  %v3218_v8 = vld [vmem:[#allocation16 + $0x28] sm:$0xff] }
 0x19d   : > { %8943 = vmatprep.mubr.msk.f32.mxu0 %vm867_vm1, %v2807_v9  ;;  %v3523_v9 = vld [vmem:[#allocation16 + $0x48] sm:$0xff]  ;;  %8953 = vmatprep.subr.mxu1 %v3218_v8 }
 0x19e   : > { %8999 = vmatprep.subr.mxu0 %v3523_v9  ;;  %8954 = vmatpush3.msra.mxu1 %v3218_v8 }
 0x19f   : > { %9000 = vmatpush3.msra.mxu0 %v3523_v9 }
 0x1a0   : > { %8944 = vmatmul.mubr.msk.f32.gmra.mxu0 %vm867_vm1, %v2808_v10 }
 0x1a1   : > { %8946 = vmatprep.mubr.msk.f32.mxu0 %vm867_vm1, %v2809_v11 }
 0x1a4   : > { %8947 = vmatmul.mubr.msk.f32.gmra.mxu0 %vm867_vm1, %v2810_v12 }
 0x1b4   : > { %v8692_v13 = vpop.f32.mrf.mxu0 }
 0x1b5   : > { %v8721_v14 = vpop.f32.mrf.mxu1 }
 0x1b6   : > { %v1210_v15 = vadd.f32 %v8721_v14, %v8692_v13  ;;  %v10723_v16 = vpop.f32.mrf.mxu0  ;;  %v3217_v13 = vld [vmem:[#allocation16 + $0x20] sm:$0xff] }
 0x1b7   : > { %v10725_v17 = vpop.f32.mrf.mxu1  ;;  %v3522_v14 = vld [vmem:[#allocation16 + $0x40] sm:$0xff]  ;;  %8955 = vmatprep.subr.mxu1 %v3217_v13 }
 0x1b8   : > { %v8695_v18 = vpop.f32.mrf.mxu0  ;;  %9001 = vmatprep.subr.mxu0 %v3522_v14  ;;  %8956 = vmatpush3.msra.mxu1 %v3217_v13 }
 0x1b9   : > { %v8724_v19 = vpop.f32.mrf.mxu1  ;;  %9002 = vmatpush3.msra.mxu0 %v3522_v14 }
 0x1ba   : > { %v10727_v20 = vadd.f32 %v8724_v19, %v8695_v18  ;;  %v10729_v21 = vpop.f32.mrf.mxu0  ;;  %v3206_v19 = vld [vmem:[#allocation2 + $0x1] sm:$0xff] }
 0x1bb   : > { %v10731_v22 = vpop.f32.mrf.mxu1  ;;  %8957 = vmatprep.mubr.msk.f32.mxu1 %vm3111_vm2, %v3206_v19 }
 0x1bc   : > { %v8698_v23 = vpop.f32.mrf.mxu0 }
 0x1bd   : > { %v8727_v24 = vpop.f32.mrf.mxu1 }
 0x1be   : > { %v10733_v25 = vadd.f32 %v8727_v24, %v8698_v23  ;;  %v10735_v26 = vpop.f32.mrf.mxu0 }
 0x1bf   : > { %v10737_v27 = vpop.f32.mrf.mxu1 }
 0x1c0   : > { %v8701_v28 = vpop.f32.mrf.mxu0 }
 0x1c1   : > { %v8730_v29 = vpop.f32.mrf.mxu1 }
 0x1c2   : > { %v10739_v30 = vadd.f32 %v8730_v29, %v8701_v28  ;;  %v10741_v31 = vpop.f32.mrf.mxu0 }
 0x1c3   : > { %v10743_v32 = vpop.f32.mrf.mxu1 }
 0x1c4   : > { %v8704_v33 = vpop.f32.mrf.mxu0 }
 0x1c5   : > { %v8733_v34 = vpop.f32.mrf.mxu1 }
 0x1c6   : > { %v10745_v35 = vadd.f32 %v8733_v34, %v8704_v33  ;;  %v10747_v36 = vpop.f32.mrf.mxu0 }
 0x1c7   : > { %v10749_v37 = vpop.f32.mrf.mxu1 }
 0x1c8   : > { %v8707_v38 = vpop.f32.mrf.mxu0 }
 0x1c9   : > { %v8736_v39 = vpop.f32.mrf.mxu1 }
 0x1ca   : > { %v10751_v40 = vadd.f32 %v8736_v39, %v8707_v38  ;;  %v10753_v41 = vpop.f32.mrf.mxu0 }
 0x1cb   : > { %v10755_v42 = vpop.f32.mrf.mxu1 }
 0x1cc   : > { %v8710_v43 = vpop.f32.mrf.mxu0 }
 0x1cd   : > { %v8739_v44 = vpop.f32.mrf.mxu1 }
 0x1ce   : > { %v10783_v46 = vadd.f32 %v8739_v44, %v8710_v43  ;;  %v10785_v47 = vpop.f32.mrf.mxu0 }
 0x1cf   : > { %v10787_v48 = vpop.f32.mrf.mxu1 }
 0x1d0   : > { %v8713_v49 = vpop.f32.mrf.mxu0 }
 0x1d1   : > { %v8742_v50 = vpop.f32.mrf.mxu1 }
 0x1d2   : > { %v10789_v51 = vadd.f32 %v8742_v50, %v8713_v49  ;;  %v10791_v52 = vpop.f32.mrf.mxu0 }
 0x1d3   : > { %v10793_v53 = vpop.f32.mrf.mxu1 }
 0x1d4   : > { %v8716_v54 = vpop.f32.mrf.mxu0 }
 0x1d5   : > { %v8745_v55 = vpop.f32.mrf.mxu1 }
 0x1d6   : > { %v10795_v56 = vadd.f32 %v8745_v55, %v8716_v54  ;;  %v10797_v57 = vpop.f32.mrf.mxu0 }
 0x1d7   : > { %v10799_v58 = vpop.f32.mrf.mxu1 }
 0x1d8   : > { %v8750_v59 = vpop.f32.mrf.mxu0 }
 0x1d9   : > { %v8779_v60 = vpop.f32.mrf.mxu1  ;;  %v1526_v62 = vadd.f32 %v8750_v59, %v1210_v15 }
 0x1da   : > { %v10801_v0 = vpop.f32.mrf.mxu0 }
 0x1db   : > { %v10803_v1 = vpop.f32.mrf.mxu1  ;;  %v10805_v3 = vadd.f32 %v8779_v60, %v1526_v62 }
 0x1dc   : > { %v8753_v5 = vpop.f32.mrf.mxu0 }
 0x1dd   : > { %v8782_v6 = vpop.f32.mrf.mxu1  ;;  %v1528_v7 = vadd.f32 %v8753_v5, %v10727_v20  ;;  %v3511_v20 = vld [vmem:[#allocation2 + $0x2] sm:$0xff] }
 0x1de   : > { %v10808_v10 = vpop.f32.mrf.mxu0  ;;  %9003 = vmatprep.mubr.msk.f32.mxu0 %vm3111_vm2, %v3511_v20 }
 0x1df   : > { %v10810_v11 = vpop.f32.mrf.mxu1  ;;  %v10812_v12 = vadd.f32 %v8782_v6, %v1528_v7 }
 0x1e0   : > { %v8756_v15 = vpop.f32.mrf.mxu0 }
 0x1e1   : > { %v8785_v18 = vpop.f32.mrf.mxu1  ;;  %v1530_v23 = vadd.f32 %v8756_v15, %v10733_v25 }
 0x1e2   : > { %v10816_v24 = vpop.f32.mrf.mxu0 }
 0x1e3   : > { %v10818_v28 = vpop.f32.mrf.mxu1  ;;  %v1780_v29 = vadd.f32 %v8785_v18, %v1530_v23 }
 0x1e4   : > { %v8759_v33 = vpop.f32.mrf.mxu0 }
 0x1e5   : > { %v8788_v34 = vpop.f32.mrf.mxu1  ;;  %v1532_v38 = vadd.f32 %v8759_v33, %v10739_v30  ;;  %v10847_v33 = vld [vmem:[#allocation16 + $0x18] sm:$0xff] }
 0x1e6   : > { %v10822_v39 = vpop.f32.mrf.mxu0  ;;  %11904 = vst [vmem:[#allocation44_spill] sm:$0xff] %v10847_v33  ;;  %8972 = vmatprep.subr.mxu1 %v10847_v33 }
 0x1e7   : > { %v10824_v43 = vpop.f32.mrf.mxu1  ;;  %v1782_v25 = vadd.f32 %v8788_v34, %v1532_v38 }
 0x1e8   : > { %v8762_v44 = vpop.f32.mrf.mxu0 }
 0x1e9   : > { %v8791_v49 = vpop.f32.mrf.mxu1  ;;  %v1534_v50 = vadd.f32 %v8762_v44, %v10745_v35 }
 0x1ea   : > { %v10827_v54 = vpop.f32.mrf.mxu0 }
 0x1eb   : > { %v10829_v55 = vpop.f32.mrf.mxu1  ;;  %v1784_v59 = vadd.f32 %v8791_v49, %v1534_v50  ;;  %v10859_v50 = vld [vmem:[#allocation16 + $0x98] sm:$0xff] }
 0x1ec   : > { %v8765_v60 = vpop.f32.mrf.mxu0  ;;  %11907 = vst [vmem:[#allocation47_spill] sm:$0xff] %v10859_v50  ;;  %9041 = vmatprep.subr.mxu0 %v10859_v50 }
 0x1ed   : > { %v8794_v61 = vpop.f32.mrf.mxu1  ;;  %v1536_v62 = vadd.f32 %v8765_v60, %v10751_v40 }
 0x1ee   : > { %v10832_v63 = vpop.f32.mrf.mxu0 }
 0x1ef   : > { %v10834_v30 = vpop.f32.mrf.mxu1  ;;  %v1786_v2 = vadd.f32 %v8794_v61, %v1536_v62 }
 0x1f0   : > { %v8768_v4 = vpop.f32.mrf.mxu0 }
 0x1f1   : > { %v8797_v5 = vpop.f32.mrf.mxu1  ;;  %v1538_v6 = vadd.f32 %v8768_v4, %v10783_v46 }
 0x1f2   : > { %v10837_v7 = vpop.f32.mrf.mxu0 }
 0x1f3   : > { %v10839_v35 = vpop.f32.mrf.mxu1  ;;  %v1788_v8 = vadd.f32 %v8797_v5, %v1538_v6 }
 0x1f4   : > { %v8771_v9 = vpop.f32.mrf.mxu0 }
 0x1f5   : > { %v8800_v13 = vpop.f32.mrf.mxu1  ;;  %v1540_v14 = vadd.f32 %v8771_v9, %v10789_v51 }
 0x1f6   : > { %v10842_v15 = vpop.f32.mrf.mxu0 }
 0x1f7   : > { %11902 = vst [vmem:[#allocation42_spill] sm:$0xff] %v10842_v15  ;;  %v10844_v40 = vpop.f32.mrf.mxu1  ;;  %v1790_v18 = vadd.f32 %v8800_v13, %v1540_v14 }
 0x1f8   : > { %11903 = vst [vmem:[#allocation43_spill] sm:$0xff] %v10844_v40  ;;  %v8774_v19 = vpop.f32.mrf.mxu0 }
 0x1f9   : > { %v8803_v20 = vpop.f32.mrf.mxu1  ;;  %v1542_v23 = vadd.f32 %v8774_v19, %v10795_v56 }
 0x1fa   : > { %v10849_v46 = vpop.f32.mrf.mxu0 }
 0x1fb   : > { %11905 = vst [vmem:[#allocation45_spill] sm:$0xff] %v10849_v46  ;;  %v10851_v34 = vpop.f32.mrf.mxu1  ;;  %v1792_v38 = vadd.f32 %v8803_v20, %v1542_v23 }
 0x1fc   : > { %11906 = vst [vmem:[#allocation46_spill] sm:$0xff] %v10851_v34  ;;  %v8808_v44 = vpop.f32.mrf.mxu0 }
 0x1fd   : > { %v10854_v51 = vpop.f32.mrf.mxu1  ;;  %v10857_v49 = vadd.f32 %v8808_v44, %v10805_v3 }
 0x1fe   : > { %v10861_v60 = vpop.f32.mrf.mxu0 }
 0x1ff   : > { %v10863_v56 = vpop.f32.mrf.mxu1 }
 0x200   : > { %v8811_v61 = vpop.f32.mrf.mxu0 }
 0x201   : > { %v10866_v62 = vpop.f32.mrf.mxu1  ;;  %v10869_v4 = vadd.f32 %v8811_v61, %v10812_v12 }
 0x202   : > { %v10871_v5 = vpop.f32.mrf.mxu0 }
 0x203   : > { %v10873_v6 = vpop.f32.mrf.mxu1 }
 0x204   : > { %v8814_v3 = vpop.f32.mrf.mxu0 }
 0x205   : > { %v10875_v9 = vpop.f32.mrf.mxu1  ;;  %v10877_v13 = vadd.f32 %v8814_v3, %v1780_v29 }
 0x206   : > { %v10879_v14 = vpop.f32.mrf.mxu0 }
 0x207   : > { %v10881_v19 = vpop.f32.mrf.mxu1 }
 0x208   : > { %v8817_v20 = vpop.f32.mrf.mxu0 }
 0x209   : > { %v10883_v23 = vpop.f32.mrf.mxu1  ;;  %v10885_v44 = vadd.f32 %v8817_v20, %v1782_v25 }
 0x20a   : > { %11908 = vst [vmem:[#allocation48_spill] sm:$0xff] %v10883_v23  ;;  %v10887_v12 = vpop.f32.mrf.mxu0 }
 0x20b   : > { %v10889_v61 = vpop.f32.mrf.mxu1 }
 0x20c   : > { %11909 = vst [vmem:[#allocation49_spill] sm:$0xff] %v10889_v61  ;;  %v8820_v45 = vpop.f32.mrf.mxu0 }
 0x20d   : > { %v10891_v50 = vpop.f32.mrf.mxu1  ;;  %v10893_v33 = vadd.f32 %v8820_v45, %v1784_v59 }
 0x20e   : > { %11910 = vst [vmem:[#allocation50_spill] sm:$0xff] %v10891_v50  ;;  %v10895_v29 = vpop.f32.mrf.mxu0 }
 0x20f   : > { %11911 = vst [vmem:[#allocation51_spill] sm:$0xff] %v10893_v33  ;;  %11912 = vst [vmem:[#allocation52_spill] sm:$0xff] %v10895_v29  ;;  %v10897_v3 = vpop.f32.mrf.mxu1 }
 0x210   : > { %11913 = vst [vmem:[#allocation53_spill] sm:$0xff] %v10897_v3  ;;  %v8823_v34 = vpop.f32.mrf.mxu0 }
 0x211   : > { %v10899_v46 = vpop.f32.mrf.mxu1  ;;  %v10901_v40 = vadd.f32 %v8823_v34, %v1786_v2 }
 0x212   : > { %11914 = vst [vmem:[#allocation54_spill] sm:$0xff] %v10899_v46  ;;  %v10903_v25 = vpop.f32.mrf.mxu0 }
 0x213   : > { %11915 = vst [vmem:[#allocation55_spill] sm:$0xff] %v10901_v40  ;;  %11916 = vst [vmem:[#allocation56_spill] sm:$0xff] %v10903_v25  ;;  %v10905_v20 = vpop.f32.mrf.mxu1  ;;  %v1205_v25 = vadd.f32 %v10725_v17, %v10723_v16  ;;  %v1225_v16 = vadd.f32 %v10737_v27, %v10735_v26 }
 0x214   : > { %11917 = vst [vmem:[#allocation57_spill] sm:$0xff] %v10905_v20  ;;  %v8826_v15 = vpop.f32.mrf.mxu0 }
 0x215   : > { %v10907_v61 = vpop.f32.mrf.mxu1  ;;  %v10909_v23 = vadd.f32 %v8826_v15, %v1788_v8 }
 0x216   : > { %11918 = vst [vmem:[#allocation58_spill] sm:$0xff] %v10907_v61  ;;  %v10911_v45 = vpop.f32.mrf.mxu0 }
 0x217   : > { %11919 = vst [vmem:[#allocation59_spill] sm:$0xff] %v10909_v23  ;;  %11920 = vst [vmem:[#allocation60_spill] sm:$0xff] %v10911_v45  ;;  %v10913_v59 = vpop.f32.mrf.mxu1 }
 0x218   : > { %11921 = vst [vmem:[#allocation61_spill] sm:$0xff] %v10913_v59  ;;  %v8829_v50 = vpop.f32.mrf.mxu0 }
 0x219   : > { %v10915_v3 = vpop.f32.mrf.mxu1  ;;  %v10917_v33 = vadd.f32 %v8829_v50, %v1790_v18 }
 0x21a   : > { %11922 = vst [vmem:[#allocation62_spill] sm:$0xff] %v10915_v3  ;;  %v10919_v2 = vpop.f32.mrf.mxu0 }
 0x21b   : > { %11923 = vst [vmem:[#allocation63_spill] sm:$0xff] %v10917_v33  ;;  %11924 = vst [vmem:[#allocation64_spill] sm:$0xff] %v10919_v2  ;;  %v10921_v34 = vpop.f32.mrf.mxu1 }
 0x21c   : > { %11925 = vst [vmem:[#allocation65_spill] sm:$0xff] %v10921_v34  ;;  %v8832_v46 = vpop.f32.mrf.mxu0 }
 0x21d   : > { %v10923_v20 = vpop.f32.mrf.mxu1  ;;  %v10925_v40 = vadd.f32 %v8832_v46, %v1792_v38 }
 0x21e   : > { %11926 = vst [vmem:[#allocation66_spill] sm:$0xff] %v10923_v20  ;;  %v10927_v8 = vpop.f32.mrf.mxu0 }
 0x21f   : > { %11927 = vst [vmem:[#allocation67_spill] sm:$0xff] %v10925_v40  ;;  %11928 = vst [vmem:[#allocation68_spill] sm:$0xff] %v10927_v8  ;;  %v10929_v15 = vpop.f32.mrf.mxu1 }
 0x220   : > { %11929 = vst [vmem:[#allocation69_spill] sm:$0xff] %v10929_v15  ;;  %v8866_v61 = vpop.f32.mrf.mxu0 }
 0x221   : > { %v8895_v59 = vpop.f32.mrf.mxu1 }
 0x222   : > { %v2436_v23 = vpop.f32.mrf.mxu0 }
 0x223   : > { %v2686_v45 = vpop.f32.mrf.mxu1 }
 0x224   : > { %v8869_v3 = vpop.f32.mrf.mxu0 }
 0x225   : > { %v10931_v18 = vpop.f32.mrf.mxu1 }
 0x226   : > { %v2446_v50 = vpop.f32.mrf.mxu0 }
 0x227   : > { %v10933_v2 = vpop.f32.mrf.mxu1 }
 0x228   : > { %v8872_v33 = vpop.f32.mrf.mxu0  ;;  %11930 = vst [vmem:[#allocation70_spill] sm:$0xff] %v10933_v2  ;;  %v1525_v2 = vadd.f32 %v10801_v0, %v1205_v25  ;;  %v1529_v25 = vadd.f32 %v10816_v24, %v1225_v16 }
 0x229   : > { %v10939_v46 = vpop.f32.mrf.mxu1 }
 0x22a   : > { %v10935_v34 = vpop.f32.mrf.mxu0  ;;  %11933 = vst [vmem:[#allocation73_spill] sm:$0xff] %v10939_v46  ;;  %v1779_v24 = vadd.f32 %v10818_v28, %v1529_v25 }
 0x22b   : > { %11931 = vst [vmem:[#allocation71_spill] sm:$0xff] %v10935_v34  ;;  %v10945_v40 = vpop.f32.mrf.mxu1 }
 0x22c   : > { %v10937_v20 = vpop.f32.mrf.mxu0  ;;  %11936 = vst [vmem:[#allocation76_spill] sm:$0xff] %v10945_v40  ;;  %v2029_v28 = vadd.f32 %v10879_v14, %v1779_v24 }
 0x22d   : > { %11932 = vst [vmem:[#allocation72_spill] sm:$0xff] %v10937_v20  ;;  %v10954_v34 = vpop.f32.mrf.mxu1 }
 0x22e   : > { %v10941_v38 = vpop.f32.mrf.mxu0 }
 0x22f   : > { %11934 = vst [vmem:[#allocation74_spill] sm:$0xff] %v10941_v38  ;;  %v1215_v38 = vadd.f32 %v10731_v22, %v10729_v21  ;;  %v10964_v40 = vpop.f32.mrf.mxu1  ;;  %v2276_v22 = vadd.f32 %v10854_v51, %v10857_v49  ;;  %v1245_v51 = vadd.f32 %v10749_v37, %v10747_v36  ;;  %v2278_v49 = vadd.f32 %v10866_v62, %v10869_v4 }
 0x230   : > { %v10943_v15 = vpop.f32.mrf.mxu0 }
 0x231   : > { %11935 = vst [vmem:[#allocation75_spill] sm:$0xff] %v10943_v15  ;;  %v1775_v15 = vadd.f32 %v10803_v1, %v1525_v2  ;;  %v10977_v1 = vpop.f32.mrf.mxu1 }
 0x232   : > { %v10947_v8 = vpop.f32.mrf.mxu0 }
 0x233   : > { %11937 = vst [vmem:[#allocation77_spill] sm:$0xff] %v10947_v8  ;;  %v1527_v8 = vadd.f32 %v10808_v10, %v1215_v38  ;;  %v2025_v0 = vadd.f32 %v10861_v60, %v1775_v15  ;;  %v1235_v10 = vadd.f32 %v10743_v32, %v10741_v31  ;;  %v2526_v60 = vadd.f32 %v8866_v61, %v2276_v22  ;;  %v10993_v32 = vpop.f32.mrf.mxu1 }
 0x234   : > { %v10951_v29 = vpop.f32.mrf.mxu0  ;;  %v1533_v61 = vadd.f32 %v10827_v54, %v1245_v51  ;;  %v11945_v24 = vld [vmem:[#allocation72_spill] sm:$0xff] }
 0x235   : > { %v1777_v21 = vadd.f32 %v10810_v11, %v1527_v8  ;;  %v2275_v26 = vadd.f32 %v10863_v56, %v2025_v0  ;;  %v1531_v15 = vadd.f32 %v10822_v39, %v1235_v10  ;;  %v1255_v56 = vadd.f32 %v10755_v42, %v10753_v41  ;;  %v11941_v0 = vld [vmem:[#allocation70_spill] sm:$0xff] }
 0x236   : > { %v10956_v20 = vpop.f32.mrf.mxu0  ;;  %v2776_v37 = vadd.f32 %v8895_v59, %v2526_v60  ;;  %v2528_v8 = vadd.f32 %v8869_v3, %v2278_v49  ;;  %v2280_v41 = vadd.f32 %v10875_v9, %v10877_v13  ;;  %v11019_v9 = vld [vmem:[#allocation15] ss:$0 sm:$0xff]  ;;  %v1783_v38 = vadd.f32 %v10829_v55, %v1533_v61  ;;  %v11942_v10 = vld [vmem:[#allocation42_spill] sm:$0xff]  ;;  %v11947_v61 = vld [vmem:[#allocation51_spill] sm:$0xff] }
 0x237   : > { %11938 = vst [vmem:[#allocation78_spill] sm:$0xff] %v10956_v20  ;;  %v2027_v27 = vadd.f32 %v10871_v5, %v1777_v21  ;;  %v2525_v31 = vadd.f32 %v2436_v23, %v2275_v26  ;;  %v1265_v5 = vadd.f32 %v10787_v48, %v10785_v47  ;;  %v1781_v62 = vadd.f32 %v10824_v43, %v1531_v15  ;;  %v11009_v47 = vld [vmem:[#allocation13] ss:$0 sm:$0xff] }
 0x238   : > { %v10960_v46 = vpop.f32.mrf.mxu0  ;;  %v1535_v4 = vadd.f32 %v10832_v63, %v1255_v56  ;;  %v1275_v48 = vadd.f32 %v10793_v53, %v10791_v52  ;;  %v1285_v43 = vadd.f32 %v10799_v58, %v10797_v57  ;;  %v2279_v63 = vadd.f32 %v10881_v19, %v2029_v28  ;;  %v11939_v57 = vld [vmem:[#allocation48_spill] sm:$0xff]  ;;  %v11940_v19 = vld [vmem:[#allocation71_spill] sm:$0xff] }
 0x239   : > { %v2277_v36 = vadd.f32 %v10873_v6, %v2027_v27  ;;  %v1537_v23 = vadd.f32 %v10837_v7, %v1265_v5  ;;  %v2775_v54 = vadd.f32 %v2686_v45, %v2525_v31  ;;  %v11013_v6 = vpop.f32.mrf.mxu1  ;;  %v2031_v7 = vadd.f32 %v10887_v12, %v1781_v62  ;;  %v11946_v5 = vld [vmem:[#allocation52_spill] sm:$0xff] }
 0x23a   : > { %v10968_v17 = vpop.f32.mrf.mxu0  ;;  %v2530_v59 = vadd.f32 %v8872_v33, %v2280_v41  ;;  %v2778_v52 = vadd.f32 %v10931_v18, %v2528_v8  ;;  %v2282_v58 = vadd.f32 %v11939_v57, %v10885_v44  ;;  %v2529_v12 = vadd.f32 %v11940_v19, %v2279_v63  ;;  %v11949_v8 = vld [vmem:[#allocation76_spill] sm:$0xff]  ;;  %v11951_v63 = vld [vmem:[#allocation43_spill] sm:$0xff] }
 0x23b   : > { %v2527_v14 = vadd.f32 %v2446_v50, %v2277_v36  ;;  %v1785_v50 = vadd.f32 %v10834_v30, %v1535_v4  ;;  %v1787_v16 = vadd.f32 %v10839_v35, %v1537_v23  ;;  %v11030_v21 = vpop.f32.mrf.mxu1  ;;  %v1539_v26 = vadd.f32 %v11942_v10, %v1275_v48  ;;  %v11943_v30 = vld [vmem:[#allocation49_spill] sm:$0xff]  ;;  %v11948_v36 = vld [vmem:[#allocation50_spill] sm:$0xff] }
 0x23c   : > { %v10972_v20 = vpop.f32.mrf.mxu0  ;;  %v2281_v27 = vadd.f32 %v11943_v30, %v2031_v7  ;;  %v11944_v35 = vld [vmem:[#allocation73_spill] sm:$0xff]  ;;  %v2532_v44 = vadd.f32 %v11945_v24, %v2282_v58  ;;  %v2033_v28 = vadd.f32 %v11946_v5, %v1783_v38  ;;  %v2779_v62 = vadd.f32 %v11949_v8, %v2529_v12  ;;  %v11950_v4 = vld [vmem:[#allocation74_spill] sm:$0xff] }
 0x23d   : > { %v2777_v25 = vadd.f32 %v11941_v0, %v2527_v14  ;;  %v2780_v60 = vadd.f32 %v11944_v35, %v2530_v59  ;;  %v1789_v7 = vadd.f32 %v11951_v63, %v1539_v26  ;;  %v11952_v59 = vld [vmem:[#allocation56_spill] sm:$0xff]  ;;  %v11958_v24 = vld [vmem:[#allocation57_spill] sm:$0xff] }
 0x23e   : > { %v10981_v2 = vpop.f32.mrf.mxu0  ;;  %v2531_v23 = vadd.f32 %v11950_v4, %v2281_v27  ;;  %v2782_v38 = vadd.f32 %v10954_v34, %v2532_v44  ;;  %v11959_v44 = vld [vmem:[#allocation77_spill] sm:$0xff]  ;;  %v11963_v4 = vld [vmem:[#allocation58_spill] sm:$0xff] }
 0x240   : > { %v10987_v11 = vpop.f32.mrf.mxu0  ;;  %v2781_v34 = vadd.f32 %v10964_v40, %v2531_v23 }
 0x242   : > { %v11000_v39 = vpop.f32.mrf.mxu0 }
 0x244   : > { %v8924_v42 = vpop.f32.mrf.mxu0 }
 0x245   : > { %v3026_v3 = vadd.f32 %v8924_v42, %v2776_v37  ;;  %v2284_v37 = vadd.f32 %v11948_v36, %v11947_v61  ;;  %v11045_v42 = vpop.f32.mrf.mxu1  ;;  %v11960_v61 = vld [vmem:[#allocation46_spill] sm:$0xff] }
 0x246   : > { %v2936_v13 = vpop.f32.mrf.mxu0 }
 0x247   : > { %v3051_v53 = vmul.f32 %v11009_v47, %v3026_v3  ;;  %v3025_v45 = vadd.f32 %v2936_v13, %v2775_v54  ;;  %v2035_v13 = vadd.f32 %v11952_v59, %v1785_v50  ;;  %v11062_v26 = vpop.f32.mrf.mxu1  ;;  %v11965_v59 = vld [vmem:[#allocation64_spill] sm:$0xff] }
 0x248   : > { %v8927_v33 = vpop.f32.mrf.mxu0 }
 0x249   : > { %v3076_v55 = vadd.f32 %v11019_v9, %v3051_v53  ;;  %v3050_v18 = vmul.f32 %v11009_v47, %v3025_v45  ;;  %v3028_v22 = vadd.f32 %v8927_v33, %v2778_v52  ;;  %v11953_v52 = vld [vmem:[#allocation75_spill] sm:$0xff]  ;;  %v11954_v33 = vld [vmem:[#allocation45_spill] sm:$0xff] }
 0x24a   : > { %v2946_v15 = vpop.f32.mrf.mxu0  ;;  %v2534_v53 = vadd.f32 %v11953_v52, %v2284_v37  ;;  %v1541_v0 = vadd.f32 %v11954_v33, %v1285_v43  ;;  %v2285_v43 = vadd.f32 %v11958_v24, %v2035_v13  ;;  %v11961_v37 = vld [vmem:[#allocation60_spill] sm:$0xff]  ;;  %v2039_v13 = vadd.f32 %v11965_v59, %v1789_v7  ;;  %v11967_v7 = vld [vmem:[#allocation63_spill] sm:$0xff] }
 0x24b   : > { %v3094_v51 = vmax.f32 %v3076_v55, 0.0  ;;  %v3075_v49 = vadd.f32 %v11019_v9, %v3050_v18  ;;  %v3053_v31 = vmul.f32 %v11009_v47, %v3028_v22  ;;  %v3027_v56 = vadd.f32 %v2946_v15, %v2777_v25  ;;  %v11955_v25 = vld [vmem:[#allocation53_spill] sm:$0xff]  ;;  %v11956_v18 = vld [vmem:[#allocation55_spill] sm:$0xff]  ;;  %v11957_v22 = vld [vmem:[#allocation54_spill] sm:$0xff] }
 0x24c   : > { %v8930_v41 = vpop.f32.mrf.mxu0  ;;  %v2283_v55 = vadd.f32 %v11955_v25, %v2033_v28  ;;  %v2286_v50 = vadd.f32 %v11957_v22, %v11956_v18  ;;  %v1791_v36 = vadd.f32 %v11960_v61, %v1541_v0  ;;  %v2037_v8 = vadd.f32 %v11961_v37, %v1787_v16  ;;  %v11966_v0 = vld [vmem:[#allocation61_spill] sm:$0xff]  ;;  %v11969_v18 = vld [vmem:[#allocation68_spill] sm:$0xff] }
 0x24d   : > { %3113 = vst.msk [vmem:[#allocation4 + $0x8] sm:$0xff] %vm3111_vm2, %v3094_v51  ;;  %v3093_v48 = vmax.f32 %v3075_v49, 0.0  ;;  %v3078_v54 = vadd.f32 %v11019_v9, %v3053_v31  ;;  %v3052_v14 = vmul.f32 %v11009_v47, %v3027_v56  ;;  %v3030_v3 = vadd.f32 %v8930_v41, %v2780_v60  ;;  %v11964_v41 = vld [vmem:[#allocation78_spill] sm:$0xff] }
 0x24e   : > { %v2956_v45 = vpop.f32.mrf.mxu0  ;;  %v2533_v15 = vadd.f32 %v11959_v44, %v2283_v55  ;;  %v2784_v51 = vadd.f32 %v10977_v1, %v2534_v53  ;;  %v2536_v49 = vadd.f32 %v10951_v29, %v2286_v50  ;;  %v2535_v1 = vadd.f32 %v11964_v41, %v2285_v43  ;;  %v8916_v29 = vpop.f32.mrf.mxu1  ;;  %v11968_v55 = vld [vmem:[#allocation62_spill] sm:$0xff] }
 0x24f   : > { %3112 = vst.msk [vmem:[#allocation4] sm:$0xff] %vm3111_vm2, %v3093_v48  ;;  %v3096_v57 = vmax.f32 %v3078_v54, 0.0  ;;  %v3077_v58 = vadd.f32 %v11019_v9, %v3052_v14  ;;  %v3055_v19 = vmul.f32 %v11009_v47, %v3030_v3  ;;  %v3029_v12 = vadd.f32 %v2956_v45, %v2779_v62  ;;  %v11962_v62 = vld [vmem:[#allocation59_spill] sm:$0xff] }
 0x250   : > { %v8933_v10 = vpop.f32.mrf.mxu0  ;;  %v2288_v23 = vadd.f32 %v11963_v4, %v11962_v62  ;;  %v2786_v16 = vadd.f32 %v11013_v6, %v2536_v49  ;;  %v2287_v25 = vadd.f32 %v11966_v0, %v2037_v8  ;;  %v2041_v6 = vadd.f32 %v11969_v18, %v1791_v36  ;;  %v3863_v18 = vld [vmem:[#allocation16 + $0x88] sm:$0xff] }
 0x251   : > { %3115 = vst.msk [vmem:[#allocation4 + $0x18] sm:$0xff] %vm3111_vm2, %v3096_v57  ;;  %v3095_v30 = vmax.f32 %v3077_v58, 0.0  ;;  %v3080_v27 = vadd.f32 %v11019_v9, %v3055_v19  ;;  %v3054_v35 = vmul.f32 %v11009_v47, %v3029_v12  ;;  %v3032_v60 = vadd.f32 %v8933_v10, %v2782_v38 }
 0x252   : > { %v2966_v40 = vpop.f32.mrf.mxu0  ;;  %v2783_v38 = vadd.f32 %v10993_v32, %v2533_v15  ;;  %v2538_v52 = vadd.f32 %v10960_v46, %v2288_v23  ;;  %v2290_v32 = vadd.f32 %v11968_v55, %v11967_v7  ;;  %v2785_v50 = vadd.f32 %v11030_v21, %v2535_v1  ;;  %v11974_v55 = vld [vmem:[#allocation44_spill] sm:$0xff] }
 0x253   : > { %3114 = vst.msk [vmem:[#allocation4 + $0x10] sm:$0xff] %vm3111_vm2, %v3095_v30  ;;  %v3098_v31 = vmax.f32 %v3080_v27, 0.0  ;;  %v3079_v56 = vadd.f32 %v11019_v9, %v3054_v35  ;;  %v3057_v5 = vmul.f32 %v11009_v47, %v3032_v60  ;;  %v3031_v28 = vadd.f32 %v2966_v40, %v2781_v34  ;;  %v2756_v34 = vpop.f32.mrf.mxu1  ;;  %v11970_v35 = vld [vmem:[#allocation65_spill] sm:$0xff] }
 0x254   : > { %v8936_v48 = vpop.f32.mrf.mxu0  ;;  %v2289_v60 = vadd.f32 %v11970_v35, %v2039_v13  ;;  %v2537_v24 = vadd.f32 %v10968_v17, %v2287_v25  ;;  %v2540_v43 = vadd.f32 %v10972_v20, %v2290_v32  ;;  %v2788_v21 = vadd.f32 %v11045_v42, %v2538_v52  ;;  %v3204_v13 = vld [vmem:[#allocation16 + $0x10] sm:$0xff]  ;;  %v11975_v32 = vld [vmem:[#allocation47_spill] sm:$0xff]  ;;  %v3862_v35 = vld [vmem:[#allocation16 + $0x80] sm:$0xff] }
 0x255   : > { %3117 = vst.msk [vmem:[#allocation4 + $0x28] sm:$0xff] %vm3111_vm2, %v3098_v31  ;;  %v3097_v54 = vmax.f32 %v3079_v56, 0.0  ;;  %v3082_v14 = vadd.f32 %v11019_v9, %v3057_v5  ;;  %v3056_v3 = vmul.f32 %v11009_v47, %v3031_v28  ;;  %v3034_v63 = vadd.f32 %v8936_v48, %v2784_v51  ;;  %v11971_v31 = vld [vmem:[#allocation67_spill] sm:$0xff]  ;;  %v11972_v56 = vld [vmem:[#allocation66_spill] sm:$0xff]  ;;  %v11973_v28 = vld [vmem:[#allocation69_spill] sm:$0xff]  ;;  %v8919_v37 = vpop.f32.mrf.mxu1 }
 0x256   : > { %v3145_v53 = vld [vmem:[#allocation4] ss:$2 sm:$0xff]  ;;  %v3147_v45 = vld [vmem:[#allocation4 + $0x1] ss:$2 sm:$0xff]  ;;  %v2976_v57 = vpop.f32.mrf.mxu0  ;;  %v2292_v5 = vadd.f32 %v11972_v56, %v11971_v31  ;;  %v2291_v61 = vadd.f32 %v11973_v28, %v2041_v6  ;;  %v2539_v20 = vadd.f32 %v10981_v2, %v2289_v60  ;;  %v2787_v4 = vadd.f32 %v11062_v26, %v2537_v24  ;;  %v11140_v28 = vld [vmem:[#allocation16 + $0xd8] sm:$0xff] }
 0x257   : > { %v3148_v58 = vmax.f32 %v3145_v53, %v3147_v45  ;;  %3116 = vst.msk [vmem:[#allocation4 + $0x20] sm:$0xff] %vm3111_vm2, %v3097_v54  ;;  %v3100_v19 = vmax.f32 %v3082_v14, 0.0  ;;  %v3081_v12 = vadd.f32 %v11019_v9, %v3056_v3  ;;  %v3059_v33 = vmul.f32 %v11009_v47, %v3034_v63  ;;  %v2766_v45 = vpop.f32.mrf.mxu1 }
 0x258   : > { %v3033_v22 = vadd.f32 %v2976_v57, %v2783_v38  ;;  %v8939_v46 = vpop.f32.mrf.mxu0  ;;  %v2790_v23 = vadd.f32 %v8916_v29, %v2540_v43  ;;  %v2542_v41 = vadd.f32 %v10987_v11, %v2292_v5  ;;  %v2541_v38 = vadd.f32 %v11000_v39, %v2291_v61  ;;  %v3864_v11 = vld [vmem:[#allocation16 + $0x90] sm:$0xff]  ;;  %v3203_v39 = vld [vmem:[#allocation16 + $0x8] sm:$0xff] }
 0x259   : > { %3149 = vst.msk [vmem:[#allocation2 + $0xb] sm:$0xff] %vm3111_vm2, %v3148_v58  ;;  %3119 = vst.msk [vmem:[#allocation4 + $0x38] sm:$0xff] %vm3111_vm2, %v3100_v19  ;;  %v3099_v10 = vmax.f32 %v3081_v12, 0.0  ;;  %v3084_v30 = vadd.f32 %v11019_v9, %v3059_v33  ;;  %v3036_v27 = vadd.f32 %v8939_v46, %v2786_v16  ;;  %v2789_v53 = vadd.f32 %v2756_v34, %v2539_v20 }
 0x25a   : > { %v3058_v44 = vmul.f32 %v11009_v47, %v3033_v22  ;;  %v2986_v15 = vpop.f32.mrf.mxu0  ;;  %v2792_v12 = vadd.f32 %v8919_v37, %v2542_v41  ;;  %v2791_v34 = vadd.f32 %v2766_v45, %v2541_v38 }
 0x25b   : > { %3118 = vst.msk [vmem:[#allocation4 + $0x30] sm:$0xff] %vm3111_vm2, %v3099_v10  ;;  %v3102_v51 = vmax.f32 %v3084_v30, 0.0  ;;  %v3061_v49 = vmul.f32 %v11009_v47, %v3036_v27  ;;  %v3035_v40 = vadd.f32 %v2986_v15, %v2785_v50  ;;  %v3202_v27 = vld [vmem:[#allocation16] sm:$0xff] }
 0x25c   : > { %v3083_v17 = vadd.f32 %v11019_v9, %v3058_v44  ;;  %v8942_v36 = vpop.f32.mrf.mxu0 }
 0x25d   : > { %3121 = vst.msk [vmem:[#allocation4 + $0x48] sm:$0xff] %vm3111_vm2, %v3102_v51  ;;  %v3086_v42 = vadd.f32 %v11019_v9, %v3061_v49  ;;  %v3060_v8 = vmul.f32 %v11009_v47, %v3035_v40  ;;  %v3038_v62 = vadd.f32 %v8942_v36, %v2788_v21  ;;  %v11136_v21 = vld [vmem:[#allocation16 + $0x78] sm:$0xff] }
 0x25e   : > { %v3151_v1 = vld [vmem:[#allocation4 + $0x12] ss:$2 sm:$0xff]  ;;  %v3153_v48 = vld [vmem:[#allocation4 + $0x13] ss:$2 sm:$0xff]  ;;  %v3101_v54 = vmax.f32 %v3083_v17, 0.0  ;;  %v2996_v14 = vpop.f32.mrf.mxu0 }
 0x25f   : > { %v3154_v3 = vmax.f32 %v3151_v1, %v3153_v48  ;;  %v3104_v63 = vmax.f32 %v3086_v42, 0.0  ;;  %v3085_v2 = vadd.f32 %v11019_v9, %v3060_v8  ;;  %v3063_v59 = vmul.f32 %v11009_v47, %v3038_v62 }
 0x260   : > { %3120 = vst.msk [vmem:[#allocation4 + $0x40] sm:$0xff] %vm3111_vm2, %v3101_v54  ;;  %v3037_v16 = vadd.f32 %v2996_v14, %v2787_v4  ;;  %v8945_v26 = vpop.f32.mrf.mxu0  ;;  %v3207_v29 = vld [vmem:[#allocation2 + $0x9] sm:$0xff] }
 0x261   : > { %v11118_v52 = vld [vmem:[#allocation2 + $0xa] sm:$0xff]  ;;  %3155 = vst.msk [vmem:[#allocation2 + $0x15] sm:$0xff] %vm3111_vm2, %v3154_v3  ;;  %3123 = vst.msk [vmem:[#allocation4 + $0x58] sm:$0xff] %vm3111_vm2, %v3104_v63  ;;  %v3103_v57 = vmax.f32 %v3085_v2, 0.0  ;;  %v3088_v58 = vadd.f32 %v11019_v9, %v3063_v59  ;;  %v3040_v19 = vadd.f32 %v8945_v26, %v2790_v23  ;;  %8958 = vmatmul.mubr.msk.f32.vlgmr.msra.gmra.mxu1 %vm3111_vm2, %v3207_v29 }
 0x262   : > { %9004 = vmatmul.mubr.msk.f32.vlgmr.msra.gmra.mxu0 %vm3111_vm2, %v11118_v52  ;;  %v3157_v33 = vld [vmem:[#allocation4 + $0x24] ss:$2 sm:$0xff]  ;;  %v3159_v0 = vld [vmem:[#allocation4 + $0x25] ss:$2 sm:$0xff]  ;;  %v3062_v25 = vmul.f32 %v11009_v47, %v3037_v16  ;;  %v3006_v7 = vpop.f32.mrf.mxu0  ;;  %8973 = vmatpush3.msra.mxu1 %v11974_v55 }
 0x263   : > { %9042 = vmatpush3.msra.mxu0 %v11975_v32  ;;  %v3160_v6 = vmax.f32 %v3157_v33, %v3159_v0  ;;  %3122 = vst.msk [vmem:[#allocation4 + $0x50] sm:$0xff] %vm3111_vm2, %v3103_v57  ;;  %v3106_v22 = vmax.f32 %v3088_v58, 0.0  ;;  %v3065_v46 = vmul.f32 %v11009_v47, %v3040_v19  ;;  %v3039_v50 = vadd.f32 %v3006_v7, %v2789_v53  ;;  %v3192_v19 = vld [vmem:[#allocation2] sm:$0xff]  ;;  %v3851_v7 = vld [vmem:[#allocation2 + $0xb] sm:$0xff] }
 0x264   : > { %8974 = vmatprep.subr.mxu1 %v3204_v13  ;;  %9043 = vmatprep.subr.mxu0 %v3864_v11  ;;  %v3087_v10 = vadd.f32 %v11019_v9, %v3062_v25  ;;  %v8948_v30 = vpop.f32.mrf.mxu0  ;;  %v3193_v25 = vld [vmem:[#allocation2 + $0x8] sm:$0xff] }
 0x265   : > { %8975 = vmatpush3.msra.mxu1 %v3204_v13  ;;  %9044 = vmatpush3.msra.mxu0 %v3864_v11  ;;  %3161 = vst.msk [vmem:[#allocation2 + $0x1f] sm:$0xff] %vm3111_vm2, %v3160_v6  ;;  %3125 = vst.msk [vmem:[#allocation4 + $0x68] sm:$0xff] %vm3111_vm2, %v3106_v22  ;;  %v3090_v60 = vadd.f32 %v11019_v9, %v3065_v46  ;;  %v3064_v24 = vmul.f32 %v11009_v47, %v3039_v50  ;;  %v3694_v55 = vld [vmem:[#allocation16 + $0x70] sm:$0xff]  ;;  %v3693_v6 = vld [vmem:[#allocation16 + $0x68] sm:$0xff] }
 0x266   : > { %v3042_v43 = vadd.f32 %v8948_v30, %v2792_v12  ;;  %8976 = vmatprep.subr.mxu1 %v3203_v39  ;;  %9045 = vmatprep.subr.mxu0 %v3863_v18  ;;  %v3105_v44 = vmax.f32 %v3087_v10, 0.0  ;;  %v3016_v15 = vpop.f32.mrf.mxu0  ;;  %v4204_v30 = vld [vmem:[#allocation16 + $0xd0] sm:$0xff] }
 0x267   : > { %8977 = vmatpush3.msra.mxu1 %v3203_v39  ;;  %9046 = vmatpush3.msra.mxu0 %v3863_v18  ;;  %v3163_v51 = vld [vmem:[#allocation4 + $0x36] ss:$2 sm:$0xff]  ;;  %v3165_v49 = vld [vmem:[#allocation4 + $0x37] ss:$2 sm:$0xff]  ;;  %v3108_v40 = vmax.f32 %v3090_v60, 0.0  ;;  %v3089_v31 = vadd.f32 %v11019_v9, %v3064_v24  ;;  %v3041_v5 = vadd.f32 %v3016_v15, %v2791_v34 }
 0x268   : > { %v3067_v56 = vmul.f32 %v11009_v47, %v3042_v43  ;;  %8978 = vmatprep.subr.mxu1 %v3202_v27  ;;  %9047 = vmatprep.subr.mxu0 %v3862_v35  ;;  %v3166_v61 = vmax.f32 %v3163_v51, %v3165_v49  ;;  %3124 = vst.msk [vmem:[#allocation4 + $0x60] sm:$0xff] %vm3111_vm2, %v3105_v44  ;;  %v3208_v17 = vld [vmem:[#allocation2 + $0x11] sm:$0xff] }
 0x269   : > { %v11143_v36 = vld [vmem:[#allocation2 + $0x12] sm:$0xff]  ;;  %8979 = vmatpush3.msra.mxu1 %v3202_v27  ;;  %9048 = vmatpush3.msra.mxu0 %v3862_v35  ;;  %3127 = vst.msk [vmem:[#allocation4 + $0x78] sm:$0xff] %vm3111_vm2, %v3108_v40  ;;  %v3107_v20 = vmax.f32 %v3089_v31, 0.0  ;;  %v3066_v42 = vmul.f32 %v11009_v47, %v3041_v5  ;;  %v4035_v60 = vld [vmem:[#allocation16 + $0xb8] sm:$0xff] }
 0x26a   : > { %v3092_v37 = vadd.f32 %v11019_v9, %v3067_v56  ;;  %8960 = vmatprep.mubr.msk.f32.mxu1 %vm3111_vm2, %v3208_v17  ;;  %9006 = vmatprep.mubr.msk.f32.mxu0 %vm3111_vm2, %v11143_v36  ;;  %3167 = vst.msk [vmem:[#allocation2 + $0x29] sm:$0xff] %vm3111_vm2, %v3166_v61  ;;  %v3169_v8 = vld [vmem:[#allocation4 + $0x48] ss:$2 sm:$0xff]  ;;  %v3171_v62 = vld [vmem:[#allocation4 + $0x49] ss:$2 sm:$0xff]  ;;  %v3194_v32 = vld [vmem:[#allocation2 + $0x10] sm:$0xff] }
 0x26b   : > { %9018 = vmatprep.subr.mxu1 %v11136_v21  ;;  %9087 = vmatprep.subr.mxu0 %v11140_v28  ;;  %v3172_v4 = vmax.f32 %v3169_v8, %v3171_v62  ;;  %3126 = vst.msk [vmem:[#allocation4 + $0x70] sm:$0xff] %vm3111_vm2, %v3107_v20  ;;  %v3091_v41 = vadd.f32 %v11019_v9, %v3066_v42  ;;  %v3852_v18 = vld [vmem:[#allocation2 + $0x13] sm:$0xff]  ;;  %v4034_v61 = vld [vmem:[#allocation16 + $0xb0] sm:$0xff]  ;;  %v4375_v62 = vld [vmem:[#allocation16 + $0xf8] sm:$0xff] }
 0x26c   : > { %v3110_v23 = vmax.f32 %v3092_v37, 0.0  ;;  %v3209_v47 = vld [vmem:[#allocation2 + $0x19] sm:$0xff]  ;;  %v3210_v48 = vld [vmem:[#allocation2 + $0x21] sm:$0xff]  ;;  %v4545_v37 = vld [vmem:[#allocation16 + $0x118] sm:$0xff] }
 0x26d   : > { %v11156_v1 = vld [vmem:[#allocation2 + $0x1a] sm:$0xff]  ;;  %3173 = vst.msk [vmem:[#allocation2 + $0x33] sm:$0xff] %vm3111_vm2, %v3172_v4  ;;  %v3109_v54 = vmax.f32 %v3091_v41, 0.0  ;;  %8961 = vmatmul.mubr.msk.f32.gmra.mxu1 %vm3111_vm2, %v3209_v47  ;;  %v3692_v34 = vld [vmem:[#allocation16 + $0x60] sm:$0xff]  ;;  %v4544_v4 = vld [vmem:[#allocation16 + $0x110] sm:$0xff] }
 0x26e   : > { %3129 = vst.msk [vmem:[#allocation4 + $0x88] sm:$0xff] %vm3111_vm2, %v3110_v23  ;;  %9007 = vmatmul.mubr.msk.f32.gmra.mxu0 %vm3111_vm2, %v11156_v1  ;;  %8963 = vmatprep.mubr.msk.f32.mxu1 %vm3111_vm2, %v3210_v48  ;;  %v3195_v22 = vld [vmem:[#allocation2 + $0x18] sm:$0xff]  ;;  %v3196_v50 = vld [vmem:[#allocation2 + $0x20] sm:$0xff] }
 0x26f   : > { %v3175_v14 = vld [vmem:[#allocation4 + $0x5a] ss:$2 sm:$0xff]  ;;  %v3177_v3 = vld [vmem:[#allocation4 + $0x5b] ss:$2 sm:$0xff]  ;;  %3128 = vst.msk [vmem:[#allocation4 + $0x80] sm:$0xff] %vm3111_vm2, %v3109_v54 }
 0x270   : > { %v3178_v9 = vmax.f32 %v3175_v14, %v3177_v3  ;;  %v3853_v46 = vld [vmem:[#allocation2 + $0x1b] sm:$0xff]  ;;  %v4202_v56 = vld [vmem:[#allocation16 + $0xc0] sm:$0xff] }
 0x271   : > { %v3211_v63 = vld [vmem:[#allocation2 + $0x29] sm:$0xff]  ;;  %v4192_v17 = vld [vmem:[#allocation2 + $0x1c] sm:$0xff]  ;;  %v4542_v14 = vld [vmem:[#allocation16 + $0x100] sm:$0xff] }
 0x272   : > { %v11165_v2 = vld [vmem:[#allocation2 + $0x22] sm:$0xff]  ;;  %v11167_v59 = vld [vmem:[#allocation2 + $0x2a] sm:$0xff]  ;;  %3179 = vst.msk [vmem:[#allocation2 + $0x3d] sm:$0xff] %vm3111_vm2, %v3178_v9  ;;  %8964 = vmatmul.mubr.msk.f32.gmra.mxu1 %vm3111_vm2, %v3211_v63  ;;  %v4543_v47 = vld [vmem:[#allocation16 + $0x108] sm:$0xff] }
 0x273   : > { %v3181_v13 = vld [vmem:[#allocation4 + $0x6c] ss:$2 sm:$0xff]  ;;  %v3183_v38 = vld [vmem:[#allocation4 + $0x6d] ss:$2 sm:$0xff]  ;;  %9009 = vmatprep.mubr.msk.f32.mxu0 %vm3111_vm2, %v11165_v2  ;;  %v4200_v9 = vld [vmem:[#allocation2 + $0x5c] sm:$0xff] }
 0x274   : > { %v3184_v16 = vmax.f32 %v3181_v13, %v3183_v38  ;;  %9010 = vmatmul.mubr.msk.f32.gmra.mxu0 %vm3111_vm2, %v11167_v59  ;;  %v3212_v26 = vld [vmem:[#allocation2 + $0x31] sm:$0xff]  ;;  %v3854_v10 = vld [vmem:[#allocation2 + $0x23] sm:$0xff]  ;;  %v4373_v13 = vld [vmem:[#allocation16 + $0xe8] sm:$0xff] }
 0x275   : > { %v11175_v29 = vld [vmem:[#allocation2 + $0x32] sm:$0xff]  ;;  %8966 = vmatprep.mubr.msk.f32.mxu1 %vm3111_vm2, %v3212_v26  ;;  %v3197_v27 = vld [vmem:[#allocation2 + $0x28] sm:$0xff] }
 0x276   : > { %3185 = vst.msk [vmem:[#allocation2 + $0x47] sm:$0xff] %vm3111_vm2, %v3184_v16  ;;  %9012 = vmatprep.mubr.msk.f32.mxu0 %vm3111_vm2, %v11175_v29  ;;  %v3187_v11 = vld [vmem:[#allocation4 + $0x7e] ss:$2 sm:$0xff]  ;;  %v3189_v53 = vld [vmem:[#allocation4 + $0x7f] ss:$2 sm:$0xff]  ;;  %v3855_v35 = vld [vmem:[#allocation2 + $0x2b] sm:$0xff] }
 0x277   : > { %v3190_v45 = vmax.f32 %v3187_v11, %v3189_v53  ;;  %v3198_v24 = vld [vmem:[#allocation2 + $0x30] sm:$0xff]  ;;  %v4193_v20 = vld [vmem:[#allocation2 + $0x24] sm:$0xff] }
 0x278   : > { %v3856_v43 = vld [vmem:[#allocation2 + $0x33] sm:$0xff]  ;;  %v4533_v38 = vld [vmem:[#allocation2 + $0x26] sm:$0xff] }
 0x279   : > { %3191 = vst.msk [vmem:[#allocation2 + $0x51] sm:$0xff] %vm3111_vm2, %v3190_v45  ;;  %v3213_v57 = vld [vmem:[#allocation2 + $0x39] sm:$0xff]  ;;  %v4194_v42 = vld [vmem:[#allocation2 + $0x2c] sm:$0xff] }
 0x27a   : > { %v11182_v58 = vld [vmem:[#allocation2 + $0x3a] sm:$0xff]  ;;  %8967 = vmatmul.mubr.msk.f32.gmra.mxu1 %vm3111_vm2, %v3213_v57  ;;  %v4021_v3 = vld [vmem:[#allocation2 + $0xc] sm:$0xff] }
 0x27b   : > { %9013 = vmatmul.mubr.msk.f32.gmra.mxu0 %vm3111_vm2, %v11182_v58  ;;  %v3199_v44 = vld [vmem:[#allocation2 + $0x38] sm:$0xff]  ;;  %v4534_v26 = vld [vmem:[#allocation2 + $0x2e] sm:$0xff] }
 0x27c   : > { %v3857_v15 = vld [vmem:[#allocation2 + $0x3b] sm:$0xff]  ;;  %v4372_v16 = vld [vmem:[#allocation16 + $0xe0] sm:$0xff] }
 0x27d   : > { %v3214_v39 = vld [vmem:[#allocation2 + $0x41] sm:$0xff]  ;;  %v3215_v33 = vld [vmem:[#allocation2 + $0x49] sm:$0xff]  ;;  %v4195_v8 = vld [vmem:[#allocation2 + $0x34] sm:$0xff] }
 0x27e   : > { %v11187_v12 = vld [vmem:[#allocation2 + $0x42] sm:$0xff]  ;;  %8969 = vmatprep.mubr.msk.f32.mxu1 %vm3111_vm2, %v3214_v39  ;;  %v4531_v63 = vld [vmem:[#allocation2 + $0x16] sm:$0xff] }
 0x27f   : > { %9015 = vmatprep.mubr.msk.f32.mxu0 %vm3111_vm2, %v11187_v12  ;;  %8970 = vmatmul.mubr.msk.f32.gmra.mxu1 %vm3111_vm2, %v3215_v33  ;;  %v3200_v51 = vld [vmem:[#allocation2 + $0x40] sm:$0xff]  ;;  %v3201_v40 = vld [vmem:[#allocation2 + $0x48] sm:$0xff] }
 0x280   : > { %8980 = vmatprep.mubr.msk.f32.mxu1 %vm3111_vm2, %v3192_v19  ;;  %v11194_v0 = vld [vmem:[#allocation2 + $0x4a] sm:$0xff]  ;;  %v3860_v5 = vld [vmem:[#allocation2 + $0x53] sm:$0xff]  ;;  %v4196_v23 = vld [vmem:[#allocation2 + $0x3c] sm:$0xff] }
 0x281   : > { %9016 = vmatmul.mubr.msk.f32.gmra.mxu0 %vm3111_vm2, %v11194_v0  ;;  %v3858_v49 = vld [vmem:[#allocation2 + $0x43] sm:$0xff]  ;;  %v3859_v31 = vld [vmem:[#allocation2 + $0x4b] sm:$0xff]  ;;  %v4199_v54 = vld [vmem:[#allocation2 + $0x54] sm:$0xff] }
 0x282   : > { %9049 = vmatprep.mubr.msk.f32.mxu0 %vm3111_vm2, %v3851_v7  ;;  %v4197_v41 = vld [vmem:[#allocation2 + $0x44] sm:$0xff]  ;;  %v3690_v48 = vld [vmem:[#allocation2 + $0x52] sm:$0xff] }
 0x283   : > { %8981 = vmatmul.mubr.msk.f32.vlgmr.msra.gmra.mxu1 %vm3111_vm2, %v3193_v25  ;;  %v4536_v11 = vld [vmem:[#allocation2 + $0x3e] sm:$0xff]  ;;  %v4537_v53 = vld [vmem:[#allocation2 + $0x46] sm:$0xff]  ;;  %v4538_v45 = vld [vmem:[#allocation2 + $0x4e] sm:$0xff] }
 0x284   : > { %8983 = vmatprep.mubr.msk.f32.mxu1 %vm3111_vm2, %v3194_v32  ;;  %9019 = vmatpush3.msra.mxu1 %v11136_v21  ;;  %v4203_v21 = vld [vmem:[#allocation16 + $0xc8] sm:$0xff]  ;;  %v4364_v33 = vld [vmem:[#allocation2 + $0x2d] sm:$0xff]  ;;  %v4367_v7 = vld [vmem:[#allocation2 + $0x45] sm:$0xff] }
 0x285   : > { %9020 = vmatprep.subr.mxu1 %v3694_v55  ;;  %9050 = vmatmul.mubr.msk.f32.vlgmr.msra.gmra.mxu0 %vm3111_vm2, %v3852_v18  ;;  %v4539_v57 = vld [vmem:[#allocation2 + $0x56] sm:$0xff]  ;;  %v4540_v19 = vld [vmem:[#allocation2 + $0x5e] sm:$0xff] }
 0x286   : > { %9021 = vmatpush3.msra.mxu1 %v3694_v55  ;;  %9052 = vmatprep.mubr.msk.f32.mxu0 %vm3111_vm2, %v3853_v46  ;;  %v4362_v39 = vld [vmem:[#allocation2 + $0x1d] sm:$0xff]  ;;  %v4368_v55 = vld [vmem:[#allocation2 + $0x4d] sm:$0xff]  ;;  %v4369_v32 = vld [vmem:[#allocation2 + $0x55] sm:$0xff] }
 0x287   : > { %8984 = vmatmul.mubr.msk.f32.gmra.mxu1 %vm3111_vm2, %v3195_v22  ;;  %9022 = vmatprep.subr.mxu1 %v3693_v6  ;;  %v4366_v25 = vld [vmem:[#allocation2 + $0x3d] sm:$0xff]  ;;  %v4841_v22 = vld [vmem:[#allocation21 + $0x78] sm:$0xff] }
 0x288   : > { %8986 = vmatprep.mubr.msk.f32.mxu1 %vm3111_vm2, %v3196_v50  ;;  %9023 = vmatpush3.msra.mxu1 %v3693_v6  ;;  %v4370_v18 = vld [vmem:[#allocation2 + $0x5d] sm:$0xff]  ;;  %v11976_v6 = vmov 0.0   ;;  %v4826_v46 = vld [vmem:[#allocation21 + $0x38] sm:$0xff]  ;;  %v4840_v50 = vld [vmem:[#allocation21 + $0x70] sm:$0xff] }
 0x289   : > { %9088 = vmatpush3.msra.mxu0 %v11140_v28  ;;  %9024 = vmatprep.subr.mxu1 %v3692_v34  ;;  %v4191_v28 = vld [vmem:[#allocation2 + $0x14] sm:$0xff]  ;;  %4756 = vst.msk [vmem:[#allocation3] sm:$0xff] %vm4745_vm3, %v11976_v6  ;;  %4757 = vst.msk [vmem:[#allocation3 + $0x8] sm:$0xff] %vm4745_vm3, %v11976_v6 }
 0x28a   : > { %9053 = vmatmul.mubr.msk.f32.gmra.mxu0 %vm3111_vm2, %v3854_v10  ;;  %9025 = vmatpush3.msra.mxu1 %v3692_v34  ;;  %4758 = vst.msk [vmem:[#allocation3 + $0x10] sm:$0xff] %vm4745_vm3, %v11976_v6  ;;  %4759 = vst.msk [vmem:[#allocation3 + $0x18] sm:$0xff] %vm4745_vm3, %v11976_v6  ;;  %v4825_v34 = vld [vmem:[#allocation21 + $0x30] sm:$0xff]  ;;  %v4839_v10 = vld [vmem:[#allocation21 + $0x68] sm:$0xff] }
 0x28b   : > { %8987 = vmatmul.mubr.msk.f32.gmra.mxu1 %vm3111_vm2, %v3197_v27  ;;  %9055 = vmatprep.mubr.msk.f32.mxu0 %vm3111_vm2, %v3855_v35  ;;  %4760 = vst.msk [vmem:[#allocation3 + $0x20] sm:$0xff] %vm4745_vm3, %v11976_v6  ;;  %4761 = vst.msk [vmem:[#allocation3 + $0x28] sm:$0xff] %vm4745_vm3, %v11976_v6  ;;  %v4838_v27 = vld [vmem:[#allocation21 + $0x60] sm:$0xff] }
 0x28c   : > { %8989 = vmatprep.mubr.msk.f32.mxu1 %vm3111_vm2, %v3198_v24  ;;  %9089 = vmatprep.subr.mxu0 %v4204_v30  ;;  %4762 = vst.msk [vmem:[#allocation3 + $0x30] sm:$0xff] %vm4745_vm3, %v11976_v6  ;;  %4763 = vst.msk [vmem:[#allocation3 + $0x38] sm:$0xff] %vm4745_vm3, %v11976_v6  ;;  %v4823_v35 = vld [vmem:[#allocation21 + $0x20] sm:$0xff]  ;;  %v4822_v24 = vld [vmem:[#allocation21 + $0x18] sm:$0xff] }
 0x28d   : > { %9064 = vmatprep.subr.mxu1 %v4035_v60  ;;  %9090 = vmatpush3.msra.mxu0 %v4204_v30  ;;  %v4824_v30 = vld [vmem:[#allocation21 + $0x28] sm:$0xff] }
 0x28e   : > { %9056 = vmatmul.mubr.msk.f32.gmra.mxu0 %vm3111_vm2, %v3856_v43  ;;  %9091 = vmatprep.subr.mxu0 %v4203_v21  ;;  %v4836_v43 = vld [vmem:[#allocation21 + $0x50] sm:$0xff] }
 0x28f   : > { %8990 = vmatmul.mubr.msk.f32.gmra.mxu1 %vm3111_vm2, %v3199_v44  ;;  %9058 = vmatprep.mubr.msk.f32.mxu0 %vm3111_vm2, %v3857_v15  ;;  %v4821_v44 = vld [vmem:[#allocation21 + $0x10] sm:$0xff]  ;;  %v4835_v15 = vld [vmem:[#allocation21 + $0x48] sm:$0xff] }
 0x290   : > { %8992 = vmatprep.mubr.msk.f32.mxu1 %vm3111_vm2, %v3200_v51  ;;  %9092 = vmatpush3.msra.mxu0 %v4203_v21  ;;  %v4820_v21 = vld [vmem:[#allocation21 + $0x8] sm:$0xff]  ;;  %v4834_v51 = vld [vmem:[#allocation21 + $0x40] sm:$0xff] }
 0x291   : > { %9093 = vmatprep.subr.mxu0 %v4202_v56 }
 0x292   : > { %9059 = vmatmul.mubr.msk.f32.gmra.mxu0 %vm3111_vm2, %v3858_v49  ;;  %v4819_v49 = vld [vmem:[#allocation21] sm:$0xff] }
 0x293   : > { %8993 = vmatmul.mubr.msk.f32.gmra.mxu1 %vm3111_vm2, %v3201_v40  ;;  %9061 = vmatprep.mubr.msk.f32.mxu0 %vm3111_vm2, %v3859_v31  ;;  %v11294_v40 = vld [vmem:[#allocation21 + $0xb8] sm:$0xff] }
 0x294   : > { %9026 = vmatprep.mubr.msk.f32.mxu1 %vm3111_vm2, %v11118_v52  ;;  %9094 = vmatpush3.msra.mxu0 %v4202_v56  ;;  %v4033_v52 = vld [vmem:[#allocation16 + $0xa8] sm:$0xff]  ;;  %11977 = vst [vmem:[#allocation48_spill] sm:$0xff] %v11294_v40  ;;  %v11296_v31 = vld [vmem:[#allocation21 + $0xf8] sm:$0xff] }
 0x295   : > { %9133 = vmatprep.subr.mxu0 %v4545_v37  ;;  %11978 = vst [vmem:[#allocation71_spill] sm:$0xff] %v11296_v31 }
 0x296   : > { %9062 = vmatmul.mubr.msk.f32.gmra.mxu0 %vm3111_vm2, %v3860_v5 }
 0x297   : > { %9027 = vmatmul.mubr.msk.f32.vlgmr.msra.gmra.mxu1 %vm3111_vm2, %v11143_v36  ;;  %9095 = vmatprep.mubr.msk.f32.mxu0 %vm3111_vm2, %v4191_v28  ;;  %v4032_v36 = vld [vmem:[#allocation16 + $0xa0] sm:$0xff] }
 0x298   : > { %9029 = vmatprep.mubr.msk.f32.mxu1 %vm3111_vm2, %v11156_v1  ;;  %9065 = vmatpush3.msra.mxu1 %v4035_v60  ;;  %v4198_v1 = vld [vmem:[#allocation2 + $0x4c] sm:$0xff] }
 0x299   : > { %9066 = vmatprep.subr.mxu1 %v4034_v61  ;;  %v4837_v60 = vld [vmem:[#allocation21 + $0x58] sm:$0xff] }
 0x29a   : > { %9096 = vmatmul.mubr.msk.f32.vlgmr.msra.gmra.mxu0 %vm3111_vm2, %v4192_v17  ;;  %9067 = vmatpush3.msra.mxu1 %v4034_v61 }
 0x29b   : > { %9030 = vmatmul.mubr.msk.f32.gmra.mxu1 %vm3111_vm2, %v11165_v2  ;;  %9098 = vmatprep.mubr.msk.f32.mxu0 %vm3111_vm2, %v4193_v20  ;;  %v4374_v2 = vld [vmem:[#allocation16 + $0xf0] sm:$0xff] }
 0x29c   : > { %9032 = vmatprep.mubr.msk.f32.mxu1 %vm3111_vm2, %v11167_v59  ;;  %9068 = vmatprep.subr.mxu1 %v4033_v52  ;;  %v4532_v59 = vld [vmem:[#allocation2 + $0x1e] sm:$0xff] }
 0x29d   : > { %9069 = vmatpush3.msra.mxu1 %v4033_v52  ;;  %9134 = vmatpush3.msra.mxu0 %v4545_v37 }
 0x29e   : > { %9099 = vmatmul.mubr.msk.f32.gmra.mxu0 %vm3111_vm2, %v4194_v42  ;;  %9070 = vmatprep.subr.mxu1 %v4032_v36 }
 0x29f   : > { %9033 = vmatmul.mubr.msk.f32.gmra.mxu1 %vm3111_vm2, %v11175_v29  ;;  %9101 = vmatprep.mubr.msk.f32.mxu0 %vm3111_vm2, %v4195_v8  ;;  %v4535_v29 = vld [vmem:[#allocation2 + $0x36] sm:$0xff] }
 0x2a0   : > { %9035 = vmatprep.mubr.msk.f32.mxu1 %vm3111_vm2, %v11182_v58  ;;  %9071 = vmatpush3.msra.mxu1 %v4032_v36  ;;  %v4361_v58 = vld [vmem:[#allocation2 + $0x15] sm:$0xff] }
 0x2a1   : > { %9110 = vmatprep.subr.mxu1 %v4375_v62  ;;  %9135 = vmatprep.subr.mxu0 %v4544_v4 }
 0x2a2   : > { %9102 = vmatmul.mubr.msk.f32.gmra.mxu0 %vm3111_vm2, %v4196_v23 }
 0x2a3   : > { %9036 = vmatmul.mubr.msk.f32.gmra.mxu1 %vm3111_vm2, %v11187_v12  ;;  %9104 = vmatprep.mubr.msk.f32.mxu0 %vm3111_vm2, %v4197_v41  ;;  %v4363_v12 = vld [vmem:[#allocation2 + $0x25] sm:$0xff] }
 0x2a4   : > { %9038 = vmatprep.mubr.msk.f32.mxu1 %vm3111_vm2, %v11194_v0  ;;  %9136 = vmatpush3.msra.mxu0 %v4544_v4  ;;  %v4365_v0 = vld [vmem:[#allocation2 + $0x35] sm:$0xff] }
 0x2a5   : > { %9137 = vmatprep.subr.mxu0 %v4543_v47 }
 0x2a6   : > { %9105 = vmatmul.mubr.msk.f32.gmra.mxu0 %vm3111_vm2, %v4198_v1 }
 0x2a7   : > { %9039 = vmatmul.mubr.msk.f32.gmra.mxu1 %vm3111_vm2, %v3690_v48  ;;  %9107 = vmatprep.mubr.msk.f32.mxu0 %vm3111_vm2, %v4199_v54 }
 0x2a8   : > { %9072 = vmatprep.mubr.msk.f32.mxu1 %vm3111_vm2, %v4021_v3  ;;  %9138 = vmatpush3.msra.mxu0 %v4543_v47 }
 0x2a9   : > { %9139 = vmatprep.subr.mxu0 %v4542_v14 }
 0x2aa   : > { %9108 = vmatmul.mubr.msk.f32.gmra.mxu0 %vm3111_vm2, %v4200_v9 }
 0x2ab   : > { %9073 = vmatmul.mubr.msk.f32.vlgmr.msra.gmra.mxu1 %vm3111_vm2, %v4191_v28  ;;  %9141 = vmatprep.mubr.msk.f32.mxu0 %vm3111_vm2, %v4531_v63 }
 0x2ac   : > { %9075 = vmatprep.mubr.msk.f32.mxu1 %vm3111_vm2, %v4192_v17  ;;  %9111 = vmatpush3.msra.mxu1 %v4375_v62 }
 0x2ad   : > { %9140 = vmatpush3.msra.mxu0 %v4542_v14  ;;  %9112 = vmatprep.subr.mxu1 %v4374_v2 }
 0x2ae   : > { %9142 = vmatmul.mubr.msk.f32.vlgmr.msra.gmra.mxu0 %vm3111_vm2, %v4532_v59  ;;  %9113 = vmatpush3.msra.mxu1 %v4374_v2 }
 0x2af   : > { %9076 = vmatmul.mubr.msk.f32.gmra.mxu1 %vm3111_vm2, %v4193_v20  ;;  %9144 = vmatprep.mubr.msk.f32.mxu0 %vm3111_vm2, %v4533_v38 }
 0x2b0   : > { %9078 = vmatprep.mubr.msk.f32.mxu1 %vm3111_vm2, %v4194_v42  ;;  %9114 = vmatprep.subr.mxu1 %v4373_v13 }
 0x2b1   : > { %9115 = vmatpush3.msra.mxu1 %v4373_v13  ;;  %9181 = vmatprep.subr.mxu0 %v4826_v46 }
 0x2b2   : > { %9145 = vmatmul.mubr.msk.f32.gmra.mxu0 %vm3111_vm2, %v4534_v26  ;;  %9116 = vmatprep.subr.mxu1 %v4372_v16 }
 0x2b3   : > { %9079 = vmatmul.mubr.msk.f32.gmra.mxu1 %vm3111_vm2, %v4195_v8  ;;  %9147 = vmatprep.mubr.msk.f32.mxu0 %vm3111_vm2, %v4535_v29 }
 0x2b4   : > { %9081 = vmatprep.mubr.msk.f32.mxu1 %vm3111_vm2, %v4196_v23  ;;  %9117 = vmatpush3.msra.mxu1 %v4372_v16 }
 0x2b5   : > { %9156 = vmatprep.subr.mxu1 %v4841_v22  ;;  %9182 = vmatpush3.msra.mxu0 %v4826_v46 }
 0x2b6   : > { %9148 = vmatmul.mubr.msk.f32.gmra.mxu0 %vm3111_vm2, %v4536_v11  ;;  %9183 = vmatprep.subr.mxu0 %v4825_v34 }
 0x2b7   : > { %9082 = vmatmul.mubr.msk.f32.gmra.mxu1 %vm3111_vm2, %v4197_v41  ;;  %9150 = vmatprep.mubr.msk.f32.mxu0 %vm3111_vm2, %v4537_v53 }
 0x2b8   : > { %9084 = vmatprep.mubr.msk.f32.mxu1 %vm3111_vm2, %v4198_v1  ;;  %9184 = vmatpush3.msra.mxu0 %v4825_v34 }
 0x2b9   : > { %9185 = vmatprep.subr.mxu0 %v4824_v30 }
 0x2ba   : > { %9151 = vmatmul.mubr.msk.f32.gmra.mxu0 %vm3111_vm2, %v4538_v45 }
 0x2bb   : > { %9085 = vmatmul.mubr.msk.f32.gmra.mxu1 %vm3111_vm2, %v4199_v54  ;;  %9153 = vmatprep.mubr.msk.f32.mxu0 %vm3111_vm2, %v4539_v57 }
 0x2bc   : > { %9118 = vmatprep.mubr.msk.f32.mxu1 %vm3111_vm2, %v4361_v58  ;;  %9186 = vmatpush3.msra.mxu0 %v4824_v30 }
 0x2bd   : > { %9187 = vmatprep.subr.mxu0 %v4823_v35 }
 0x2be   : > { %9154 = vmatmul.mubr.msk.f32.gmra.mxu0 %vm3111_vm2, %v4540_v19 }
 0x2bf   : > { %9119 = vmatmul.mubr.msk.f32.vlgmr.msra.gmra.mxu1 %vm3111_vm2, %v4362_v39  ;;  %9188 = vmatpush3.msra.mxu0 %v4823_v35 }
 0x2c0   : > { %9121 = vmatprep.mubr.msk.f32.mxu1 %vm3111_vm2, %v4363_v12  ;;  %9157 = vmatpush3.msra.mxu1 %v4841_v22 }
 0x2c1   : > { %9158 = vmatprep.subr.mxu1 %v4840_v50  ;;  %9189 = vmatprep.subr.mxu0 %v4822_v24 }
 0x2c2   : > { %9159 = vmatpush3.msra.mxu1 %v4840_v50  ;;  %9190 = vmatpush3.msra.mxu0 %v4822_v24 }
 0x2c3   : > { %9122 = vmatmul.mubr.msk.f32.gmra.mxu1 %vm3111_vm2, %v4364_v33  ;;  %9160 = vmatprep.subr.mxu1 %v4839_v10 }
 0x2c4   : > { %9124 = vmatprep.mubr.msk.f32.mxu1 %vm3111_vm2, %v4365_v0  ;;  %9161 = vmatpush3.msra.mxu1 %v4839_v10 }
 0x2c5   : > { %9162 = vmatprep.subr.mxu1 %v4838_v27  ;;  %9191 = vmatprep.subr.mxu0 %v4821_v44 }
 0x2c6   : > { %9163 = vmatpush3.msra.mxu1 %v4838_v27  ;;  %9192 = vmatpush3.msra.mxu0 %v4821_v44 }
 0x2c7   : > { %9125 = vmatmul.mubr.msk.f32.gmra.mxu1 %vm3111_vm2, %v4366_v25  ;;  %9164 = vmatprep.subr.mxu1 %v4837_v60 }
 0x2c8   : > { %9127 = vmatprep.mubr.msk.f32.mxu1 %vm3111_vm2, %v4367_v7  ;;  %9165 = vmatpush3.msra.mxu1 %v4837_v60 }
 0x2c9   : > { %9166 = vmatprep.subr.mxu1 %v4836_v43  ;;  %9193 = vmatprep.subr.mxu0 %v4820_v21 }
 0x2ca   : > { %9167 = vmatpush3.msra.mxu1 %v4836_v43  ;;  %9194 = vmatpush3.msra.mxu0 %v4820_v21 }
 0x2cb   : > { %9128 = vmatmul.mubr.msk.f32.gmra.mxu1 %vm3111_vm2, %v4368_v55  ;;  %9168 = vmatprep.subr.mxu1 %v4835_v15 }
 0x2cc   : > { %9130 = vmatprep.mubr.msk.f32.mxu1 %vm3111_vm2, %v4369_v32  ;;  %9169 = vmatpush3.msra.mxu1 %v4835_v15 }
 0x2cd   : > { %9170 = vmatprep.subr.mxu1 %v4834_v51  ;;  %9195 = vmatprep.subr.mxu0 %v4819_v49 }
 0x2ce   : > { %9171 = vmatpush3.msra.mxu1 %v4834_v51  ;;  %9196 = vmatpush3.msra.mxu0 %v4819_v49 }
 0x2cf   : > { %9131 = vmatmul.mubr.msk.f32.gmra.mxu1 %vm3111_vm2, %v4370_v18  ;;  %9206 = vmatprep.subr.mxu1 %v11294_v40 }
 0x2d0   : > { %9231 = vmatprep.subr.mxu0 %v11296_v31 }
 0x321   : > { %v11298_v56 = vpop.f32.mrf.mxu1 }
 0x322   : > { %v11300_v5 = vpop.f32.mrf.mxu0 }
 0x323   : > { %v3317_v28 = vpop.f32.mrf.mxu1 }
 0x324   : > { %v11304_v61 = vpop.f32.mrf.mxu0 }
 0x32d   : > { %v8962_v17 = vpop.f32.mrf.mxu1 }
 0x32e   : > { %v11306_v52 = vpop.f32.mrf.mxu0 }
 0x32f   : > { %v11308_v20 = vpop.f32.mrf.mxu1 }
 0x330   : > { %v11310_v37 = vpop.f32.mrf.mxu0 }
 0x332   : > { %v11312_v36 = vpop.f32.mrf.mxu1 }
 0x334   : > { %v11314_v42 = vpop.f32.mrf.mxu0  ;;  %v11316_v8 = vpop.f32.mrf.mxu1 }
 0x336   : > { %v11318_v62 = vpop.f32.mrf.mxu0 }
 0x33a   : > { %v11320_v4 = vpop.f32.mrf.mxu1 }
 0x33b   : > { %v11322_v23 = vpop.f32.mrf.mxu0 }
 0x33c   : > { %v11324_v41 = vpop.f32.mrf.mxu1 }
 0x33d   : > { %v11328_v1 = vpop.f32.mrf.mxu0 }
 0x33f   : > { %v11326_v47 = vpop.f32.mrf.mxu1 }
 0x341   : > { %v11330_v48 = vpop.f32.mrf.mxu1  ;;  %v11332_v54 = vpop.f32.mrf.mxu0 }
 0x343   : > { %v8982_v14 = vpop.f32.mrf.mxu1  ;;  %v11334_v3 = vpop.f32.mrf.mxu0 }
 0x344   : > { %v3468_v6 = vadd.f32 %v8982_v14, %v11298_v56 }
 0x345   : > { %v3462_v9 = vpop.f32.mrf.mxu1  ;;  %v9051_v63 = vpop.f32.mrf.mxu0 }
 0x347   : > { %v8985_v2 = vpop.f32.mrf.mxu1  ;;  %v11336_v59 = vpop.f32.mrf.mxu0 }
 0x349   : > { %v3472_v13 = vpop.f32.mrf.mxu1 }
 0x34a   : > { %v11338_v38 = vpop.f32.mrf.mxu0 }
 0x34b   : > { %v8988_v16 = vpop.f32.mrf.mxu1 }
 0x34c   : > { %v11340_v26 = vpop.f32.mrf.mxu0  ;;  %v3488_v14 = vadd.f32 %v8988_v16, %v11312_v36 }
 0x34d   : > { %v3482_v29 = vpop.f32.mrf.mxu1 }
 0x34e   : > { %v11342_v11 = vpop.f32.mrf.mxu0 }
 0x34f   : > { %v8991_v53 = vpop.f32.mrf.mxu1 }
 0x350   : > { %v11344_v45 = vpop.f32.mrf.mxu0 }
 0x351   : > { %v3492_v57 = vpop.f32.mrf.mxu1 }
 0x352   : > { %v11346_v58 = vpop.f32.mrf.mxu0 }
 0x353   : > { %11979 = vst [vmem:[#allocation70_spill] sm:$0xff] %v11346_v58  ;;  %v8994_v19 = vpop.f32.mrf.mxu1 }
 0x354   : > { %v11348_v39 = vpop.f32.mrf.mxu0 }
 0x355   : > { %11980 = vst [vmem:[#allocation42_spill] sm:$0xff] %v11348_v39  ;;  %v11350_v12 = vpop.f32.mrf.mxu1 }
 0x356   : > { %v11352_v33 = vpop.f32.mrf.mxu0 }
 0x357   : > { %11981 = vst [vmem:[#allocation49_spill] sm:$0xff] %v11352_v33  ;;  %v9028_v0 = vpop.f32.mrf.mxu1 }
 0x358   : > { %v11354_v25 = vpop.f32.mrf.mxu0 }
 0x359   : > { %11982 = vst [vmem:[#allocation73_spill] sm:$0xff] %v11354_v25  ;;  %v3792_v7 = vpop.f32.mrf.mxu1  ;;  %v3463_v25 = vadd.f32 %v3462_v9, %v3317_v28  ;;  %v3483_v28 = vadd.f32 %v3482_v29, %v11316_v8 }
 0x35a   : > { %v9097_v55 = vpop.f32.mrf.mxu0 }
 0x35b   : > { %v9031_v32 = vpop.f32.mrf.mxu1  ;;  %v3675_v36 = vadd.f32 %v11318_v62, %v3483_v28 }
 0x35c   : > { %v11356_v18 = vpop.f32.mrf.mxu0 }
 0x35d   : > { %v3802_v22 = vpop.f32.mrf.mxu1 }
 0x35e   : > { %v11358_v46 = vpop.f32.mrf.mxu0 }
 0x35f   : > { %v9034_v50 = vpop.f32.mrf.mxu1 }
 0x360   : > { %v11360_v34 = vpop.f32.mrf.mxu0 }
 0x361   : > { %11983 = vst [vmem:[#allocation72_spill] sm:$0xff] %v11360_v34  ;;  %v3812_v10 = vpop.f32.mrf.mxu1 }
 0x362   : > { %v11362_v30 = vpop.f32.mrf.mxu0 }
 0x363   : > { %11984 = vst [vmem:[#allocation52_spill] sm:$0xff] %v11362_v30  ;;  %v9037_v27 = vpop.f32.mrf.mxu1  ;;  %v3478_v30 = vadd.f32 %v8985_v2, %v8962_v17  ;;  %v3498_v2 = vadd.f32 %v8991_v53, %v11320_v4  ;;  %v3845_v4 = vadd.f32 %v3812_v10, %v3675_v36 }
 0x364   : > { %v11364_v35 = vpop.f32.mrf.mxu0 }
 0x365   : > { %11985 = vst [vmem:[#allocation51_spill] sm:$0xff] %v11364_v35  ;;  %v3822_v60 = vpop.f32.mrf.mxu1  ;;  %v3678_v53 = vadd.f32 %v11322_v23, %v3498_v2 }
 0x366   : > { %v11366_v24 = vpop.f32.mrf.mxu0 }
 0x367   : > { %11986 = vst [vmem:[#allocation50_spill] sm:$0xff] %v11366_v24  ;;  %v11368_v43 = vpop.f32.mrf.mxu1  ;;  %v3672_v24 = vadd.f32 %v11300_v5, %v3468_v6 }
 0x368   : > { %11987 = vst [vmem:[#allocation76_spill] sm:$0xff] %v11368_v43  ;;  %v11370_v44 = vpop.f32.mrf.mxu0  ;;  %v3674_v43 = vadd.f32 %v11306_v52, %v3478_v30  ;;  %v3493_v52 = vadd.f32 %v3492_v57, %v11324_v41 }
 0x369   : > { %11988 = vst [vmem:[#allocation74_spill] sm:$0xff] %v11370_v44  ;;  %v11372_v15 = vpop.f32.mrf.mxu1  ;;  %v3473_v44 = vadd.f32 %v3472_v13, %v11308_v20  ;;  %v3842_v34 = vadd.f32 %v9028_v0, %v3672_v24 }
 0x36a   : > { %11989 = vst [vmem:[#allocation43_spill] sm:$0xff] %v11372_v15  ;;  %v11374_v21 = vpop.f32.mrf.mxu0  ;;  %v3671_v15 = vadd.f32 %v11304_v61, %v3463_v25  ;;  %v3844_v17 = vadd.f32 %v9031_v32, %v3674_v43  ;;  %v11992_v43 = vld [vmem:[#allocation70_spill] sm:$0xff] }
 0x36b   : > { %11990 = vst [vmem:[#allocation56_spill] sm:$0xff] %v11374_v21  ;;  %v9074_v51 = vpop.f32.mrf.mxu1  ;;  %v3673_v6 = vadd.f32 %v11310_v37, %v3473_v44  ;;  %v4012_v5 = vadd.f32 %v9051_v63, %v3842_v34  ;;  %v3508_v37 = vadd.f32 %v8994_v19, %v11326_v47  ;;  %v11410_v44 = vld [vmem:[#allocation19] ss:$0 sm:$0xff] }
 0x36c   : > { %v11377_v31 = vpop.f32.mrf.mxu0  ;;  %v3841_v58 = vadd.f32 %v3792_v7, %v3671_v15  ;;  %v3676_v7 = vadd.f32 %v11314_v42, %v3488_v14  ;;  %v4014_v29 = vadd.f32 %v11338_v38, %v3844_v17  ;;  %v11995_v17 = vld [vmem:[#allocation42_spill] sm:$0xff] }
 0x36d   : > { %v4132_v49 = vpop.f32.mrf.mxu1  ;;  %v3843_v13 = vadd.f32 %v3802_v22, %v3673_v6  ;;  %v4182_v0 = vadd.f32 %v9074_v51, %v4012_v5  ;;  %v3677_v22 = vadd.f32 %v11328_v1, %v3493_v52  ;;  %v3680_v23 = vadd.f32 %v11332_v54, %v3508_v37 }
 0x36e   : > { %v9143_v33 = vpop.f32.mrf.mxu0  ;;  %v4011_v61 = vadd.f32 %v11336_v59, %v3841_v58  ;;  %v3846_v63 = vadd.f32 %v9034_v50, %v3676_v7  ;;  %v3503_v59 = vadd.f32 %v11350_v12, %v11330_v48  ;;  %v3848_v58 = vadd.f32 %v9037_v27, %v3678_v53 }
 0x36f   : > { %v9077_v40 = vpop.f32.mrf.mxu1  ;;  %v4013_v42 = vadd.f32 %v11340_v26, %v3843_v13  ;;  %v4352_v62 = vadd.f32 %v9097_v55, %v4182_v0  ;;  %v3847_v50 = vadd.f32 %v3822_v60, %v3677_v22  ;;  %v4015_v48 = vadd.f32 %v11344_v45, %v3845_v4 }
 0x370   : > { %v4642_v56 = vpop.f32.mrf.mxu0  ;;  %v4181_v16 = vadd.f32 %v4132_v49, %v4011_v61  ;;  %v4184_v41 = vadd.f32 %v9077_v40, %v4014_v29  ;;  %v4016_v10 = vadd.f32 %v11342_v11, %v3846_v63  ;;  %v11404_v40 = vld [vmem:[#allocation18] ss:$0 sm:$0xff]  ;;  %v3679_v12 = vadd.f32 %v11334_v3, %v3503_v59  ;;  %v11993_v49 = vld [vmem:[#allocation72_spill] sm:$0xff]  ;;  %v11996_v61 = vld [vmem:[#allocation49_spill] sm:$0xff] }
 0x371   : > { %v4142_v35 = vpop.f32.mrf.mxu1  ;;  %v4018_v54 = vadd.f32 %v11992_v43, %v3848_v58  ;;  %v11994_v14 = vld [vmem:[#allocation43_spill] sm:$0xff] }
 0x372   : > { %v9146_v25 = vpop.f32.mrf.mxu0  ;;  %v4183_v34 = vadd.f32 %v4142_v35, %v4013_v42  ;;  %v4351_v19 = vadd.f32 %v11356_v18, %v4181_v16  ;;  %v4354_v27 = vadd.f32 %v11358_v46, %v4184_v41  ;;  %v11991_v35 = vld [vmem:[#allocation76_spill] sm:$0xff]  ;;  %v4017_v46 = vadd.f32 %v11995_v17, %v3847_v50  ;;  %v11998_v16 = vld [vmem:[#allocation51_spill] sm:$0xff]  ;;  %v11999_v42 = vld [vmem:[#allocation50_spill] sm:$0xff] }
 0x373   : > { %v9080_v39 = vpop.f32.mrf.mxu1  ;;  %v3850_v24 = vadd.f32 %v11991_v35, %v3680_v23  ;;  %v12001_v23 = vld [vmem:[#allocation74_spill] sm:$0xff] }
 0x374   : > { %v4652_v57 = vpop.f32.mrf.mxu0  ;;  %v4186_v18 = vadd.f32 %v9080_v39, %v4016_v10  ;;  %v4353_v3 = vadd.f32 %v11993_v49, %v4183_v34  ;;  %v12000_v34 = vld [vmem:[#allocation73_spill] sm:$0xff] }
 0x375   : > { %v4152_v21 = vpop.f32.mrf.mxu1  ;;  %v4020_v52 = vadd.f32 %v11996_v61, %v3850_v24 }
 0x376   : > { %v9149_v55 = vpop.f32.mrf.mxu0  ;;  %v4185_v60 = vadd.f32 %v4152_v21, %v4015_v48 }
 0x377   : > { %v9083_v9 = vpop.f32.mrf.mxu1 }
 0x378   : > { %v4188_v28 = vadd.f32 %v9083_v9, %v4018_v54  ;;  %v4662_v5 = vpop.f32.mrf.mxu0  ;;  %v4355_v29 = vadd.f32 %v11998_v16, %v4185_v60 }
 0x379   : > { %v4162_v20 = vpop.f32.mrf.mxu1 }
 0x37a   : > { %v4187_v0 = vadd.f32 %v4162_v20, %v4017_v46 }
 0x37b   : > { %v9086_v8 = vpop.f32.mrf.mxu1 }
 0x37c   : > { %v4190_v53 = vadd.f32 %v9086_v8, %v4020_v52 }
 0x37d   : > { %v11394_v32 = vpop.f32.mrf.mxu1 }
 0x37f   : > { %v9120_v38 = vpop.f32.mrf.mxu1 }
 0x380   : > { %v4522_v47 = vadd.f32 %v9120_v38, %v4352_v62  ;;  %v9152_v62 = vpop.f32.mrf.mxu0 }
 0x381   : > { %v4472_v26 = vpop.f32.mrf.mxu1 }
 0x382   : > { %v4692_v30 = vadd.f32 %v9143_v33, %v4522_v47  ;;  %v4521_v1 = vadd.f32 %v4472_v26, %v4351_v19  ;;  %v3849_v33 = vadd.f32 %v11994_v14, %v3679_v12  ;;  %v4672_v24 = vpop.f32.mrf.mxu0 }
 0x383   : > { %v9123_v11 = vpop.f32.mrf.mxu1 }
 0x384   : > { %v4709_v45 = vmul.f32 %v11404_v40, %v4692_v30  ;;  %v4691_v15 = vadd.f32 %v4642_v56, %v4521_v1  ;;  %v4524_v51 = vadd.f32 %v9123_v11, %v4354_v27  ;;  %v11997_v56 = vld [vmem:[#allocation52_spill] sm:$0xff]  ;;  %v4019_v47 = vadd.f32 %v12000_v34, %v3849_v33  ;;  %v9155_v49 = vpop.f32.mrf.mxu0 }
 0x385   : > { %v4482_v6 = vpop.f32.mrf.mxu1  ;;  %v4356_v7 = vadd.f32 %v11997_v56, %v4186_v18  ;;  %v12002_v27 = vld [vmem:[#allocation56_spill] sm:$0xff] }
 0x386   : > { %v4726_v39 = vadd.f32 %v11410_v44, %v4709_v45  ;;  %v4708_v21 = vmul.f32 %v11404_v40, %v4691_v15  ;;  %v4694_v2 = vadd.f32 %v9146_v25, %v4524_v51  ;;  %v4523_v13 = vadd.f32 %v4482_v6, %v4353_v3  ;;  %v4682_v61 = vpop.f32.mrf.mxu0 }
 0x387   : > { %v9126_v36 = vpop.f32.mrf.mxu1  ;;  %v4358_v25 = vadd.f32 %v11999_v42, %v4188_v28  ;;  %v4189_v12 = vadd.f32 %v11394_v32, %v4019_v47  ;;  %v4360_v35 = vadd.f32 %v12002_v27, %v4190_v53 }
 0x388   : > { %v4736_v37 = vmax.f32 %v4726_v39, 0.0  ;;  %v4725_v9 = vadd.f32 %v11410_v44, %v4708_v21  ;;  %v4711_v63 = vmul.f32 %v11404_v40, %v4694_v2  ;;  %v4693_v4 = vadd.f32 %v4652_v57, %v4523_v13 }
 0x389   : > { %v4526_v59 = vadd.f32 %v9126_v36, %v4356_v7  ;;  %v4492_v41 = vpop.f32.mrf.mxu1  ;;  %v4357_v57 = vadd.f32 %v12001_v23, %v4187_v0  ;;  %v4359_v14 = vadd.f32 %v11377_v31, %v4189_v12  ;;  %v5081_v23 = vld [vmem:[#allocation21 + $0xb0] sm:$0xff]  ;;  %v5080_v12 = vld [vmem:[#allocation21 + $0xa8] sm:$0xff] }
 0x38a   : > { %4747 = vst.msk [vmem:[#allocation5 + $0x8] sm:$0xff] %vm4745_vm3, %v4736_v37  ;;  %v4735_v20 = vmax.f32 %v4725_v9, 0.0  ;;  %v4728_v58 = vadd.f32 %v11410_v44, %v4711_v63  ;;  %v4710_v22 = vmul.f32 %v11404_v40, %v4693_v4  ;;  %v4525_v38 = vadd.f32 %v4492_v41, %v4355_v29 }
 0x38b   : > { %v4696_v19 = vadd.f32 %v9149_v55, %v4526_v59  ;;  %v9129_v50 = vpop.f32.mrf.mxu1 }
 0x38c   : > { %4746 = vst.msk [vmem:[#allocation5] sm:$0xff] %vm4745_vm3, %v4735_v20  ;;  %v4738_v8 = vmax.f32 %v4728_v58, 0.0  ;;  %v4727_v10 = vadd.f32 %v11410_v44, %v4710_v22  ;;  %v4695_v48 = vadd.f32 %v4662_v5, %v4525_v38  ;;  %v4528_v26 = vadd.f32 %v9129_v50, %v4358_v25 }
 0x38d   : > { %v4713_v30 = vmul.f32 %v11404_v40, %v4696_v19  ;;  %v4502_v1 = vpop.f32.mrf.mxu1 }
 0x38e   : > { %4749 = vst.msk [vmem:[#allocation5 + $0x18] sm:$0xff] %vm4745_vm3, %v4738_v8  ;;  %v4737_v55 = vmax.f32 %v4727_v10, 0.0  ;;  %v4712_v18 = vmul.f32 %v11404_v40, %v4695_v48  ;;  %v4698_v60 = vadd.f32 %v9152_v62, %v4528_v26  ;;  %v4527_v43 = vadd.f32 %v4502_v1, %v4357_v57  ;;  %v5215_v10 = vld [vmem:[#allocation21 + $0xf0] sm:$0xff]  ;;  %v12004_v26 = vld [vmem:[#allocation71_spill] sm:$0xff] }
 0x38f   : > { %v4730_v54 = vadd.f32 %v11410_v44, %v4713_v30  ;;  %v9132_v11 = vpop.f32.mrf.mxu1  ;;  %v12003_v48 = vld [vmem:[#allocation48_spill] sm:$0xff] }
 0x390   : > { %4748 = vst.msk [vmem:[#allocation5 + $0x10] sm:$0xff] %vm4745_vm3, %v4737_v55  ;;  %v4729_v32 = vadd.f32 %v11410_v44, %v4712_v18  ;;  %v4715_v45 = vmul.f32 %v11404_v40, %v4698_v60  ;;  %v4697_v15 = vadd.f32 %v4672_v24, %v4527_v43  ;;  %v4530_v51 = vadd.f32 %v9132_v11, %v4360_v35  ;;  %v5214_v30 = vld [vmem:[#allocation21 + $0xe8] sm:$0xff]  ;;  %v5079_v35 = vld [vmem:[#allocation21 + $0xa0] sm:$0xff] }
 0x391   : > { %v4740_v3 = vmax.f32 %v4730_v54, 0.0  ;;  %v4512_v33 = vpop.f32.mrf.mxu1  ;;  %v5213_v11 = vld [vmem:[#allocation21 + $0xe0] sm:$0xff] }
 0x392   : > { %v4739_v28 = vmax.f32 %v4729_v32, 0.0  ;;  %v4732_v17 = vadd.f32 %v11410_v44, %v4715_v45  ;;  %v4714_v46 = vmul.f32 %v11404_v40, %v4697_v15  ;;  %v4700_v6 = vadd.f32 %v9155_v49, %v4530_v51  ;;  %v5078_v32 = vld [vmem:[#allocation21 + $0x98] sm:$0xff]  ;;  %v5077_v49 = vld [vmem:[#allocation21 + $0x90] sm:$0xff] }
 0x393   : > { %v4766_v5 = vld [vmem:[#allocation5] ss:$2 sm:$0xf]  ;;  %v4768_v39 = vld [vmem:[#allocation5 + $0x1] ss:$2 sm:$0xf]  ;;  %v4529_v21 = vadd.f32 %v4512_v33, %v4359_v14 }
 0x394   : > { %4751 = vst.msk [vmem:[#allocation5 + $0x28] sm:$0xff] %vm4745_vm3, %v4740_v3  ;;  %v4769_v2 = vmax.f32 %v4766_v5, %v4768_v39  ;;  %4750 = vst.msk [vmem:[#allocation5 + $0x20] sm:$0xff] %vm4745_vm3, %v4739_v28  ;;  %v4742_v13 = vmax.f32 %v4732_v17, 0.0  ;;  %v4731_v0 = vadd.f32 %v11410_v44, %v4714_v46  ;;  %v4717_v31 = vmul.f32 %v11404_v40, %v4700_v6  ;;  %v5212_v45 = vld [vmem:[#allocation21 + $0xd8] sm:$0xff]  ;;  %v5211_v3 = vld [vmem:[#allocation21 + $0xd0] sm:$0xff] }
 0x395   : > { %v4699_v52 = vadd.f32 %v4682_v61, %v4529_v21  ;;  %v5076_v14 = vld [vmem:[#allocation21 + $0x88] sm:$0xff]  ;;  %v5075_v46 = vld [vmem:[#allocation21 + $0x80] sm:$0xff]  ;;  %v5350_v21 = vld [vmem:[#allocation21 + $0x138] sm:$0xff] }
 0x396   : > { %4753 = vst.msk [vmem:[#allocation5 + $0x38] sm:$0xff] %vm4745_vm3, %v4742_v13  ;;  %v4741_v56 = vmax.f32 %v4731_v0, 0.0  ;;  %v4734_v7 = vadd.f32 %v11410_v44, %v4717_v31  ;;  %v5210_v33 = vld [vmem:[#allocation21 + $0xc8] sm:$0xff]  ;;  %v5209_v6 = vld [vmem:[#allocation21 + $0xc0] sm:$0xff]  ;;  %v5349_v31 = vld [vmem:[#allocation21 + $0x130] sm:$0xff] }
 0x397   : > { %4770 = vst.msk [vmem:[#allocation3 + $0x7] sm:$0xf] %vm4764_vm4, %v4769_v2  ;;  %v4772_v36 = vld [vmem:[#allocation5 + $0xa] ss:$2 sm:$0xf]  ;;  %v4716_v29 = vmul.f32 %v11404_v40, %v4699_v52  ;;  %v5483_v61 = vld [vmem:[#allocation21 + $0x170] sm:$0xff] }
 0x398   : > { %v4774_v16 = vld [vmem:[#allocation5 + $0xb] ss:$2 sm:$0xf]  ;;  %v4778_v9 = vld [vmem:[#allocation5 + $0x14] ss:$2 sm:$0xf] }
 0x399   : > { %v4775_v37 = vmax.f32 %v4772_v36, %v4774_v16  ;;  %v4780_v63 = vld [vmem:[#allocation5 + $0x15] ss:$2 sm:$0xf]  ;;  %4752 = vst.msk [vmem:[#allocation5 + $0x30] sm:$0xff] %vm4745_vm3, %v4741_v56  ;;  %v4744_v4 = vmax.f32 %v4734_v7, 0.0  ;;  %v4733_v53 = vadd.f32 %v11410_v44, %v4716_v29  ;;  %v5484_v2 = vld [vmem:[#allocation21 + $0x178] sm:$0xff] }
 0x39a   : > { %v4781_v59 = vmax.f32 %v4778_v9, %v4780_v63  ;;  %v5348_v7 = vld [vmem:[#allocation21 + $0x128] sm:$0xff]  ;;  %v5481_v9 = vld [vmem:[#allocation21 + $0x160] sm:$0xff] }
 0x39b   : > { %v4790_v41 = vld [vmem:[#allocation5 + $0x28] ss:$2 sm:$0xf]  ;;  %v4792_v42 = vld [vmem:[#allocation5 + $0x29] ss:$2 sm:$0xf] }
 0x39c   : > { %4776 = vst.msk [vmem:[#allocation3 + $0xd] sm:$0xf] %vm4764_vm4, %v4775_v37  ;;  %v4793_v25 = vmax.f32 %v4790_v41, %v4792_v42  ;;  %v4784_v62 = vld [vmem:[#allocation5 + $0x1e] ss:$2 sm:$0xf]  ;;  %v4743_v58 = vmax.f32 %v4733_v53, 0.0 }
 0x39d   : > { %v4786_v20 = vld [vmem:[#allocation5 + $0x1f] ss:$2 sm:$0xf]  ;;  %4755 = vst.msk [vmem:[#allocation5 + $0x48] sm:$0xff] %vm4745_vm3, %v4744_v4  ;;  %v5482_v36 = vld [vmem:[#allocation21 + $0x168] sm:$0xff]  ;;  %v5347_v37 = vld [vmem:[#allocation21 + $0x120] sm:$0xff] }
 0x39e   : > { %4782 = vst.msk [vmem:[#allocation3 + $0x13] sm:$0xf] %vm4764_vm4, %v4781_v59  ;;  %v4787_v40 = vmax.f32 %v4784_v62, %v4786_v20  ;;  %v4827_v22 = vld [vmem:[#allocation3 + $0x1] sm:$0xff]  ;;  %4794 = vst.msk [vmem:[#allocation3 + $0x1f] sm:$0xf] %vm4764_vm4, %v4793_v25  ;;  %v5345_v25 = vld [vmem:[#allocation21 + $0x110] sm:$0xff] }
 0x39f   : > { %v4813_v38 = vld [vmem:[#allocation3] sm:$0xff]  ;;  %4754 = vst.msk [vmem:[#allocation5 + $0x40] sm:$0xff] %vm4745_vm3, %v4743_v58  ;;  %9172 = vmatprep.mubr.msk.f32.mxu1 %vm4745_vm3, %v4827_v22  ;;  %v5479_v62 = vld [vmem:[#allocation21 + $0x150] sm:$0xff]  ;;  %v5478_v58 = vld [vmem:[#allocation21 + $0x148] sm:$0xff] }
 0x3a0   : > { %4788 = vst.msk [vmem:[#allocation3 + $0x19] sm:$0xf] %vm4764_vm4, %v4787_v40  ;;  %9197 = vmatprep.mubr.msk.f32.mxu0 %vm4745_vm3, %v4813_v38  ;;  %v4796_v44 = vld [vmem:[#allocation5 + $0x32] ss:$2 sm:$0xf]  ;;  %v5068_v5 = vld [vmem:[#allocation3 + $0x2] sm:$0xff] }
 0x3a1   : > { %v4798_v34 = vld [vmem:[#allocation5 + $0x33] ss:$2 sm:$0xf]  ;;  %v5346_v53 = vld [vmem:[#allocation21 + $0x118] sm:$0xff] }
 0x3a2   : > { %v4799_v47 = vmax.f32 %v4796_v44, %v4798_v34  ;;  %v5480_v59 = vld [vmem:[#allocation21 + $0x158] sm:$0xff]  ;;  %v5344_v40 = vld [vmem:[#allocation21 + $0x108] sm:$0xff]  ;;  %v5343_v22 = vld [vmem:[#allocation21 + $0x100] sm:$0xff] }
 0x3a3   : > { %v4828_v19 = vld [vmem:[#allocation3 + $0x9] sm:$0xff]  ;;  %v5618_v44 = vld [vmem:[#allocation21 + $0x1b8] sm:$0xff] }
 0x3a4   : > { %v11461_v50 = vld [vmem:[#allocation3 + $0x8] sm:$0xff]  ;;  %4800 = vst.msk [vmem:[#allocation3 + $0x25] sm:$0xf] %vm4764_vm4, %v4799_v47  ;;  %9173 = vmatmul.mubr.msk.f32.vlgmr.msra.gmra.mxu1 %vm4745_vm3, %v4828_v19  ;;  %v5752_v34 = vld [vmem:[#allocation21 + $0x1f8] sm:$0xff] }
 0x3a5   : > { %9198 = vmatmul.mubr.msk.f32.vlgmr.msra.gmra.mxu0 %vm4745_vm3, %v11461_v50  ;;  %v4829_v57 = vld [vmem:[#allocation3 + $0x11] sm:$0xff]  ;;  %9207 = vmatpush3.msra.mxu1 %v12003_v48  ;;  %v5202_v39 = vld [vmem:[#allocation3 + $0x6] sm:$0xff] }
 0x3a6   : > { %v11467_v8 = vld [vmem:[#allocation3 + $0x10] sm:$0xff]  ;;  %9232 = vmatpush3.msra.mxu0 %v12004_v26  ;;  %9175 = vmatprep.mubr.msk.f32.mxu1 %vm4745_vm3, %v4829_v57  ;;  %v4808_v55 = vld [vmem:[#allocation5 + $0x46] ss:$2 sm:$0xf]  ;;  %v5336_v20 = vld [vmem:[#allocation3 + $0x7] sm:$0xff] }
 0x3a7   : > { %9200 = vmatprep.mubr.msk.f32.mxu0 %vm4745_vm3, %v11467_v8  ;;  %v4802_v1 = vld [vmem:[#allocation5 + $0x3c] ss:$2 sm:$0xf]  ;;  %v4804_v27 = vld [vmem:[#allocation5 + $0x3d] ss:$2 sm:$0xf]  ;;  %9208 = vmatprep.subr.mxu1 %v5081_v23 }
 0x3a8   : > { %9233 = vmatprep.subr.mxu0 %v5215_v10  ;;  %v4805_v24 = vmax.f32 %v4802_v1, %v4804_v27  ;;  %v4810_v18 = vld [vmem:[#allocation5 + $0x47] ss:$2 sm:$0xf]  ;;  %9209 = vmatpush3.msra.mxu1 %v5081_v23  ;;  %v5069_v13 = vld [vmem:[#allocation3 + $0xa] sm:$0xff]  ;;  %v5070_v52 = vld [vmem:[#allocation3 + $0x12] sm:$0xff] }
 0x3a9   : > { %9234 = vmatpush3.msra.mxu0 %v5215_v10  ;;  %v4811_v60 = vmax.f32 %v4808_v55, %v4810_v18  ;;  %9210 = vmatprep.subr.mxu1 %v5080_v12  ;;  %v4830_v43 = vld [vmem:[#allocation3 + $0x19] sm:$0xff]  ;;  %v11493_v0 = vld [vmem:[#allocation3 + $0xe] sm:$0xff]  ;;  %v5477_v38 = vld [vmem:[#allocation21 + $0x140] sm:$0xff] }
 0x3aa   : > { %9235 = vmatprep.subr.mxu0 %v5214_v30  ;;  %v11474_v54 = vld [vmem:[#allocation3 + $0x18] sm:$0xff]  ;;  %4806 = vst.msk [vmem:[#allocation3 + $0x2b] sm:$0xf] %vm4764_vm4, %v4805_v24  ;;  %9176 = vmatmul.mubr.msk.f32.gmra.mxu1 %vm4745_vm3, %v4830_v43  ;;  %v5337_v47 = vld [vmem:[#allocation3 + $0xf] sm:$0xff]  ;;  %v5615_v26 = vld [vmem:[#allocation21 + $0x1a0] sm:$0xff] }
 0x3ab   : > { %9201 = vmatmul.mubr.msk.f32.gmra.mxu0 %vm4745_vm3, %v11474_v54  ;;  %4812 = vst.msk [vmem:[#allocation3 + $0x31] sm:$0xf] %vm4764_vm4, %v4811_v60  ;;  %9211 = vmatpush3.msra.mxu1 %v5080_v12  ;;  %v4831_v15 = vld [vmem:[#allocation3 + $0x21] sm:$0xff]  ;;  %v11498_v56 = vld [vmem:[#allocation3 + $0x16] sm:$0xff]  ;;  %v5616_v57 = vld [vmem:[#allocation21 + $0x1a8] sm:$0xff] }
 0x3ac   : > { %9236 = vmatpush3.msra.mxu0 %v5214_v30  ;;  %9212 = vmatprep.subr.mxu1 %v5079_v35  ;;  %v11481_v51 = vld [vmem:[#allocation3 + $0x20] sm:$0xff]  ;;  %v5338_v19 = vld [vmem:[#allocation3 + $0x17] sm:$0xff]  ;;  %v5750_v10 = vld [vmem:[#allocation21 + $0x1e8] sm:$0xff] }
 0x3ad   : > { %9237 = vmatprep.subr.mxu0 %v5213_v11  ;;  %9213 = vmatpush3.msra.mxu1 %v5079_v35  ;;  %v5071_v16 = vld [vmem:[#allocation3 + $0x1a] sm:$0xff]  ;;  %v5072_v63 = vld [vmem:[#allocation3 + $0x22] sm:$0xff]  ;;  %v5604_v24 = vld [vmem:[#allocation3 + $0xc] sm:$0xff] }
 0x3ae   : > { %9238 = vmatpush3.msra.mxu0 %v5213_v11  ;;  %9214 = vmatprep.subr.mxu1 %v5078_v32  ;;  %v11503_v29 = vld [vmem:[#allocation3 + $0x1e] sm:$0xff]  ;;  %v5751_v23 = vld [vmem:[#allocation21 + $0x1f0] sm:$0xff]  ;;  %v5749_v12 = vld [vmem:[#allocation21 + $0x1e0] sm:$0xff] }
 0x3af   : > { %9239 = vmatprep.subr.mxu0 %v5212_v45  ;;  %9178 = vmatprep.mubr.msk.f32.mxu1 %vm4745_vm3, %v4831_v15  ;;  %v5339_v48 = vld [vmem:[#allocation3 + $0x1f] sm:$0xff]  ;;  %v5613_v55 = vld [vmem:[#allocation21 + $0x190] sm:$0xff]  ;;  %v5738_v60 = vld [vmem:[#allocation3 + $0xd] sm:$0xff] }
 0x3b0   : > { %9203 = vmatprep.mubr.msk.f32.mxu0 %vm4745_vm3, %v11481_v51  ;;  %9215 = vmatpush3.msra.mxu1 %v5078_v32  ;;  %v5614_v30 = vld [vmem:[#allocation21 + $0x198] sm:$0xff]  ;;  %v5747_v18 = vld [vmem:[#allocation21 + $0x1d0] sm:$0xff]  ;;  %v5612_v43 = vld [vmem:[#allocation21 + $0x188] sm:$0xff] }
 0x3b1   : > { %9240 = vmatpush3.msra.mxu0 %v5212_v45  ;;  %9216 = vmatprep.subr.mxu1 %v5077_v49  ;;  %v4832_v28 = vld [vmem:[#allocation3 + $0x29] sm:$0xff]  ;;  %v5748_v1 = vld [vmem:[#allocation21 + $0x1d8] sm:$0xff]  ;;  %v5605_v15 = vld [vmem:[#allocation3 + $0x14] sm:$0xff] }
 0x3b2   : > { %9241 = vmatprep.subr.mxu0 %v5211_v3  ;;  %v11486_v17 = vld [vmem:[#allocation3 + $0x28] sm:$0xff]  ;;  %9217 = vmatpush3.msra.mxu1 %v5077_v49  ;;  %v5475_v35 = vld [vmem:[#allocation3 + $0x30] sm:$0xff]  ;;  %v5886_v45 = vld [vmem:[#allocation21 + $0x238] sm:$0xff] }
 0x3b3   : > { %9242 = vmatpush3.msra.mxu0 %v5211_v3  ;;  %9218 = vmatprep.subr.mxu1 %v5076_v14  ;;  %v11508_v4 = vld [vmem:[#allocation3 + $0x26] sm:$0xff]  ;;  %v11513_v42 = vld [vmem:[#allocation3 + $0x2e] sm:$0xff]  ;;  %v5606_v49 = vld [vmem:[#allocation3 + $0x1c] sm:$0xff] }
 0x3b4   : > { %9243 = vmatprep.subr.mxu0 %v5210_v33  ;;  %9179 = vmatmul.mubr.msk.f32.gmra.mxu1 %vm4745_vm3, %v4832_v28  ;;  %v5073_v41 = vld [vmem:[#allocation3 + $0x2a] sm:$0xff]  ;;  %v5885_v3 = vld [vmem:[#allocation21 + $0x230] sm:$0xff] }
 0x3b5   : > { %9204 = vmatmul.mubr.msk.f32.gmra.mxu0 %vm4745_vm3, %v11486_v17  ;;  %9219 = vmatpush3.msra.mxu1 %v5076_v14  ;;  %v5341_v27 = vld [vmem:[#allocation3 + $0x2f] sm:$0xff]  ;;  %v5611_v11 = vld [vmem:[#allocation21 + $0x180] sm:$0xff]  ;;  %v5740_v14 = vld [vmem:[#allocation3 + $0x1d] sm:$0xff] }
 0x3b6   : > { %9244 = vmatpush3.msra.mxu0 %v5210_v33  ;;  %9220 = vmatprep.subr.mxu1 %v5075_v46  ;;  %v5745_v32 = vld [vmem:[#allocation21 + $0x1c0] sm:$0xff]  ;;  %v5884_v33 = vld [vmem:[#allocation21 + $0x228] sm:$0xff] }
 0x3b7   : > { %9222 = vmatprep.mubr.msk.f32.mxu1 %vm4745_vm3, %v5068_v5  ;;  %9245 = vmatprep.subr.mxu0 %v5209_v6  ;;  %v5741_v28 = vld [vmem:[#allocation3 + $0x25] sm:$0xff] }
 0x3b8   : > { %9247 = vmatprep.mubr.msk.f32.mxu0 %vm4745_vm3, %v5202_v39  ;;  %9221 = vmatpush3.msra.mxu1 %v5075_v46  ;;  %v5607_v46 = vld [vmem:[#allocation3 + $0x24] sm:$0xff]  ;;  %v5608_v5 = vld [vmem:[#allocation3 + $0x2c] sm:$0xff] }
 0x3b9   : > { %9246 = vmatpush3.msra.mxu0 %v5209_v6  ;;  %9256 = vmatprep.subr.mxu1 %v5350_v21  ;;  %v5883_v6 = vld [vmem:[#allocation21 + $0x220] sm:$0xff] }
 0x3ba   : > { %9281 = vmatprep.subr.mxu0 %v5484_v2  ;;  %9223 = vmatmul.mubr.msk.f32.vlgmr.msra.gmra.mxu1 %vm4745_vm3, %v5069_v13  ;;  %v5742_v39 = vld [vmem:[#allocation3 + $0x2d] sm:$0xff] }
 0x3bb   : > { %9248 = vmatmul.mubr.msk.f32.vlgmr.msra.gmra.mxu0 %vm4745_vm3, %v11493_v0  ;;  %9257 = vmatpush3.msra.mxu1 %v5350_v21  ;;  %v5743_v21 = vld [vmem:[#allocation3 + $0x35] sm:$0xff] }
 0x3bc   : > { %9282 = vmatpush3.msra.mxu0 %v5484_v2  ;;  %9225 = vmatprep.mubr.msk.f32.mxu1 %vm4745_vm3, %v5070_v52  ;;  %v5882_v2 = vld [vmem:[#allocation21 + $0x218] sm:$0xff]  ;;  %v5609_v13 = vld [vmem:[#allocation3 + $0x34] sm:$0xff]  ;;  %v5879_v52 = vld [vmem:[#allocation21 + $0x200] sm:$0xff] }
 0x3bd   : > { %9250 = vmatprep.mubr.msk.f32.mxu0 %vm4745_vm3, %v11498_v56  ;;  %9258 = vmatprep.subr.mxu1 %v5349_v31 }
 0x3be   : > { %9283 = vmatprep.subr.mxu0 %v5483_v61  ;;  %9259 = vmatpush3.msra.mxu1 %v5349_v31  ;;  %v5881_v31 = vld [vmem:[#allocation21 + $0x210] sm:$0xff] }
 0x3bf   : > { %9284 = vmatpush3.msra.mxu0 %v5483_v61  ;;  %9260 = vmatprep.subr.mxu1 %v5348_v7  ;;  %v5880_v61 = vld [vmem:[#allocation21 + $0x208] sm:$0xff] }
 0x3c0   : > { %9285 = vmatprep.subr.mxu0 %v5482_v36  ;;  %9226 = vmatmul.mubr.msk.f32.gmra.mxu1 %vm4745_vm3, %v5071_v16 }
 0x3c1   : > { %9251 = vmatmul.mubr.msk.f32.gmra.mxu0 %vm4745_vm3, %v11503_v29  ;;  %9261 = vmatpush3.msra.mxu1 %v5348_v7 }
 0x3c2   : > { %9286 = vmatpush3.msra.mxu0 %v5482_v36  ;;  %9228 = vmatprep.mubr.msk.f32.mxu1 %vm4745_vm3, %v5072_v63 }
 0x3c3   : > { %9253 = vmatprep.mubr.msk.f32.mxu0 %vm4745_vm3, %v11508_v4  ;;  %9262 = vmatprep.subr.mxu1 %v5347_v37 }
 0x3c4   : > { %9287 = vmatprep.subr.mxu0 %v5481_v9  ;;  %9263 = vmatpush3.msra.mxu1 %v5347_v37 }
 0x3c5   : > { %9288 = vmatpush3.msra.mxu0 %v5481_v9  ;;  %9264 = vmatprep.subr.mxu1 %v5346_v53 }
 0x3c6   : > { %9289 = vmatprep.subr.mxu0 %v5480_v59  ;;  %9229 = vmatmul.mubr.msk.f32.gmra.mxu1 %vm4745_vm3, %v5073_v41 }
 0x3c7   : > { %9254 = vmatmul.mubr.msk.f32.gmra.mxu0 %vm4745_vm3, %v11513_v42  ;;  %9265 = vmatpush3.msra.mxu1 %v5346_v53 }
 0x3c8   : > { %9290 = vmatpush3.msra.mxu0 %v5480_v59  ;;  %9266 = vmatprep.subr.mxu1 %v5345_v25 }
 0x3c9   : > { %9272 = vmatprep.mubr.msk.f32.mxu1 %vm4745_vm3, %v5336_v20  ;;  %9291 = vmatprep.subr.mxu0 %v5479_v62 }
 0x3ca   : > { %9297 = vmatprep.mubr.msk.f32.mxu0 %vm4745_vm3, %v11461_v50  ;;  %9267 = vmatpush3.msra.mxu1 %v5345_v25  ;;  %v5617_v50 = vld [vmem:[#allocation21 + $0x1b0] sm:$0xff] }
 0x3cb   : > { %9292 = vmatpush3.msra.mxu0 %v5479_v62  ;;  %9268 = vmatprep.subr.mxu1 %v5344_v40 }
 0x3cc   : > { %9293 = vmatprep.subr.mxu0 %v5478_v58  ;;  %9269 = vmatpush3.msra.mxu1 %v5344_v40 }
 0x3cd   : > { %9294 = vmatpush3.msra.mxu0 %v5478_v58  ;;  %9270 = vmatprep.subr.mxu1 %v5343_v22 }
 0x3ce   : > { %9295 = vmatprep.subr.mxu0 %v5477_v38  ;;  %9271 = vmatpush3.msra.mxu1 %v5343_v22 }
 0x3cf   : > { %9296 = vmatpush3.msra.mxu0 %v5477_v38  ;;  %9273 = vmatmul.mubr.msk.f32.vlgmr.msra.gmra.mxu1 %vm4745_vm3, %v5337_v47 }
 0x3d0   : > { %9298 = vmatmul.mubr.msk.f32.vlgmr.msra.gmra.mxu0 %vm4745_vm3, %v11467_v8  ;;  %9306 = vmatprep.subr.mxu1 %v5618_v44  ;;  %v5340_v8 = vld [vmem:[#allocation3 + $0x27] sm:$0xff] }
 0x3d1   : > { %9331 = vmatprep.subr.mxu0 %v5752_v34  ;;  %9275 = vmatprep.mubr.msk.f32.mxu1 %vm4745_vm3, %v5338_v19 }
 0x3d2   : > { %9300 = vmatprep.mubr.msk.f32.mxu0 %vm4745_vm3, %v11474_v54  ;;  %9307 = vmatpush3.msra.mxu1 %v5618_v44  ;;  %v5746_v54 = vld [vmem:[#allocation21 + $0x1c8] sm:$0xff] }
 0x3d3   : > { %9332 = vmatpush3.msra.mxu0 %v5752_v34  ;;  %9308 = vmatprep.subr.mxu1 %v5617_v50 }
 0x3d4   : > { %9333 = vmatprep.subr.mxu0 %v5751_v23  ;;  %9309 = vmatpush3.msra.mxu1 %v5617_v50 }
 0x3d5   : > { %9334 = vmatpush3.msra.mxu0 %v5751_v23  ;;  %9276 = vmatmul.mubr.msk.f32.gmra.mxu1 %vm4745_vm3, %v5339_v48 }
 0x3d6   : > { %9301 = vmatmul.mubr.msk.f32.gmra.mxu0 %vm4745_vm3, %v11481_v51  ;;  %9310 = vmatprep.subr.mxu1 %v5616_v57  ;;  %v5739_v51 = vld [vmem:[#allocation3 + $0x15] sm:$0xff] }
 0x3d7   : > { %9335 = vmatprep.subr.mxu0 %v5750_v10  ;;  %9278 = vmatprep.mubr.msk.f32.mxu1 %vm4745_vm3, %v5340_v8 }
 0x3d8   : > { %9303 = vmatprep.mubr.msk.f32.mxu0 %vm4745_vm3, %v11486_v17  ;;  %9311 = vmatpush3.msra.mxu1 %v5616_v57  ;;  %v12005_v17 = vmov 0.0  }
 0x3d9   : > { %9336 = vmatpush3.msra.mxu0 %v5750_v10  ;;  %9312 = vmatprep.subr.mxu1 %v5615_v26 }
 0x3da   : > { %9337 = vmatprep.subr.mxu0 %v5749_v12  ;;  %9313 = vmatpush3.msra.mxu1 %v5615_v26 }
 0x3db   : > { %9338 = vmatpush3.msra.mxu0 %v5749_v12  ;;  %9279 = vmatmul.mubr.msk.f32.gmra.mxu1 %vm4745_vm3, %v5341_v27 }
 0x3dc   : > { %9304 = vmatmul.mubr.msk.f32.gmra.mxu0 %vm4745_vm3, %v5475_v35  ;;  %9314 = vmatprep.subr.mxu1 %v5614_v30 }
 0x3dd   : > { %9339 = vmatprep.subr.mxu0 %v5748_v1  ;;  %9315 = vmatpush3.msra.mxu1 %v5614_v30 }
 0x3de   : > { %9322 = vmatprep.mubr.msk.f32.mxu1 %vm4745_vm3, %v5604_v24  ;;  %9340 = vmatpush3.msra.mxu0 %v5748_v1 }
 0x3df   : > { %9347 = vmatprep.mubr.msk.f32.mxu0 %vm4745_vm3, %v5738_v60  ;;  %9316 = vmatprep.subr.mxu1 %v5613_v55 }
 0x3e0   : > { %9341 = vmatprep.subr.mxu0 %v5747_v18  ;;  %9317 = vmatpush3.msra.mxu1 %v5613_v55 }
 0x3e1   : > { %9342 = vmatpush3.msra.mxu0 %v5747_v18  ;;  %9318 = vmatprep.subr.mxu1 %v5612_v43 }
 0x3e2   : > { %9343 = vmatprep.subr.mxu0 %v5746_v54  ;;  %9319 = vmatpush3.msra.mxu1 %v5612_v43 }
 0x3e3   : > { %9344 = vmatpush3.msra.mxu0 %v5746_v54  ;;  %9320 = vmatprep.subr.mxu1 %v5611_v11 }
 0x3e4   : > { %9345 = vmatprep.subr.mxu0 %v5745_v32  ;;  %9321 = vmatpush3.msra.mxu1 %v5611_v11 }
 0x3e5   : > { %9346 = vmatpush3.msra.mxu0 %v5745_v32  ;;  %9323 = vmatmul.mubr.msk.f32.vlgmr.msra.gmra.mxu1 %vm4745_vm3, %v5605_v15 }
 0x3e6   : > { %9348 = vmatmul.mubr.msk.f32.vlgmr.msra.gmra.mxu0 %vm4745_vm3, %v5739_v51  ;;  %9356 = vmatprep.subr.mxu1 %v5886_v45 }
 0x3e7   : > { %9325 = vmatprep.mubr.msk.f32.mxu1 %vm4745_vm3, %v5606_v49  ;;  %9350 = vmatprep.mubr.msk.f32.mxu0 %vm4745_vm3, %v5740_v14 }
 0x3e8   : > { %9357 = vmatpush3.msra.mxu1 %v5886_v45  ;;  %9381 = vmatprep.subr.mxu0 %v12005_v17 }
 0x3e9   : > { %9358 = vmatprep.subr.mxu1 %v5885_v3  ;;  %9326 = vmatmul.mubr.msk.f32.gmra.mxu1 %vm4745_vm3, %v5607_v46 }
 0x3ea   : > { %9359 = vmatpush3.msra.mxu1 %v5885_v3  ;;  %9351 = vmatmul.mubr.msk.f32.gmra.mxu0 %vm4745_vm3, %v5741_v28 }
 0x3eb   : > { %9360 = vmatprep.subr.mxu1 %v5884_v33  ;;  %9328 = vmatprep.mubr.msk.f32.mxu1 %vm4745_vm3, %v5608_v5 }
 0x3ec   : > { %9353 = vmatprep.mubr.msk.f32.mxu0 %vm4745_vm3, %v5742_v39  ;;  %9361 = vmatpush3.msra.mxu1 %v5884_v33 }
 0x3ed   : > { %9362 = vmatprep.subr.mxu1 %v5883_v6  ;;  %9329 = vmatmul.mubr.msk.f32.gmra.mxu1 %vm4745_vm3, %v5609_v13 }
 0x3ee   : > { %9354 = vmatmul.mubr.msk.f32.gmra.mxu0 %vm4745_vm3, %v5743_v21  ;;  %9363 = vmatpush3.msra.mxu1 %v5883_v6 }
 0x3ef   : > { %9364 = vmatprep.subr.mxu1 %v5882_v2  ;;  %9372 = vmatprep.mubr.msk.f32.mxu1 %vm4745_vm3, %v11493_v0  ;;  %v5877_v0 = vld [vmem:[#allocation3 + $0x36] sm:$0xff] }
 0x3f0   : > { %9365 = vmatpush3.msra.mxu1 %v5882_v2  ;;  %9413 = vmatprep.mubr.msk.f32.mxu0 %vm10064_vm5, %v12005_v17 }
 0x3f1   : > { %9366 = vmatprep.subr.mxu1 %v5881_v31 }
 0x3f2   : > { %9367 = vmatpush3.msra.mxu1 %v5881_v31 }
 0x3f3   : > { %9368 = vmatprep.subr.mxu1 %v5880_v61 }
 0x3f4   : > { %9369 = vmatpush3.msra.mxu1 %v5880_v61 }
 0x3f5   : > { %9370 = vmatprep.subr.mxu1 %v5879_v52 }
 0x3f6   : > { %9371 = vmatpush3.msra.mxu1 %v5879_v52 }
 0x3f7   : > { %9373 = vmatmul.mubr.msk.f32.vlgmr.msra.gmra.mxu1 %vm4745_vm3, %v11498_v56 }
 0x3f8   : > { %9375 = vmatprep.mubr.msk.f32.mxu1 %vm4745_vm3, %v11503_v29 }
 0x3fb   : > { %9376 = vmatmul.mubr.msk.f32.gmra.mxu1 %vm4745_vm3, %v11508_v4 }
 0x3fc   : > { %9378 = vmatprep.mubr.msk.f32.mxu1 %vm4745_vm3, %v11513_v42 }
 0x3ff   : > { %9379 = vmatmul.mubr.msk.f32.gmra.mxu1 %vm4745_vm3, %v5877_v0 }
 0x464   : > { %v9174_v7 = vpop.f32.mrf.mxu1 }
 0x465   : > { %v9199_v36 = vpop.f32.mrf.mxu0 }
 0x466   : > { %v4926_v16 = vpop.f32.mrf.mxu1  ;;  %v5045_v27 = vadd.f32 %v9199_v36, %v9174_v7 }
 0x467   : > { %v5039_v37 = vpop.f32.mrf.mxu0 }
 0x468   : > { %v5040_v55 = vadd.f32 %v5039_v37, %v4926_v16 }
 0x46a   : > { %v9177_v9 = vpop.f32.mrf.mxu1 }
 0x46b   : > { %v9202_v63 = vpop.f32.mrf.mxu0 }
 0x46c   : > { %v4936_v53 = vpop.f32.mrf.mxu1  ;;  %v5055_v43 = vadd.f32 %v9202_v63, %v9177_v9 }
 0x46d   : > { %v5049_v56 = vpop.f32.mrf.mxu0 }
 0x46e   : > { %v5050_v32 = vadd.f32 %v5049_v56, %v4936_v53 }
 0x474   : > { %v9180_v59 = vpop.f32.mrf.mxu1 }
 0x475   : > { %v9205_v41 = vpop.f32.mrf.mxu0 }
 0x476   : > { %v4946_v29 = vpop.f32.mrf.mxu1  ;;  %v5065_v3 = vadd.f32 %v9205_v41, %v9180_v59 }
 0x477   : > { %v5059_v25 = vpop.f32.mrf.mxu0 }
 0x478   : > { %v5060_v46 = vadd.f32 %v5059_v25, %v4946_v29 }
 0x47a   : > { %v9224_v62 = vpop.f32.mrf.mxu1 }
 0x47b   : > { %v9249_v20 = vpop.f32.mrf.mxu0  ;;  %v5197_v18 = vadd.f32 %v9224_v62, %v5045_v27 }
 0x47c   : > { %v5167_v4 = vpop.f32.mrf.mxu1 }
 0x47d   : > { %v5301_v42 = vpop.f32.mrf.mxu0  ;;  %v5196_v54 = vadd.f32 %v5167_v4, %v5040_v55  ;;  %v5331_v45 = vadd.f32 %v9249_v20, %v5197_v18 }
 0x47f   : > { %v5330_v14 = vadd.f32 %v5301_v42, %v5196_v54 }
 0x480   : > { %v9227_v40 = vpop.f32.mrf.mxu1 }
 0x481   : > { %v9252_v22 = vpop.f32.mrf.mxu0  ;;  %v5199_v15 = vadd.f32 %v9227_v40, %v5055_v43 }
 0x482   : > { %v5177_v58 = vpop.f32.mrf.mxu1 }
 0x483   : > { %v5311_v44 = vpop.f32.mrf.mxu0  ;;  %v5198_v33 = vadd.f32 %v5177_v58, %v5050_v32  ;;  %v5333_v39 = vadd.f32 %v9252_v22, %v5199_v15  ;;  %v8199_v58 = vld [vmem:[#allocation22] ss:$0 sm:$0xff] }
 0x485   : > { %v5332_v31 = vadd.f32 %v5311_v44, %v5198_v33 }
 0x486   : > { %v9230_v38 = vpop.f32.mrf.mxu1 }
 0x487   : > { %v9255_v47 = vpop.f32.mrf.mxu0  ;;  %v5201_v6 = vadd.f32 %v9230_v38, %v5065_v3 }
 0x488   : > { %v5187_v34 = vpop.f32.mrf.mxu1 }
 0x489   : > { %v5321_v50 = vpop.f32.mrf.mxu0  ;;  %v5200_v13 = vadd.f32 %v5187_v34, %v5060_v46  ;;  %v5335_v0 = vadd.f32 %v9255_v47, %v5201_v6 }
 0x48b   : > { %v5334_v63 = vadd.f32 %v5321_v50, %v5200_v13 }
 0x48f   : > { %v9274_v19 = vpop.f32.mrf.mxu1 }
 0x490   : > { %v9299_v57 = vpop.f32.mrf.mxu0  ;;  %v5465_v28 = vadd.f32 %v9274_v19, %v5331_v45 }
 0x491   : > { %v5435_v23 = vpop.f32.mrf.mxu1 }
 0x492   : > { %v5569_v48 = vpop.f32.mrf.mxu0  ;;  %v5464_v21 = vadd.f32 %v5435_v23, %v5330_v14  ;;  %v5599_v61 = vadd.f32 %v9299_v57, %v5465_v28  ;;  %v8200_v23 = vld [vmem:[#allocation24] ss:$0 sm:$0xff] }
 0x494   : > { %v5598_v36 = vadd.f32 %v5569_v48, %v5464_v21 }
 0x495   : > { %v9277_v10 = vpop.f32.mrf.mxu1 }
 0x496   : > { %v9302_v26 = vpop.f32.mrf.mxu0  ;;  %v5467_v52 = vadd.f32 %v9277_v10, %v5333_v39 }
 0x497   : > { %v5445_v8 = vpop.f32.mrf.mxu1 }
 0x498   : > { %v5579_v30 = vpop.f32.mrf.mxu0  ;;  %v5466_v16 = vadd.f32 %v5445_v8, %v5332_v31  ;;  %v5601_v56 = vadd.f32 %v9302_v26, %v5467_v52 }
 0x49a   : > { %v5600_v25 = vadd.f32 %v5579_v30, %v5466_v16 }
 0x49b   : > { %v9280_v12 = vpop.f32.mrf.mxu1 }
 0x49c   : > { %v9305_v35 = vpop.f32.mrf.mxu0  ;;  %v5469_v53 = vadd.f32 %v9280_v12, %v5335_v0 }
 0x49d   : > { %v5455_v1 = vpop.f32.mrf.mxu1 }
 0x49e   : > { %v5589_v11 = vpop.f32.mrf.mxu0  ;;  %v5468_v41 = vadd.f32 %v5455_v1, %v5334_v63  ;;  %v5603_v40 = vadd.f32 %v9305_v35, %v5469_v53 }
 0x4a0   : > { %v5602_v47 = vadd.f32 %v5589_v11, %v5468_v41 }
 0x4a5   : > { %v9324_v24 = vpop.f32.mrf.mxu1 }
 0x4a6   : > { %v9349_v51 = vpop.f32.mrf.mxu0  ;;  %v5733_v37 = vadd.f32 %v9324_v24, %v5599_v61 }
 0x4a7   : > { %v5703_v60 = vpop.f32.mrf.mxu1 }
 0x4a8   : > { %v5837_v2 = vpop.f32.mrf.mxu0  ;;  %v5732_v59 = vadd.f32 %v5703_v60, %v5598_v36  ;;  %v5867_v62 = vadd.f32 %v9349_v51, %v5733_v37 }
 0x4a9   : > { %v9327_v49 = vpop.f32.mrf.mxu1 }
 0x4aa   : > { %v9352_v9 = vpop.f32.mrf.mxu0  ;;  %v5735_v4 = vadd.f32 %v9327_v49, %v5601_v56  ;;  %v5866_v22 = vadd.f32 %v5837_v2, %v5732_v59 }
 0x4ab   : > { %v5713_v5 = vpop.f32.mrf.mxu1 }
 0x4ac   : > { %v5847_v20 = vpop.f32.mrf.mxu0  ;;  %v5734_v38 = vadd.f32 %v5713_v5, %v5600_v25  ;;  %v5869_v57 = vadd.f32 %v9352_v9, %v5735_v4 }
 0x4ad   : > { %v9330_v7 = vpop.f32.mrf.mxu1 }
 0x4ae   : > { %v9355_v44 = vpop.f32.mrf.mxu0  ;;  %v5737_v19 = vadd.f32 %v9330_v7, %v5603_v40  ;;  %v5868_v12 = vadd.f32 %v5847_v20, %v5734_v38 }
 0x4af   : > { %v5723_v29 = vpop.f32.mrf.mxu1 }
 0x4b0   : > { %v5736_v8 = vadd.f32 %v5723_v29, %v5602_v47  ;;  %v5857_v30 = vpop.f32.mrf.mxu0  ;;  %v5871_v24 = vadd.f32 %v9355_v44, %v5737_v19  ;;  %v8201_v44 = vld [vmem:[#allocation25] ss:$0 sm:$0xff] }
 0x4b2   : > { %v5870_v11 = vadd.f32 %v5857_v30, %v5736_v8  ;;  %v6160_v8 = vld [vmem:[%s11850_s12 + $0x60] sm:$0xff] }
 0x4b7   : > { %v9374_v42 = vpop.f32.mrf.mxu1 }
 0x4b8   : > { %v6001_v34 = vadd.f32 %v9374_v42, %v5867_v62 }
 0x4b9   : > { %v5971_v50 = vpop.f32.mrf.mxu1 }
 0x4ba   : > { %v6014_v10 = vmul.f32 %v8199_v58, %v6001_v34  ;;  %v6000_v48 = vadd.f32 %v5971_v50, %v5866_v22  ;;  %v10063_v50 = vmov 0  }
 0x4bb   : > { %v9377_v26 = vpop.f32.mrf.mxu1  ;;  %9592 = vset.pattern.permute.xlu1 %v10063_v50  ;;  %9593 = vset.pattern.permute.xlu0 %v10063_v50  ;;  %v6453_v50 = vld [vmem:[#allocation31 + $0x2c0] sm:$0xff] }
 0x4bc   : > { %v6027_v1 = vadd.f32 %v8200_v23, %v6014_v10  ;;  %v6013_v27 = vmul.f32 %v8199_v58, %v6000_v48  ;;  %v6003_v35 = vadd.f32 %v9377_v26, %v5869_v57  ;;  %v6163_v57 = vld [vmem:[%s11850_s12 + $0x78] sm:$0xff]  ;;  %v6162_v10 = vld [vmem:[%s11850_s12 + $0x70] sm:$0xff]  ;;  %v6161_v48 = vld [vmem:[%s11850_s12 + $0x68] sm:$0xff] }
 0x4bd   : > { %v5981_v55 = vpop.f32.mrf.mxu1  ;;  %9382 = vmatpush3.msra.mxu0 %v6163_v57  ;;  %v6159_v26 = vld [vmem:[%s11850_s12 + $0x58] sm:$0xff]  ;;  %v6388_v57 = vld [vmem:[#allocation31 + $0xb8] sm:$0xff] }
 0x4be   : > { %v6033_v18 = vmax.f32 %v6027_v1, 0.0  ;;  %v6026_v60 = vadd.f32 %v8200_v23, %v6013_v27  ;;  %v6016_v43 = vmul.f32 %v8199_v58, %v6003_v35  ;;  %v6002_v54 = vadd.f32 %v5981_v55, %v5868_v12  ;;  %9383 = vmatprep.subr.mxu0 %v12005_v17  ;;  %v8202_v12 = vld [vmem:[#allocation9] ss:$0 sm:$0xff] }
 0x4bf   : > { %v9380_v32 = vpop.f32.mrf.mxu1  ;;  %9384 = vmatpush3.msra.mxu0 %v6162_v10  ;;  %v6452_v10 = vld [vmem:[#allocation31 + $0x2b8] sm:$0xff] }
 0x4c0   : > { %6039 = vst [vmem:[#allocation6 + $0x8] sm:$0xff] %v6033_v18  ;;  %v6032_v45 = vmax.f32 %v6026_v60, 0.0  ;;  %v6029_v15 = vadd.f32 %v8200_v23, %v6016_v43  ;;  %v6015_v51 = vmul.f32 %v8199_v58, %v6002_v54  ;;  %v6005_v49 = vadd.f32 %v9380_v32, %v5871_v24  ;;  %9385 = vmatprep.subr.mxu0 %v12005_v17  ;;  %v6157_v32 = vld [vmem:[%s11850_s12 + $0x48] sm:$0xff] }
 0x4c1   : > { %v5991_v3 = vpop.f32.mrf.mxu1  ;;  %9386 = vmatpush3.msra.mxu0 %v6161_v48  ;;  %v6387_v48 = vld [vmem:[#allocation31 + $0xb0] sm:$0xff] }
 0x4c2   : > { %6038 = vst [vmem:[#allocation6] sm:$0xff] %v6032_v45  ;;  %v6035_v14 = vmax.f32 %v6029_v15, 0.0  ;;  %v6028_v33 = vadd.f32 %v8200_v23, %v6015_v51  ;;  %v6018_v28 = vmul.f32 %v8199_v58, %v6005_v49  ;;  %v6004_v46 = vadd.f32 %v5991_v3, %v5870_v11  ;;  %9387 = vmatprep.subr.mxu0 %v12005_v17  ;;  %v6158_v11 = vld [vmem:[%s11850_s12 + $0x50] sm:$0xff]  ;;  %v6156_v15 = vld [vmem:[%s11850_s12 + $0x40] sm:$0xff]  ;;  %v6155_v51 = vld [vmem:[%s11850_s12 + $0x38] sm:$0xff] }
 0x4c3   : > { %9388 = vmatpush3.msra.mxu0 %v6160_v8  ;;  %v6154_v3 = vld [vmem:[%s11850_s12 + $0x30] sm:$0xff]  ;;  %v6451_v8 = vld [vmem:[#allocation31 + $0x2b0] sm:$0xff] }
 0x4c4   : > { %6041 = vst [vmem:[#allocation6 + $0x18] sm:$0xff] %v6035_v14  ;;  %v6034_v6 = vmax.f32 %v6028_v33, 0.0  ;;  %v6031_v5 = vadd.f32 %v8200_v23, %v6018_v28  ;;  %v6017_v39 = vmul.f32 %v8199_v58, %v6004_v46  ;;  %9389 = vmatprep.subr.mxu0 %v12005_v17  ;;  %v6153_v14 = vld [vmem:[%s11850_s12 + $0x28] sm:$0xff]  ;;  %v6152_v33 = vld [vmem:[%s11850_s12 + $0x20] sm:$0xff]  ;;  %v6151_v28 = vld [vmem:[%s11850_s12 + $0x18] sm:$0xff] }
 0x4c5   : > { %9390 = vmatpush3.msra.mxu0 %v6159_v26  ;;  %v6150_v46 = vld [vmem:[%s11850_s12 + $0x10] sm:$0xff]  ;;  %v6386_v26 = vld [vmem:[#allocation31 + $0xa8] sm:$0xff] }
 0x4c6   : > { %6040 = vst [vmem:[#allocation6 + $0x10] sm:$0xff] %v6034_v6  ;;  %v6037_v21 = vmax.f32 %v6031_v5, 0.0  ;;  %v6030_v2 = vadd.f32 %v8200_v23, %v6017_v39  ;;  %9391 = vmatprep.subr.mxu0 %v12005_v17  ;;  %v6149_v6 = vld [vmem:[%s11850_s12 + $0x8] sm:$0xff]  ;;  %v6148_v5 = vld [vmem:[%s11850_s12] sm:$0xff] }
 0x4c7   : > { %v6056_v13 = vld [vmem:[#allocation6 + $0xc] ss:$2 sm:$0x3]  ;;  %v6058_v31 = vld [vmem:[#allocation6 + $0xd] ss:$2 sm:$0x3]  ;;  %9392 = vmatpush3.msra.mxu0 %v6158_v11 }
 0x4c8   : > { %6043 = vst [vmem:[#allocation6 + $0x28] sm:$0xff] %v6037_v21  ;;  %v6036_v61 = vmax.f32 %v6030_v2, 0.0  ;;  %v6059_v52 = vmax.f32 %v6056_v13, %v6058_v31  ;;  %9393 = vmatprep.subr.mxu0 %v12005_v17  ;;  %v6380_v11 = vld [vmem:[#allocation31 + $0x78] sm:$0xff] }
 0x4c9   : > { %v6044_v0 = vld [vmem:[#allocation6] ss:$2 sm:$0x3]  ;;  %v6046_v7 = vld [vmem:[#allocation6 + $0x1] ss:$2 sm:$0x3]  ;;  %9394 = vmatpush3.msra.mxu0 %v6157_v32 }
 0x4ca   : > { %6042 = vst [vmem:[#allocation6 + $0x20] sm:$0xff] %v6036_v61  ;;  %v6047_v36 = vmax.f32 %v6044_v0, %v6046_v7  ;;  %v6050_v16 = vld [vmem:[#allocation6 + $0x6] ss:$2 sm:$0x3]  ;;  %6060 = vst [vmem:[#allocation7 + $0x4] sm:$0x3] %v6059_v52  ;;  %9395 = vmatprep.subr.mxu0 %v12005_v17 }
 0x4cb   : > { %v6052_v37 = vld [vmem:[#allocation6 + $0x7] ss:$2 sm:$0x3]  ;;  %v6068_v63 = vld [vmem:[#allocation6 + $0x18] ss:$2 sm:$0x3]  ;;  %9396 = vmatpush3.msra.mxu0 %v6156_v15 }
 0x4cc   : > { %v6053_v9 = vmax.f32 %v6050_v16, %v6052_v37  ;;  %v6070_v53 = vld [vmem:[#allocation6 + $0x19] ss:$2 sm:$0x3]  ;;  %6048 = vst [vmem:[#allocation7] sm:$0x3] %v6047_v36  ;;  %9397 = vmatprep.subr.mxu0 %v12005_v17  ;;  %v6444_v32 = vld [vmem:[#allocation31 + $0x278] sm:$0xff] }
 0x4cd   : > { %v6071_v56 = vmax.f32 %v6068_v63, %v6070_v53  ;;  %v6062_v59 = vld [vmem:[#allocation6 + $0x12] ss:$2 sm:$0x3]  ;;  %v6064_v41 = vld [vmem:[#allocation6 + $0x13] ss:$2 sm:$0x3]  ;;  %9398 = vmatpush3.msra.mxu0 %v6155_v51 }
 0x4ce   : > { %6054 = vst [vmem:[#allocation7 + $0x2] sm:$0x3] %v6053_v9  ;;  %v6065_v29 = vmax.f32 %v6062_v59, %v6064_v41  ;;  %9399 = vmatprep.subr.mxu0 %v12005_v17  ;;  %v6237_v9 = vld [vmem:[#allocation28 + $0x8] sm:$0xff]  ;;  %v6236_v63 = vld [vmem:[#allocation28] sm:$0xff] }
 0x4cf   : > { %6072 = vst [vmem:[#allocation7 + $0x8] sm:$0x3] %v6071_v56  ;;  %v6086_v25 = vld [vmem:[#allocation6 + $0x2a] ss:$2 sm:$0x3]  ;;  %9400 = vmatpush3.msra.mxu0 %v6154_v3  ;;  %v6396_v53 = vld [vmem:[#allocation31 + $0xf8] sm:$0xff] }
 0x4d0   : > { %v6088_v62 = vld [vmem:[#allocation6 + $0x2b] ss:$2 sm:$0x3]  ;;  %6066 = vst [vmem:[#allocation7 + $0x6] sm:$0x3] %v6065_v29  ;;  %9401 = vmatprep.subr.mxu0 %v12005_v17  ;;  %v6460_v56 = vld [vmem:[#allocation31 + $0x2f8] sm:$0xff]  ;;  %6971 = vmatprep.subr.mxu1 %v6396_v53 }
 0x4d1   : > { %v6089_v4 = vmax.f32 %v6086_v25, %v6088_v62  ;;  %v6074_v20 = vld [vmem:[#allocation6 + $0x1e] ss:$2 sm:$0x3]  ;;  %v6076_v40 = vld [vmem:[#allocation6 + $0x1f] ss:$2 sm:$0x3]  ;;  %9402 = vmatpush3.msra.mxu0 %v6153_v14 }
 0x4d2   : > { %v6077_v42 = vmax.f32 %v6074_v20, %v6076_v40  ;;  %v6080_v58 = vld [vmem:[#allocation6 + $0x24] ss:$2 sm:$0x3]  ;;  %v6082_v22 = vld [vmem:[#allocation6 + $0x25] ss:$2 sm:$0x3]  ;;  %9403 = vmatprep.subr.mxu0 %v12005_v17 }
 0x4d3   : > { %6090 = vst [vmem:[#allocation7 + $0xe] sm:$0x3] %v6089_v4  ;;  %v6083_v38 = vmax.f32 %v6080_v58, %v6082_v22  ;;  %9404 = vmatpush3.msra.mxu0 %v6152_v33  ;;  %v6395_v59 = vld [vmem:[#allocation31 + $0xf0] sm:$0xff]  ;;  %v6394_v41 = vld [vmem:[#allocation31 + $0xe8] sm:$0xff]  ;;  %v6393_v29 = vld [vmem:[#allocation31 + $0xe0] sm:$0xff] }
 0x4d4   : > { %6078 = vst [vmem:[#allocation7 + $0xa] sm:$0x3] %v6077_v42  ;;  %9405 = vmatprep.subr.mxu0 %v12005_v17  ;;  %6972 = vmatpush1.msra.mxu1 %v6395_v59  ;;  %v6392_v25 = vld [vmem:[#allocation31 + $0xd8] sm:$0xff]  ;;  %v6391_v62 = vld [vmem:[#allocation31 + $0xd0] sm:$0xff]  ;;  %v6390_v4 = vld [vmem:[#allocation31 + $0xc8] sm:$0xff] }
 0x4d5   : > { %6084 = vst [vmem:[#allocation7 + $0xc] sm:$0x3] %v6083_v38  ;;  %9406 = vmatpush3.msra.mxu0 %v6151_v28  ;;  %6973 = vmatprep.subr.mxu1 %v6394_v41  ;;  %v6164_v20 = vld [vmem:[#allocation27] sm:$0x1]  ;;  %v6459_v22 = vld [vmem:[#allocation31 + $0x2f0] sm:$0xff]  ;;  %v6377_v3 = vld [vmem:[#allocation31 + $0x60] sm:$0xff] }
 0x4d6   : > { %9407 = vmatprep.subr.mxu0 %v12005_v17  ;;  %6974 = vmatpush1.msra.mxu1 %v6393_v29  ;;  %v6458_v38 = vld [vmem:[#allocation31 + $0x2e8] sm:$0xff]  ;;  %v6443_v15 = vld [vmem:[#allocation31 + $0x270] sm:$0xff]  ;;  %v6441_v14 = vld [vmem:[#allocation31 + $0x260] sm:$0xff] }
 0x4d7   : > { %v11559_v34 = vld [vmem:[#allocation7] sm:$0xff]  ;;  %9408 = vmatpush3.msra.mxu0 %v6150_v46  ;;  %6975 = vmatprep.subr.mxu1 %v6392_v25  ;;  %v6378_v51 = vld [vmem:[#allocation31 + $0x68] sm:$0xff]  ;;  %v6375_v46 = vld [vmem:[#allocation31 + $0x50] sm:$0xff] }
 0x4d8   : > { %v6100_v47 = vmul.f32 %v8201_v44, %v11559_v34  ;;  %9409 = vmatprep.subr.mxu0 %v12005_v17  ;;  %6976 = vmatpush1.msra.mxu1 %v6391_v62  ;;  %v6376_v33 = vld [vmem:[#allocation31 + $0x58] sm:$0xff]  ;;  %v6431_v59 = vld [vmem:[#allocation31 + $0x210] sm:$0xff]  ;;  %v6366_v41 = vld [vmem:[#allocation31 + $0x8] sm:$0xff] }
 0x4d9   : > { %9410 = vmatpush3.msra.mxu0 %v6149_v6  ;;  %6977 = vmatprep.subr.mxu1 %v6390_v4  ;;  %v6440_v28 = vld [vmem:[#allocation31 + $0x258] sm:$0xff]  ;;  %v6439_v6 = vld [vmem:[#allocation31 + $0x250] sm:$0xff]  ;;  %v6430_v29 = vld [vmem:[#allocation31 + $0x208] sm:$0xff] }
 0x4da   : > { %6102 = vadd.xlane.f32.xlu0 %v6100_v47  ;;  %9411 = vmatprep.subr.mxu0 %v12005_v17  ;;  %v6455_v47 = vld [vmem:[#allocation31 + $0x2d0] sm:$0xff]  ;;  %v6432_v53 = vld [vmem:[#allocation31 + $0x218] sm:$0xff]  ;;  %v6365_v25 = vld [vmem:[#allocation31] sm:$0xff] }
 0x4db   : > { %9412 = vmatpush3.msra.mxu0 %v6148_v5  ;;  %v6374_v5 = vld [vmem:[#allocation31 + $0x48] sm:$0xff]  ;;  %v6429_v62 = vld [vmem:[#allocation31 + $0x200] sm:$0xff]  ;;  %v6428_v4 = vld [vmem:[#allocation31 + $0x1f8] sm:$0xff] }
 0x4dc   : > { %v11562_v19 = vld [vmem:[#allocation7 + $0x8] sm:$0xff]  ;;  %9416 = vmatprep.subr.mxu0 %v12005_v17 }
 0x4dd   : > { %v6101_v23 = vmul.f32 %v8201_v44, %v11562_v19  ;;  %v6457_v44 = vld [vmem:[#allocation31 + $0x2e0] sm:$0xff] }
 0x4df   : > { %6104 = vadd.xlane.f32.xlu0 %v6101_v23  ;;  %v6389_v23 = vld [vmem:[#allocation31 + $0xc0] sm:$0xff] }
 0x4e0   : > { %6978 = vmatpush1.msra.mxu1 %v6389_v23  ;;  %v6422_v23 = vld [vmem:[#allocation31 + $0x1c8] sm:$0xff] }
 0x4e1   : > { %6979 = vmatprep.subr.mxu1 %v6388_v57  ;;  %v6421_v57 = vld [vmem:[#allocation31 + $0x1c0] sm:$0xff] }
 0x4e2   : > { %6980 = vmatpush1.msra.mxu1 %v6387_v48  ;;  %v6420_v48 = vld [vmem:[#allocation31 + $0x1b8] sm:$0xff] }
 0x4e3   : > { %6981 = vmatprep.subr.mxu1 %v6386_v26  ;;  %v6419_v26 = vld [vmem:[#allocation31 + $0x1b0] sm:$0xff] }
 0x563   : > { %v6103_v30 = vpop.xlane.xlu0 %6102 }
 0x564   : > { %v6113_v1 = vadd.f32 %v8202_v12, %v6103_v30  ;;  %v6385_v30 = vld [vmem:[#allocation31 + $0xa0] sm:$0xff] }
 0x565   : > { %6982 = vmatpush1.msra.mxu1 %v6385_v30  ;;  %v6418_v30 = vld [vmem:[#allocation31 + $0x1a8] sm:$0xff] }
 0x566   : > { %v8203_v27 = vmul.f32 -1.442695, %v6113_v1  ;;  %v6449_v1 = vld [vmem:[#allocation31 + $0x2a0] sm:$0xff] }
 0x568   : > { %9594 = vpow2.f32 %v8203_v27  ;;  %v6105_v35 = vpop.xlane.xlu0 %6104  ;;  %v6384_v27 = vld [vmem:[#allocation31 + $0x98] sm:$0xff] }
 0x569   : > { %v6114_v24 = vadd.f32 %v8202_v12, %v6105_v35  ;;  %v6450_v12 = vld [vmem:[#allocation31 + $0x2a8] sm:$0xff]  ;;  %v6448_v35 = vld [vmem:[#allocation31 + $0x298] sm:$0xff]  ;;  %6983 = vmatprep.subr.mxu1 %v6384_v27  ;;  %v6417_v27 = vld [vmem:[#allocation31 + $0x1a0] sm:$0xff] }
 0x56b   : > { %v8204_v55 = vmul.f32 -1.442695, %v6114_v24  ;;  %v6383_v24 = vld [vmem:[#allocation31 + $0x90] sm:$0xff] }
 0x56c   : > { %6984 = vmatpush1.msra.mxu1 %v6383_v24  ;;  %v6416_v24 = vld [vmem:[#allocation31 + $0x198] sm:$0xff] }
 0x56d   : > { %9596 = vpow2.f32 %v8204_v55  ;;  %v6447_v55 = vld [vmem:[#allocation31 + $0x290] sm:$0xff] }
 0x575   : > { %v9595_v18 = vpop.eup %9594 }
 0x576   : > { %v6121_v60 = vadd.f32 1.0, %v9595_v18  ;;  %v6382_v18 = vld [vmem:[#allocation31 + $0x88] sm:$0xff] }
 0x577   : > { %6985 = vmatprep.subr.mxu1 %v6382_v18  ;;  %v6415_v18 = vld [vmem:[#allocation31 + $0x190] sm:$0xff] }
 0x578   : > { %9598 = vrcp.f32 %v6121_v60  ;;  %v6446_v60 = vld [vmem:[#allocation31 + $0x288] sm:$0xff] }
 0x57a   : > { %v9597_v43 = vpop.eup %9596 }
 0x57b   : > { %v6122_v54 = vadd.f32 1.0, %v9597_v43  ;;  %v6381_v43 = vld [vmem:[#allocation31 + $0x80] sm:$0xff] }
 0x57c   : > { %6986 = vmatpush1.msra.mxu1 %v6381_v43  ;;  %v6414_v43 = vld [vmem:[#allocation31 + $0x188] sm:$0xff] }
 0x57d   : > { %9600 = vrcp.f32 %v6122_v54  ;;  %v6445_v54 = vld [vmem:[#allocation31 + $0x280] sm:$0xff]  ;;  %6987 = vmatprep.subr.mxu1 %v6380_v11 }
 0x57e   : > { %v6413_v11 = vld [vmem:[#allocation31 + $0x180] sm:$0xff] }
 0x585   : > { %v9599_v45 = vpop.eup %9598 }
 0x586   : > { %6129 = vperm.xlu1 %9592, %v9599_v45   ;;  %v6379_v45 = vld [vmem:[#allocation31 + $0x70] sm:$0xff] }
 0x587   : > { %6988 = vmatpush1.msra.mxu1 %v6379_v45  ;;  %v6412_v45 = vld [vmem:[#allocation31 + $0x178] sm:$0xff] }
 0x588   : > { %6989 = vmatprep.subr.mxu1 %v6378_v51  ;;  %v6411_v51 = vld [vmem:[#allocation31 + $0x170] sm:$0xff] }
 0x589   : > { %6990 = vmatpush1.msra.mxu1 %v6377_v3  ;;  %v6410_v3 = vld [vmem:[#allocation31 + $0x168] sm:$0xff] }
 0x58a   : > { %v9601_v49 = vpop.eup %9600  ;;  %6991 = vmatprep.subr.mxu1 %v6376_v33  ;;  %v6409_v33 = vld [vmem:[#allocation31 + $0x160] sm:$0xff] }
 0x58b   : > { %6134 = vperm.xlu1 %9592, %v9601_v49   ;;  %v6442_v49 = vld [vmem:[#allocation31 + $0x268] sm:$0xff]  ;;  %6992 = vmatpush1.msra.mxu1 %v6375_v46  ;;  %v6408_v46 = vld [vmem:[#allocation31 + $0x158] sm:$0xff] }
 0x58c   : > { %6993 = vmatprep.subr.mxu1 %v6374_v5  ;;  %v6407_v5 = vld [vmem:[#allocation31 + $0x150] sm:$0xff] }
 0x601   : > { %v6130_v39 = vpop.permute.xlu1 %6129 }
 0x602   : > { %v11632_v2 = vmul.f32 %v6130_v39, %v11559_v34  ;;  %v6456_v34 = vld [vmem:[#allocation31 + $0x2d8] sm:$0xff]  ;;  %v6438_v39 = vld [vmem:[#allocation31 + $0x248] sm:$0xff] }
 0x606   : > { %v6135_v21 = vpop.permute.xlu1 %6134 }
 0x607   : > { %v11635_v13 = vmul.f32 %v6135_v21, %v11562_v19  ;;  %v6454_v19 = vld [vmem:[#allocation31 + $0x2c8] sm:$0xff]  ;;  %v6373_v21 = vld [vmem:[#allocation31 + $0x40] sm:$0xff] }
 0x608   : > { %6994 = vmatpush1.msra.mxu1 %v6373_v21  ;;  %v6406_v21 = vld [vmem:[#allocation31 + $0x148] sm:$0xff] }
 0x609   : > { %v6139_v31 = vadd.f32 %v11635_v13, %v11632_v2 }
 0x60b   : > { %v6140_v61 = vrot.slane %v6139_v31, 4 }
 0x60d   : > { %v6141_v52 = vadd.f32 %v6140_v61, %v6139_v31  ;;  %v6437_v31 = vld [vmem:[#allocation31 + $0x240] sm:$0xff]  ;;  %v6372_v61 = vld [vmem:[#allocation31 + $0x38] sm:$0xff] }
 0x60e   : > { %6995 = vmatprep.subr.mxu1 %v6372_v61  ;;  %v6405_v61 = vld [vmem:[#allocation31 + $0x140] sm:$0xff] }
 0x60f   : > { %v6142_v0 = vrot.slane %v6141_v52, 2 }
 0x611   : > { %v6143_v7 = vadd.f32 %v6142_v0, %v6141_v52  ;;  %v6436_v52 = vld [vmem:[#allocation31 + $0x238] sm:$0xff]  ;;  %v6371_v0 = vld [vmem:[#allocation31 + $0x30] sm:$0xff] }
 0x612   : > { %6996 = vmatpush1.msra.mxu1 %v6371_v0  ;;  %v6404_v0 = vld [vmem:[#allocation31 + $0x138] sm:$0xff] }
 0x613   : > { %v6144_v36 = vrot.slane %v6143_v7, 1 }
 0x615   : > { %v6145_v16 = vadd.f32 %v6144_v36, %v6143_v7  ;;  %v6435_v7 = vld [vmem:[#allocation31 + $0x230] sm:$0xff]  ;;  %v6370_v36 = vld [vmem:[#allocation31 + $0x28] sm:$0xff] }
 0x616   : > { %6997 = vmatprep.subr.mxu1 %v6370_v36  ;;  %v6403_v36 = vld [vmem:[#allocation31 + $0x130] sm:$0xff] }
 0x617   : > { %v6147_v37 = vmul.f32 0.0625, %v6145_v16  ;;  %v6434_v16 = vld [vmem:[#allocation31 + $0x228] sm:$0xff] }
 0x619   : > { %9414 = vmatmul.mubr.f32.vlgmr.msra.gmra.mxu0 %v6147_v37  ;;  %v6369_v37 = vld [vmem:[#allocation31 + $0x20] sm:$0xff] }
 0x61a   : > { %9420 = vmatprep.mubr.msk.f32.mxu0 %vm10064_vm5, %v12005_v17  ;;  %9417 = vmatpush3.msra.mxu0 %v6237_v9  ;;  %v6433_v9 = vld [vmem:[#allocation31 + $0x220] sm:$0xff] }
 0x61b   : > { %9418 = vmatprep.subr.mxu0 %v12005_v17  ;;  %6998 = vmatpush1.msra.mxu1 %v6369_v37  ;;  %v6402_v37 = vld [vmem:[#allocation31 + $0x128] sm:$0xff] }
 0x61c   : > { %9419 = vmatpush3.msra.mxu0 %v6236_v63  ;;  %v6368_v63 = vld [vmem:[#allocation31 + $0x18] sm:$0xff] }
 0x61d   : > { %7042 = vmatprep.subr.mxu0 %v6460_v56  ;;  %6999 = vmatprep.subr.mxu1 %v6368_v63  ;;  %v6367_v56 = vld [vmem:[#allocation31 + $0x10] sm:$0xff]  ;;  %v6401_v63 = vld [vmem:[#allocation31 + $0x120] sm:$0xff] }
 0x61e   : > { %7000 = vmatpush1.msra.mxu1 %v6367_v56  ;;  %v6400_v56 = vld [vmem:[#allocation31 + $0x118] sm:$0xff] }
 0x61f   : > { %7001 = vmatprep.subr.mxu1 %v6366_v41  ;;  %v6399_v41 = vld [vmem:[#allocation31 + $0x110] sm:$0xff] }
 0x620   : > { %7002 = vmatpush1.msra.mxu1 %v6365_v25  ;;  %v6398_v25 = vld [vmem:[#allocation31 + $0x108] sm:$0xff] }
 0x621   : > { %7003 = vmatprep.subr.mxu1 %v6428_v4  ;;  %v6397_v4 = vld [vmem:[#allocation31 + $0x100] sm:$0xff] }
 0x6d9   : > { %v6231_v17 = vpop.f32.mrf.mxu0 }
 0x6da   : > { %v6232_v40 = vadd.f32 %v6231_v17, %v6164_v20  ;;  %v6492_v20 = vld [vmem:[#allocation31 + $0x3f8] sm:$0xff]  ;;  %v6427_v17 = vld [vmem:[#allocation31 + $0x1f0] sm:$0xff] }
 0x6db   : > { %v9415_v42 = vpop.f32.mrf.mxu0  ;;  %7004 = vmatpush2.msra.mxu1 %v6427_v17  ;;  %v6524_v17 = vld [vmem:[#allocation31 + $0x4f8] sm:$0xff] }
 0x6dc   : > { %v6235_v58 = vmax.f32 %v6232_v40, 0.0  ;;  %v6491_v40 = vld [vmem:[#allocation31 + $0x3f0] sm:$0xff]  ;;  %v6426_v42 = vld [vmem:[#allocation31 + $0x1e8] sm:$0xff] }
 0x6dd   : > { %7005 = vmatprep.subr.mxu1 %v6426_v42  ;;  %v6238_v42 = vld [vmem:[#allocation30] sm:$0x1] }
 0x6de   : > { %9421 = vmatmul.mubr.msk.f32.vlgmr.msra.gmra.mxu0 %vm6239_vm6, %v6235_v58  ;;  %v6490_v58 = vld [vmem:[#allocation31 + $0x3e8] sm:$0xff] }
 0x6df   : > { %7043 = vmatpush1.msra.mxu0 %v6459_v22  ;;  %v6425_v22 = vld [vmem:[#allocation31 + $0x1e0] sm:$0xff] }
 0x6e0   : > { %7044 = vmatprep.subr.mxu0 %v6458_v38  ;;  %v6489_v38 = vld [vmem:[#allocation31 + $0x3e0] sm:$0xff]  ;;  %7006 = vmatpush2.msra.mxu1 %v6425_v22 }
 0x6e1   : > { %7045 = vmatpush1.msra.mxu0 %v6457_v44  ;;  %v6424_v44 = vld [vmem:[#allocation31 + $0x1d8] sm:$0xff] }
 0x6e2   : > { %7046 = vmatprep.subr.mxu0 %v6456_v34  ;;  %v6488_v34 = vld [vmem:[#allocation31 + $0x3d8] sm:$0xff]  ;;  %7007 = vmatprep.subr.mxu1 %v6424_v44 }
 0x6e3   : > { %7047 = vmatpush1.msra.mxu0 %v6455_v47  ;;  %v6423_v47 = vld [vmem:[#allocation31 + $0x1d0] sm:$0xff] }
 0x6e4   : > { %7048 = vmatprep.subr.mxu0 %v6454_v19  ;;  %v6487_v19 = vld [vmem:[#allocation31 + $0x3d0] sm:$0xff]  ;;  %7008 = vmatpush2.msra.mxu1 %v6423_v47 }
 0x6e5   : > { %7049 = vmatpush1.msra.mxu0 %v6453_v50  ;;  %v6486_v50 = vld [vmem:[#allocation31 + $0x3c8] sm:$0xff]  ;;  %7009 = vmatprep.subr.mxu1 %v6422_v23 }
 0x6e6   : > { %7050 = vmatprep.subr.mxu0 %v6452_v10  ;;  %v6485_v10 = vld [vmem:[#allocation31 + $0x3c0] sm:$0xff]  ;;  %7010 = vmatpush2.msra.mxu1 %v6421_v57 }
 0x6e7   : > { %7051 = vmatpush1.msra.mxu0 %v6451_v8  ;;  %v6484_v8 = vld [vmem:[#allocation31 + $0x3b8] sm:$0xff]  ;;  %7011 = vmatprep.subr.mxu1 %v6420_v48 }
 0x6e8   : > { %7052 = vmatprep.subr.mxu0 %v6450_v12  ;;  %v6483_v12 = vld [vmem:[#allocation31 + $0x3b0] sm:$0xff]  ;;  %7012 = vmatpush2.msra.mxu1 %v6419_v26  ;;  %v6576_v26 = vld [vmem:[#allocation31 + $0x698] sm:$0xff] }
 0x6e9   : > { %7053 = vmatpush1.msra.mxu0 %v6449_v1  ;;  %v6482_v1 = vld [vmem:[#allocation31 + $0x3a8] sm:$0xff]  ;;  %7013 = vmatprep.subr.mxu1 %v6418_v30 }
 0x6ea   : > { %7054 = vmatprep.subr.mxu0 %v6448_v35  ;;  %v6481_v35 = vld [vmem:[#allocation31 + $0x3a0] sm:$0xff]  ;;  %7014 = vmatpush2.msra.mxu1 %v6417_v27 }
 0x6eb   : > { %7055 = vmatpush1.msra.mxu0 %v6447_v55  ;;  %v6480_v55 = vld [vmem:[#allocation31 + $0x398] sm:$0xff]  ;;  %7015 = vmatprep.subr.mxu1 %v6416_v24 }
 0x6ec   : > { %7056 = vmatprep.subr.mxu0 %v6446_v60  ;;  %v6479_v60 = vld [vmem:[#allocation31 + $0x390] sm:$0xff]  ;;  %7016 = vmatpush2.msra.mxu1 %v6415_v18 }
 0x6ed   : > { %7057 = vmatpush1.msra.mxu0 %v6445_v54  ;;  %v6478_v54 = vld [vmem:[#allocation31 + $0x388] sm:$0xff]  ;;  %7017 = vmatprep.subr.mxu1 %v6414_v43 }
 0x6ee   : > { %7058 = vmatprep.subr.mxu0 %v6444_v32  ;;  %v6477_v32 = vld [vmem:[#allocation31 + $0x380] sm:$0xff]  ;;  %7018 = vmatpush2.msra.mxu1 %v6413_v11 }
 0x6ef   : > { %7059 = vmatpush1.msra.mxu0 %v6443_v15  ;;  %v6476_v15 = vld [vmem:[#allocation31 + $0x378] sm:$0xff]  ;;  %7019 = vmatprep.subr.mxu1 %v6412_v45 }
 0x6f0   : > { %7060 = vmatprep.subr.mxu0 %v6442_v49  ;;  %v6475_v49 = vld [vmem:[#allocation31 + $0x370] sm:$0xff]  ;;  %7020 = vmatpush2.msra.mxu1 %v6411_v51 }
 0x6f1   : > { %7061 = vmatpush1.msra.mxu0 %v6441_v14  ;;  %v6474_v14 = vld [vmem:[#allocation31 + $0x368] sm:$0xff]  ;;  %7021 = vmatprep.subr.mxu1 %v6410_v3 }
 0x6f2   : > { %7062 = vmatprep.subr.mxu0 %v6440_v28  ;;  %v6473_v28 = vld [vmem:[#allocation31 + $0x360] sm:$0xff]  ;;  %7022 = vmatpush2.msra.mxu1 %v6409_v33 }
 0x6f3   : > { %7063 = vmatpush1.msra.mxu0 %v6439_v6  ;;  %v6472_v6 = vld [vmem:[#allocation31 + $0x358] sm:$0xff]  ;;  %7023 = vmatprep.subr.mxu1 %v6408_v46 }
 0x6f4   : > { %7064 = vmatprep.subr.mxu0 %v6438_v39  ;;  %v6471_v39 = vld [vmem:[#allocation31 + $0x350] sm:$0xff]  ;;  %7024 = vmatpush2.msra.mxu1 %v6407_v5 }
 0x6f5   : > { %7065 = vmatpush1.msra.mxu0 %v6437_v31  ;;  %v6470_v31 = vld [vmem:[#allocation31 + $0x348] sm:$0xff]  ;;  %7025 = vmatprep.subr.mxu1 %v6406_v21 }
 0x6f6   : > { %7066 = vmatprep.subr.mxu0 %v6436_v52  ;;  %v6469_v52 = vld [vmem:[#allocation31 + $0x340] sm:$0xff]  ;;  %7026 = vmatpush2.msra.mxu1 %v6405_v61  ;;  %v6587_v61 = vld [vmem:[#allocation31 + $0x6f0] sm:$0xff] }
 0x6f7   : > { %7067 = vmatpush1.msra.mxu0 %v6435_v7  ;;  %v6468_v7 = vld [vmem:[#allocation31 + $0x338] sm:$0xff]  ;;  %7027 = vmatprep.subr.mxu1 %v6404_v0 }
 0x6f8   : > { %7068 = vmatprep.subr.mxu0 %v6434_v16  ;;  %v6467_v16 = vld [vmem:[#allocation31 + $0x330] sm:$0xff]  ;;  %7028 = vmatpush2.msra.mxu1 %v6403_v36 }
 0x6f9   : > { %7069 = vmatpush1.msra.mxu0 %v6433_v9  ;;  %v6466_v9 = vld [vmem:[#allocation31 + $0x328] sm:$0xff]  ;;  %7029 = vmatprep.subr.mxu1 %v6402_v37 }
 0x6fa   : > { %7070 = vmatprep.subr.mxu0 %v6432_v53  ;;  %v6465_v53 = vld [vmem:[#allocation31 + $0x320] sm:$0xff]  ;;  %7030 = vmatpush2.msra.mxu1 %v6401_v63  ;;  %v6586_v37 = vld [vmem:[#allocation31 + $0x6e8] sm:$0xff] }
 0x6fb   : > { %7071 = vmatpush1.msra.mxu0 %v6431_v59  ;;  %v6464_v59 = vld [vmem:[#allocation31 + $0x318] sm:$0xff]  ;;  %7031 = vmatprep.subr.mxu1 %v6400_v56  ;;  %v6521_v63 = vld [vmem:[#allocation31 + $0x4e0] sm:$0xff] }
 0x6fc   : > { %7072 = vmatprep.subr.mxu0 %v6430_v29  ;;  %v6463_v29 = vld [vmem:[#allocation31 + $0x310] sm:$0xff]  ;;  %7032 = vmatpush2.msra.mxu1 %v6399_v41 }
 0x6fd   : > { %7073 = vmatpush1.msra.mxu0 %v6429_v62  ;;  %v6462_v62 = vld [vmem:[#allocation31 + $0x308] sm:$0xff]  ;;  %7033 = vmatprep.subr.mxu1 %v6398_v25  ;;  %v6584_v25 = vld [vmem:[#allocation31 + $0x6d8] sm:$0xff] }
 0x6fe   : > { %7074 = vmatprep.subr.mxu0 %v6492_v20  ;;  %v6461_v20 = vld [vmem:[#allocation31 + $0x300] sm:$0xff]  ;;  %7034 = vmatpush2.msra.mxu1 %v6397_v4 }
 0x6ff   : > { %7075 = vmatpush2.msra.mxu0 %v6491_v40  ;;  %v6588_v40 = vld [vmem:[#allocation31 + $0x6f8] sm:$0xff]  ;;  %7113 = vmatprep.subr.mxu1 %v6524_v17  ;;  %v6583_v17 = vld [vmem:[#allocation31 + $0x6d0] sm:$0xff] }
 0x700   : > { %7076 = vmatprep.subr.mxu0 %v6490_v58 }
 0x701   : > { %7077 = vmatpush2.msra.mxu0 %v6489_v38 }
 0x702   : > { %7078 = vmatprep.subr.mxu0 %v6488_v34 }
 0x703   : > { %7079 = vmatpush2.msra.mxu0 %v6487_v19  ;;  %v6319_v19 = vlaneseq }
 0x704   : > { %7080 = vmatprep.subr.mxu0 %v6486_v50 }
 0x705   : > { %7081 = vmatpush2.msra.mxu0 %v6485_v10  ;;  %v11642_v23 = vshrl.u32 %v6319_v19, 7  ;;  %vm11650_vm7 = vcmp.lt.s32.totalorder %v6319_v19, 128  ;;  %v6514_v19 = vld [vmem:[#allocation31 + $0x4a8] sm:$0xff] }
 0x706   : > { %7082 = vmatprep.subr.mxu0 %v6484_v8 }
 0x707   : > { %7083 = vmatpush2.msra.mxu0 %v6483_v12  ;;  %v11645_v50 = vsub.s32 0, %v11642_v23  ;;  %v6894_v51 = vsub.s32 3, %v11642_v23  ;;  %v6898_v3 = vsub.s32 4, %v11642_v23  ;;  %v6910_v46 = vsub.s32 7, %v11642_v23 }
 0x708   : > { %7084 = vmatprep.subr.mxu0 %v6482_v1 }
 0x709   : > { %7085 = vmatpush2.msra.mxu0 %v6481_v35 }
 0x70a   : > { %7086 = vmatprep.subr.mxu0 %v6480_v55 }
 0x70b   : > { %7087 = vmatpush2.msra.mxu0 %v6479_v60 }
 0x70c   : > { %7088 = vmatprep.subr.mxu0 %v6478_v54 }
 0x70d   : > { %7089 = vmatpush2.msra.mxu0 %v6477_v32 }
 0x70e   : > { %7090 = vmatprep.subr.mxu0 %v6476_v15  ;;  %v11687_v15 = vsub.s32 1, %v11642_v23 }
 0x70f   : > { %7091 = vmatpush2.msra.mxu0 %v6475_v49  ;;  %v6890_v49 = vsub.s32 2, %v11642_v23 }
 0x710   : > { %7092 = vmatprep.subr.mxu0 %v6474_v14  ;;  %v6906_v14 = vsub.s32 6, %v11642_v23 }
 0x711   : > { %7093 = vmatpush2.msra.mxu0 %v6473_v28  ;;  %v6902_v28 = vsub.s32 5, %v11642_v23  ;;  %v6710_v23 = vld [vmem:[#allocation31 + $0xac8] sm:$0xff] }
 0x712   : > { %7094 = vmatprep.subr.mxu0 %v6472_v6 }
 0x713   : > { %7095 = vmatpush2.msra.mxu0 %v6471_v39 }
 0x714   : > { %7096 = vmatprep.subr.mxu0 %v6470_v31  ;;  %v6523_v31 = vld [vmem:[#allocation31 + $0x4f0] sm:$0xff] }
 0x715   : > { %7097 = vmatpush2.msra.mxu0 %v6469_v52 }
 0x716   : > { %7098 = vmatprep.subr.mxu0 %v6468_v7  ;;  %v6522_v7 = vld [vmem:[#allocation31 + $0x4e8] sm:$0xff] }
 0x717   : > { %7099 = vmatpush2.msra.mxu0 %v6467_v16 }
 0x718   : > { %7100 = vmatprep.subr.mxu0 %v6466_v9 }
 0x719   : > { %7101 = vmatpush2.msra.mxu0 %v6465_v53  ;;  %v6585_v53 = vld [vmem:[#allocation31 + $0x6e0] sm:$0xff] }
 0x71a   : > { %7102 = vmatprep.subr.mxu0 %v6464_v59 }
 0x71b   : > { %7103 = vmatpush2.msra.mxu0 %v6463_v29  ;;  %v6520_v29 = vld [vmem:[#allocation31 + $0x4d8] sm:$0xff] }
 0x71c   : > { %7104 = vmatprep.subr.mxu0 %v6462_v62 }
 0x71d   : > { %7105 = vmatpush2.msra.mxu0 %v6461_v20  ;;  %v6519_v20 = vld [vmem:[#allocation31 + $0x4d0] sm:$0xff] }
 0x71e   : > { %7184 = vmatprep.subr.mxu0 %v6588_v40  ;;  %v6518_v40 = vld [vmem:[#allocation31 + $0x4c8] sm:$0xff] }
 0x79e   : > { %v6309_v58 = vpop.f32.mrf.mxu0 }
 0x79f   : > { %v6310_v22 = vadd.f32 %v6309_v58, %v6238_v42  ;;  %v6582_v42 = vld [vmem:[#allocation31 + $0x6c8] sm:$0xff]  ;;  %v6517_v58 = vld [vmem:[#allocation31 + $0x4c0] sm:$0xff] }
 0x7a0   : > { %v9422_v38 = vpop.f32.mrf.mxu0 }
 0x7a1   : > { %v8206_v44 = vmul.f32 -1.442695, %v6310_v22  ;;  %v6581_v22 = vld [vmem:[#allocation31 + $0x6c0] sm:$0xff]  ;;  %v6516_v38 = vld [vmem:[#allocation31 + $0x4b8] sm:$0xff] }
 0x7a3   : > { %9602 = vpow2.f32 %v8206_v44  ;;  %v6580_v44 = vld [vmem:[#allocation31 + $0x6b8] sm:$0xff] }
 0x7b0   : > { %v9603_v34 = vpop.eup %9602 }
 0x7b1   : > { %v6316_v47 = vadd.f32 1.0, %v9603_v34  ;;  %v6515_v34 = vld [vmem:[#allocation31 + $0x4b0] sm:$0xff] }
 0x7b3   : > { %9604 = vrcp.f32 %v6316_v47  ;;  %v6579_v47 = vld [vmem:[#allocation31 + $0x6b0] sm:$0xff] }
 0x7c0   : > { %v9605_v57 = vpop.eup %9604 }
 0x7c1   : > { %v6322_v10 = vrot.slane %v9605_v57, %v11645_v50  ;;  %v6578_v57 = vld [vmem:[#allocation31 + $0x6a8] sm:$0xff] }
 0x7c3   : > { %v6323_v48 = vmul.f32 %v6322_v10, %v11632_v2  ;;  %v6324_v8 = vmul.f32 %v6322_v10, %v11635_v13  ;;  %v6513_v10 = vld [vmem:[#allocation31 + $0x4a0] sm:$0xff] }
 0x7c5   : > { %6325 = vst [vmem:[#allocation7] sm:$0xff] %v6323_v48  ;;  %6326 = vst [vmem:[#allocation7 + $0x8] sm:$0xff] %v6324_v8  ;;  %v6577_v48 = vld [vmem:[#allocation31 + $0x6a0] sm:$0xff]  ;;  %v6512_v8 = vld [vmem:[#allocation31 + $0x498] sm:$0xff] }
 0x7cc   : > { %v6327_v12 = vld [vmem:[#allocation7] sm:$0x1]  ;;  %v6333_v30 = vld [vmem:[#allocation7 + $0x1] sm:$0x1]  ;;  %v6335_v1 = vld [vmem:[#allocation7 + $0x2] sm:$0x1] }
 0x7cd   : > { %6332 = vst.msk [vmem:[#allocation8] sm:$0x1] %vm11650_vm7, %v6327_v12  ;;  %6334 = vst.msk [vmem:[#allocation8 + $0x1] sm:$0x1] %vm11650_vm7, %v6333_v30  ;;  %v6337_v2 = vld [vmem:[#allocation7 + $0x3] sm:$0x1] }
 0x7ce   : > { %6336 = vst.msk [vmem:[#allocation8 + $0x2] sm:$0x1] %vm11650_vm7, %v6335_v1  ;;  %v6339_v13 = vld [vmem:[#allocation7 + $0x4] sm:$0x1]  ;;  %v6341_v27 = vld [vmem:[#allocation7 + $0x5] sm:$0x1] }
 0x7cf   : > { %6338 = vst.msk [vmem:[#allocation8 + $0x3] sm:$0x1] %vm11650_vm7, %v6337_v2  ;;  %6340 = vst.msk [vmem:[#allocation8 + $0x4] sm:$0x1] %vm11650_vm7, %v6339_v13  ;;  %v6343_v35 = vld [vmem:[#allocation7 + $0x6] sm:$0x1] }
 0x7d0   : > { %6342 = vst.msk [vmem:[#allocation8 + $0x5] sm:$0x1] %vm11650_vm7, %v6341_v27  ;;  %v6345_v24 = vld [vmem:[#allocation7 + $0x7] sm:$0x1]  ;;  %v6347_v55 = vld [vmem:[#allocation7 + $0x8] sm:$0x1] }
 0x7d1   : > { %6344 = vst.msk [vmem:[#allocation8 + $0x6] sm:$0x1] %vm11650_vm7, %v6343_v35  ;;  %6346 = vst.msk [vmem:[#allocation8 + $0x7] sm:$0x1] %vm11650_vm7, %v6345_v24  ;;  %v6349_v18 = vld [vmem:[#allocation7 + $0x9] sm:$0x1] }
 0x7d2   : > { %6348 = vst.msk [vmem:[#allocation8 + $0x8] sm:$0x1] %vm11650_vm7, %v6347_v55  ;;  %v6351_v60 = vld [vmem:[#allocation7 + $0xa] sm:$0x1]  ;;  %v6353_v43 = vld [vmem:[#allocation7 + $0xb] sm:$0x1] }
 0x7d3   : > { %6350 = vst.msk [vmem:[#allocation8 + $0x9] sm:$0x1] %vm11650_vm7, %v6349_v18  ;;  %6352 = vst.msk [vmem:[#allocation8 + $0xa] sm:$0x1] %vm11650_vm7, %v6351_v60  ;;  %v6355_v54 = vld [vmem:[#allocation7 + $0xc] sm:$0x1] }
 0x7d4   : > { %6354 = vst.msk [vmem:[#allocation8 + $0xb] sm:$0x1] %vm11650_vm7, %v6353_v43  ;;  %v6357_v11 = vld [vmem:[#allocation7 + $0xd] sm:$0x1]  ;;  %v6359_v32 = vld [vmem:[#allocation7 + $0xe] sm:$0x1] }
 0x7d5   : > { %6356 = vst.msk [vmem:[#allocation8 + $0xc] sm:$0x1] %vm11650_vm7, %v6355_v54  ;;  %6358 = vst.msk [vmem:[#allocation8 + $0xd] sm:$0x1] %vm11650_vm7, %v6357_v11  ;;  %v6361_v45 = vld [vmem:[#allocation7 + $0xf] sm:$0x1] }
 0x7d6   : > { %6360 = vst.msk [vmem:[#allocation8 + $0xe] sm:$0x1] %vm11650_vm7, %v6359_v32  ;;  %6362 = vst.msk [vmem:[#allocation8 + $0xf] sm:$0x1] %vm11650_vm7, %v6361_v45  ;;  %v6511_v12 = vld [vmem:[#allocation31 + $0x490] sm:$0xff]  ;;  %v6510_v1 = vld [vmem:[#allocation31 + $0x488] sm:$0xff] }
 0x7d7   : > { %v6575_v30 = vld [vmem:[#allocation31 + $0x690] sm:$0xff]  ;;  %v6574_v2 = vld [vmem:[#allocation31 + $0x688] sm:$0xff]  ;;  %v6509_v13 = vld [vmem:[#allocation31 + $0x480] sm:$0xff] }
 0x7d8   : > { %v6363_v33 = vld [vmem:[#allocation8] sm:$0xff]  ;;  %v6573_v27 = vld [vmem:[#allocation31 + $0x680] sm:$0xff]  ;;  %v6508_v35 = vld [vmem:[#allocation31 + $0x478] sm:$0xff] }
 0x7d9   : > { %v6887_v6 = vrot.slane %v6363_v33, %v11687_v15  ;;  %v6895_v5 = vrot.slane %v6363_v33, %v6894_v51  ;;  %v6883_v39 = vrot.slane %v6363_v33, %v11645_v50  ;;  %v6891_v21 = vrot.slane %v6363_v33, %v6890_v49  ;;  %v6572_v24 = vld [vmem:[#allocation31 + $0x678] sm:$0xff]  ;;  %v6507_v55 = vld [vmem:[#allocation31 + $0x470] sm:$0xff]  ;;  %v6506_v60 = vld [vmem:[#allocation31 + $0x468] sm:$0xff] }
 0x7da   : > { %v11699_v52 = vrot.slane %v6363_v33, %v6898_v3  ;;  %v11701_v0 = vrot.slane %v6363_v33, %v6906_v14  ;;  %v6903_v16 = vrot.slane %v6363_v33, %v6902_v28  ;;  %v6911_v9 = vrot.slane %v6363_v33, %v6910_v46  ;;  %v6571_v18 = vld [vmem:[#allocation31 + $0x670] sm:$0xff]  ;;  %v6570_v43 = vld [vmem:[#allocation31 + $0x668] sm:$0xff]  ;;  %v6505_v54 = vld [vmem:[#allocation31 + $0x460] sm:$0xff] }
 0x7db   : > { %7035 = vmatprep.mubr.f32.mxu1 %v6887_v6  ;;  %7106 = vmatprep.mubr.f32.mxu0 %v6895_v5  ;;  %v6569_v11 = vld [vmem:[#allocation31 + $0x660] sm:$0xff]  ;;  %v6504_v32 = vld [vmem:[#allocation31 + $0x458] sm:$0xff]  ;;  %v6566_v33 = vld [vmem:[#allocation31 + $0x648] sm:$0xff] }
 0x7dc   : > { %7036 = vmatmul.mubr.f32.vlgmr.msra.gmra.mxu1 %v6883_v39  ;;  %7107 = vmatmul.mubr.f32.vlgmr.msra.gmra.mxu0 %v6891_v21  ;;  %v6568_v45 = vld [vmem:[#allocation31 + $0x658] sm:$0xff]  ;;  %v6499_v39 = vld [vmem:[#allocation31 + $0x430] sm:$0xff] }
 0x7dd   : > { %v11703_v36 = vld [vmem:[#allocation8 + $0x8] sm:$0xff]  ;;  %7114 = vmatpush1.msra.mxu1 %v6523_v31  ;;  %7185 = vmatpush1.msra.mxu0 %v6587_v61  ;;  %v6500_v6 = vld [vmem:[#allocation31 + $0x438] sm:$0xff]  ;;  %v6498_v31 = vld [vmem:[#allocation31 + $0x428] sm:$0xff] }
 0x7de   : > { %v11706_v56 = vrot.slane %v11703_v36, %v6890_v49  ;;  %v11709_v59 = vrot.slane %v11703_v36, %v6902_v28  ;;  %v11712_v41 = vrot.slane %v11703_v36, %v6910_v46  ;;  %7115 = vmatprep.subr.mxu1 %v6522_v7  ;;  %7177 = vmatprep.mubr.f32.mxu1 %v6903_v16  ;;  %v6503_v49 = vld [vmem:[#allocation31 + $0x450] sm:$0xff]  ;;  %v6501_v28 = vld [vmem:[#allocation31 + $0x440] sm:$0xff]  ;;  %v6564_v5 = vld [vmem:[#allocation31 + $0x638] sm:$0xff] }
 0x7df   : > { %v11715_v62 = vrot.slane %v11703_v36, %v6898_v3  ;;  %v11718_v4 = vrot.slane %v11703_v36, %v6906_v14  ;;  %7186 = vmatprep.subr.mxu0 %v6586_v37  ;;  %7248 = vmatprep.mubr.f32.mxu0 %v6911_v9  ;;  %v6567_v3 = vld [vmem:[#allocation31 + $0x650] sm:$0xff]  ;;  %v6502_v14 = vld [vmem:[#allocation31 + $0x448] sm:$0xff]  ;;  %v6565_v46 = vld [vmem:[#allocation31 + $0x640] sm:$0xff] }
 0x7e0   : > { %7116 = vmatpush1.msra.mxu1 %v6521_v63  ;;  %7187 = vmatpush1.msra.mxu0 %v6585_v53  ;;  %v6563_v21 = vld [vmem:[#allocation31 + $0x630] sm:$0xff]  ;;  %v6562_v61 = vld [vmem:[#allocation31 + $0x628] sm:$0xff]  ;;  %v6497_v7 = vld [vmem:[#allocation31 + $0x420] sm:$0xff] }
 0x7e1   : > { %7117 = vmatprep.subr.mxu1 %v6520_v29  ;;  %7188 = vmatprep.subr.mxu0 %v6584_v25  ;;  %v6561_v16 = vld [vmem:[#allocation31 + $0x620] sm:$0xff]  ;;  %v6496_v37 = vld [vmem:[#allocation31 + $0x418] sm:$0xff]  ;;  %v6495_v63 = vld [vmem:[#allocation31 + $0x410] sm:$0xff] }
 0x7e2   : > { %7118 = vmatpush1.msra.mxu1 %v6519_v20  ;;  %7189 = vmatpush1.msra.mxu0 %v6583_v17  ;;  %v6560_v9 = vld [vmem:[#allocation31 + $0x618] sm:$0xff]  ;;  %v6559_v53 = vld [vmem:[#allocation31 + $0x610] sm:$0xff]  ;;  %v6494_v29 = vld [vmem:[#allocation31 + $0x408] sm:$0xff] }
 0x7e3   : > { %7119 = vmatprep.subr.mxu1 %v6518_v40  ;;  %7190 = vmatprep.subr.mxu0 %v6582_v42  ;;  %v6558_v25 = vld [vmem:[#allocation31 + $0x608] sm:$0xff]  ;;  %v6493_v20 = vld [vmem:[#allocation31 + $0x400] sm:$0xff]  ;;  %v6556_v40 = vld [vmem:[#allocation31 + $0x5f8] sm:$0xff] }
 0x7e4   : > { %7120 = vmatpush1.msra.mxu1 %v6517_v58  ;;  %7191 = vmatpush1.msra.mxu0 %v6581_v22  ;;  %v6557_v17 = vld [vmem:[#allocation31 + $0x600] sm:$0xff]  ;;  %v6620_v42 = vld [vmem:[#allocation31 + $0x7f8] sm:$0xff]  ;;  %v6555_v58 = vld [vmem:[#allocation31 + $0x5f0] sm:$0xff] }
 0x7e5   : > { %7121 = vmatprep.subr.mxu1 %v6516_v38  ;;  %7192 = vmatprep.subr.mxu0 %v6580_v44  ;;  %v6619_v22 = vld [vmem:[#allocation31 + $0x7f0] sm:$0xff]  ;;  %v6554_v38 = vld [vmem:[#allocation31 + $0x5e8] sm:$0xff] }
 0x7e6   : > { %7122 = vmatpush1.msra.mxu1 %v6515_v34  ;;  %7193 = vmatpush1.msra.mxu0 %v6579_v47  ;;  %v6618_v44 = vld [vmem:[#allocation31 + $0x7e8] sm:$0xff]  ;;  %v6553_v34 = vld [vmem:[#allocation31 + $0x5e0] sm:$0xff] }
 0x7e7   : > { %7123 = vmatprep.subr.mxu1 %v6514_v19  ;;  %7194 = vmatprep.subr.mxu0 %v6578_v57  ;;  %v6617_v47 = vld [vmem:[#allocation31 + $0x7e0] sm:$0xff]  ;;  %v6552_v19 = vld [vmem:[#allocation31 + $0x5d8] sm:$0xff] }
 0x7e8   : > { %7124 = vmatpush1.msra.mxu1 %v6513_v10  ;;  %7195 = vmatpush1.msra.mxu0 %v6577_v48  ;;  %v6616_v57 = vld [vmem:[#allocation31 + $0x7d8] sm:$0xff]  ;;  %v6551_v10 = vld [vmem:[#allocation31 + $0x5d0] sm:$0xff] }
 0x7e9   : > { %7125 = vmatprep.subr.mxu1 %v6512_v8  ;;  %7196 = vmatprep.subr.mxu0 %v6576_v26  ;;  %v6615_v48 = vld [vmem:[#allocation31 + $0x7d0] sm:$0xff]  ;;  %v6550_v8 = vld [vmem:[#allocation31 + $0x5c8] sm:$0xff] }
 0x7ea   : > { %7126 = vmatpush1.msra.mxu1 %v6511_v12  ;;  %7197 = vmatpush1.msra.mxu0 %v6575_v30  ;;  %v6614_v26 = vld [vmem:[#allocation31 + $0x7c8] sm:$0xff]  ;;  %v6549_v12 = vld [vmem:[#allocation31 + $0x5c0] sm:$0xff] }
 0x7eb   : > { %7127 = vmatprep.subr.mxu1 %v6510_v1  ;;  %7198 = vmatprep.subr.mxu0 %v6574_v2  ;;  %v6613_v30 = vld [vmem:[#allocation31 + $0x7c0] sm:$0xff]  ;;  %v6548_v1 = vld [vmem:[#allocation31 + $0x5b8] sm:$0xff] }
 0x7ec   : > { %7128 = vmatpush1.msra.mxu1 %v6509_v13  ;;  %7199 = vmatpush1.msra.mxu0 %v6573_v27  ;;  %v6612_v2 = vld [vmem:[#allocation31 + $0x7b8] sm:$0xff]  ;;  %v6547_v13 = vld [vmem:[#allocation31 + $0x5b0] sm:$0xff] }
 0x7ed   : > { %7129 = vmatprep.subr.mxu1 %v6508_v35  ;;  %7200 = vmatprep.subr.mxu0 %v6572_v24  ;;  %v6611_v27 = vld [vmem:[#allocation31 + $0x7b0] sm:$0xff]  ;;  %v6546_v35 = vld [vmem:[#allocation31 + $0x5a8] sm:$0xff] }
 0x7ee   : > { %7130 = vmatpush1.msra.mxu1 %v6507_v55  ;;  %7201 = vmatpush1.msra.mxu0 %v6571_v18  ;;  %v6610_v24 = vld [vmem:[#allocation31 + $0x7a8] sm:$0xff]  ;;  %v6545_v55 = vld [vmem:[#allocation31 + $0x5a0] sm:$0xff] }
 0x7ef   : > { %7131 = vmatprep.subr.mxu1 %v6506_v60  ;;  %7202 = vmatprep.subr.mxu0 %v6570_v43  ;;  %v6609_v18 = vld [vmem:[#allocation31 + $0x7a0] sm:$0xff]  ;;  %v6544_v60 = vld [vmem:[#allocation31 + $0x598] sm:$0xff] }
 0x7f0   : > { %7132 = vmatpush1.msra.mxu1 %v6505_v54  ;;  %7203 = vmatpush1.msra.mxu0 %v6569_v11  ;;  %v6608_v43 = vld [vmem:[#allocation31 + $0x798] sm:$0xff]  ;;  %v6543_v54 = vld [vmem:[#allocation31 + $0x590] sm:$0xff] }
 0x7f1   : > { %7133 = vmatprep.subr.mxu1 %v6504_v32  ;;  %7204 = vmatprep.subr.mxu0 %v6568_v45  ;;  %v6607_v11 = vld [vmem:[#allocation31 + $0x790] sm:$0xff]  ;;  %v6542_v32 = vld [vmem:[#allocation31 + $0x588] sm:$0xff] }
 0x7f2   : > { %7134 = vmatpush1.msra.mxu1 %v6503_v49  ;;  %7205 = vmatpush1.msra.mxu0 %v6567_v3  ;;  %v6606_v45 = vld [vmem:[#allocation31 + $0x788] sm:$0xff]  ;;  %v6541_v49 = vld [vmem:[#allocation31 + $0x580] sm:$0xff] }
 0x7f3   : > { %7135 = vmatprep.subr.mxu1 %v6502_v14  ;;  %7206 = vmatprep.subr.mxu0 %v6566_v33  ;;  %v6605_v3 = vld [vmem:[#allocation31 + $0x780] sm:$0xff]  ;;  %v6540_v14 = vld [vmem:[#allocation31 + $0x578] sm:$0xff] }
 0x7f4   : > { %7136 = vmatpush1.msra.mxu1 %v6501_v28  ;;  %7207 = vmatpush1.msra.mxu0 %v6565_v46  ;;  %v6604_v33 = vld [vmem:[#allocation31 + $0x778] sm:$0xff]  ;;  %v6539_v28 = vld [vmem:[#allocation31 + $0x570] sm:$0xff] }
 0x7f5   : > { %7137 = vmatprep.subr.mxu1 %v6500_v6  ;;  %7208 = vmatprep.subr.mxu0 %v6564_v5  ;;  %v6603_v46 = vld [vmem:[#allocation31 + $0x770] sm:$0xff]  ;;  %v6538_v6 = vld [vmem:[#allocation31 + $0x568] sm:$0xff] }
 0x7f6   : > { %7138 = vmatpush1.msra.mxu1 %v6499_v39  ;;  %7209 = vmatpush1.msra.mxu0 %v6563_v21  ;;  %v6602_v5 = vld [vmem:[#allocation31 + $0x768] sm:$0xff]  ;;  %v6537_v39 = vld [vmem:[#allocation31 + $0x560] sm:$0xff] }
 0x7f7   : > { %7139 = vmatprep.subr.mxu1 %v6498_v31  ;;  %7210 = vmatprep.subr.mxu0 %v6562_v61  ;;  %v6601_v21 = vld [vmem:[#allocation31 + $0x760] sm:$0xff]  ;;  %v6536_v31 = vld [vmem:[#allocation31 + $0x558] sm:$0xff] }
 0x7f8   : > { %7140 = vmatpush1.msra.mxu1 %v6497_v7  ;;  %7211 = vmatpush1.msra.mxu0 %v6561_v16  ;;  %v6600_v61 = vld [vmem:[#allocation31 + $0x758] sm:$0xff]  ;;  %v6535_v7 = vld [vmem:[#allocation31 + $0x550] sm:$0xff] }
 0x7f9   : > { %7141 = vmatprep.subr.mxu1 %v6496_v37  ;;  %7212 = vmatprep.subr.mxu0 %v6560_v9  ;;  %v6599_v16 = vld [vmem:[#allocation31 + $0x750] sm:$0xff]  ;;  %v6534_v37 = vld [vmem:[#allocation31 + $0x548] sm:$0xff] }
 0x7fa   : > { %7142 = vmatpush1.msra.mxu1 %v6495_v63  ;;  %7213 = vmatpush1.msra.mxu0 %v6559_v53  ;;  %v6598_v9 = vld [vmem:[#allocation31 + $0x748] sm:$0xff]  ;;  %v6533_v63 = vld [vmem:[#allocation31 + $0x540] sm:$0xff] }
 0x7fb   : > { %7143 = vmatprep.subr.mxu1 %v6494_v29  ;;  %7214 = vmatprep.subr.mxu0 %v6558_v25  ;;  %v6597_v53 = vld [vmem:[#allocation31 + $0x740] sm:$0xff]  ;;  %v6532_v29 = vld [vmem:[#allocation31 + $0x538] sm:$0xff] }
 0x7fc   : > { %7144 = vmatpush1.msra.mxu1 %v6493_v20  ;;  %7215 = vmatpush1.msra.mxu0 %v6557_v17  ;;  %v6596_v25 = vld [vmem:[#allocation31 + $0x738] sm:$0xff]  ;;  %v6531_v20 = vld [vmem:[#allocation31 + $0x530] sm:$0xff] }
 0x7fd   : > { %7145 = vmatprep.subr.mxu1 %v6556_v40  ;;  %7216 = vmatprep.subr.mxu0 %v6620_v42  ;;  %v6595_v17 = vld [vmem:[#allocation31 + $0x730] sm:$0xff]  ;;  %v6530_v40 = vld [vmem:[#allocation31 + $0x528] sm:$0xff] }
 0x7fe   : > { %7146 = vmatpush2.msra.mxu1 %v6555_v58  ;;  %7217 = vmatpush2.msra.mxu0 %v6619_v22  ;;  %v6594_v42 = vld [vmem:[#allocation31 + $0x728] sm:$0xff]  ;;  %v6529_v58 = vld [vmem:[#allocation31 + $0x520] sm:$0xff] }
 0x7ff   : > { %7147 = vmatprep.subr.mxu1 %v6554_v38  ;;  %7218 = vmatprep.subr.mxu0 %v6618_v44  ;;  %v6593_v22 = vld [vmem:[#allocation31 + $0x720] sm:$0xff]  ;;  %v6528_v38 = vld [vmem:[#allocation31 + $0x518] sm:$0xff] }
 0x800   : > { %7148 = vmatpush2.msra.mxu1 %v6553_v34  ;;  %7219 = vmatpush2.msra.mxu0 %v6617_v47  ;;  %v6592_v44 = vld [vmem:[#allocation31 + $0x718] sm:$0xff]  ;;  %v6527_v34 = vld [vmem:[#allocation31 + $0x510] sm:$0xff] }
 0x801   : > { %7149 = vmatprep.subr.mxu1 %v6552_v19  ;;  %7220 = vmatprep.subr.mxu0 %v6616_v57  ;;  %v6591_v47 = vld [vmem:[#allocation31 + $0x710] sm:$0xff]  ;;  %v6526_v19 = vld [vmem:[#allocation31 + $0x508] sm:$0xff] }
 0x802   : > { %7150 = vmatpush2.msra.mxu1 %v6551_v10  ;;  %7221 = vmatpush2.msra.mxu0 %v6615_v48  ;;  %v6590_v57 = vld [vmem:[#allocation31 + $0x708] sm:$0xff]  ;;  %v6525_v10 = vld [vmem:[#allocation31 + $0x500] sm:$0xff] }
 0x803   : > { %7151 = vmatprep.subr.mxu1 %v6550_v8  ;;  %7222 = vmatprep.subr.mxu0 %v6614_v26  ;;  %v6589_v48 = vld [vmem:[#allocation31 + $0x700] sm:$0xff]  ;;  %v6652_v8 = vld [vmem:[#allocation31 + $0x8f8] sm:$0xff] }
 0x804   : > { %7152 = vmatpush2.msra.mxu1 %v6549_v12  ;;  %7223 = vmatpush2.msra.mxu0 %v6613_v30  ;;  %v6716_v26 = vld [vmem:[#allocation31 + $0xaf8] sm:$0xff]  ;;  %v6651_v12 = vld [vmem:[#allocation31 + $0x8f0] sm:$0xff]  ;;  %v6919_v30 = vrot.slane %v11703_v36, %v11687_v15 }
 0x805   : > { %7153 = vmatprep.subr.mxu1 %v6548_v1  ;;  %7224 = vmatprep.subr.mxu0 %v6612_v2  ;;  %v6715_v1 = vld [vmem:[#allocation31 + $0xaf0] sm:$0xff]  ;;  %v6927_v2 = vrot.slane %v11703_v36, %v6894_v51  ;;  %v6645_v51 = vld [vmem:[#allocation31 + $0x8c0] sm:$0xff] }
 0x806   : > { %7154 = vmatpush2.msra.mxu1 %v6547_v13  ;;  %7225 = vmatpush2.msra.mxu0 %v6611_v27  ;;  %v6650_v13 = vld [vmem:[#allocation31 + $0x8e8] sm:$0xff]  ;;  %v6709_v36 = vld [vmem:[#allocation31 + $0xac0] sm:$0xff] }
 0x807   : > { %7155 = vmatprep.subr.mxu1 %v6546_v35  ;;  %7226 = vmatprep.subr.mxu0 %v6610_v24  ;;  %v6714_v27 = vld [vmem:[#allocation31 + $0xae8] sm:$0xff]  ;;  %v6649_v35 = vld [vmem:[#allocation31 + $0x8e0] sm:$0xff] }
 0x808   : > { %7156 = vmatpush2.msra.mxu1 %v6545_v55  ;;  %7227 = vmatpush2.msra.mxu0 %v6609_v18  ;;  %v6713_v24 = vld [vmem:[#allocation31 + $0xae0] sm:$0xff]  ;;  %v6647_v55 = vld [vmem:[#allocation31 + $0x8d0] sm:$0xff] }
 0x809   : > { %7157 = vmatprep.subr.mxu1 %v6544_v60  ;;  %7228 = vmatprep.subr.mxu0 %v6608_v43  ;;  %v6711_v18 = vld [vmem:[#allocation31 + $0xad0] sm:$0xff]  ;;  %v6646_v60 = vld [vmem:[#allocation31 + $0x8c8] sm:$0xff]  ;;  %v6644_v43 = vld [vmem:[#allocation31 + $0x8b8] sm:$0xff] }
 0x80a   : > { %7158 = vmatpush2.msra.mxu1 %v6543_v54  ;;  %7229 = vmatpush2.msra.mxu0 %v6607_v11  ;;  %v6708_v54 = vld [vmem:[#allocation31 + $0xab8] sm:$0xff]  ;;  %v6643_v11 = vld [vmem:[#allocation31 + $0x8b0] sm:$0xff] }
 0x80b   : > { %7159 = vmatprep.subr.mxu1 %v6542_v32  ;;  %7230 = vmatprep.subr.mxu0 %v6606_v45  ;;  %v6707_v32 = vld [vmem:[#allocation31 + $0xab0] sm:$0xff]  ;;  %v6642_v45 = vld [vmem:[#allocation31 + $0x8a8] sm:$0xff] }
 0x80c   : > { %7160 = vmatpush2.msra.mxu1 %v6541_v49  ;;  %7231 = vmatpush2.msra.mxu0 %v6605_v3  ;;  %v6706_v49 = vld [vmem:[#allocation31 + $0xaa8] sm:$0xff]  ;;  %v6641_v3 = vld [vmem:[#allocation31 + $0x8a0] sm:$0xff] }
 0x80d   : > { %7161 = vmatprep.subr.mxu1 %v6540_v14  ;;  %7232 = vmatprep.subr.mxu0 %v6604_v33  ;;  %v6705_v14 = vld [vmem:[#allocation31 + $0xaa0] sm:$0xff]  ;;  %v6640_v33 = vld [vmem:[#allocation31 + $0x898] sm:$0xff] }
 0x80e   : > { %7162 = vmatpush2.msra.mxu1 %v6539_v28  ;;  %7233 = vmatpush2.msra.mxu0 %v6603_v46  ;;  %v6704_v28 = vld [vmem:[#allocation31 + $0xa98] sm:$0xff]  ;;  %v6639_v46 = vld [vmem:[#allocation31 + $0x890] sm:$0xff] }
 0x80f   : > { %7163 = vmatprep.subr.mxu1 %v6538_v6  ;;  %7234 = vmatprep.subr.mxu0 %v6602_v5  ;;  %v6703_v6 = vld [vmem:[#allocation31 + $0xa90] sm:$0xff]  ;;  %v6638_v5 = vld [vmem:[#allocation31 + $0x888] sm:$0xff] }
 0x810   : > { %7164 = vmatpush2.msra.mxu1 %v6537_v39  ;;  %7235 = vmatpush2.msra.mxu0 %v6601_v21  ;;  %v6702_v39 = vld [vmem:[#allocation31 + $0xa88] sm:$0xff]  ;;  %v6637_v21 = vld [vmem:[#allocation31 + $0x880] sm:$0xff] }
 0x811   : > { %7165 = vmatprep.subr.mxu1 %v6536_v31  ;;  %7236 = vmatprep.subr.mxu0 %v6600_v61  ;;  %v6701_v31 = vld [vmem:[#allocation31 + $0xa80] sm:$0xff]  ;;  %v6636_v61 = vld [vmem:[#allocation31 + $0x878] sm:$0xff] }
 0x812   : > { %7166 = vmatpush2.msra.mxu1 %v6535_v7  ;;  %7237 = vmatpush2.msra.mxu0 %v6599_v16  ;;  %v6700_v7 = vld [vmem:[#allocation31 + $0xa78] sm:$0xff]  ;;  %v6635_v16 = vld [vmem:[#allocation31 + $0x870] sm:$0xff] }
 0x813   : > { %7167 = vmatprep.subr.mxu1 %v6534_v37  ;;  %7238 = vmatprep.subr.mxu0 %v6598_v9  ;;  %v6699_v37 = vld [vmem:[#allocation31 + $0xa70] sm:$0xff]  ;;  %v6634_v9 = vld [vmem:[#allocation31 + $0x868] sm:$0xff] }
 0x814   : > { %7168 = vmatpush2.msra.mxu1 %v6533_v63  ;;  %7239 = vmatpush2.msra.mxu0 %v6597_v53  ;;  %v6698_v63 = vld [vmem:[#allocation31 + $0xa68] sm:$0xff]  ;;  %v6633_v53 = vld [vmem:[#allocation31 + $0x860] sm:$0xff] }
 0x815   : > { %7169 = vmatprep.subr.mxu1 %v6532_v29  ;;  %7240 = vmatprep.subr.mxu0 %v6596_v25  ;;  %v6697_v29 = vld [vmem:[#allocation31 + $0xa60] sm:$0xff]  ;;  %v6632_v25 = vld [vmem:[#allocation31 + $0x858] sm:$0xff] }
 0x816   : > { %7170 = vmatpush2.msra.mxu1 %v6531_v20  ;;  %7241 = vmatpush2.msra.mxu0 %v6595_v17  ;;  %v6696_v20 = vld [vmem:[#allocation31 + $0xa58] sm:$0xff]  ;;  %v6631_v17 = vld [vmem:[#allocation31 + $0x850] sm:$0xff] }
 0x817   : > { %7171 = vmatprep.subr.mxu1 %v6530_v40  ;;  %7242 = vmatprep.subr.mxu0 %v6594_v42  ;;  %v6695_v40 = vld [vmem:[#allocation31 + $0xa50] sm:$0xff]  ;;  %v6630_v42 = vld [vmem:[#allocation31 + $0x848] sm:$0xff] }
 0x818   : > { %7172 = vmatpush2.msra.mxu1 %v6529_v58  ;;  %7243 = vmatpush2.msra.mxu0 %v6593_v22  ;;  %v6694_v58 = vld [vmem:[#allocation31 + $0xa48] sm:$0xff]  ;;  %v6629_v22 = vld [vmem:[#allocation31 + $0x840] sm:$0xff] }
 0x819   : > { %7173 = vmatprep.subr.mxu1 %v6528_v38  ;;  %7244 = vmatprep.subr.mxu0 %v6592_v44  ;;  %v6693_v38 = vld [vmem:[#allocation31 + $0xa40] sm:$0xff]  ;;  %v6628_v44 = vld [vmem:[#allocation31 + $0x838] sm:$0xff] }
 0x81a   : > { %7174 = vmatpush2.msra.mxu1 %v6527_v34  ;;  %7245 = vmatpush2.msra.mxu0 %v6591_v47  ;;  %v6692_v34 = vld [vmem:[#allocation31 + $0xa38] sm:$0xff]  ;;  %v6627_v47 = vld [vmem:[#allocation31 + $0x830] sm:$0xff] }
 0x81b   : > { %7175 = vmatprep.subr.mxu1 %v6526_v19  ;;  %7246 = vmatprep.subr.mxu0 %v6590_v57  ;;  %v6691_v19 = vld [vmem:[#allocation31 + $0xa30] sm:$0xff]  ;;  %v6626_v57 = vld [vmem:[#allocation31 + $0x828] sm:$0xff] }
 0x81c   : > { %7176 = vmatpush2.msra.mxu1 %v6525_v10  ;;  %7247 = vmatpush2.msra.mxu0 %v6589_v48  ;;  %v6690_v10 = vld [vmem:[#allocation31 + $0xa28] sm:$0xff]  ;;  %v6625_v48 = vld [vmem:[#allocation31 + $0x820] sm:$0xff] }
 0x81d   : > { %7178 = vmatmul.mubr.f32.vlgmr.msra.gmra.mxu1 %v11699_v52  ;;  %7249 = vmatmul.mubr.f32.vlgmr.msra.gmra.mxu0 %v11701_v0  ;;  %v6648_v52 = vld [vmem:[#allocation31 + $0x8d8] sm:$0xff] }
 0x81e   : > { %7255 = vmatprep.subr.mxu1 %v6652_v8  ;;  %7326 = vmatprep.subr.mxu0 %v6716_v26  ;;  %v6712_v0 = vld [vmem:[#allocation31 + $0xad8] sm:$0xff]  ;;  %v6689_v8 = vld [vmem:[#allocation31 + $0xa20] sm:$0xff] }
 0x81f   : > { %7256 = vmatpush1.msra.mxu1 %v6651_v12  ;;  %7319 = vmatprep.mubr.f32.mxu1 %v6919_v30  ;;  %v6624_v26 = vld [vmem:[#allocation31 + $0x818] sm:$0xff]  ;;  %v6623_v30 = vld [vmem:[#allocation31 + $0x810] sm:$0xff] }
 0x820   : > { %7327 = vmatpush1.msra.mxu0 %v6715_v1  ;;  %7390 = vmatprep.mubr.f32.mxu0 %v6927_v2  ;;  %v6688_v12 = vld [vmem:[#allocation31 + $0xa18] sm:$0xff]  ;;  %v6687_v1 = vld [vmem:[#allocation31 + $0xa10] sm:$0xff]  ;;  %v6622_v2 = vld [vmem:[#allocation31 + $0x808] sm:$0xff] }
 0x821   : > { %7257 = vmatprep.subr.mxu1 %v6650_v13  ;;  %7328 = vmatprep.subr.mxu0 %v6714_v27  ;;  %v6686_v13 = vld [vmem:[#allocation31 + $0xa08] sm:$0xff]  ;;  %v6621_v27 = vld [vmem:[#allocation31 + $0x800] sm:$0xff] }
 0x822   : > { %7258 = vmatpush1.msra.mxu1 %v6649_v35  ;;  %7329 = vmatpush1.msra.mxu0 %v6713_v24  ;;  %v6685_v35 = vld [vmem:[#allocation31 + $0xa00] sm:$0xff]  ;;  %v6684_v24 = vld [vmem:[#allocation31 + $0x9f8] sm:$0xff] }
 0x823   : > { %7259 = vmatprep.subr.mxu1 %v6648_v52  ;;  %7330 = vmatprep.subr.mxu0 %v6712_v0  ;;  %v6748_v52 = vld [vmem:[#allocation31 + $0xbf8] sm:$0xff]  ;;  %v6683_v0 = vld [vmem:[#allocation31 + $0x9f0] sm:$0xff] }
 0x824   : > { %7260 = vmatpush1.msra.mxu1 %v6647_v55  ;;  %7331 = vmatpush1.msra.mxu0 %v6711_v18  ;;  %v6747_v55 = vld [vmem:[#allocation31 + $0xbf0] sm:$0xff]  ;;  %v6682_v18 = vld [vmem:[#allocation31 + $0x9e8] sm:$0xff] }
 0x825   : > { %7261 = vmatprep.subr.mxu1 %v6646_v60  ;;  %7332 = vmatprep.subr.mxu0 %v6710_v23  ;;  %v6746_v60 = vld [vmem:[#allocation31 + $0xbe8] sm:$0xff]  ;;  %v6681_v23 = vld [vmem:[#allocation31 + $0x9e0] sm:$0xff] }
 0x826   : > { %7262 = vmatpush1.msra.mxu1 %v6645_v51  ;;  %7333 = vmatpush1.msra.mxu0 %v6709_v36  ;;  %v6745_v51 = vld [vmem:[#allocation31 + $0xbe0] sm:$0xff]  ;;  %v6680_v36 = vld [vmem:[#allocation31 + $0x9d8] sm:$0xff] }
 0x827   : > { %7263 = vmatprep.subr.mxu1 %v6644_v43  ;;  %7334 = vmatprep.subr.mxu0 %v6708_v54  ;;  %v6744_v43 = vld [vmem:[#allocation31 + $0xbd8] sm:$0xff]  ;;  %v6679_v54 = vld [vmem:[#allocation31 + $0x9d0] sm:$0xff] }
 0x828   : > { %7264 = vmatpush1.msra.mxu1 %v6643_v11  ;;  %7335 = vmatpush1.msra.mxu0 %v6707_v32  ;;  %v6743_v11 = vld [vmem:[#allocation31 + $0xbd0] sm:$0xff]  ;;  %v6678_v32 = vld [vmem:[#allocation31 + $0x9c8] sm:$0xff] }
 0x829   : > { %7265 = vmatprep.subr.mxu1 %v6642_v45  ;;  %7336 = vmatprep.subr.mxu0 %v6706_v49  ;;  %v6742_v45 = vld [vmem:[#allocation31 + $0xbc8] sm:$0xff]  ;;  %v6677_v49 = vld [vmem:[#allocation31 + $0x9c0] sm:$0xff] }
 0x82a   : > { %7266 = vmatpush1.msra.mxu1 %v6641_v3  ;;  %7337 = vmatpush1.msra.mxu0 %v6705_v14  ;;  %v6741_v3 = vld [vmem:[#allocation31 + $0xbc0] sm:$0xff]  ;;  %v6676_v14 = vld [vmem:[#allocation31 + $0x9b8] sm:$0xff] }
 0x82b   : > { %7267 = vmatprep.subr.mxu1 %v6640_v33  ;;  %7338 = vmatprep.subr.mxu0 %v6704_v28  ;;  %v6740_v33 = vld [vmem:[#allocation31 + $0xbb8] sm:$0xff]  ;;  %v6675_v28 = vld [vmem:[#allocation31 + $0x9b0] sm:$0xff] }
 0x82c   : > { %7268 = vmatpush1.msra.mxu1 %v6639_v46  ;;  %7339 = vmatpush1.msra.mxu0 %v6703_v6  ;;  %v6739_v46 = vld [vmem:[#allocation31 + $0xbb0] sm:$0xff]  ;;  %v6674_v6 = vld [vmem:[#allocation31 + $0x9a8] sm:$0xff] }
 0x82d   : > { %7269 = vmatprep.subr.mxu1 %v6638_v5  ;;  %7340 = vmatprep.subr.mxu0 %v6702_v39  ;;  %v6738_v5 = vld [vmem:[#allocation31 + $0xba8] sm:$0xff]  ;;  %v6673_v39 = vld [vmem:[#allocation31 + $0x9a0] sm:$0xff] }
 0x82e   : > { %7270 = vmatpush1.msra.mxu1 %v6637_v21  ;;  %7341 = vmatpush1.msra.mxu0 %v6701_v31  ;;  %v6737_v21 = vld [vmem:[#allocation31 + $0xba0] sm:$0xff]  ;;  %v6672_v31 = vld [vmem:[#allocation31 + $0x998] sm:$0xff] }
 0x82f   : > { %7271 = vmatprep.subr.mxu1 %v6636_v61  ;;  %7342 = vmatprep.subr.mxu0 %v6700_v7  ;;  %v6736_v61 = vld [vmem:[#allocation31 + $0xb98] sm:$0xff]  ;;  %v6671_v7 = vld [vmem:[#allocation31 + $0x990] sm:$0xff] }
 0x830   : > { %7272 = vmatpush1.msra.mxu1 %v6635_v16  ;;  %7343 = vmatpush1.msra.mxu0 %v6699_v37  ;;  %v6735_v16 = vld [vmem:[#allocation31 + $0xb90] sm:$0xff]  ;;  %v6670_v37 = vld [vmem:[#allocation31 + $0x988] sm:$0xff] }
 0x831   : > { %7273 = vmatprep.subr.mxu1 %v6634_v9  ;;  %7344 = vmatprep.subr.mxu0 %v6698_v63  ;;  %v6734_v9 = vld [vmem:[#allocation31 + $0xb88] sm:$0xff]  ;;  %v6669_v63 = vld [vmem:[#allocation31 + $0x980] sm:$0xff] }
 0x832   : > { %7274 = vmatpush1.msra.mxu1 %v6633_v53  ;;  %7345 = vmatpush1.msra.mxu0 %v6697_v29  ;;  %v6733_v53 = vld [vmem:[#allocation31 + $0xb80] sm:$0xff]  ;;  %v6668_v29 = vld [vmem:[#allocation31 + $0x978] sm:$0xff] }
 0x833   : > { %7275 = vmatprep.subr.mxu1 %v6632_v25  ;;  %7346 = vmatprep.subr.mxu0 %v6696_v20  ;;  %v6732_v25 = vld [vmem:[#allocation31 + $0xb78] sm:$0xff]  ;;  %v6667_v20 = vld [vmem:[#allocation31 + $0x970] sm:$0xff] }
 0x834   : > { %7276 = vmatpush1.msra.mxu1 %v6631_v17  ;;  %7347 = vmatpush1.msra.mxu0 %v6695_v40  ;;  %v6731_v17 = vld [vmem:[#allocation31 + $0xb70] sm:$0xff]  ;;  %v6666_v40 = vld [vmem:[#allocation31 + $0x968] sm:$0xff] }
 0x835   : > { %7277 = vmatprep.subr.mxu1 %v6630_v42  ;;  %7348 = vmatprep.subr.mxu0 %v6694_v58  ;;  %v6730_v42 = vld [vmem:[#allocation31 + $0xb68] sm:$0xff]  ;;  %v6665_v58 = vld [vmem:[#allocation31 + $0x960] sm:$0xff] }
 0x836   : > { %7278 = vmatpush1.msra.mxu1 %v6629_v22  ;;  %7349 = vmatpush1.msra.mxu0 %v6693_v38  ;;  %v6729_v22 = vld [vmem:[#allocation31 + $0xb60] sm:$0xff]  ;;  %v6664_v38 = vld [vmem:[#allocation31 + $0x958] sm:$0xff] }
 0x837   : > { %7279 = vmatprep.subr.mxu1 %v6628_v44  ;;  %7350 = vmatprep.subr.mxu0 %v6692_v34  ;;  %v6728_v44 = vld [vmem:[#allocation31 + $0xb58] sm:$0xff]  ;;  %v6663_v34 = vld [vmem:[#allocation31 + $0x950] sm:$0xff] }
 0x838   : > { %7280 = vmatpush1.msra.mxu1 %v6627_v47  ;;  %7351 = vmatpush1.msra.mxu0 %v6691_v19  ;;  %v6727_v47 = vld [vmem:[#allocation31 + $0xb50] sm:$0xff]  ;;  %v6662_v19 = vld [vmem:[#allocation31 + $0x948] sm:$0xff] }
 0x839   : > { %7281 = vmatprep.subr.mxu1 %v6626_v57  ;;  %7352 = vmatprep.subr.mxu0 %v6690_v10  ;;  %v6726_v57 = vld [vmem:[#allocation31 + $0xb48] sm:$0xff]  ;;  %v6661_v10 = vld [vmem:[#allocation31 + $0x940] sm:$0xff] }
 0x83a   : > { %7282 = vmatpush1.msra.mxu1 %v6625_v48  ;;  %7353 = vmatpush1.msra.mxu0 %v6689_v8  ;;  %v6725_v48 = vld [vmem:[#allocation31 + $0xb40] sm:$0xff]  ;;  %v6660_v8 = vld [vmem:[#allocation31 + $0x938] sm:$0xff] }
 0x83b   : > { %7283 = vmatprep.subr.mxu1 %v6624_v26  ;;  %7354 = vmatprep.subr.mxu0 %v6688_v12  ;;  %v6724_v26 = vld [vmem:[#allocation31 + $0xb38] sm:$0xff]  ;;  %v6659_v12 = vld [vmem:[#allocation31 + $0x930] sm:$0xff] }
 0x83c   : > { %7284 = vmatpush1.msra.mxu1 %v6623_v30  ;;  %7355 = vmatpush1.msra.mxu0 %v6687_v1  ;;  %v6723_v30 = vld [vmem:[#allocation31 + $0xb30] sm:$0xff]  ;;  %v6658_v1 = vld [vmem:[#allocation31 + $0x928] sm:$0xff] }
 0x83d   : > { %7285 = vmatprep.subr.mxu1 %v6622_v2  ;;  %7356 = vmatprep.subr.mxu0 %v6686_v13  ;;  %v6722_v2 = vld [vmem:[#allocation31 + $0xb28] sm:$0xff]  ;;  %v6657_v13 = vld [vmem:[#allocation31 + $0x920] sm:$0xff] }
 0x83e   : > { %7286 = vmatpush1.msra.mxu1 %v6621_v27  ;;  %7357 = vmatpush1.msra.mxu0 %v6685_v35  ;;  %v6721_v27 = vld [vmem:[#allocation31 + $0xb20] sm:$0xff]  ;;  %v6656_v35 = vld [vmem:[#allocation31 + $0x918] sm:$0xff] }
 0x83f   : > { %7287 = vmatprep.subr.mxu1 %v6684_v24  ;;  %7358 = vmatprep.subr.mxu0 %v6748_v52  ;;  %v6720_v24 = vld [vmem:[#allocation31 + $0xb18] sm:$0xff]  ;;  %v6655_v52 = vld [vmem:[#allocation31 + $0x910] sm:$0xff] }
 0x840   : > { %7288 = vmatpush2.msra.mxu1 %v6683_v0  ;;  %7359 = vmatpush2.msra.mxu0 %v6747_v55  ;;  %v6719_v0 = vld [vmem:[#allocation31 + $0xb10] sm:$0xff]  ;;  %v6654_v55 = vld [vmem:[#allocation31 + $0x908] sm:$0xff] }
 0x841   : > { %7289 = vmatprep.subr.mxu1 %v6682_v18  ;;  %7360 = vmatprep.subr.mxu0 %v6746_v60  ;;  %v6718_v18 = vld [vmem:[#allocation31 + $0xb08] sm:$0xff]  ;;  %v6653_v60 = vld [vmem:[#allocation31 + $0x900] sm:$0xff] }
 0x842   : > { %7290 = vmatpush2.msra.mxu1 %v6681_v23  ;;  %7361 = vmatpush2.msra.mxu0 %v6745_v51  ;;  %v6717_v23 = vld [vmem:[#allocation31 + $0xb00] sm:$0xff]  ;;  %v9610_v51 = vld [vmem:[#allocation8 + $0x8] sm:$0xff] }
 0x843   : > { %7291 = vmatprep.subr.mxu1 %v6680_v36  ;;  %7362 = vmatprep.subr.mxu0 %v6744_v43  ;;  %v6915_v36 = vrot.slane %v9610_v51, %v11645_v50  ;;  %v6780_v43 = vld [vmem:[#allocation31 + $0xcf8] sm:$0xff]  ;;  %v6751_v51 = vld [vmem:[#allocation31 + $0xc10] sm:$0xff] }
 0x844   : > { %7292 = vmatpush2.msra.mxu1 %v6679_v54  ;;  %7363 = vmatpush2.msra.mxu0 %v6743_v11  ;;  %v6844_v54 = vld [vmem:[#allocation31 + $0xef8] sm:$0xff]  ;;  %v6779_v11 = vld [vmem:[#allocation31 + $0xcf0] sm:$0xff] }
 0x845   : > { %7293 = vmatprep.subr.mxu1 %v6678_v32  ;;  %7364 = vmatprep.subr.mxu0 %v6742_v45  ;;  %v6843_v32 = vld [vmem:[#allocation31 + $0xef0] sm:$0xff]  ;;  %v6778_v45 = vld [vmem:[#allocation31 + $0xce8] sm:$0xff] }
 0x846   : > { %7294 = vmatpush2.msra.mxu1 %v6677_v49  ;;  %7365 = vmatpush2.msra.mxu0 %v6741_v3  ;;  %v6842_v49 = vld [vmem:[#allocation31 + $0xee8] sm:$0xff]  ;;  %v6777_v3 = vld [vmem:[#allocation31 + $0xce0] sm:$0xff] }
 0x847   : > { %7295 = vmatprep.subr.mxu1 %v6676_v14  ;;  %7366 = vmatprep.subr.mxu0 %v6740_v33  ;;  %v6841_v14 = vld [vmem:[#allocation31 + $0xee0] sm:$0xff]  ;;  %v6776_v33 = vld [vmem:[#allocation31 + $0xcd8] sm:$0xff] }
 0x848   : > { %7296 = vmatpush2.msra.mxu1 %v6675_v28  ;;  %7367 = vmatpush2.msra.mxu0 %v6739_v46  ;;  %v6840_v28 = vld [vmem:[#allocation31 + $0xed8] sm:$0xff]  ;;  %v6775_v46 = vld [vmem:[#allocation31 + $0xcd0] sm:$0xff] }
 0x849   : > { %7297 = vmatprep.subr.mxu1 %v6674_v6  ;;  %7368 = vmatprep.subr.mxu0 %v6738_v5  ;;  %v6839_v6 = vld [vmem:[#allocation31 + $0xed0] sm:$0xff]  ;;  %v6838_v5 = vld [vmem:[#allocation31 + $0xec8] sm:$0xff] }
 0x84a   : > { %7298 = vmatpush2.msra.mxu1 %v6673_v39  ;;  %7369 = vmatpush2.msra.mxu0 %v6737_v21  ;;  %v6773_v39 = vld [vmem:[#allocation31 + $0xcc0] sm:$0xff] }
 0x84b   : > { %7299 = vmatprep.subr.mxu1 %v6672_v31  ;;  %7370 = vmatprep.subr.mxu0 %v6736_v61  ;;  %v6837_v21 = vld [vmem:[#allocation31 + $0xec0] sm:$0xff]  ;;  %v6836_v31 = vld [vmem:[#allocation31 + $0xeb8] sm:$0xff]  ;;  %v6835_v61 = vld [vmem:[#allocation31 + $0xeb0] sm:$0xff] }
 0x84c   : > { %7300 = vmatpush2.msra.mxu1 %v6671_v7  ;;  %7371 = vmatpush2.msra.mxu0 %v6735_v16  ;;  %v6770_v7 = vld [vmem:[#allocation31 + $0xca8] sm:$0xff] }
 0x84d   : > { %7301 = vmatprep.subr.mxu1 %v6670_v37  ;;  %7372 = vmatprep.subr.mxu0 %v6734_v9  ;;  %v6834_v16 = vld [vmem:[#allocation31 + $0xea8] sm:$0xff]  ;;  %v6769_v37 = vld [vmem:[#allocation31 + $0xca0] sm:$0xff] }
 0x84e   : > { %7302 = vmatpush2.msra.mxu1 %v6669_v63  ;;  %7373 = vmatpush2.msra.mxu0 %v6733_v53  ;;  %v6833_v9 = vld [vmem:[#allocation31 + $0xea0] sm:$0xff]  ;;  %v6768_v63 = vld [vmem:[#allocation31 + $0xc98] sm:$0xff] }
 0x84f   : > { %7303 = vmatprep.subr.mxu1 %v6668_v29  ;;  %7374 = vmatprep.subr.mxu0 %v6732_v25  ;;  %v6832_v53 = vld [vmem:[#allocation31 + $0xe98] sm:$0xff]  ;;  %v6767_v29 = vld [vmem:[#allocation31 + $0xc90] sm:$0xff] }
 0x850   : > { %7304 = vmatpush2.msra.mxu1 %v6667_v20  ;;  %7375 = vmatpush2.msra.mxu0 %v6731_v17  ;;  %v6831_v25 = vld [vmem:[#allocation31 + $0xe90] sm:$0xff]  ;;  %v6766_v20 = vld [vmem:[#allocation31 + $0xc88] sm:$0xff] }
 0x851   : > { %7305 = vmatprep.subr.mxu1 %v6666_v40  ;;  %7376 = vmatprep.subr.mxu0 %v6730_v42  ;;  %v6830_v17 = vld [vmem:[#allocation31 + $0xe88] sm:$0xff]  ;;  %v6765_v40 = vld [vmem:[#allocation31 + $0xc80] sm:$0xff] }
 0x852   : > { %7306 = vmatpush2.msra.mxu1 %v6665_v58  ;;  %7377 = vmatpush2.msra.mxu0 %v6729_v22  ;;  %v6829_v42 = vld [vmem:[#allocation31 + $0xe80] sm:$0xff]  ;;  %v6764_v58 = vld [vmem:[#allocation31 + $0xc78] sm:$0xff] }
 0x853   : > { %7307 = vmatprep.subr.mxu1 %v6664_v38  ;;  %7378 = vmatprep.subr.mxu0 %v6728_v44  ;;  %v6828_v22 = vld [vmem:[#allocation31 + $0xe78] sm:$0xff]  ;;  %v6763_v38 = vld [vmem:[#allocation31 + $0xc70] sm:$0xff] }
 0x854   : > { %7308 = vmatpush2.msra.mxu1 %v6663_v34  ;;  %7379 = vmatpush2.msra.mxu0 %v6727_v47  ;;  %v6827_v44 = vld [vmem:[#allocation31 + $0xe70] sm:$0xff]  ;;  %v6762_v34 = vld [vmem:[#allocation31 + $0xc68] sm:$0xff] }
 0x855   : > { %7309 = vmatprep.subr.mxu1 %v6662_v19  ;;  %7380 = vmatprep.subr.mxu0 %v6726_v57  ;;  %v6826_v47 = vld [vmem:[#allocation31 + $0xe68] sm:$0xff]  ;;  %v6761_v19 = vld [vmem:[#allocation31 + $0xc60] sm:$0xff] }
 0x856   : > { %7310 = vmatpush2.msra.mxu1 %v6661_v10  ;;  %7381 = vmatpush2.msra.mxu0 %v6725_v48  ;;  %v6825_v57 = vld [vmem:[#allocation31 + $0xe60] sm:$0xff]  ;;  %v6760_v10 = vld [vmem:[#allocation31 + $0xc58] sm:$0xff] }
 0x857   : > { %7311 = vmatprep.subr.mxu1 %v6660_v8  ;;  %7382 = vmatprep.subr.mxu0 %v6724_v26  ;;  %v6824_v48 = vld [vmem:[#allocation31 + $0xe58] sm:$0xff]  ;;  %v6759_v8 = vld [vmem:[#allocation31 + $0xc50] sm:$0xff] }
 0x858   : > { %7312 = vmatpush2.msra.mxu1 %v6659_v12  ;;  %7383 = vmatpush2.msra.mxu0 %v6723_v30  ;;  %v6823_v26 = vld [vmem:[#allocation31 + $0xe50] sm:$0xff]  ;;  %v6758_v12 = vld [vmem:[#allocation31 + $0xc48] sm:$0xff] }
 0x859   : > { %7313 = vmatprep.subr.mxu1 %v6658_v1  ;;  %7384 = vmatprep.subr.mxu0 %v6722_v2  ;;  %v6822_v30 = vld [vmem:[#allocation31 + $0xe48] sm:$0xff]  ;;  %v6757_v1 = vld [vmem:[#allocation31 + $0xc40] sm:$0xff] }
 0x85a   : > { %7314 = vmatpush2.msra.mxu1 %v6657_v13  ;;  %7385 = vmatpush2.msra.mxu0 %v6721_v27  ;;  %v6821_v2 = vld [vmem:[#allocation31 + $0xe40] sm:$0xff]  ;;  %v6756_v13 = vld [vmem:[#allocation31 + $0xc38] sm:$0xff] }
 0x85b   : > { %7315 = vmatprep.subr.mxu1 %v6656_v35  ;;  %7386 = vmatprep.subr.mxu0 %v6720_v24  ;;  %v6820_v27 = vld [vmem:[#allocation31 + $0xe38] sm:$0xff]  ;;  %v6755_v35 = vld [vmem:[#allocation31 + $0xc30] sm:$0xff] }
 0x85c   : > { %7316 = vmatpush2.msra.mxu1 %v6655_v52  ;;  %7387 = vmatpush2.msra.mxu0 %v6719_v0  ;;  %v6819_v24 = vld [vmem:[#allocation31 + $0xe30] sm:$0xff]  ;;  %v6754_v52 = vld [vmem:[#allocation31 + $0xc28] sm:$0xff] }
 0x85d   : > { %7317 = vmatprep.subr.mxu1 %v6654_v55  ;;  %7388 = vmatprep.subr.mxu0 %v6718_v18  ;;  %v6818_v0 = vld [vmem:[#allocation31 + $0xe28] sm:$0xff]  ;;  %v6753_v55 = vld [vmem:[#allocation31 + $0xc20] sm:$0xff] }
 0x85e   : > { %7318 = vmatpush2.msra.mxu1 %v6653_v60  ;;  %7389 = vmatpush2.msra.mxu0 %v6717_v23  ;;  %v6817_v18 = vld [vmem:[#allocation31 + $0xe20] sm:$0xff]  ;;  %v6752_v60 = vld [vmem:[#allocation31 + $0xc18] sm:$0xff] }
 0x85f   : > { %7320 = vmatmul.mubr.f32.vlgmr.msra.gmra.mxu1 %v6915_v36  ;;  %7391 = vmatmul.mubr.f32.vlgmr.msra.gmra.mxu0 %v11706_v56  ;;  %v6774_v56 = vld [vmem:[#allocation31 + $0xcc8] sm:$0xff]  ;;  %v6816_v23 = vld [vmem:[#allocation31 + $0xe18] sm:$0xff]  ;;  %v6815_v36 = vld [vmem:[#allocation31 + $0xe10] sm:$0xff] }
 0x860   : > { %7397 = vmatprep.subr.mxu1 %v6780_v43  ;;  %7468 = vmatprep.subr.mxu0 %v6844_v54  ;;  %v6750_v43 = vld [vmem:[#allocation31 + $0xc08] sm:$0xff] }
 0x861   : > { %7398 = vmatpush1.msra.mxu1 %v6779_v11  ;;  %7461 = vmatprep.mubr.f32.mxu1 %v11709_v59  ;;  %v6772_v59 = vld [vmem:[#allocation31 + $0xcb8] sm:$0xff]  ;;  %v6814_v54 = vld [vmem:[#allocation31 + $0xe08] sm:$0xff]  ;;  %v6749_v11 = vld [vmem:[#allocation31 + $0xc00] sm:$0xff] }
 0x862   : > { %7469 = vmatpush1.msra.mxu0 %v6843_v32  ;;  %7532 = vmatprep.mubr.f32.mxu0 %v11712_v41  ;;  %v6771_v41 = vld [vmem:[#allocation31 + $0xcb0] sm:$0xff]  ;;  %v6813_v32 = vld [vmem:[#allocation31 + $0xe00] sm:$0xff] }
 0x863   : > { %7399 = vmatprep.subr.mxu1 %v6778_v45  ;;  %7470 = vmatprep.subr.mxu0 %v6842_v49  ;;  %v6812_v45 = vld [vmem:[#allocation31 + $0xdf8] sm:$0xff] }
 0x864   : > { %7400 = vmatpush1.msra.mxu1 %v6777_v3  ;;  %7471 = vmatpush1.msra.mxu0 %v6841_v14  ;;  %v6876_v49 = vld [vmem:[#allocation31 + $0xff8] sm:$0xff]  ;;  %v6811_v3 = vld [vmem:[#allocation31 + $0xdf0] sm:$0xff] }
 0x865   : > { %7401 = vmatprep.subr.mxu1 %v6776_v33  ;;  %7472 = vmatprep.subr.mxu0 %v6840_v28  ;;  %v6875_v14 = vld [vmem:[#allocation31 + $0xff0] sm:$0xff]  ;;  %v6810_v33 = vld [vmem:[#allocation31 + $0xde8] sm:$0xff] }
 0x866   : > { %7402 = vmatpush1.msra.mxu1 %v6775_v46  ;;  %7473 = vmatpush1.msra.mxu0 %v6839_v6  ;;  %v6874_v28 = vld [vmem:[#allocation31 + $0xfe8] sm:$0xff]  ;;  %v6809_v46 = vld [vmem:[#allocation31 + $0xde0] sm:$0xff] }
 0x867   : > { %7403 = vmatprep.subr.mxu1 %v6774_v56  ;;  %7474 = vmatprep.subr.mxu0 %v6838_v5  ;;  %v6873_v6 = vld [vmem:[#allocation31 + $0xfe0] sm:$0xff]  ;;  %v6808_v56 = vld [vmem:[#allocation31 + $0xdd8] sm:$0xff] }
 0x868   : > { %7404 = vmatpush1.msra.mxu1 %v6773_v39  ;;  %7475 = vmatpush1.msra.mxu0 %v6837_v21  ;;  %v6872_v5 = vld [vmem:[#allocation31 + $0xfd8] sm:$0xff]  ;;  %v6807_v39 = vld [vmem:[#allocation31 + $0xdd0] sm:$0xff] }
 0x869   : > { %7405 = vmatprep.subr.mxu1 %v6772_v59  ;;  %7476 = vmatprep.subr.mxu0 %v6836_v31  ;;  %v6871_v21 = vld [vmem:[#allocation31 + $0xfd0] sm:$0xff]  ;;  %v6806_v59 = vld [vmem:[#allocation31 + $0xdc8] sm:$0xff] }
 0x86a   : > { %7406 = vmatpush1.msra.mxu1 %v6771_v41  ;;  %7477 = vmatpush1.msra.mxu0 %v6835_v61  ;;  %v6870_v31 = vld [vmem:[#allocation31 + $0xfc8] sm:$0xff]  ;;  %v6805_v41 = vld [vmem:[#allocation31 + $0xdc0] sm:$0xff] }
 0x86b   : > { %7407 = vmatprep.subr.mxu1 %v6770_v7  ;;  %7478 = vmatprep.subr.mxu0 %v6834_v16  ;;  %v6869_v61 = vld [vmem:[#allocation31 + $0xfc0] sm:$0xff]  ;;  %v6804_v7 = vld [vmem:[#allocation31 + $0xdb8] sm:$0xff] }
 0x86c   : > { %7408 = vmatpush1.msra.mxu1 %v6769_v37  ;;  %7479 = vmatpush1.msra.mxu0 %v6833_v9  ;;  %v6868_v16 = vld [vmem:[#allocation31 + $0xfb8] sm:$0xff]  ;;  %v6803_v37 = vld [vmem:[#allocation31 + $0xdb0] sm:$0xff] }
 0x86d   : > { %7409 = vmatprep.subr.mxu1 %v6768_v63  ;;  %7480 = vmatprep.subr.mxu0 %v6832_v53  ;;  %v6867_v9 = vld [vmem:[#allocation31 + $0xfb0] sm:$0xff]  ;;  %v6802_v63 = vld [vmem:[#allocation31 + $0xda8] sm:$0xff] }
 0x86e   : > { %7410 = vmatpush1.msra.mxu1 %v6767_v29  ;;  %7481 = vmatpush1.msra.mxu0 %v6831_v25  ;;  %v6866_v53 = vld [vmem:[#allocation31 + $0xfa8] sm:$0xff]  ;;  %v6801_v29 = vld [vmem:[#allocation31 + $0xda0] sm:$0xff] }
 0x86f   : > { %7411 = vmatprep.subr.mxu1 %v6766_v20  ;;  %7482 = vmatprep.subr.mxu0 %v6830_v17  ;;  %v6865_v25 = vld [vmem:[#allocation31 + $0xfa0] sm:$0xff]  ;;  %v6800_v20 = vld [vmem:[#allocation31 + $0xd98] sm:$0xff] }
 0x870   : > { %7412 = vmatpush1.msra.mxu1 %v6765_v40  ;;  %7483 = vmatpush1.msra.mxu0 %v6829_v42  ;;  %v6864_v17 = vld [vmem:[#allocation31 + $0xf98] sm:$0xff]  ;;  %v6799_v40 = vld [vmem:[#allocation31 + $0xd90] sm:$0xff] }
 0x871   : > { %7413 = vmatprep.subr.mxu1 %v6764_v58  ;;  %7484 = vmatprep.subr.mxu0 %v6828_v22  ;;  %v6863_v42 = vld [vmem:[#allocation31 + $0xf90] sm:$0xff]  ;;  %v6798_v58 = vld [vmem:[#allocation31 + $0xd88] sm:$0xff] }
 0x872   : > { %7414 = vmatpush1.msra.mxu1 %v6763_v38  ;;  %7485 = vmatpush1.msra.mxu0 %v6827_v44  ;;  %v6862_v22 = vld [vmem:[#allocation31 + $0xf88] sm:$0xff]  ;;  %v6797_v38 = vld [vmem:[#allocation31 + $0xd80] sm:$0xff] }
 0x873   : > { %7415 = vmatprep.subr.mxu1 %v6762_v34  ;;  %7486 = vmatprep.subr.mxu0 %v6826_v47  ;;  %v6861_v44 = vld [vmem:[#allocation31 + $0xf80] sm:$0xff]  ;;  %v6796_v34 = vld [vmem:[#allocation31 + $0xd78] sm:$0xff] }
 0x874   : > { %7416 = vmatpush1.msra.mxu1 %v6761_v19  ;;  %7487 = vmatpush1.msra.mxu0 %v6825_v57  ;;  %v6860_v47 = vld [vmem:[#allocation31 + $0xf78] sm:$0xff]  ;;  %v6795_v19 = vld [vmem:[#allocation31 + $0xd70] sm:$0xff] }
 0x875   : > { %7417 = vmatprep.subr.mxu1 %v6760_v10  ;;  %7488 = vmatprep.subr.mxu0 %v6824_v48  ;;  %v6859_v57 = vld [vmem:[#allocation31 + $0xf70] sm:$0xff]  ;;  %v6794_v10 = vld [vmem:[#allocation31 + $0xd68] sm:$0xff] }
 0x876   : > { %7418 = vmatpush1.msra.mxu1 %v6759_v8  ;;  %7489 = vmatpush1.msra.mxu0 %v6823_v26  ;;  %v6858_v48 = vld [vmem:[#allocation31 + $0xf68] sm:$0xff]  ;;  %v6793_v8 = vld [vmem:[#allocation31 + $0xd60] sm:$0xff] }
 0x877   : > { %7419 = vmatprep.subr.mxu1 %v6758_v12  ;;  %7490 = vmatprep.subr.mxu0 %v6822_v30  ;;  %v6857_v26 = vld [vmem:[#allocation31 + $0xf60] sm:$0xff]  ;;  %v6792_v12 = vld [vmem:[#allocation31 + $0xd58] sm:$0xff] }
 0x878   : > { %7420 = vmatpush1.msra.mxu1 %v6757_v1  ;;  %7491 = vmatpush1.msra.mxu0 %v6821_v2  ;;  %v6856_v30 = vld [vmem:[#allocation31 + $0xf58] sm:$0xff]  ;;  %v6791_v1 = vld [vmem:[#allocation31 + $0xd50] sm:$0xff] }
 0x879   : > { %7421 = vmatprep.subr.mxu1 %v6756_v13  ;;  %7492 = vmatprep.subr.mxu0 %v6820_v27  ;;  %v6855_v2 = vld [vmem:[#allocation31 + $0xf50] sm:$0xff]  ;;  %v6790_v13 = vld [vmem:[#allocation31 + $0xd48] sm:$0xff] }
 0x87a   : > { %7422 = vmatpush1.msra.mxu1 %v6755_v35  ;;  %7493 = vmatpush1.msra.mxu0 %v6819_v24  ;;  %v6854_v27 = vld [vmem:[#allocation31 + $0xf48] sm:$0xff]  ;;  %v6789_v35 = vld [vmem:[#allocation31 + $0xd40] sm:$0xff] }
 0x87b   : > { %7423 = vmatprep.subr.mxu1 %v6754_v52  ;;  %7494 = vmatprep.subr.mxu0 %v6818_v0  ;;  %v6853_v24 = vld [vmem:[#allocation31 + $0xf40] sm:$0xff]  ;;  %v6788_v52 = vld [vmem:[#allocation31 + $0xd38] sm:$0xff] }
 0x87c   : > { %7424 = vmatpush1.msra.mxu1 %v6753_v55  ;;  %7495 = vmatpush1.msra.mxu0 %v6817_v18  ;;  %v6852_v0 = vld [vmem:[#allocation31 + $0xf38] sm:$0xff]  ;;  %v6787_v55 = vld [vmem:[#allocation31 + $0xd30] sm:$0xff] }
 0x87d   : > { %7425 = vmatprep.subr.mxu1 %v6752_v60  ;;  %7496 = vmatprep.subr.mxu0 %v6816_v23  ;;  %v6851_v18 = vld [vmem:[#allocation31 + $0xf30] sm:$0xff]  ;;  %v6786_v60 = vld [vmem:[#allocation31 + $0xd28] sm:$0xff] }
 0x87e   : > { %7426 = vmatpush1.msra.mxu1 %v6751_v51  ;;  %7497 = vmatpush1.msra.mxu0 %v6815_v36  ;;  %v6850_v23 = vld [vmem:[#allocation31 + $0xf28] sm:$0xff]  ;;  %v6785_v51 = vld [vmem:[#allocation31 + $0xd20] sm:$0xff] }
 0x87f   : > { %7427 = vmatprep.subr.mxu1 %v6750_v43  ;;  %7498 = vmatprep.subr.mxu0 %v6814_v54  ;;  %v6849_v36 = vld [vmem:[#allocation31 + $0xf20] sm:$0xff]  ;;  %v6784_v43 = vld [vmem:[#allocation31 + $0xd18] sm:$0xff] }
 0x880   : > { %7428 = vmatpush1.msra.mxu1 %v6749_v11  ;;  %7499 = vmatpush1.msra.mxu0 %v6813_v32  ;;  %v6848_v54 = vld [vmem:[#allocation31 + $0xf18] sm:$0xff]  ;;  %v6783_v11 = vld [vmem:[#allocation31 + $0xd10] sm:$0xff] }
 0x881   : > { %7429 = vmatprep.subr.mxu1 %v6812_v45  ;;  %7500 = vmatprep.subr.mxu0 %v6876_v49  ;;  %v6847_v32 = vld [vmem:[#allocation31 + $0xf10] sm:$0xff]  ;;  %v6782_v45 = vld [vmem:[#allocation31 + $0xd08] sm:$0xff] }
 0x882   : > { %7430 = vmatpush2.msra.mxu1 %v6811_v3  ;;  %7501 = vmatpush2.msra.mxu0 %v6875_v14  ;;  %v6846_v49 = vld [vmem:[#allocation31 + $0xf08] sm:$0xff]  ;;  %v6781_v3 = vld [vmem:[#allocation31 + $0xd00] sm:$0xff] }
 0x883   : > { %7431 = vmatprep.subr.mxu1 %v6810_v33  ;;  %7502 = vmatprep.subr.mxu0 %v6874_v28  ;;  %v6845_v14 = vld [vmem:[#allocation31 + $0xf00] sm:$0xff]  ;;  %v7572_v33 = vld [vmem:[%s11856_s18 + $0xf8] sm:$0xff] }
 0x884   : > { %7432 = vmatpush2.msra.mxu1 %v6809_v46  ;;  %7503 = vmatpush2.msra.mxu0 %v6873_v6  ;;  %v7556_v28 = vld [vmem:[%s11856_s18 + $0x78] sm:$0xff]  ;;  %v7571_v46 = vld [vmem:[%s11856_s18 + $0xf0] sm:$0xff] }
 0x885   : > { %7433 = vmatprep.subr.mxu1 %v6808_v56  ;;  %7504 = vmatprep.subr.mxu0 %v6872_v5  ;;  %v7555_v6 = vld [vmem:[%s11856_s18 + $0x70] sm:$0xff]  ;;  %v7569_v56 = vld [vmem:[%s11856_s18 + $0xe0] sm:$0xff] }
 0x886   : > { %7434 = vmatpush2.msra.mxu1 %v6807_v39  ;;  %7505 = vmatpush2.msra.mxu0 %v6871_v21  ;;  %v7553_v5 = vld [vmem:[%s11856_s18 + $0x60] sm:$0xff]  ;;  %v7568_v39 = vld [vmem:[%s11856_s18 + $0xd8] sm:$0xff] }
 0x887   : > { %7435 = vmatprep.subr.mxu1 %v6806_v59  ;;  %7506 = vmatprep.subr.mxu0 %v6870_v31  ;;  %v7552_v21 = vld [vmem:[%s11856_s18 + $0x58] sm:$0xff]  ;;  %v7567_v59 = vld [vmem:[%s11856_s18 + $0xd0] sm:$0xff] }
 0x888   : > { %7436 = vmatpush2.msra.mxu1 %v6805_v41  ;;  %7507 = vmatpush2.msra.mxu0 %v6869_v61  ;;  %v7551_v31 = vld [vmem:[%s11856_s18 + $0x50] sm:$0xff]  ;;  %v7566_v41 = vld [vmem:[%s11856_s18 + $0xc8] sm:$0xff] }
 0x889   : > { %7437 = vmatprep.subr.mxu1 %v6804_v7  ;;  %7508 = vmatprep.subr.mxu0 %v6868_v16  ;;  %v7550_v61 = vld [vmem:[%s11856_s18 + $0x48] sm:$0xff]  ;;  %v7565_v7 = vld [vmem:[%s11856_s18 + $0xc0] sm:$0xff] }
 0x88a   : > { %7438 = vmatpush2.msra.mxu1 %v6803_v37  ;;  %7509 = vmatpush2.msra.mxu0 %v6867_v9  ;;  %v7549_v16 = vld [vmem:[%s11856_s18 + $0x40] sm:$0xff]  ;;  %v7564_v37 = vld [vmem:[%s11856_s18 + $0xb8] sm:$0xff] }
 0x88b   : > { %7439 = vmatprep.subr.mxu1 %v6802_v63  ;;  %7510 = vmatprep.subr.mxu0 %v6866_v53  ;;  %v7548_v9 = vld [vmem:[%s11856_s18 + $0x38] sm:$0xff]  ;;  %v7563_v63 = vld [vmem:[%s11856_s18 + $0xb0] sm:$0xff] }
 0x88c   : > { %7440 = vmatpush2.msra.mxu1 %v6801_v29  ;;  %7511 = vmatpush2.msra.mxu0 %v6865_v25  ;;  %v7547_v53 = vld [vmem:[%s11856_s18 + $0x30] sm:$0xff]  ;;  %v7562_v29 = vld [vmem:[%s11856_s18 + $0xa8] sm:$0xff] }
 0x88d   : > { %7441 = vmatprep.subr.mxu1 %v6800_v20  ;;  %7512 = vmatprep.subr.mxu0 %v6864_v17  ;;  %v7546_v25 = vld [vmem:[%s11856_s18 + $0x28] sm:$0xff]  ;;  %v7561_v20 = vld [vmem:[%s11856_s18 + $0xa0] sm:$0xff] }
 0x88e   : > { %7442 = vmatpush2.msra.mxu1 %v6799_v40  ;;  %7513 = vmatpush2.msra.mxu0 %v6863_v42  ;;  %v7545_v17 = vld [vmem:[%s11856_s18 + $0x20] sm:$0xff]  ;;  %v7560_v40 = vld [vmem:[%s11856_s18 + $0x98] sm:$0xff] }
 0x88f   : > { %7443 = vmatprep.subr.mxu1 %v6798_v58  ;;  %7514 = vmatprep.subr.mxu0 %v6862_v22  ;;  %v7544_v42 = vld [vmem:[%s11856_s18 + $0x18] sm:$0xff]  ;;  %v7559_v58 = vld [vmem:[%s11856_s18 + $0x90] sm:$0xff] }
 0x890   : > { %7444 = vmatpush2.msra.mxu1 %v6797_v38  ;;  %7515 = vmatpush2.msra.mxu0 %v6861_v44  ;;  %v7543_v22 = vld [vmem:[%s11856_s18 + $0x10] sm:$0xff]  ;;  %v7558_v38 = vld [vmem:[%s11856_s18 + $0x88] sm:$0xff] }
 0x891   : > { %7445 = vmatprep.subr.mxu1 %v6796_v34  ;;  %7516 = vmatprep.subr.mxu0 %v6860_v47  ;;  %v7542_v44 = vld [vmem:[%s11856_s18 + $0x8] sm:$0xff]  ;;  %v7557_v34 = vld [vmem:[%s11856_s18 + $0x80] sm:$0xff] }
 0x892   : > { %7446 = vmatpush2.msra.mxu1 %v6795_v19  ;;  %7517 = vmatpush2.msra.mxu0 %v6859_v57  ;;  %v7541_v47 = vld [vmem:[%s11856_s18] sm:$0xff]  ;;  %v6877_v19 = vld [vmem:[#allocation33] sm:$0x3] }
 0x893   : > { %7447 = vmatprep.subr.mxu1 %v6794_v10  ;;  %7518 = vmatprep.subr.mxu0 %v6858_v48  ;;  %v6964_v10 = vrot.slane %v6877_v19, %v11645_v50  ;;  %v6968_v48 = vrot.slane %v6877_v19, %v11687_v15 }
 0x894   : > { %7448 = vmatpush2.msra.mxu1 %v6793_v8  ;;  %7519 = vmatpush2.msra.mxu0 %v6857_v26 }
 0x895   : > { %7449 = vmatprep.subr.mxu1 %v6792_v12  ;;  %7520 = vmatprep.subr.mxu0 %v6856_v30 }
 0x896   : > { %7450 = vmatpush2.msra.mxu1 %v6791_v1  ;;  %7521 = vmatpush2.msra.mxu0 %v6855_v2 }
 0x897   : > { %7451 = vmatprep.subr.mxu1 %v6790_v13  ;;  %7522 = vmatprep.subr.mxu0 %v6854_v27 }
 0x898   : > { %7452 = vmatpush2.msra.mxu1 %v6789_v35  ;;  %7523 = vmatpush2.msra.mxu0 %v6853_v24 }
 0x899   : > { %7453 = vmatprep.subr.mxu1 %v6788_v52  ;;  %7524 = vmatprep.subr.mxu0 %v6852_v0 }
 0x89a   : > { %7454 = vmatpush2.msra.mxu1 %v6787_v55  ;;  %7525 = vmatpush2.msra.mxu0 %v6851_v18 }
 0x89b   : > { %7455 = vmatprep.subr.mxu1 %v6786_v60  ;;  %7526 = vmatprep.subr.mxu0 %v6850_v23 }
 0x89c   : > { %7456 = vmatpush2.msra.mxu1 %v6785_v51  ;;  %7527 = vmatpush2.msra.mxu0 %v6849_v36  ;;  %v7037_v57 = vpop.f32.mrf.mxu1  ;;  %v7108_v8 = vpop.f32.mrf.mxu0 }
 0x89d   : > { %7457 = vmatprep.subr.mxu1 %v6784_v43  ;;  %7528 = vmatprep.subr.mxu0 %v6848_v54  ;;  %v7038_v12 = vadd.f32 %v7037_v57, %v6964_v10 }
 0x89e   : > { %7458 = vmatpush2.msra.mxu1 %v6783_v11  ;;  %7529 = vmatpush2.msra.mxu0 %v6847_v32  ;;  %v7039_v26 = vpop.f32.mrf.mxu1  ;;  %v7110_v2 = vpop.f32.mrf.mxu0 }
 0x89f   : > { %7459 = vmatprep.subr.mxu1 %v6782_v45  ;;  %7530 = vmatprep.subr.mxu0 %v6846_v49  ;;  %v7040_v1 = vadd.f32 %v7039_v26, %v6968_v48  ;;  %v7109_v13 = vadd.f32 %v7108_v8, %v7038_v12 }
 0x8a0   : > { %7460 = vmatpush2.msra.mxu1 %v6781_v3  ;;  %7531 = vmatpush2.msra.mxu0 %v6845_v14 }
 0x8a1   : > { %7462 = vmatmul.mubr.f32.vlgmr.msra.gmra.mxu1 %v11715_v62  ;;  %7533 = vmatmul.mubr.f32.vlgmr.msra.gmra.mxu0 %v11718_v4  ;;  %v7570_v62 = vld [vmem:[%s11856_s18 + $0xe8] sm:$0xff]  ;;  %v7111_v24 = vadd.f32 %v7110_v2, %v7040_v1 }
 0x8a2   : > { %8653 = vmatprep.subr.mxu1 %v7572_v33  ;;  %v7554_v4 = vld [vmem:[%s11856_s18 + $0x68] sm:$0xff] }
 0x8a3   : > { %8654 = vmatpush3.msra.mxu1 %v7556_v28 }
 0x8a4   : > { %8655 = vmatprep.subr.mxu1 %v7571_v46 }
 0x8a5   : > { %8656 = vmatpush3.msra.mxu1 %v7555_v6 }
 0x8a6   : > { %8657 = vmatprep.subr.mxu1 %v7570_v62 }
 0x8a7   : > { %8658 = vmatpush3.msra.mxu1 %v7554_v4 }
 0x8a8   : > { %8659 = vmatprep.subr.mxu1 %v7569_v56  ;;  %v7573_v56 = vld [vmem:[#allocation10] sm:$0x1] }
 0x8a9   : > { %8660 = vmatpush3.msra.mxu1 %v7553_v5 }
 0x8aa   : > { %8661 = vmatprep.subr.mxu1 %v7568_v39 }
 0x8ab   : > { %8662 = vmatpush3.msra.mxu1 %v7552_v21 }
 0x8ac   : > { %8663 = vmatprep.subr.mxu1 %v7567_v59 }
 0x8ad   : > { %8664 = vmatpush3.msra.mxu1 %v7551_v31 }
 0x8ae   : > { %8665 = vmatprep.subr.mxu1 %v7566_v41 }
 0x8af   : > { %8666 = vmatpush3.msra.mxu1 %v7550_v61 }
 0x8b0   : > { %8667 = vmatprep.subr.mxu1 %v7565_v7 }
 0x8b1   : > { %8668 = vmatpush3.msra.mxu1 %v7549_v16 }
 0x8b2   : > { %8669 = vmatprep.subr.mxu1 %v7564_v37 }
 0x8b3   : > { %8670 = vmatpush3.msra.mxu1 %v7548_v9 }
 0x8b4   : > { %8671 = vmatprep.subr.mxu1 %v7563_v63 }
 0x8b5   : > { %8672 = vmatpush3.msra.mxu1 %v7547_v53 }
 0x8b6   : > { %8673 = vmatprep.subr.mxu1 %v7562_v29 }
 0x8b7   : > { %8674 = vmatpush3.msra.mxu1 %v7546_v25 }
 0x8b8   : > { %8675 = vmatprep.subr.mxu1 %v7561_v20 }
 0x8b9   : > { %8676 = vmatpush3.msra.mxu1 %v7545_v17 }
 0x8ba   : > { %8677 = vmatprep.subr.mxu1 %v7560_v40 }
 0x8bb   : > { %8678 = vmatpush3.msra.mxu1 %v7544_v42 }
 0x8bc   : > { %8679 = vmatprep.subr.mxu1 %v7559_v58 }
 0x8bd   : > { %8680 = vmatpush3.msra.mxu1 %v7543_v22 }
 0x8be   : > { %8681 = vmatprep.subr.mxu1 %v7558_v38 }
 0x8bf   : > { %8682 = vmatpush3.msra.mxu1 %v7542_v44 }
 0x8c0   : > { %8683 = vmatprep.subr.mxu1 %v7557_v34 }
 0x8c1   : > { %8684 = vmatpush3.msra.mxu1 %v7541_v47 }
 0x8dd   : > { %v7179_v30 = vpop.f32.mrf.mxu1  ;;  %v7250_v27 = vpop.f32.mrf.mxu0 }
 0x8de   : > { %v7180_v52 = vadd.f32 %v7179_v30, %v7109_v13 }
 0x8df   : > { %v7181_v35 = vpop.f32.mrf.mxu1  ;;  %v7252_v18 = vpop.f32.mrf.mxu0 }
 0x8e0   : > { %v7182_v55 = vadd.f32 %v7181_v35, %v7111_v24  ;;  %v7251_v60 = vadd.f32 %v7250_v27, %v7180_v52 }
 0x8e2   : > { %v7253_v50 = vadd.f32 %v7252_v18, %v7182_v55 }
 0x91f   : > { %v7321_v0 = vpop.f32.mrf.mxu1  ;;  %v7392_v23 = vpop.f32.mrf.mxu0 }
 0x920   : > { %v7322_v36 = vadd.f32 %v7321_v0, %v7251_v60 }
 0x921   : > { %v7323_v51 = vpop.f32.mrf.mxu1  ;;  %v7394_v43 = vpop.f32.mrf.mxu0 }
 0x922   : > { %v7324_v15 = vadd.f32 %v7323_v51, %v7253_v50  ;;  %v7393_v54 = vadd.f32 %v7392_v23, %v7322_v36 }
 0x924   : > { %v7395_v45 = vadd.f32 %v7394_v43, %v7324_v15 }
 0x961   : > { %v7463_v11 = vpop.f32.mrf.mxu1  ;;  %v7534_v32 = vpop.f32.mrf.mxu0 }
 0x962   : > { %v7464_v49 = vadd.f32 %v7463_v11, %v7393_v54 }
 0x963   : > { %v7465_v3 = vpop.f32.mrf.mxu1  ;;  %v7536_v28 = vpop.f32.mrf.mxu0 }
 0x964   : > { %v7466_v14 = vadd.f32 %v7465_v3, %v7395_v45  ;;  %v7535_v33 = vadd.f32 %v7534_v32, %v7464_v49 }
 0x966   : > { %v7537_v46 = vadd.f32 %v7536_v28, %v7466_v14  ;;  %v7539_v62 = vmax.f32 %v7535_v33, 0.0 }
 0x968   : > { %v7540_v6 = vmax.f32 %v7537_v46, 0.0 }
 0x96a   : > { %7638 = vmatprep.mubr.f32.mxu1 %v7540_v6 }
 0x96b   : > { %7639 = vmatmul.mubr.f32.vlgmr.msra.gmra.mxu1 %v7539_v62 }
 0xa2b   : > { %v8685_v4 = vpop.f32.mrf.mxu1 }
 0xa2d   : > { %v8686_v5 = vpop.f32.mrf.mxu1 }
 0xa2e   : > { %v8687_v39 = vadd.f32 %v8686_v5, %v8685_v4 }
 0xa30   : > { %v7641_v21 = vadd.f32 %v8687_v39, %v7573_v56 }
 0xa32   : > { %v8207_v59 = vmul.f32 -1.442695, %v7641_v21 }
 0xa34   : > { %9606 = vpow2.f32 %v8207_v59 }
 0xa41   : > { %v9607_v31 = vpop.eup %9606 }
 0xa42   : > { %v7647_v41 = vadd.f32 1.0, %v9607_v31 }
 0xa44   : > { %9608 = vrcp.f32 %v7647_v41 }
 0xa51   : > { %v9609_v61 = vpop.eup %9608 }
 0xa52   : > { %7651 = vst.msk [vmem:[%s827_s23] sm:$0x1] %vm7650_vm8, %v9609_v61 }
 0xa53 PF: > { %s42_s2 = sadd.s32 1, %s10039_s2  }
 0xa54   : > { %p39_p11 = scmp.ge.s32.totalorder %s42_s2, 4  }
 0xa56   :  { %41 = sbr.rel (!%p39_p11) target bundleno = 14 (0xe), region = 260 }
 0xa5b   :  { %7669 = vsyncpa [#allocation12], 1 }
 0xa5c   :  { %7671 = vsyncpa [#allocation12 + $0x1], 1 }
 0xa5d   :  { %7672 = vsyncpa [#allocation14], 1 }
 0xa5e   :  { %7673 = vsyncpa [#allocation17], 1 }
 0xa5f   :  { %7674 = vsyncpa [#allocation20], 1 }
 0xa60   :  { %7675 = vsyncpa [#allocation23], 1 }
 0xa61   :  { %7676 = vsyncpa [#allocation26], 1 }
 0xa62   :  { %7677 = vsyncpa [#allocation29], 1 }
 0xa63   :  { %7678 = vsyncpa [#allocation32], 1 }

</bundles_post_ra>
